<compile_context>
chip_gen: v6e
topology: v6e:2x2x1
jax: 0.10.0
libtpu: 0.0.40
codegen_flags: <defaults>
</compile_context>

<pallas_src>
import functools

import jax
import jax.numpy as jnp
from jax.experimental import pallas as pl
from jax.experimental.pallas import tpu as pltpu


def _layernorm(x, gamma, beta, eps=1e-5):
    mu = jnp.mean(x, axis=-1, keepdims=True)
    xc = x - mu
    var = jnp.mean(xc * xc, axis=-1, keepdims=True)
    return xc * jax.lax.rsqrt(var + eps) * gamma + beta


def _encoder_block_kernel(
    x_ref,
    wqkv_ref, bqkv_ref,
    wo_ref, bo_ref,
    ln_g_ref, ln_b_ref,
    w1_ref, b1_ref, w2_ref, b2_ref,
    o_ref,
    *, num_heads,
):
    B, S, D = x_ref.shape
    M = B * S
    dh = D // num_heads
    scale = 1.0 / jnp.sqrt(jnp.float32(dh))

    x = x_ref[...].reshape(M, D)            # (B*S, D) fp32 activations
    xb = x.astype(jnp.bfloat16)

    # --- fused Q/K/V projection: one (M, D) x (D, 3D) MXU matmul ---
    qkv = jnp.dot(xb, wqkv_ref[...], preferred_element_type=jnp.float32) + bqkv_ref[...]
    q = qkv[:, :D]            # lane-aligned (multiples of 128) slices
    k = qkv[:, D:2 * D]
    v = qkv[:, 2 * D:]

    # --- multi-head attention ---
    # Short static loop over heads; batch dim handled by batched einsums.
    # Each head's context is accumulated straight into the Wo product
    # (no jnp.concatenate / relayout).
    attn = None
    for i in range(num_heads):
        lo = i * dh
        qh = q[:, lo:lo + dh].reshape(B, S, dh).astype(jnp.bfloat16)
        kh = k[:, lo:lo + dh].reshape(B, S, dh).astype(jnp.bfloat16)
        vh = v[:, lo:lo + dh].reshape(B, S, dh).astype(jnp.bfloat16)

        s = jnp.einsum("bqd,bkd->bqk", qh, kh,
                       preferred_element_type=jnp.float32) * scale     # (B,S,S) fp32
        s = s - jnp.max(s, axis=-1, keepdims=True)
        p = jnp.exp(s)
        p = p * pl.reciprocal(jnp.sum(p, axis=-1, keepdims=True), approx=True)

        ctx = jnp.einsum("bqk,bkd->bqd", p.astype(jnp.bfloat16), vh,
                         preferred_element_type=jnp.float32)            # (B,S,dh)
        contrib = jnp.dot(ctx.reshape(M, dh).astype(jnp.bfloat16),
                          wo_ref[pl.ds(lo, dh), :],
                          preferred_element_type=jnp.float32)           # (M, D)
        attn = contrib if attn is None else attn + contrib
    attn = attn + bo_ref[...]

    gamma = ln_g_ref[...]
    beta = ln_b_ref[...]

    # --- Add & Norm (first sublayer), fp32 ---
    y1 = _layernorm(x + attn, gamma, beta)

    # --- FeedForward: Linear -> ReLU -> Linear (bf16 matmuls, fp32 accumulate) ---
    h1 = jnp.dot(y1.astype(jnp.bfloat16), w1_ref[...],
                 preferred_element_type=jnp.float32) + b1_ref[...]
    h1 = jnp.maximum(h1, 0.0)
    ff = jnp.dot(h1.astype(jnp.bfloat16), w2_ref[...],
                 preferred_element_type=jnp.float32) + b2_ref[...]

    # --- Add & Norm (second sublayer, same LayerNorm parameters) ---
    o_ref[...] = _layernorm(y1 + ff, gamma, beta).reshape(B, S, D)


def encoder_block_pallas(x, params, *, num_heads):
    B, S, D = x.shape
    bf16 = jnp.bfloat16

    # Fuse Q/K/V weights ([in, out] layout) and cast matmul weights to bf16.
    wqkv = jnp.concatenate(
        [params["wq"], params["wk"], params["wv"]], axis=1).astype(bf16)   # (D, 3D)
    bqkv = jnp.concatenate(
        [params["bq"], params["bk"], params["bv"]], axis=1)                # (1, 3D) fp32

    kernel = functools.partial(_encoder_block_kernel, num_heads=num_heads)

    # Grid-less call: every operand is a full-array VMEM block (~6 MiB bf16
    # weights + <1 MiB activations), loaded exactly once, single-buffered.
    return pl.pallas_call(
        kernel,
        out_shape=jax.ShapeDtypeStruct((B, S, D), jnp.float32),
        compiler_params=pltpu.CompilerParams(
            vmem_limit_bytes=32 * 1024 * 1024,   # right-sized; fits v5e/v6e/v7x
        ),
    )(
        x,
        wqkv, bqkv,
        params["wo"].astype(bf16), params["bo"],
        params["ln_g"], params["ln_b"],
        params["w1"].astype(bf16), params["b1"],
        params["w2"].astype(bf16), params["b2"],
    )


def encoder_block_ref(x, params, *, num_heads):
    """Pure-JAX fp32 reference with the PyTorch module's math."""
    def ln(z):
        mu = jnp.mean(z, axis=-1, keepdims=True)
        var = jnp.mean((z - mu) ** 2, axis=-1, keepdims=True)
        return (z - mu) / jnp.sqrt(var + 1e-5) * params["ln_g"][0] + params["ln_b"][0]

    q = x @ params["wq"] + params["bq"][0]
    k = x @ params["wk"] + params["bk"][0]
    v = x @ params["wv"] + params["bv"][0]
    B, S, D = x.shape
    dh = D // num_heads
    qh = q.reshape(B, S, num_heads, dh).transpose(0, 2, 1, 3)
    kh = k.reshape(B, S, num_heads, dh).transpose(0, 2, 1, 3)
    vh = v.reshape(B, S, num_heads, dh).transpose(0, 2, 1, 3)
    s = jnp.einsum("bhqd,bhkd->bhqk", qh, kh) / jnp.sqrt(jnp.float32(dh))
    p = jax.nn.softmax(s, axis=-1)
    a = jnp.einsum("bhqk,bhkd->bhqd", p, vh).transpose(0, 2, 1, 3).reshape(B, S, D)
    attn = a @ params["wo"] + params["bo"][0]
    y1 = ln(x + attn)
    ff = jnp.maximum(y1 @ params["w1"] + params["b1"][0], 0.0) @ params["w2"] + params["b2"][0]
    return ln(y1 + ff)


def init_params(key, d_model, d_ff):
    keys = jax.random.split(key, 12)
    scale_d = 1.0 / jnp.sqrt(jnp.float32(d_model))
    scale_f = 1.0 / jnp.sqrt(jnp.float32(d_ff))
    u = lambda k, shape, s: jax.random.uniform(k, shape, jnp.float32, -s, s)
    return {
        "wq": u(keys[0], (d_model, d_model), scale_d), "bq": u(keys[1], (1, d_model), scale_d),
        "wk": u(keys[2], (d_model, d_model), scale_d), "bk": u(keys[3], (1, d_model), scale_d),
        "wv": u(keys[4], (d_model, d_model), scale_d), "bv": u(keys[5], (1, d_model), scale_d),
        "wo": u(keys[6], (d_model, d_model), scale_d), "bo": u(keys[7], (1, d_model), scale_d),
        "ln_g": jnp.ones((1, d_model), jnp.float32),
        "ln_b": jnp.zeros((1, d_model), jnp.float32),
        "w1": u(keys[8], (d_model, d_ff), scale_d), "b1": u(keys[9], (1, d_ff), scale_d),
        "w2": u(keys[10], (d_ff, d_model), scale_f), "b2": u(keys[11], (1, d_model), scale_f),
    }


if __name__ == "__main__":
    # Shapes implied by the module: embedding_dim = d_k = d_v = 512, h = 8,
    # d_ff = 2048 (static FeedForward layer is hard-wired to d_model=512).
    B, S, D, H, D_FF = 2, 8, 512, 8, 2048

    key = jax.random.PRNGKey(0)
    k_x, k_p = jax.random.split(key)
    x = jax.random.normal(k_x, (B, S, D), jnp.float32)
    params = init_params(k_p, D, D_FF)

    out = jax.block_until_ready(encoder_block_pallas(x, params, num_heads=H))

    ref = encoder_block_ref(x, params, num_heads=H)
    assert out.shape == (B, S, D)
    # Tolerance loosened vs. the fp32 reference because matmul weights/inputs
    # are bf16 in the kernel (fp32 accumulation, fp32 LayerNorm/softmax).
    assert jnp.allclose(out, ref, atol=5e-2, rtol=5e-2), "mismatch vs reference"

    print("KERNEL_OK")
</pallas_src>

<mosaic_0001>
module attributes {stable_mosaic.version = 11 : i64} {
  func.func @_encoder_block_kernel(%arg0: memref<2x8x512xf32, #tpu.memory_space<vmem>>, %arg1: memref<512x1536xbf16, #tpu.memory_space<vmem>>, %arg2: memref<1x1536xf32, #tpu.memory_space<vmem>>, %arg3: memref<512x512xbf16, #tpu.memory_space<vmem>>, %arg4: memref<1x512xf32, #tpu.memory_space<vmem>>, %arg5: memref<1x512xf32, #tpu.memory_space<vmem>>, %arg6: memref<1x512xf32, #tpu.memory_space<vmem>>, %arg7: memref<512x2048xbf16, #tpu.memory_space<vmem>>, %arg8: memref<1x2048xf32, #tpu.memory_space<vmem>>, %arg9: memref<2048x512xbf16, #tpu.memory_space<vmem>>, %arg10: memref<1x512xf32, #tpu.memory_space<vmem>>, %arg11: memref<2x8x512xf32, #tpu.memory_space<vmem>>) attributes {dimension_semantics = [], scalar_prefetch = 0 : i64, scratch_operands = 0 : i64, tpu.core_type = #tpu.core_type<tc>} {
    %cst = arith.constant 6.400000e+01 : f32
    %0 = math.sqrt %cst : f32
    %cst_0 = arith.constant 1.000000e+00 : f32
    %1 = arith.divf %cst_0, %0 : f32
    %c0 = arith.constant 0 : index
    %c0_1 = arith.constant 0 : index
    %c0_2 = arith.constant 0 : index
    %2 = vector.load %arg0[%c0, %c0_1, %c0_2] : memref<2x8x512xf32, #tpu.memory_space<vmem>>, vector<2x8x512xf32>
    %3 = vector.shape_cast %2 : vector<2x8x512xf32> to vector<16x512xf32>
    %4 = arith.truncf %3 : vector<16x512xf32> to vector<16x512xbf16>
    %c0_3 = arith.constant 0 : index
    %c0_4 = arith.constant 0 : index
    %5 = vector.load %arg1[%c0_3, %c0_4] : memref<512x1536xbf16, #tpu.memory_space<vmem>>, vector<512x1536xbf16>
    %cst_5 = arith.constant dense<0.000000e+00> : vector<16x1536xf32>
    %6 = tpu.matmul %4, %5, %cst_5 {dimension_numbers = #tpu.dot_dimension_numbers<[1], [0], [0], [1], [0, 0, 1, 1], [], []>} : vector<16x512xbf16>, vector<512x1536xbf16>, vector<16x1536xf32> -> vector<16x1536xf32>
    %c0_6 = arith.constant 0 : index
    %c0_7 = arith.constant 0 : index
    %7 = vector.load %arg2[%c0_6, %c0_7] : memref<1x1536xf32, #tpu.memory_space<vmem>>, vector<1x1536xf32>
    %8 = vector.broadcast %7 : vector<1x1536xf32> to vector<16x1536xf32>
    %9 = arith.addf %6, %8 : vector<16x1536xf32>
    %10 = vector.extract_strided_slice %9 {offsets = [0, 0], sizes = [16, 512], strides = [1, 1]} : vector<16x1536xf32> to vector<16x512xf32>
    %11 = vector.extract_strided_slice %9 {offsets = [0, 512], sizes = [16, 512], strides = [1, 1]} : vector<16x1536xf32> to vector<16x512xf32>
    %12 = vector.extract_strided_slice %9 {offsets = [0, 1024], sizes = [16, 512], strides = [1, 1]} : vector<16x1536xf32> to vector<16x512xf32>
    %13 = vector.extract_strided_slice %10 {offsets = [0, 0], sizes = [16, 64], strides = [1, 1]} : vector<16x512xf32> to vector<16x64xf32>
    %14 = vector.shape_cast %13 : vector<16x64xf32> to vector<2x8x64xf32>
    %15 = arith.truncf %14 : vector<2x8x64xf32> to vector<2x8x64xbf16>
    %16 = vector.extract_strided_slice %11 {offsets = [0, 0], sizes = [16, 64], strides = [1, 1]} : vector<16x512xf32> to vector<16x64xf32>
    %17 = vector.shape_cast %16 : vector<16x64xf32> to vector<2x8x64xf32>
    %18 = arith.truncf %17 : vector<2x8x64xf32> to vector<2x8x64xbf16>
    %19 = vector.extract_strided_slice %12 {offsets = [0, 0], sizes = [16, 64], strides = [1, 1]} : vector<16x512xf32> to vector<16x64xf32>
    %20 = vector.shape_cast %19 : vector<16x64xf32> to vector<2x8x64xf32>
    %21 = arith.truncf %20 : vector<2x8x64xf32> to vector<2x8x64xbf16>
    "tpu.trace_start"() <{level = 10 : i32, message = "bqd,bkd->bqk"}> : () -> ()
    %cst_8 = arith.constant dense<0.000000e+00> : vector<2x8x8xf32>
    %22 = tpu.matmul %15, %18, %cst_8 {dimension_numbers = #tpu.dot_dimension_numbers<[2], [2], [1], [1], [0, 0, 0, 1, 1, 1], [0], [0]>} : vector<2x8x64xbf16>, vector<2x8x64xbf16>, vector<2x8x8xf32> -> vector<2x8x8xf32>
    "tpu.trace_stop"() : () -> ()
    %23 = vector.broadcast %1 : f32 to vector<2x8x8xf32>
    %24 = arith.mulf %22, %23 : vector<2x8x8xf32>
    %cst_9 = arith.constant dense<0xFF800000> : vector<2x8xf32>
    %25 = vector.multi_reduction <maximumf>, %24, %cst_9 [2] : vector<2x8x8xf32> to vector<2x8xf32>
    %26 = vector.shape_cast %25 : vector<2x8xf32> to vector<2x8x1xf32>
    %27 = vector.broadcast %26 : vector<2x8x1xf32> to vector<2x8x8xf32>
    %28 = arith.subf %24, %27 : vector<2x8x8xf32>
    %29 = math.exp %28 : vector<2x8x8xf32>
    %cst_10 = arith.constant dense<0.000000e+00> : vector<2x8xf32>
    %30 = vector.multi_reduction <add>, %29, %cst_10 [2] : vector<2x8x8xf32> to vector<2x8xf32>
    %31 = vector.shape_cast %30 : vector<2x8xf32> to vector<2x8x1xf32>
    %32 = tpu.reciprocal %31 {approx = true} : vector<2x8x1xf32> -> vector<2x8x1xf32>
    %33 = vector.broadcast %32 : vector<2x8x1xf32> to vector<2x8x8xf32>
    %34 = arith.mulf %29, %33 : vector<2x8x8xf32>
    %35 = arith.truncf %34 : vector<2x8x8xf32> to vector<2x8x8xbf16>
    "tpu.trace_start"() <{level = 10 : i32, message = "bqk,bkd->bqd"}> : () -> ()
    %cst_11 = arith.constant dense<0.000000e+00> : vector<2x8x64xf32>
    %36 = tpu.matmul %35, %21, %cst_11 {dimension_numbers = #tpu.dot_dimension_numbers<[2], [1], [1], [2], [0, 0, 0, 1, 1, 2], [0], [0]>} : vector<2x8x8xbf16>, vector<2x8x64xbf16>, vector<2x8x64xf32> -> vector<2x8x64xf32>
    "tpu.trace_stop"() : () -> ()
    %37 = vector.shape_cast %36 : vector<2x8x64xf32> to vector<16x64xf32>
    %38 = arith.truncf %37 : vector<16x64xf32> to vector<16x64xbf16>
    %c0_12 = arith.constant 0 : index
    %c0_13 = arith.constant 0 : index
    %39 = vector.load %arg3[%c0_12, %c0_13] : memref<512x512xbf16, #tpu.memory_space<vmem>>, vector<64x512xbf16>
    %cst_14 = arith.constant dense<0.000000e+00> : vector<16x512xf32>
    %40 = tpu.matmul %38, %39, %cst_14 {dimension_numbers = #tpu.dot_dimension_numbers<[1], [0], [0], [1], [0, 0, 1, 1], [], []>} : vector<16x64xbf16>, vector<64x512xbf16>, vector<16x512xf32> -> vector<16x512xf32>
    %41 = vector.extract_strided_slice %10 {offsets = [0, 64], sizes = [16, 64], strides = [1, 1]} : vector<16x512xf32> to vector<16x64xf32>
    %42 = vector.shape_cast %41 : vector<16x64xf32> to vector<2x8x64xf32>
    %43 = arith.truncf %42 : vector<2x8x64xf32> to vector<2x8x64xbf16>
    %44 = vector.extract_strided_slice %11 {offsets = [0, 64], sizes = [16, 64], strides = [1, 1]} : vector<16x512xf32> to vector<16x64xf32>
    %45 = vector.shape_cast %44 : vector<16x64xf32> to vector<2x8x64xf32>
    %46 = arith.truncf %45 : vector<2x8x64xf32> to vector<2x8x64xbf16>
    %47 = vector.extract_strided_slice %12 {offsets = [0, 64], sizes = [16, 64], strides = [1, 1]} : vector<16x512xf32> to vector<16x64xf32>
    %48 = vector.shape_cast %47 : vector<16x64xf32> to vector<2x8x64xf32>
    %49 = arith.truncf %48 : vector<2x8x64xf32> to vector<2x8x64xbf16>
    "tpu.trace_start"() <{level = 10 : i32, message = "bqd,bkd->bqk"}> : () -> ()
    %cst_15 = arith.constant dense<0.000000e+00> : vector<2x8x8xf32>
    %50 = tpu.matmul %43, %46, %cst_15 {dimension_numbers = #tpu.dot_dimension_numbers<[2], [2], [1], [1], [0, 0, 0, 1, 1, 1], [0], [0]>} : vector<2x8x64xbf16>, vector<2x8x64xbf16>, vector<2x8x8xf32> -> vector<2x8x8xf32>
    "tpu.trace_stop"() : () -> ()
    %51 = vector.broadcast %1 : f32 to vector<2x8x8xf32>
    %52 = arith.mulf %50, %51 : vector<2x8x8xf32>
    %cst_16 = arith.constant dense<0xFF800000> : vector<2x8xf32>
    %53 = vector.multi_reduction <maximumf>, %52, %cst_16 [2] : vector<2x8x8xf32> to vector<2x8xf32>
    %54 = vector.shape_cast %53 : vector<2x8xf32> to vector<2x8x1xf32>
    %55 = vector.broadcast %54 : vector<2x8x1xf32> to vector<2x8x8xf32>
    %56 = arith.subf %52, %55 : vector<2x8x8xf32>
    %57 = math.exp %56 : vector<2x8x8xf32>
    %cst_17 = arith.constant dense<0.000000e+00> : vector<2x8xf32>
    %58 = vector.multi_reduction <add>, %57, %cst_17 [2] : vector<2x8x8xf32> to vector<2x8xf32>
    %59 = vector.shape_cast %58 : vector<2x8xf32> to vector<2x8x1xf32>
    %60 = tpu.reciprocal %59 {approx = true} : vector<2x8x1xf32> -> vector<2x8x1xf32>
    %61 = vector.broadcast %60 : vector<2x8x1xf32> to vector<2x8x8xf32>
    %62 = arith.mulf %57, %61 : vector<2x8x8xf32>
    %63 = arith.truncf %62 : vector<2x8x8xf32> to vector<2x8x8xbf16>
    "tpu.trace_start"() <{level = 10 : i32, message = "bqk,bkd->bqd"}> : () -> ()
    %cst_18 = arith.constant dense<0.000000e+00> : vector<2x8x64xf32>
    %64 = tpu.matmul %63, %49, %cst_18 {dimension_numbers = #tpu.dot_dimension_numbers<[2], [1], [1], [2], [0, 0, 0, 1, 1, 2], [0], [0]>} : vector<2x8x8xbf16>, vector<2x8x64xbf16>, vector<2x8x64xf32> -> vector<2x8x64xf32>
    "tpu.trace_stop"() : () -> ()
    %65 = vector.shape_cast %64 : vector<2x8x64xf32> to vector<16x64xf32>
    %66 = arith.truncf %65 : vector<16x64xf32> to vector<16x64xbf16>
    %c64 = arith.constant 64 : index
    %c0_19 = arith.constant 0 : index
    %67 = vector.load %arg3[%c64, %c0_19] : memref<512x512xbf16, #tpu.memory_space<vmem>>, vector<64x512xbf16>
    %cst_20 = arith.constant dense<0.000000e+00> : vector<16x512xf32>
    %68 = tpu.matmul %66, %67, %cst_20 {dimension_numbers = #tpu.dot_dimension_numbers<[1], [0], [0], [1], [0, 0, 1, 1], [], []>} : vector<16x64xbf16>, vector<64x512xbf16>, vector<16x512xf32> -> vector<16x512xf32>
    %69 = arith.addf %40, %68 : vector<16x512xf32>
    %70 = vector.extract_strided_slice %10 {offsets = [0, 128], sizes = [16, 64], strides = [1, 1]} : vector<16x512xf32> to vector<16x64xf32>
    %71 = vector.shape_cast %70 : vector<16x64xf32> to vector<2x8x64xf32>
    %72 = arith.truncf %71 : vector<2x8x64xf32> to vector<2x8x64xbf16>
    %73 = vector.extract_strided_slice %11 {offsets = [0, 128], sizes = [16, 64], strides = [1, 1]} : vector<16x512xf32> to vector<16x64xf32>
    %74 = vector.shape_cast %73 : vector<16x64xf32> to vector<2x8x64xf32>
    %75 = arith.truncf %74 : vector<2x8x64xf32> to vector<2x8x64xbf16>
    %76 = vector.extract_strided_slice %12 {offsets = [0, 128], sizes = [16, 64], strides = [1, 1]} : vector<16x512xf32> to vector<16x64xf32>
    %77 = vector.shape_cast %76 : vector<16x64xf32> to vector<2x8x64xf32>
    %78 = arith.truncf %77 : vector<2x8x64xf32> to vector<2x8x64xbf16>
    "tpu.trace_start"() <{level = 10 : i32, message = "bqd,bkd->bqk"}> : () -> ()
    %cst_21 = arith.constant dense<0.000000e+00> : vector<2x8x8xf32>
    %79 = tpu.matmul %72, %75, %cst_21 {dimension_numbers = #tpu.dot_dimension_numbers<[2], [2], [1], [1], [0, 0, 0, 1, 1, 1], [0], [0]>} : vector<2x8x64xbf16>, vector<2x8x64xbf16>, vector<2x8x8xf32> -> vector<2x8x8xf32>
    "tpu.trace_stop"() : () -> ()
    %80 = vector.broadcast %1 : f32 to vector<2x8x8xf32>
    %81 = arith.mulf %79, %80 : vector<2x8x8xf32>
    %cst_22 = arith.constant dense<0xFF800000> : vector<2x8xf32>
    %82 = vector.multi_reduction <maximumf>, %81, %cst_22 [2] : vector<2x8x8xf32> to vector<2x8xf32>
    %83 = vector.shape_cast %82 : vector<2x8xf32> to vector<2x8x1xf32>
    %84 = vector.broadcast %83 : vector<2x8x1xf32> to vector<2x8x8xf32>
    %85 = arith.subf %81, %84 : vector<2x8x8xf32>
    %86 = math.exp %85 : vector<2x8x8xf32>
    %cst_23 = arith.constant dense<0.000000e+00> : vector<2x8xf32>
    %87 = vector.multi_reduction <add>, %86, %cst_23 [2] : vector<2x8x8xf32> to vector<2x8xf32>
    %88 = vector.shape_cast %87 : vector<2x8xf32> to vector<2x8x1xf32>
    %89 = tpu.reciprocal %88 {approx = true} : vector<2x8x1xf32> -> vector<2x8x1xf32>
    %90 = vector.broadcast %89 : vector<2x8x1xf32> to vector<2x8x8xf32>
    %91 = arith.mulf %86, %90 : vector<2x8x8xf32>
    %92 = arith.truncf %91 : vector<2x8x8xf32> to vector<2x8x8xbf16>
    "tpu.trace_start"() <{level = 10 : i32, message = "bqk,bkd->bqd"}> : () -> ()
    %cst_24 = arith.constant dense<0.000000e+00> : vector<2x8x64xf32>
    %93 = tpu.matmul %92, %78, %cst_24 {dimension_numbers = #tpu.dot_dimension_numbers<[2], [1], [1], [2], [0, 0, 0, 1, 1, 2], [0], [0]>} : vector<2x8x8xbf16>, vector<2x8x64xbf16>, vector<2x8x64xf32> -> vector<2x8x64xf32>
    "tpu.trace_stop"() : () -> ()
    %94 = vector.shape_cast %93 : vector<2x8x64xf32> to vector<16x64xf32>
    %95 = arith.truncf %94 : vector<16x64xf32> to vector<16x64xbf16>
    %c128 = arith.constant 128 : index
    %c0_25 = arith.constant 0 : index
    %96 = vector.load %arg3[%c128, %c0_25] : memref<512x512xbf16, #tpu.memory_space<vmem>>, vector<64x512xbf16>
    %cst_26 = arith.constant dense<0.000000e+00> : vector<16x512xf32>
    %97 = tpu.matmul %95, %96, %cst_26 {dimension_numbers = #tpu.dot_dimension_numbers<[1], [0], [0], [1], [0, 0, 1, 1], [], []>} : vector<16x64xbf16>, vector<64x512xbf16>, vector<16x512xf32> -> vector<16x512xf32>
    %98 = arith.addf %69, %97 : vector<16x512xf32>
    %99 = vector.extract_strided_slice %10 {offsets = [0, 192], sizes = [16, 64], strides = [1, 1]} : vector<16x512xf32> to vector<16x64xf32>
    %100 = vector.shape_cast %99 : vector<16x64xf32> to vector<2x8x64xf32>
    %101 = arith.truncf %100 : vector<2x8x64xf32> to vector<2x8x64xbf16>
    %102 = vector.extract_strided_slice %11 {offsets = [0, 192], sizes = [16, 64], strides = [1, 1]} : vector<16x512xf32> to vector<16x64xf32>
    %103 = vector.shape_cast %102 : vector<16x64xf32> to vector<2x8x64xf32>
    %104 = arith.truncf %103 : vector<2x8x64xf32> to vector<2x8x64xbf16>
    %105 = vector.extract_strided_slice %12 {offsets = [0, 192], sizes = [16, 64], strides = [1, 1]} : vector<16x512xf32> to vector<16x64xf32>
    %106 = vector.shape_cast %105 : vector<16x64xf32> to vector<2x8x64xf32>
    %107 = arith.truncf %106 : vector<2x8x64xf32> to vector<2x8x64xbf16>
    "tpu.trace_start"() <{level = 10 : i32, message = "bqd,bkd->bqk"}> : () -> ()
    %cst_27 = arith.constant dense<0.000000e+00> : vector<2x8x8xf32>
    %108 = tpu.matmul %101, %104, %cst_27 {dimension_numbers = #tpu.dot_dimension_numbers<[2], [2], [1], [1], [0, 0, 0, 1, 1, 1], [0], [0]>} : vector<2x8x64xbf16>, vector<2x8x64xbf16>, vector<2x8x8xf32> -> vector<2x8x8xf32>
    "tpu.trace_stop"() : () -> ()
    %109 = vector.broadcast %1 : f32 to vector<2x8x8xf32>
    %110 = arith.mulf %108, %109 : vector<2x8x8xf32>
    %cst_28 = arith.constant dense<0xFF800000> : vector<2x8xf32>
    %111 = vector.multi_reduction <maximumf>, %110, %cst_28 [2] : vector<2x8x8xf32> to vector<2x8xf32>
    %112 = vector.shape_cast %111 : vector<2x8xf32> to vector<2x8x1xf32>
    %113 = vector.broadcast %112 : vector<2x8x1xf32> to vector<2x8x8xf32>
    %114 = arith.subf %110, %113 : vector<2x8x8xf32>
    %115 = math.exp %114 : vector<2x8x8xf32>
    %cst_29 = arith.constant dense<0.000000e+00> : vector<2x8xf32>
    %116 = vector.multi_reduction <add>, %115, %cst_29 [2] : vector<2x8x8xf32> to vector<2x8xf32>
    %117 = vector.shape_cast %116 : vector<2x8xf32> to vector<2x8x1xf32>
    %118 = tpu.reciprocal %117 {approx = true} : vector<2x8x1xf32> -> vector<2x8x1xf32>
    %119 = vector.broadcast %118 : vector<2x8x1xf32> to vector<2x8x8xf32>
    %120 = arith.mulf %115, %119 : vector<2x8x8xf32>
    %121 = arith.truncf %120 : vector<2x8x8xf32> to vector<2x8x8xbf16>
    "tpu.trace_start"() <{level = 10 : i32, message = "bqk,bkd->bqd"}> : () -> ()
    %cst_30 = arith.constant dense<0.000000e+00> : vector<2x8x64xf32>
    %122 = tpu.matmul %121, %107, %cst_30 {dimension_numbers = #tpu.dot_dimension_numbers<[2], [1], [1], [2], [0, 0, 0, 1, 1, 2], [0], [0]>} : vector<2x8x8xbf16>, vector<2x8x64xbf16>, vector<2x8x64xf32> -> vector<2x8x64xf32>
    "tpu.trace_stop"() : () -> ()
    %123 = vector.shape_cast %122 : vector<2x8x64xf32> to vector<16x64xf32>
    %124 = arith.truncf %123 : vector<16x64xf32> to vector<16x64xbf16>
    %c192 = arith.constant 192 : index
    %c0_31 = arith.constant 0 : index
    %125 = vector.load %arg3[%c192, %c0_31] : memref<512x512xbf16, #tpu.memory_space<vmem>>, vector<64x512xbf16>
    %cst_32 = arith.constant dense<0.000000e+00> : vector<16x512xf32>
    %126 = tpu.matmul %124, %125, %cst_32 {dimension_numbers = #tpu.dot_dimension_numbers<[1], [0], [0], [1], [0, 0, 1, 1], [], []>} : vector<16x64xbf16>, vector<64x512xbf16>, vector<16x512xf32> -> vector<16x512xf32>
    %127 = arith.addf %98, %126 : vector<16x512xf32>
    %128 = vector.extract_strided_slice %10 {offsets = [0, 256], sizes = [16, 64], strides = [1, 1]} : vector<16x512xf32> to vector<16x64xf32>
    %129 = vector.shape_cast %128 : vector<16x64xf32> to vector<2x8x64xf32>
    %130 = arith.truncf %129 : vector<2x8x64xf32> to vector<2x8x64xbf16>
    %131 = vector.extract_strided_slice %11 {offsets = [0, 256], sizes = [16, 64], strides = [1, 1]} : vector<16x512xf32> to vector<16x64xf32>
    %132 = vector.shape_cast %131 : vector<16x64xf32> to vector<2x8x64xf32>
    %133 = arith.truncf %132 : vector<2x8x64xf32> to vector<2x8x64xbf16>
    %134 = vector.extract_strided_slice %12 {offsets = [0, 256], sizes = [16, 64], strides = [1, 1]} : vector<16x512xf32> to vector<16x64xf32>
    %135 = vector.shape_cast %134 : vector<16x64xf32> to vector<2x8x64xf32>
    %136 = arith.truncf %135 : vector<2x8x64xf32> to vector<2x8x64xbf16>
    "tpu.trace_start"() <{level = 10 : i32, message = "bqd,bkd->bqk"}> : () -> ()
    %cst_33 = arith.constant dense<0.000000e+00> : vector<2x8x8xf32>
    %137 = tpu.matmul %130, %133, %cst_33 {dimension_numbers = #tpu.dot_dimension_numbers<[2], [2], [1], [1], [0, 0, 0, 1, 1, 1], [0], [0]>} : vector<2x8x64xbf16>, vector<2x8x64xbf16>, vector<2x8x8xf32> -> vector<2x8x8xf32>
    "tpu.trace_stop"() : () -> ()
    %138 = vector.broadcast %1 : f32 to vector<2x8x8xf32>
    %139 = arith.mulf %137, %138 : vector<2x8x8xf32>
    %cst_34 = arith.constant dense<0xFF800000> : vector<2x8xf32>
    %140 = vector.multi_reduction <maximumf>, %139, %cst_34 [2] : vector<2x8x8xf32> to vector<2x8xf32>
    %141 = vector.shape_cast %140 : vector<2x8xf32> to vector<2x8x1xf32>
    %142 = vector.broadcast %141 : vector<2x8x1xf32> to vector<2x8x8xf32>
    %143 = arith.subf %139, %142 : vector<2x8x8xf32>
    %144 = math.exp %143 : vector<2x8x8xf32>
    %cst_35 = arith.constant dense<0.000000e+00> : vector<2x8xf32>
    %145 = vector.multi_reduction <add>, %144, %cst_35 [2] : vector<2x8x8xf32> to vector<2x8xf32>
    %146 = vector.shape_cast %145 : vector<2x8xf32> to vector<2x8x1xf32>
    %147 = tpu.reciprocal %146 {approx = true} : vector<2x8x1xf32> -> vector<2x8x1xf32>
    %148 = vector.broadcast %147 : vector<2x8x1xf32> to vector<2x8x8xf32>
    %149 = arith.mulf %144, %148 : vector<2x8x8xf32>
    %150 = arith.truncf %149 : vector<2x8x8xf32> to vector<2x8x8xbf16>
    "tpu.trace_start"() <{level = 10 : i32, message = "bqk,bkd->bqd"}> : () -> ()
    %cst_36 = arith.constant dense<0.000000e+00> : vector<2x8x64xf32>
    %151 = tpu.matmul %150, %136, %cst_36 {dimension_numbers = #tpu.dot_dimension_numbers<[2], [1], [1], [2], [0, 0, 0, 1, 1, 2], [0], [0]>} : vector<2x8x8xbf16>, vector<2x8x64xbf16>, vector<2x8x64xf32> -> vector<2x8x64xf32>
    "tpu.trace_stop"() : () -> ()
    %152 = vector.shape_cast %151 : vector<2x8x64xf32> to vector<16x64xf32>
    %153 = arith.truncf %152 : vector<16x64xf32> to vector<16x64xbf16>
    %c256 = arith.constant 256 : index
    %c0_37 = arith.constant 0 : index
    %154 = vector.load %arg3[%c256, %c0_37] : memref<512x512xbf16, #tpu.memory_space<vmem>>, vector<64x512xbf16>
    %cst_38 = arith.constant dense<0.000000e+00> : vector<16x512xf32>
    %155 = tpu.matmul %153, %154, %cst_38 {dimension_numbers = #tpu.dot_dimension_numbers<[1], [0], [0], [1], [0, 0, 1, 1], [], []>} : vector<16x64xbf16>, vector<64x512xbf16>, vector<16x512xf32> -> vector<16x512xf32>
    %156 = arith.addf %127, %155 : vector<16x512xf32>
    %157 = vector.extract_strided_slice %10 {offsets = [0, 320], sizes = [16, 64], strides = [1, 1]} : vector<16x512xf32> to vector<16x64xf32>
    %158 = vector.shape_cast %157 : vector<16x64xf32> to vector<2x8x64xf32>
    %159 = arith.truncf %158 : vector<2x8x64xf32> to vector<2x8x64xbf16>
    %160 = vector.extract_strided_slice %11 {offsets = [0, 320], sizes = [16, 64], strides = [1, 1]} : vector<16x512xf32> to vector<16x64xf32>
    %161 = vector.shape_cast %160 : vector<16x64xf32> to vector<2x8x64xf32>
    %162 = arith.truncf %161 : vector<2x8x64xf32> to vector<2x8x64xbf16>
    %163 = vector.extract_strided_slice %12 {offsets = [0, 320], sizes = [16, 64], strides = [1, 1]} : vector<16x512xf32> to vector<16x64xf32>
    %164 = vector.shape_cast %163 : vector<16x64xf32> to vector<2x8x64xf32>
    %165 = arith.truncf %164 : vector<2x8x64xf32> to vector<2x8x64xbf16>
    "tpu.trace_start"() <{level = 10 : i32, message = "bqd,bkd->bqk"}> : () -> ()
    %cst_39 = arith.constant dense<0.000000e+00> : vector<2x8x8xf32>
    %166 = tpu.matmul %159, %162, %cst_39 {dimension_numbers = #tpu.dot_dimension_numbers<[2], [2], [1], [1], [0, 0, 0, 1, 1, 1], [0], [0]>} : vector<2x8x64xbf16>, vector<2x8x64xbf16>, vector<2x8x8xf32> -> vector<2x8x8xf32>
    "tpu.trace_stop"() : () -> ()
    %167 = vector.broadcast %1 : f32 to vector<2x8x8xf32>
    %168 = arith.mulf %166, %167 : vector<2x8x8xf32>
    %cst_40 = arith.constant dense<0xFF800000> : vector<2x8xf32>
    %169 = vector.multi_reduction <maximumf>, %168, %cst_40 [2] : vector<2x8x8xf32> to vector<2x8xf32>
    %170 = vector.shape_cast %169 : vector<2x8xf32> to vector<2x8x1xf32>
    %171 = vector.broadcast %170 : vector<2x8x1xf32> to vector<2x8x8xf32>
    %172 = arith.subf %168, %171 : vector<2x8x8xf32>
    %173 = math.exp %172 : vector<2x8x8xf32>
    %cst_41 = arith.constant dense<0.000000e+00> : vector<2x8xf32>
    %174 = vector.multi_reduction <add>, %173, %cst_41 [2] : vector<2x8x8xf32> to vector<2x8xf32>
    %175 = vector.shape_cast %174 : vector<2x8xf32> to vector<2x8x1xf32>
    %176 = tpu.reciprocal %175 {approx = true} : vector<2x8x1xf32> -> vector<2x8x1xf32>
    %177 = vector.broadcast %176 : vector<2x8x1xf32> to vector<2x8x8xf32>
    %178 = arith.mulf %173, %177 : vector<2x8x8xf32>
    %179 = arith.truncf %178 : vector<2x8x8xf32> to vector<2x8x8xbf16>
    "tpu.trace_start"() <{level = 10 : i32, message = "bqk,bkd->bqd"}> : () -> ()
    %cst_42 = arith.constant dense<0.000000e+00> : vector<2x8x64xf32>
    %180 = tpu.matmul %179, %165, %cst_42 {dimension_numbers = #tpu.dot_dimension_numbers<[2], [1], [1], [2], [0, 0, 0, 1, 1, 2], [0], [0]>} : vector<2x8x8xbf16>, vector<2x8x64xbf16>, vector<2x8x64xf32> -> vector<2x8x64xf32>
    "tpu.trace_stop"() : () -> ()
    %181 = vector.shape_cast %180 : vector<2x8x64xf32> to vector<16x64xf32>
    %182 = arith.truncf %181 : vector<16x64xf32> to vector<16x64xbf16>
    %c320 = arith.constant 320 : index
    %c0_43 = arith.constant 0 : index
    %183 = vector.load %arg3[%c320, %c0_43] : memref<512x512xbf16, #tpu.memory_space<vmem>>, vector<64x512xbf16>
    %cst_44 = arith.constant dense<0.000000e+00> : vector<16x512xf32>
    %184 = tpu.matmul %182, %183, %cst_44 {dimension_numbers = #tpu.dot_dimension_numbers<[1], [0], [0], [1], [0, 0, 1, 1], [], []>} : vector<16x64xbf16>, vector<64x512xbf16>, vector<16x512xf32> -> vector<16x512xf32>
    %185 = arith.addf %156, %184 : vector<16x512xf32>
    %186 = vector.extract_strided_slice %10 {offsets = [0, 384], sizes = [16, 64], strides = [1, 1]} : vector<16x512xf32> to vector<16x64xf32>
    %187 = vector.shape_cast %186 : vector<16x64xf32> to vector<2x8x64xf32>
    %188 = arith.truncf %187 : vector<2x8x64xf32> to vector<2x8x64xbf16>
    %189 = vector.extract_strided_slice %11 {offsets = [0, 384], sizes = [16, 64], strides = [1, 1]} : vector<16x512xf32> to vector<16x64xf32>
    %190 = vector.shape_cast %189 : vector<16x64xf32> to vector<2x8x64xf32>
    %191 = arith.truncf %190 : vector<2x8x64xf32> to vector<2x8x64xbf16>
    %192 = vector.extract_strided_slice %12 {offsets = [0, 384], sizes = [16, 64], strides = [1, 1]} : vector<16x512xf32> to vector<16x64xf32>
    %193 = vector.shape_cast %192 : vector<16x64xf32> to vector<2x8x64xf32>
    %194 = arith.truncf %193 : vector<2x8x64xf32> to vector<2x8x64xbf16>
    "tpu.trace_start"() <{level = 10 : i32, message = "bqd,bkd->bqk"}> : () -> ()
    %cst_45 = arith.constant dense<0.000000e+00> : vector<2x8x8xf32>
    %195 = tpu.matmul %188, %191, %cst_45 {dimension_numbers = #tpu.dot_dimension_numbers<[2], [2], [1], [1], [0, 0, 0, 1, 1, 1], [0], [0]>} : vector<2x8x64xbf16>, vector<2x8x64xbf16>, vector<2x8x8xf32> -> vector<2x8x8xf32>
    "tpu.trace_stop"() : () -> ()
    %196 = vector.broadcast %1 : f32 to vector<2x8x8xf32>
    %197 = arith.mulf %195, %196 : vector<2x8x8xf32>
    %cst_46 = arith.constant dense<0xFF800000> : vector<2x8xf32>
    %198 = vector.multi_reduction <maximumf>, %197, %cst_46 [2] : vector<2x8x8xf32> to vector<2x8xf32>
    %199 = vector.shape_cast %198 : vector<2x8xf32> to vector<2x8x1xf32>
    %200 = vector.broadcast %199 : vector<2x8x1xf32> to vector<2x8x8xf32>
    %201 = arith.subf %197, %200 : vector<2x8x8xf32>
    %202 = math.exp %201 : vector<2x8x8xf32>
    %cst_47 = arith.constant dense<0.000000e+00> : vector<2x8xf32>
    %203 = vector.multi_reduction <add>, %202, %cst_47 [2] : vector<2x8x8xf32> to vector<2x8xf32>
    %204 = vector.shape_cast %203 : vector<2x8xf32> to vector<2x8x1xf32>
    %205 = tpu.reciprocal %204 {approx = true} : vector<2x8x1xf32> -> vector<2x8x1xf32>
    %206 = vector.broadcast %205 : vector<2x8x1xf32> to vector<2x8x8xf32>
    %207 = arith.mulf %202, %206 : vector<2x8x8xf32>
    %208 = arith.truncf %207 : vector<2x8x8xf32> to vector<2x8x8xbf16>
    "tpu.trace_start"() <{level = 10 : i32, message = "bqk,bkd->bqd"}> : () -> ()
    %cst_48 = arith.constant dense<0.000000e+00> : vector<2x8x64xf32>
    %209 = tpu.matmul %208, %194, %cst_48 {dimension_numbers = #tpu.dot_dimension_numbers<[2], [1], [1], [2], [0, 0, 0, 1, 1, 2], [0], [0]>} : vector<2x8x8xbf16>, vector<2x8x64xbf16>, vector<2x8x64xf32> -> vector<2x8x64xf32>
    "tpu.trace_stop"() : () -> ()
    %210 = vector.shape_cast %209 : vector<2x8x64xf32> to vector<16x64xf32>
    %211 = arith.truncf %210 : vector<16x64xf32> to vector<16x64xbf16>
    %c384 = arith.constant 384 : index
    %c0_49 = arith.constant 0 : index
    %212 = vector.load %arg3[%c384, %c0_49] : memref<512x512xbf16, #tpu.memory_space<vmem>>, vector<64x512xbf16>
    %cst_50 = arith.constant dense<0.000000e+00> : vector<16x512xf32>
    %213 = tpu.matmul %211, %212, %cst_50 {dimension_numbers = #tpu.dot_dimension_numbers<[1], [0], [0], [1], [0, 0, 1, 1], [], []>} : vector<16x64xbf16>, vector<64x512xbf16>, vector<16x512xf32> -> vector<16x512xf32>
    %214 = arith.addf %185, %213 : vector<16x512xf32>
    %215 = vector.extract_strided_slice %10 {offsets = [0, 448], sizes = [16, 64], strides = [1, 1]} : vector<16x512xf32> to vector<16x64xf32>
    %216 = vector.shape_cast %215 : vector<16x64xf32> to vector<2x8x64xf32>
    %217 = arith.truncf %216 : vector<2x8x64xf32> to vector<2x8x64xbf16>
    %218 = vector.extract_strided_slice %11 {offsets = [0, 448], sizes = [16, 64], strides = [1, 1]} : vector<16x512xf32> to vector<16x64xf32>
    %219 = vector.shape_cast %218 : vector<16x64xf32> to vector<2x8x64xf32>
    %220 = arith.truncf %219 : vector<2x8x64xf32> to vector<2x8x64xbf16>
    %221 = vector.extract_strided_slice %12 {offsets = [0, 448], sizes = [16, 64], strides = [1, 1]} : vector<16x512xf32> to vector<16x64xf32>
    %222 = vector.shape_cast %221 : vector<16x64xf32> to vector<2x8x64xf32>
    %223 = arith.truncf %222 : vector<2x8x64xf32> to vector<2x8x64xbf16>
    "tpu.trace_start"() <{level = 10 : i32, message = "bqd,bkd->bqk"}> : () -> ()
    %cst_51 = arith.constant dense<0.000000e+00> : vector<2x8x8xf32>
    %224 = tpu.matmul %217, %220, %cst_51 {dimension_numbers = #tpu.dot_dimension_numbers<[2], [2], [1], [1], [0, 0, 0, 1, 1, 1], [0], [0]>} : vector<2x8x64xbf16>, vector<2x8x64xbf16>, vector<2x8x8xf32> -> vector<2x8x8xf32>
    "tpu.trace_stop"() : () -> ()
    %225 = vector.broadcast %1 : f32 to vector<2x8x8xf32>
    %226 = arith.mulf %224, %225 : vector<2x8x8xf32>
    %cst_52 = arith.constant dense<0xFF800000> : vector<2x8xf32>
    %227 = vector.multi_reduction <maximumf>, %226, %cst_52 [2] : vector<2x8x8xf32> to vector<2x8xf32>
    %228 = vector.shape_cast %227 : vector<2x8xf32> to vector<2x8x1xf32>
    %229 = vector.broadcast %228 : vector<2x8x1xf32> to vector<2x8x8xf32>
    %230 = arith.subf %226, %229 : vector<2x8x8xf32>
    %231 = math.exp %230 : vector<2x8x8xf32>
    %cst_53 = arith.constant dense<0.000000e+00> : vector<2x8xf32>
    %232 = vector.multi_reduction <add>, %231, %cst_53 [2] : vector<2x8x8xf32> to vector<2x8xf32>
    %233 = vector.shape_cast %232 : vector<2x8xf32> to vector<2x8x1xf32>
    %234 = tpu.reciprocal %233 {approx = true} : vector<2x8x1xf32> -> vector<2x8x1xf32>
    %235 = vector.broadcast %234 : vector<2x8x1xf32> to vector<2x8x8xf32>
    %236 = arith.mulf %231, %235 : vector<2x8x8xf32>
    %237 = arith.truncf %236 : vector<2x8x8xf32> to vector<2x8x8xbf16>
    "tpu.trace_start"() <{level = 10 : i32, message = "bqk,bkd->bqd"}> : () -> ()
    %cst_54 = arith.constant dense<0.000000e+00> : vector<2x8x64xf32>
    %238 = tpu.matmul %237, %223, %cst_54 {dimension_numbers = #tpu.dot_dimension_numbers<[2], [1], [1], [2], [0, 0, 0, 1, 1, 2], [0], [0]>} : vector<2x8x8xbf16>, vector<2x8x64xbf16>, vector<2x8x64xf32> -> vector<2x8x64xf32>
    "tpu.trace_stop"() : () -> ()
    %239 = vector.shape_cast %238 : vector<2x8x64xf32> to vector<16x64xf32>
    %240 = arith.truncf %239 : vector<16x64xf32> to vector<16x64xbf16>
    %c448 = arith.constant 448 : index
    %c0_55 = arith.constant 0 : index
    %241 = vector.load %arg3[%c448, %c0_55] : memref<512x512xbf16, #tpu.memory_space<vmem>>, vector<64x512xbf16>
    %cst_56 = arith.constant dense<0.000000e+00> : vector<16x512xf32>
    %242 = tpu.matmul %240, %241, %cst_56 {dimension_numbers = #tpu.dot_dimension_numbers<[1], [0], [0], [1], [0, 0, 1, 1], [], []>} : vector<16x64xbf16>, vector<64x512xbf16>, vector<16x512xf32> -> vector<16x512xf32>
    %243 = arith.addf %214, %242 : vector<16x512xf32>
    %c0_57 = arith.constant 0 : index
    %c0_58 = arith.constant 0 : index
    %244 = vector.load %arg4[%c0_57, %c0_58] : memref<1x512xf32, #tpu.memory_space<vmem>>, vector<1x512xf32>
    %245 = vector.broadcast %244 : vector<1x512xf32> to vector<16x512xf32>
    %246 = arith.addf %243, %245 : vector<16x512xf32>
    %c0_59 = arith.constant 0 : index
    %c0_60 = arith.constant 0 : index
    %247 = vector.load %arg5[%c0_59, %c0_60] : memref<1x512xf32, #tpu.memory_space<vmem>>, vector<1x512xf32>
    %c0_61 = arith.constant 0 : index
    %c0_62 = arith.constant 0 : index
    %248 = vector.load %arg6[%c0_61, %c0_62] : memref<1x512xf32, #tpu.memory_space<vmem>>, vector<1x512xf32>
    %249 = arith.addf %3, %246 : vector<16x512xf32>
    %cst_63 = arith.constant dense<0.000000e+00> : vector<16xf32>
    %250 = vector.multi_reduction <add>, %249, %cst_63 [1] : vector<16x512xf32> to vector<16xf32>
    %251 = vector.shape_cast %250 : vector<16xf32> to vector<16x1xf32>
    %cst_64 = arith.constant 5.120000e+02 : f32
    %252 = vector.broadcast %cst_64 : f32 to vector<16x1xf32>
    %253 = arith.divf %251, %252 : vector<16x1xf32>
    %254 = vector.broadcast %253 : vector<16x1xf32> to vector<16x512xf32>
    %255 = arith.subf %249, %254 : vector<16x512xf32>
    %256 = arith.mulf %255, %255 : vector<16x512xf32>
    %cst_65 = arith.constant dense<0.000000e+00> : vector<16xf32>
    %257 = vector.multi_reduction <add>, %256, %cst_65 [1] : vector<16x512xf32> to vector<16xf32>
    %258 = vector.shape_cast %257 : vector<16xf32> to vector<16x1xf32>
    %cst_66 = arith.constant 5.120000e+02 : f32
    %259 = vector.broadcast %cst_66 : f32 to vector<16x1xf32>
    %260 = arith.divf %258, %259 : vector<16x1xf32>
    %cst_67 = arith.constant 9.99999974E-6 : f32
    %261 = vector.broadcast %cst_67 : f32 to vector<16x1xf32>
    %262 = arith.addf %260, %261 : vector<16x1xf32>
    %263 = math.rsqrt %262 : vector<16x1xf32>
    %264 = vector.broadcast %263 : vector<16x1xf32> to vector<16x512xf32>
    %265 = arith.mulf %255, %264 : vector<16x512xf32>
    %266 = vector.broadcast %247 : vector<1x512xf32> to vector<16x512xf32>
    %267 = arith.mulf %265, %266 : vector<16x512xf32>
    %268 = vector.broadcast %248 : vector<1x512xf32> to vector<16x512xf32>
    %269 = arith.addf %267, %268 : vector<16x512xf32>
    %270 = arith.truncf %269 : vector<16x512xf32> to vector<16x512xbf16>
    %c0_68 = arith.constant 0 : index
    %c0_69 = arith.constant 0 : index
    %271 = vector.load %arg7[%c0_68, %c0_69] : memref<512x2048xbf16, #tpu.memory_space<vmem>>, vector<512x2048xbf16>
    %cst_70 = arith.constant dense<0.000000e+00> : vector<16x2048xf32>
    %272 = tpu.matmul %270, %271, %cst_70 {dimension_numbers = #tpu.dot_dimension_numbers<[1], [0], [0], [1], [0, 0, 1, 1], [], []>} : vector<16x512xbf16>, vector<512x2048xbf16>, vector<16x2048xf32> -> vector<16x2048xf32>
    %c0_71 = arith.constant 0 : index
    %c0_72 = arith.constant 0 : index
    %273 = vector.load %arg8[%c0_71, %c0_72] : memref<1x2048xf32, #tpu.memory_space<vmem>>, vector<1x2048xf32>
    %274 = vector.broadcast %273 : vector<1x2048xf32> to vector<16x2048xf32>
    %275 = arith.addf %272, %274 : vector<16x2048xf32>
    %cst_73 = arith.constant 0.000000e+00 : f32
    %276 = vector.broadcast %cst_73 : f32 to vector<16x2048xf32>
    %277 = arith.maximumf %275, %276 : vector<16x2048xf32>
    %278 = arith.truncf %277 : vector<16x2048xf32> to vector<16x2048xbf16>
    %c0_74 = arith.constant 0 : index
    %c0_75 = arith.constant 0 : index
    %279 = vector.load %arg9[%c0_74, %c0_75] : memref<2048x512xbf16, #tpu.memory_space<vmem>>, vector<2048x512xbf16>
    %cst_76 = arith.constant dense<0.000000e+00> : vector<16x512xf32>
    %280 = tpu.matmul %278, %279, %cst_76 {dimension_numbers = #tpu.dot_dimension_numbers<[1], [0], [0], [1], [0, 0, 1, 1], [], []>} : vector<16x2048xbf16>, vector<2048x512xbf16>, vector<16x512xf32> -> vector<16x512xf32>
    %c0_77 = arith.constant 0 : index
    %c0_78 = arith.constant 0 : index
    %281 = vector.load %arg10[%c0_77, %c0_78] : memref<1x512xf32, #tpu.memory_space<vmem>>, vector<1x512xf32>
    %282 = vector.broadcast %281 : vector<1x512xf32> to vector<16x512xf32>
    %283 = arith.addf %280, %282 : vector<16x512xf32>
    %284 = arith.addf %269, %283 : vector<16x512xf32>
    %cst_79 = arith.constant dense<0.000000e+00> : vector<16xf32>
    %285 = vector.multi_reduction <add>, %284, %cst_79 [1] : vector<16x512xf32> to vector<16xf32>
    %286 = vector.shape_cast %285 : vector<16xf32> to vector<16x1xf32>
    %cst_80 = arith.constant 5.120000e+02 : f32
    %287 = vector.broadcast %cst_80 : f32 to vector<16x1xf32>
    %288 = arith.divf %286, %287 : vector<16x1xf32>
    %289 = vector.broadcast %288 : vector<16x1xf32> to vector<16x512xf32>
    %290 = arith.subf %284, %289 : vector<16x512xf32>
    %291 = arith.mulf %290, %290 : vector<16x512xf32>
    %cst_81 = arith.constant dense<0.000000e+00> : vector<16xf32>
    %292 = vector.multi_reduction <add>, %291, %cst_81 [1] : vector<16x512xf32> to vector<16xf32>
    %293 = vector.shape_cast %292 : vector<16xf32> to vector<16x1xf32>
    %cst_82 = arith.constant 5.120000e+02 : f32
    %294 = vector.broadcast %cst_82 : f32 to vector<16x1xf32>
    %295 = arith.divf %293, %294 : vector<16x1xf32>
    %cst_83 = arith.constant 9.99999974E-6 : f32
    %296 = vector.broadcast %cst_83 : f32 to vector<16x1xf32>
    %297 = arith.addf %295, %296 : vector<16x1xf32>
    %298 = math.rsqrt %297 : vector<16x1xf32>
    %299 = vector.broadcast %298 : vector<16x1xf32> to vector<16x512xf32>
    %300 = arith.mulf %290, %299 : vector<16x512xf32>
    %301 = vector.broadcast %247 : vector<1x512xf32> to vector<16x512xf32>
    %302 = arith.mulf %300, %301 : vector<16x512xf32>
    %303 = vector.broadcast %248 : vector<1x512xf32> to vector<16x512xf32>
    %304 = arith.addf %302, %303 : vector<16x512xf32>
    %305 = vector.shape_cast %304 : vector<16x512xf32> to vector<2x8x512xf32>
    %c0_84 = arith.constant 0 : index
    %c0_85 = arith.constant 0 : index
    %c0_86 = arith.constant 0 : index
    %306 = vector.load %arg11[%c0_84, %c0_85, %c0_86] : memref<2x8x512xf32, #tpu.memory_space<vmem>>, vector<2x8x512xf32>
    tpu.vector_store %arg11[%c0_84, %c0_85, %c0_86], %305 {strides = array<i32>} : memref<2x8x512xf32, #tpu.memory_space<vmem>>, vector<2x8x512xf32>,
    return
  }
}

</mosaic_0001>

<bundles_post_ra>
// kernel: tpu_custom_call.1
= control target key start
LH: loop header
LB: loop body
LE: loop exit
PB: predicated region body
PF: predicated region fallthrough
CT: control target
= control target key end

     0   :  { %16 = vsyncpa [#allocation3], 0  ;;  %s19311_s0 = inlined_call_operand.hbm [shape: f32[2,8,512], index: 0, kind: input, shape index: {}]   ;;  %s19312_s1 = inlined_call_operand.hbm [shape: bf16[512,1536], index: 1, kind: input, shape index: {}]   ;;  %s19313_s2 = inlined_call_operand.hbm [shape: f32[1,1536], index: 2, kind: input, shape index: {}]   ;;  %s19314_s3 = inlined_call_operand.hbm [shape: bf16[512,512], index: 3, kind: input, shape index: {}]   ;;  %s19315_s4 = inlined_call_operand.hbm [shape: f32[1,512], index: 4, kind: input, shape index: {}]   ;;  %s19316_s5 = inlined_call_operand.hbm [shape: f32[1,512], index: 5, kind: input, shape index: {}]   ;;  %s19317_s6 = inlined_call_operand.hbm [shape: f32[1,512], index: 6, kind: input, shape index: {}]   ;;  %s19318_s7 = inlined_call_operand.hbm [shape: bf16[512,2048], index: 7, kind: input, shape index: {}]   ;;  %s19319_s8 = inlined_call_operand.hbm [shape: f32[1,2048], index: 8, kind: input, shape index: {}]   ;;  %s19320_s9 = inlined_call_operand.hbm [shape: bf16[2048,512], index: 9, kind: input, shape index: {}]   ;;  %s19321_s10 = inlined_call_operand.hbm [shape: f32[1,512], index: 10, kind: input, shape index: {}]   ;;  %s19322_s11 = inlined_call_operand.hbm [shape: f32[2,8,512], index: 11, kind: output, shape index: {}]  }
   0x1   :  { %17 = vsyncpa [#allocation6], 0 }
   0x2   :  { %18 = vsyncpa [#allocation9], 0 }
   0x3   :  { %19 = vsyncpa [#allocation12], 0 }
   0x4   :  { %20 = vsyncpa [#allocation15], 0 }
   0x5   :  { %21 = vsyncpa [#allocation18], 0 }
   0x6   :  { %22 = vsyncpa [#allocation4], 0  ;;  %s18059_s17 = smov [#allocation5]  }
   0x7   :  { %s40_s18 = sshll.u32 %s18059_s17, 4  ;;  %s41_s18 = int_to_ptr.vmem [resolvable:$true] %s40_s18 }
   0x8   :  { %s17813_s19 = scalar_lea.vmem %s41_s18, 49152  ;;  %p17818_p1 = scmp.lt.s32.totalorder %s41_s18, %s41_s18 }
   0x9   :  { %p17814_p0 = scmp.ne.s32.totalorder %s41_s18, %s17813_s19  ;;  %p17819_p2 = scmp.lt.s32.totalorder %s17813_s19, %s17813_s19 }
   0xb   :  { %p17820_p3 = por %p17819_p2, %p17818_p1 }
   0xd   :  { %p17821_p4 = pnand %p17820_p3, %p17814_p0 }
   0xf   :  { %17824 = shalt.err (!%p17821_p4)
}
  0x10   :  { %s18060_s20 = smov 768   ;;  %s18061_s21 = smov 48  }
  0x11   :  { %46 = dma.hbm_to_vmem [thread:$0]  %s19312_s1, 49152, %s41_s18, [#allocation6], %s18060_s20, %s18060_s20, %s18061_s21  }
  0x12   :  { %s18062_s24 = smov [#allocation8]  }
  0x13   :  { %s62_s25 = sshll.u32 %s18062_s24, 4  ;;  %s63_s25 = int_to_ptr.vmem [resolvable:$true] %s62_s25 }
  0x14   :  { %s17833_s26 = scalar_lea.vmem %s63_s25, 16384  ;;  %p17838_p6 = scmp.lt.s32.totalorder %s63_s25, %s63_s25 }
  0x15   :  { %p17834_p5 = scmp.ne.s32.totalorder %s63_s25, %s17833_s26  ;;  %p17839_p7 = scmp.lt.s32.totalorder %s17833_s26, %s17833_s26 }
  0x17   :  { %p17840_p8 = por %p17839_p7, %p17838_p6 }
  0x19   :  { %p17841_p9 = pnand %p17840_p8, %p17834_p5 }
  0x1b   :  { %17844 = shalt.err (!%p17841_p9)
}
  0x1c   :  { %s18063_s27 = smov 256   ;;  %s18064_s28 = smov 16  }
  0x1d   :  { %68 = dma.hbm_to_vmem [thread:$0]  %s19314_s3, 16384, %s63_s25, [#allocation9], %s18063_s27, %s18063_s27, %s18064_s28  }
  0x1e   :  { %s18065_s1 = smov [#allocation11]   ;;  %s18066_s13 = smov [#allocation14]  }
  0x1f   :  { %s85_s12 = sshll.u32 %s18065_s1, 4  ;;  %s104_s14 = sshll.u32 %s18066_s13, 4  ;;  %s86_s12 = int_to_ptr.vmem [resolvable:$true] %s85_s12  ;;  %s105_s14 = int_to_ptr.vmem [resolvable:$true] %s104_s14 }
  0x20   :  { %s17853_s15 = scalar_lea.vmem %s86_s12, 64  ;;  %p17858_p11 = scmp.lt.s32.totalorder %s86_s12, %s86_s12 }
  0x21   :  { %p17854_p10 = scmp.ne.s32.totalorder %s86_s12, %s17853_s15  ;;  %p17859_p12 = scmp.lt.s32.totalorder %s17853_s15, %s17853_s15 }
  0x23   :  { %p17860_p13 = por %p17859_p12, %p17858_p11 }
  0x25   :  { %p17861_p0 = pnand %p17860_p13, %p17854_p10 }
  0x27   :  { %17864 = shalt.err (!%p17861_p0)
}
  0x28   :  { %88 = dma.hbm_to_vmem [thread:$0]  %s19316_s5, 64, %s86_s12, [#allocation12]  }
  0x29   :  { %s17873_s18 = scalar_lea.vmem %s105_s14, 65536  ;;  %p17878_p2 = scmp.lt.s32.totalorder %s105_s14, %s105_s14 }
  0x2a   :  { %p17874_p1 = scmp.ne.s32.totalorder %s105_s14, %s17873_s18  ;;  %p17879_p3 = scmp.lt.s32.totalorder %s17873_s18, %s17873_s18 }
  0x2c   :  { %p17880_p4 = por %p17879_p3, %p17878_p2 }
  0x2e   :  { %p17881_p5 = pnand %p17880_p4, %p17874_p1 }
  0x30   :  { %17884 = shalt.err (!%p17881_p5)
}
  0x31   :  { %s18067_s3 = smov 1024   ;;  %s18068_s19 = smov 64  }
  0x32   :  { %110 = dma.hbm_to_vmem [thread:$0]  %s19318_s7, 65536, %s105_s14, [#allocation15], %s18067_s3, %s18067_s3, %s18068_s19  }
  0x33   :  { %s18069_s22 = smov [#allocation17]   ;;  %s18070_s24 = smov [#allocation2]  }
  0x34   :  { %s126_s23 = sshll.u32 %s18069_s22, 4  ;;  %s28_s25 = sshll.u32 %s18070_s24, 4  ;;  %s127_s23 = int_to_ptr.vmem [resolvable:$true] %s126_s23  ;;  %s29_s25 = int_to_ptr.vmem [resolvable:$true] %s28_s25 }
  0x35   :  { %s17893_s5 = scalar_lea.vmem %s127_s23, 65536  ;;  %p17898_p7 = scmp.lt.s32.totalorder %s127_s23, %s127_s23 }
  0x36   :  { %p17894_p6 = scmp.ne.s32.totalorder %s127_s23, %s17893_s5  ;;  %p17899_p8 = scmp.lt.s32.totalorder %s17893_s5, %s17893_s5 }
  0x38   :  { %p17900_p9 = por %p17899_p8, %p17898_p7 }
  0x3a   :  { %p17901_p10 = pnand %p17900_p9, %p17894_p6 }
  0x3c   :  { %17904 = shalt.err (!%p17901_p10)
}
  0x3d   :  { %132 = dma.hbm_to_vmem [thread:$0]  %s19320_s9, 65536, %s127_s23, [#allocation18], %s18063_s27, %s18063_s27, %s18064_s28  }
  0x3e   :  { %s17913_s7 = scalar_lea.vmem %s29_s25, 1024  ;;  %p17918_p12 = scmp.lt.s32.totalorder %s29_s25, %s29_s25 }
  0x3f   :  { %p17914_p11 = scmp.ne.s32.totalorder %s29_s25, %s17913_s7  ;;  %p17919_p13 = scmp.lt.s32.totalorder %s17913_s7, %s17913_s7 }
  0x41   :  { %p17920_p0 = por %p17919_p13, %p17918_p12 }
  0x43   :  { %p17921_p1 = pnand %p17920_p0, %p17914_p11 }
  0x45   :  { %17924 = shalt.err (!%p17921_p1)
}
  0x46   :  { %s18071_s30 = smov 512   ;;  %s18072_s1 = smov 32  }
  0x47   :  { %34 = dma.hbm_to_vmem [thread:$0]  %s19311_s0, 1024, %s29_s25, [#allocation3], %s18071_s30, %s18071_s30, %s18072_s1  }
  0x48   :  { %s18073_s14 = smov [#allocation7]   ;;  %s18074_s16 = smov [#allocation10]  }
  0x49   :  { %s53_s15 = sshll.u32 %s18073_s14, 4  ;;  %s75_s9 = sshll.u32 %s18074_s16, 4  ;;  %s54_s15 = int_to_ptr.vmem [resolvable:$true] %s53_s15  ;;  %s76_s9 = int_to_ptr.vmem [resolvable:$true] %s75_s9 }
  0x4a   :  { %s17933_s27 = scalar_lea.vmem %s54_s15, 192  ;;  %p17938_p3 = scmp.lt.s32.totalorder %s54_s15, %s54_s15 }
  0x4b   :  { %p17934_p2 = scmp.ne.s32.totalorder %s54_s15, %s17933_s27  ;;  %p17939_p4 = scmp.lt.s32.totalorder %s17933_s27, %s17933_s27 }
  0x4d   :  { %p17940_p5 = por %p17939_p4, %p17938_p3 }
  0x4f   :  { %p17941_p6 = pnand %p17940_p5, %p17934_p2 }
  0x51   :  { %17944 = shalt.err (!%p17941_p6)
}
  0x52   :  { %56 = dma.hbm_to_vmem [thread:$0]  %s19313_s2, 192, %s54_s15, [#allocation6]  }
  0x53   :  { %s17953_s18 = scalar_lea.vmem %s76_s9, 64  ;;  %p17958_p8 = scmp.lt.s32.totalorder %s76_s9, %s76_s9 }
  0x54   :  { %p17954_p7 = scmp.ne.s32.totalorder %s76_s9, %s17953_s18  ;;  %p17959_p9 = scmp.lt.s32.totalorder %s17953_s18, %s17953_s18 }
  0x56   :  { %p17960_p10 = por %p17959_p9, %p17958_p8 }
  0x58   :  { %p17961_p11 = pnand %p17960_p10, %p17954_p7 }
  0x5a   :  { %17964 = shalt.err (!%p17961_p11)
}
  0x5b   :  { %78 = dma.hbm_to_vmem [thread:$0]  %s19315_s4, 64, %s76_s9, [#allocation9]  }
  0x5c   :  { %s18075_s20 = smov [#allocation13]   ;;  %s18076_s22 = smov [#allocation16]  }
  0x5d   :  { %s95_s21 = sshll.u32 %s18075_s20, 4  ;;  %s117_s23 = sshll.u32 %s18076_s22, 4  ;;  %s96_s21 = int_to_ptr.vmem [resolvable:$true] %s95_s21  ;;  %s118_s23 = int_to_ptr.vmem [resolvable:$true] %s117_s23 }
  0x5e   :  { %s17973_s24 = scalar_lea.vmem %s96_s21, 64  ;;  %p17978_p13 = scmp.lt.s32.totalorder %s96_s21, %s96_s21 }
  0x5f   :  { %p17974_p12 = scmp.ne.s32.totalorder %s96_s21, %s17973_s24  ;;  %p17979_p0 = scmp.lt.s32.totalorder %s17973_s24, %s17973_s24 }
  0x61   :  { %p17980_p1 = por %p17979_p0, %p17978_p13 }
  0x63   :  { %p17981_p2 = pnand %p17980_p1, %p17974_p12 }
  0x65   :  { %17984 = shalt.err (!%p17981_p2)
}
  0x66   :  { %98 = dma.hbm_to_vmem [thread:$0]  %s19317_s6, 64, %s96_s21, [#allocation12]  }
  0x67   :  { %s17993_s5 = scalar_lea.vmem %s118_s23, 256  ;;  %p17998_p4 = scmp.lt.s32.totalorder %s118_s23, %s118_s23 }
  0x68   :  { %p17994_p3 = scmp.ne.s32.totalorder %s118_s23, %s17993_s5  ;;  %p17999_p5 = scmp.lt.s32.totalorder %s17993_s5, %s17993_s5 }
  0x6a   :  { %p18000_p6 = por %p17999_p5, %p17998_p4 }
  0x6c   :  { %p18001_p7 = pnand %p18000_p6, %p17994_p3 }
  0x6e   :  { %18004 = shalt.err (!%p18001_p7)
}
  0x6f   :  { %120 = dma.hbm_to_vmem [thread:$0]  %s19319_s8, 256, %s118_s23, [#allocation15]  }
  0x70   :  { %s18077_s29 = smov [#allocation19]  }
  0x71   :  { %s139_s7 = sshll.u32 %s18077_s29, 4  ;;  %s140_s7 = int_to_ptr.vmem [resolvable:$true] %s139_s7 }
  0x72   :  { %s18013_s12 = scalar_lea.vmem %s140_s7, 64  ;;  %p18018_p9 = scmp.lt.s32.totalorder %s140_s7, %s140_s7 }
  0x73   :  { %p18014_p8 = scmp.ne.s32.totalorder %s140_s7, %s18013_s12  ;;  %p18019_p10 = scmp.lt.s32.totalorder %s18013_s12, %s18013_s12 }
  0x75   :  { %p18020_p11 = por %p18019_p10, %p18018_p9 }
  0x77   :  { %p18021_p12 = pnand %p18020_p11, %p18014_p8 }
  0x79   :  { %18024 = shalt.err (!%p18021_p12)
}
  0x7a   :  { %142 = dma.hbm_to_vmem [thread:$0]  %s19321_s10, 64, %s140_s7, [#allocation18]  }
  0x7b   :  { %18045 = dma.done.wait [#allocation3], 1024  }
  0x7c   :  { %18046 = vsyncadd [#allocation3], 4294966272 }
  0x7d   :  { %18047 = dma.done.wait [#allocation6], 49344  }
  0x7e   :  { %18048 = vsyncadd [#allocation6], 4294917952 }
  0x7f   :  { %18049 = dma.done.wait [#allocation9], 16448  }
  0x80   :  { %18050 = vsyncadd [#allocation9], 4294950848 }
  0x81   :  { %18051 = dma.done.wait [#allocation12], 128  }
  0x82   :  { %18052 = vsyncadd [#allocation12], 4294967168 }
  0x83   :  { %18053 = dma.done.wait [#allocation15], 65792  }
  0x84   :  { %18054 = vsyncadd [#allocation15], 4294901504 }
  0x85   :  { %18055 = dma.done.wait [#allocation18], 65600  }
  0x86   :  { %18056 = vsyncadd [#allocation18], 4294901696  ;;  %v16186_v0 = vld [vmem:[#allocation5 + $0x2a4] ss:$48 sps:$4 sm:$0xff]   ;;  %v16190_v2 = vld [vmem:[#allocation5 + $0x2a0] ss:$48 sps:$4 sm:$0xff]  }
  0x87   :  { %v16188_v1 = vld [vmem:[#allocation5 + $0x8a4] ss:$48 sps:$4 sm:$0xff]   ;;  %2557 = vmatprep.subr.bf16.mxu0 %v16186_v0  ;;  %v16191_v3 = vld [vmem:[#allocation5 + $0x8a0] ss:$48 sps:$4 sm:$0xff]   ;;  %v178_v46 = vld [vmem:[#allocation2 + $0x8] sm:$0xff]  ;;  %vm18079_vm0 = vmmov 0  }
  0x88   :  { %2600 = vmatprep.subr.bf16.mxu1 %v16188_v1  ;;  %v16192_v4 = vld [vmem:[#allocation5 + $0x244] ss:$48 sps:$4 sm:$0xff]   ;;  %2558 = vmatpush1.bf16.msra.mxu0 %v16190_v2  ;;  %v16196_v6 = vld [vmem:[#allocation5 + $0x240] ss:$48 sps:$4 sm:$0xff]   ;;  %v182_v47 = vld [vmem:[#allocation2 + $0x28] sm:$0xff]  ;;  %vm3079_vm1 = vcmask 523264  }
  0x89   :  { %2601 = vmatpush1.bf16.msra.mxu1 %v16191_v3  ;;  %v16194_v5 = vld [vmem:[#allocation5 + $0x844] ss:$48 sps:$4 sm:$0xff]   ;;  %2559 = vmatprep.subr.bf16.mxu0 %v16192_v4  ;;  %v16197_v7 = vld [vmem:[#allocation5 + $0x840] ss:$48 sps:$4 sm:$0xff]   ;;  %v180_v48 = vld [vmem:[#allocation2 + $0x18] sm:$0xff]  ;;  %v18185_v53 = vpack.c.bf16 %v182_v47, %v178_v46  ;;  %vm3202_vm2 = vcmask 1043456  }
  0x8a   :  { %2602 = vmatprep.subr.bf16.mxu1 %v16194_v5  ;;  %v16198_v8 = vld [vmem:[#allocation5 + $0x1e4] ss:$48 sps:$4 sm:$0xff]   ;;  %v16202_v10 = vld [vmem:[#allocation5 + $0x1e0] ss:$48 sps:$4 sm:$0xff]   ;;  %v184_v49 = vld [vmem:[#allocation2 + $0x38] sm:$0xff]  ;;  %vm3174_vm3 = vcmask 64512  }
  0x8b   :  { %v16200_v9 = vld [vmem:[#allocation5 + $0x7e4] ss:$48 sps:$4 sm:$0xff]   ;;  %v16203_v11 = vld [vmem:[#allocation5 + $0x7e0] ss:$48 sps:$4 sm:$0xff]   ;;  %v18187_v54 = vpack.c.bf16 %v184_v49, %v180_v48  ;;  %2589 = vmatprep.mubr.bf16.mxu0 %v18185_v53  ;;  %v16330_v46 = vld [vmem:[#allocation5 + $0x5a8] ss:$48 sps:$4 sm:$0xff]  }
  0x8c   :  { %2560 = vmatpush1.bf16.msra.mxu0 %v16196_v6  ;;  %v16204_v12 = vld [vmem:[#allocation5 + $0x184] ss:$48 sps:$4 sm:$0xff]   ;;  %v16208_v14 = vld [vmem:[#allocation5 + $0x180] ss:$48 sps:$4 sm:$0xff]   ;;  %v16333_v47 = vld [vmem:[#allocation5 + $0xba8] ss:$48 sps:$4 sm:$0xff]  }
  0x8d   :  { %2603 = vmatpush1.bf16.msra.mxu1 %v16197_v7  ;;  %2561 = vmatprep.subr.bf16.mxu0 %v16198_v8  ;;  %v16206_v13 = vld [vmem:[#allocation5 + $0x784] ss:$48 sps:$4 sm:$0xff]   ;;  %v16209_v15 = vld [vmem:[#allocation5 + $0x780] ss:$48 sps:$4 sm:$0xff]   ;;  %v16338_v48 = vld [vmem:[#allocation5 + $0x54c] ss:$48 sps:$4 sm:$0xff]  }
  0x8e   :  { %2604 = vmatprep.subr.bf16.mxu1 %v16200_v9  ;;  %v16210_v16 = vld [vmem:[#allocation5 + $0x124] ss:$48 sps:$4 sm:$0xff]   ;;  %v16214_v18 = vld [vmem:[#allocation5 + $0x120] ss:$48 sps:$4 sm:$0xff]   ;;  %2632 = vmatprep.mubr.bf16.mxu1 %v18187_v54  ;;  %v16341_v49 = vld [vmem:[#allocation5 + $0xb4c] ss:$48 sps:$4 sm:$0xff]  }
  0x8f   :  { %v16212_v17 = vld [vmem:[#allocation5 + $0x724] ss:$48 sps:$4 sm:$0xff]   ;;  %v16215_v19 = vld [vmem:[#allocation5 + $0x720] ss:$48 sps:$4 sm:$0xff]   ;;  %s18081_s8 = smov [#allocation20]  }
  0x90   :  { %2562 = vmatpush1.bf16.msra.mxu0 %v16202_v10  ;;  %v16216_v20 = vld [vmem:[#allocation5 + $0xc4] ss:$48 sps:$4 sm:$0xff]   ;;  %v16220_v22 = vld [vmem:[#allocation5 + $0xc0] ss:$48 sps:$4 sm:$0xff]   ;;  %v16284_v10 = vld [vmem:[#allocation5 + $0x2ac] ss:$48 sps:$4 sm:$0xff]  }
  0x91   :  { %2605 = vmatpush1.bf16.msra.mxu1 %v16203_v11  ;;  %2563 = vmatprep.subr.bf16.mxu0 %v16204_v12  ;;  %v16218_v21 = vld [vmem:[#allocation5 + $0x6c4] ss:$48 sps:$4 sm:$0xff]   ;;  %v16221_v23 = vld [vmem:[#allocation5 + $0x6c0] ss:$48 sps:$4 sm:$0xff]   ;;  %v16287_v11 = vld [vmem:[#allocation5 + $0x8ac] ss:$48 sps:$4 sm:$0xff]  }
  0x92   :  { %2606 = vmatprep.subr.bf16.mxu1 %v16206_v13  ;;  %v16222_v24 = vld [vmem:[#allocation5 + $0x64] ss:$48 sps:$4 sm:$0xff]   ;;  %v16226_v26 = vld [vmem:[#allocation5 + $0x60] ss:$48 sps:$4 sm:$0xff]   ;;  %s14306_s10 = sshll.u32 %s18081_s8, 4  ;;  %s14307_s10 = int_to_ptr.vmem [resolvable:$true] %s14306_s10 }
  0x93   :  { %v16224_v25 = vld [vmem:[#allocation5 + $0x664] ss:$48 sps:$4 sm:$0xff]   ;;  %v16227_v27 = vld [vmem:[#allocation5 + $0x660] ss:$48 sps:$4 sm:$0xff]   ;;  %p18030_p0 = scmp.lt.s32.totalorder %s14307_s10, %s14307_s10 }
  0x94   :  { %2564 = vmatpush1.bf16.msra.mxu0 %v16208_v14  ;;  %v16228_v28 = vld [vmem:[#allocation5 + $0x4] ss:$48 sps:$4 sm:$0xff]   ;;  %v16232_v30 = vld [vmem:[#allocation5] ss:$48 sps:$4 sm:$0xff]   ;;  %v16282_v14 = vld [vmem:[#allocation5 + $0x2a8] ss:$48 sps:$4 sm:$0xff]  }
  0x95   :  { %2607 = vmatpush1.bf16.msra.mxu1 %v16209_v15  ;;  %2565 = vmatprep.subr.bf16.mxu0 %v16210_v16  ;;  %v16230_v29 = vld [vmem:[#allocation5 + $0x604] ss:$48 sps:$4 sm:$0xff]   ;;  %v16233_v31 = vld [vmem:[#allocation5 + $0x600] ss:$48 sps:$4 sm:$0xff]   ;;  %v16285_v15 = vld [vmem:[#allocation5 + $0x8a8] ss:$48 sps:$4 sm:$0xff]  }
  0x96   :  { %2608 = vmatprep.subr.bf16.mxu1 %v16212_v17  ;;  %v16234_v32 = vld [vmem:[#allocation5 + $0x5a4] ss:$48 sps:$4 sm:$0xff]   ;;  %v16238_v34 = vld [vmem:[#allocation5 + $0x5a0] ss:$48 sps:$4 sm:$0xff]   ;;  %v16290_v16 = vld [vmem:[#allocation5 + $0x24c] ss:$48 sps:$4 sm:$0xff]  }
  0x97   :  { %v16236_v33 = vld [vmem:[#allocation5 + $0xba4] ss:$48 sps:$4 sm:$0xff]   ;;  %v16239_v35 = vld [vmem:[#allocation5 + $0xba0] ss:$48 sps:$4 sm:$0xff]   ;;  %v16293_v17 = vld [vmem:[#allocation5 + $0x84c] ss:$48 sps:$4 sm:$0xff]  }
  0x98   :  { %2566 = vmatpush1.bf16.msra.mxu0 %v16214_v18  ;;  %v16240_v36 = vld [vmem:[#allocation5 + $0x544] ss:$48 sps:$4 sm:$0xff]   ;;  %v16244_v38 = vld [vmem:[#allocation5 + $0x540] ss:$48 sps:$4 sm:$0xff]   ;;  %v16288_v18 = vld [vmem:[#allocation5 + $0x248] ss:$48 sps:$4 sm:$0xff]  }
  0x99   :  { %2609 = vmatpush1.bf16.msra.mxu1 %v16215_v19  ;;  %2567 = vmatprep.subr.bf16.mxu0 %v16216_v20  ;;  %v16242_v37 = vld [vmem:[#allocation5 + $0xb44] ss:$48 sps:$4 sm:$0xff]   ;;  %v16245_v39 = vld [vmem:[#allocation5 + $0xb40] ss:$48 sps:$4 sm:$0xff]   ;;  %v16291_v19 = vld [vmem:[#allocation5 + $0x848] ss:$48 sps:$4 sm:$0xff]  }
  0x9a   :  { %2610 = vmatprep.subr.bf16.mxu1 %v16218_v21  ;;  %v16246_v40 = vld [vmem:[#allocation5 + $0x4e4] ss:$48 sps:$4 sm:$0xff]   ;;  %v16250_v42 = vld [vmem:[#allocation5 + $0x4e0] ss:$48 sps:$4 sm:$0xff]   ;;  %v16296_v20 = vld [vmem:[#allocation5 + $0x1ec] ss:$48 sps:$4 sm:$0xff]  }
  0x9b   :  { %v16248_v41 = vld [vmem:[#allocation5 + $0xae4] ss:$48 sps:$4 sm:$0xff]   ;;  %v16251_v43 = vld [vmem:[#allocation5 + $0xae0] ss:$48 sps:$4 sm:$0xff]   ;;  %v16299_v21 = vld [vmem:[#allocation5 + $0x7ec] ss:$48 sps:$4 sm:$0xff]  }
  0x9c   :  { %2568 = vmatpush1.bf16.msra.mxu0 %v16220_v22  ;;  %v16252_v44 = vld [vmem:[#allocation5 + $0x484] ss:$48 sps:$4 sm:$0xff]   ;;  %v16256_v50 = vld [vmem:[#allocation5 + $0x480] ss:$48 sps:$4 sm:$0xff]   ;;  %v16294_v22 = vld [vmem:[#allocation5 + $0x1e8] ss:$48 sps:$4 sm:$0xff]  }
  0x9d   :  { %2611 = vmatpush1.bf16.msra.mxu1 %v16221_v23  ;;  %2569 = vmatprep.subr.bf16.mxu0 %v16222_v24  ;;  %v16254_v45 = vld [vmem:[#allocation5 + $0xa84] ss:$48 sps:$4 sm:$0xff]   ;;  %v16257_v51 = vld [vmem:[#allocation5 + $0xa80] ss:$48 sps:$4 sm:$0xff]   ;;  %v16297_v23 = vld [vmem:[#allocation5 + $0x7e8] ss:$48 sps:$4 sm:$0xff]  }
  0x9e   :  { %2612 = vmatprep.subr.bf16.mxu1 %v16224_v25  ;;  %v16258_v52 = vld [vmem:[#allocation5 + $0x424] ss:$48 sps:$4 sm:$0xff]   ;;  %v16262_v56 = vld [vmem:[#allocation5 + $0x420] ss:$48 sps:$4 sm:$0xff]   ;;  %v16302_v24 = vld [vmem:[#allocation5 + $0x18c] ss:$48 sps:$4 sm:$0xff]  }
  0x9f   :  { %v16260_v55 = vld [vmem:[#allocation5 + $0xa24] ss:$48 sps:$4 sm:$0xff]   ;;  %v16263_v57 = vld [vmem:[#allocation5 + $0xa20] ss:$48 sps:$4 sm:$0xff]   ;;  %v16305_v25 = vld [vmem:[#allocation5 + $0x78c] ss:$48 sps:$4 sm:$0xff]  }
  0xa0   :  { %2570 = vmatpush1.bf16.msra.mxu0 %v16226_v26  ;;  %v16264_v58 = vld [vmem:[#allocation5 + $0x3c4] ss:$48 sps:$4 sm:$0xff]   ;;  %v16268_v60 = vld [vmem:[#allocation5 + $0x3c0] ss:$48 sps:$4 sm:$0xff]   ;;  %v16300_v26 = vld [vmem:[#allocation5 + $0x188] ss:$48 sps:$4 sm:$0xff]  }
  0xa1   :  { %2613 = vmatpush1.bf16.msra.mxu1 %v16227_v27  ;;  %2571 = vmatprep.subr.bf16.mxu0 %v16228_v28  ;;  %v16266_v59 = vld [vmem:[#allocation5 + $0x9c4] ss:$48 sps:$4 sm:$0xff]   ;;  %v16269_v61 = vld [vmem:[#allocation5 + $0x9c0] ss:$48 sps:$4 sm:$0xff]   ;;  %v16303_v27 = vld [vmem:[#allocation5 + $0x788] ss:$48 sps:$4 sm:$0xff]  }
  0xa2   :  { %2614 = vmatprep.subr.bf16.mxu1 %v16230_v29  ;;  %v16270_v62 = vld [vmem:[#allocation5 + $0x364] ss:$48 sps:$4 sm:$0xff]   ;;  %v16274_v0 = vld [vmem:[#allocation5 + $0x360] ss:$48 sps:$4 sm:$0xff]   ;;  %v16308_v28 = vld [vmem:[#allocation5 + $0x12c] ss:$48 sps:$4 sm:$0xff]  }
  0xa3   :  { %v16272_v63 = vld [vmem:[#allocation5 + $0x964] ss:$48 sps:$4 sm:$0xff]   ;;  %v16275_v1 = vld [vmem:[#allocation5 + $0x960] ss:$48 sps:$4 sm:$0xff]   ;;  %v16311_v29 = vld [vmem:[#allocation5 + $0x72c] ss:$48 sps:$4 sm:$0xff]  }
  0xa4   :  { %2572 = vmatpush1.bf16.msra.mxu0 %v16232_v30  ;;  %v16276_v2 = vld [vmem:[#allocation5 + $0x304] ss:$48 sps:$4 sm:$0xff]   ;;  %v16280_v4 = vld [vmem:[#allocation5 + $0x300] ss:$48 sps:$4 sm:$0xff]   ;;  %v16306_v30 = vld [vmem:[#allocation5 + $0x128] ss:$48 sps:$4 sm:$0xff]  }
  0xa5   :  { %2615 = vmatpush1.bf16.msra.mxu1 %v16233_v31  ;;  %2573 = vmatprep.subr.bf16.mxu0 %v16234_v32  ;;  %v16278_v3 = vld [vmem:[#allocation5 + $0x904] ss:$48 sps:$4 sm:$0xff]   ;;  %v16281_v5 = vld [vmem:[#allocation5 + $0x900] ss:$48 sps:$4 sm:$0xff]   ;;  %v16309_v31 = vld [vmem:[#allocation5 + $0x728] ss:$48 sps:$4 sm:$0xff]  }
  0xa6   :  { %2616 = vmatprep.subr.bf16.mxu1 %v16236_v33  ;;  %v177_v6 = vld [vmem:[#allocation2] sm:$0xff]  ;;  %v179_v8 = vld [vmem:[#allocation2 + $0x10] sm:$0xff]  ;;  %v16314_v32 = vld [vmem:[#allocation5 + $0xcc] ss:$48 sps:$4 sm:$0xff]  }
  0xa7   :  { %v181_v7 = vld [vmem:[#allocation2 + $0x20] sm:$0xff]  ;;  %v183_v9 = vld [vmem:[#allocation2 + $0x30] sm:$0xff]  ;;  %v16317_v33 = vld [vmem:[#allocation5 + $0x6cc] ss:$48 sps:$4 sm:$0xff]  }
  0xa8   :  { %2574 = vmatpush2.bf16.msra.mxu0 %v16238_v34  ;;  %v18191_v12 = vpack.c.bf16 %v181_v7, %v177_v6  ;;  %v18193_v13 = vpack.c.bf16 %v183_v9, %v179_v8  ;;  %v16312_v34 = vld [vmem:[#allocation5 + $0xc8] ss:$48 sps:$4 sm:$0xff]   ;;  %v16368_v6 = vld [vmem:[#allocation5 + $0x36c] ss:$48 sps:$4 sm:$0xff]  }
  0xa9   :  { %2617 = vmatpush2.bf16.msra.mxu1 %v16239_v35  ;;  %2575 = vmatprep.subr.bf16.mxu0 %v16240_v36  ;;  %v16315_v35 = vld [vmem:[#allocation5 + $0x6c8] ss:$48 sps:$4 sm:$0xff]   ;;  %v16320_v36 = vld [vmem:[#allocation5 + $0x6c] ss:$48 sps:$4 sm:$0xff]  }
  0xaa   :  { %2618 = vmatprep.subr.bf16.mxu1 %v16242_v37  ;;  %v16323_v37 = vld [vmem:[#allocation5 + $0x66c] ss:$48 sps:$4 sm:$0xff]   ;;  %v16366_v8 = vld [vmem:[#allocation5 + $0x368] ss:$48 sps:$4 sm:$0xff]  }
  0xab   :  { %v16371_v7 = vld [vmem:[#allocation5 + $0x96c] ss:$48 sps:$4 sm:$0xff]   ;;  %v16369_v9 = vld [vmem:[#allocation5 + $0x968] ss:$48 sps:$4 sm:$0xff]  }
  0xac   :  { %2576 = vmatpush2.bf16.msra.mxu0 %v16244_v38  ;;  %v16318_v38 = vld [vmem:[#allocation5 + $0x68] ss:$48 sps:$4 sm:$0xff]  }
  0xad   :  { %2619 = vmatpush2.bf16.msra.mxu1 %v16245_v39  ;;  %2577 = vmatprep.subr.bf16.mxu0 %v16246_v40  ;;  %v16321_v39 = vld [vmem:[#allocation5 + $0x668] ss:$48 sps:$4 sm:$0xff]   ;;  %v16326_v40 = vld [vmem:[#allocation5 + $0xc] ss:$48 sps:$4 sm:$0xff]  }
  0xae   :  { %2620 = vmatprep.subr.bf16.mxu1 %v16248_v41  ;;  %v16329_v41 = vld [vmem:[#allocation5 + $0x60c] ss:$48 sps:$4 sm:$0xff]  }
  0xb0   :  { %2578 = vmatpush2.bf16.msra.mxu0 %v16250_v42  ;;  %v16324_v42 = vld [vmem:[#allocation5 + $0x8] ss:$48 sps:$4 sm:$0xff]  }
  0xb1   :  { %2621 = vmatpush2.bf16.msra.mxu1 %v16251_v43  ;;  %2579 = vmatprep.subr.bf16.mxu0 %v16252_v44  ;;  %v16327_v43 = vld [vmem:[#allocation5 + $0x608] ss:$48 sps:$4 sm:$0xff]   ;;  %v16332_v44 = vld [vmem:[#allocation5 + $0x5ac] ss:$48 sps:$4 sm:$0xff]  }
  0xb2   :  { %2622 = vmatprep.subr.bf16.mxu1 %v16254_v45  ;;  %v16335_v45 = vld [vmem:[#allocation5 + $0xbac] ss:$48 sps:$4 sm:$0xff]  }
  0xb4   :  { %2580 = vmatpush2.bf16.msra.mxu0 %v16256_v50  ;;  %v16336_v50 = vld [vmem:[#allocation5 + $0x548] ss:$48 sps:$4 sm:$0xff]  }
  0xb5   :  { %2623 = vmatpush2.bf16.msra.mxu1 %v16257_v51  ;;  %2581 = vmatprep.subr.bf16.mxu0 %v16258_v52  ;;  %v16339_v51 = vld [vmem:[#allocation5 + $0xb48] ss:$48 sps:$4 sm:$0xff]   ;;  %v16344_v52 = vld [vmem:[#allocation5 + $0x4ec] ss:$48 sps:$4 sm:$0xff]  }
  0xb6   :  { %2624 = vmatprep.subr.bf16.mxu1 %v16260_v55  ;;  %v16347_v55 = vld [vmem:[#allocation5 + $0xaec] ss:$48 sps:$4 sm:$0xff]  }
  0xb8   :  { %2582 = vmatpush2.bf16.msra.mxu0 %v16262_v56  ;;  %v16342_v56 = vld [vmem:[#allocation5 + $0x4e8] ss:$48 sps:$4 sm:$0xff]  }
  0xb9   :  { %2625 = vmatpush2.bf16.msra.mxu1 %v16263_v57  ;;  %2583 = vmatprep.subr.bf16.mxu0 %v16264_v58  ;;  %v16345_v57 = vld [vmem:[#allocation5 + $0xae8] ss:$48 sps:$4 sm:$0xff]   ;;  %v16350_v58 = vld [vmem:[#allocation5 + $0x48c] ss:$48 sps:$4 sm:$0xff]  }
  0xba   :  { %2626 = vmatprep.subr.bf16.mxu1 %v16266_v59  ;;  %v16353_v59 = vld [vmem:[#allocation5 + $0xa8c] ss:$48 sps:$4 sm:$0xff]  }
  0xbc   :  { %2584 = vmatpush2.bf16.msra.mxu0 %v16268_v60  ;;  %v16348_v60 = vld [vmem:[#allocation5 + $0x488] ss:$48 sps:$4 sm:$0xff]  }
  0xbd   :  { %2627 = vmatpush2.bf16.msra.mxu1 %v16269_v61  ;;  %2585 = vmatprep.subr.bf16.mxu0 %v16270_v62  ;;  %v16351_v61 = vld [vmem:[#allocation5 + $0xa88] ss:$48 sps:$4 sm:$0xff]   ;;  %v16356_v62 = vld [vmem:[#allocation5 + $0x42c] ss:$48 sps:$4 sm:$0xff]  }
  0xbe   :  { %2628 = vmatprep.subr.bf16.mxu1 %v16272_v63  ;;  %v16359_v63 = vld [vmem:[#allocation5 + $0xa2c] ss:$48 sps:$4 sm:$0xff]  }
  0xc0   :  { %2586 = vmatpush2.bf16.msra.mxu0 %v16274_v0  ;;  %v16354_v0 = vld [vmem:[#allocation5 + $0x428] ss:$48 sps:$4 sm:$0xff]  }
  0xc1   :  { %2629 = vmatpush2.bf16.msra.mxu1 %v16275_v1  ;;  %2587 = vmatprep.subr.bf16.mxu0 %v16276_v2  ;;  %v16357_v1 = vld [vmem:[#allocation5 + $0xa28] ss:$48 sps:$4 sm:$0xff]   ;;  %v16362_v2 = vld [vmem:[#allocation5 + $0x3cc] ss:$48 sps:$4 sm:$0xff]  }
  0xc2   :  { %2630 = vmatprep.subr.bf16.mxu1 %v16278_v3  ;;  %v16365_v3 = vld [vmem:[#allocation5 + $0x9cc] ss:$48 sps:$4 sm:$0xff]  }
  0xc4   :  { %2588 = vmatpush2.bf16.msra.mxu0 %v16280_v4  ;;  %v16360_v4 = vld [vmem:[#allocation5 + $0x3c8] ss:$48 sps:$4 sm:$0xff]  }
  0xc5   :  { %2631 = vmatpush2.bf16.msra.mxu1 %v16281_v5  ;;  %2643 = vmatprep.subr.bf16.mxu0 %v16284_v10  ;;  %v16363_v5 = vld [vmem:[#allocation5 + $0x9c8] ss:$48 sps:$4 sm:$0xff]   ;;  %v16374_v10 = vld [vmem:[#allocation5 + $0x30c] ss:$48 sps:$4 sm:$0xff]  }
  0xc6   :  { %2686 = vmatprep.subr.bf16.mxu1 %v16287_v11  ;;  %v16377_v11 = vld [vmem:[#allocation5 + $0x90c] ss:$48 sps:$4 sm:$0xff]  }
  0xc7   :  { %2590 = vmatmul.mubr.bf16.vlgmr.msra.gmra.mxu0 %v18191_v12 }
  0xc8   :  { %2633 = vmatmul.mubr.bf16.vlgmr.msra.gmra.mxu1 %v18193_v13  ;;  %2644 = vmatpush1.bf16.msra.mxu0 %v16282_v14  ;;  %v16372_v14 = vld [vmem:[#allocation5 + $0x308] ss:$48 sps:$4 sm:$0xff]  }
  0xc9   :  { %2687 = vmatpush1.bf16.msra.mxu1 %v16285_v15  ;;  %2645 = vmatprep.subr.bf16.mxu0 %v16290_v16  ;;  %v16375_v15 = vld [vmem:[#allocation5 + $0x908] ss:$48 sps:$4 sm:$0xff]   ;;  %v16380_v16 = vld [vmem:[#allocation5 + $0x2b4] ss:$48 sps:$4 sm:$0xff]  }
  0xca   :  { %2688 = vmatprep.subr.bf16.mxu1 %v16293_v17  ;;  %2675 = vmatprep.mubr.bf16.mxu0 %v18185_v53  ;;  %v16383_v17 = vld [vmem:[#allocation5 + $0x8b4] ss:$48 sps:$4 sm:$0xff]  }
  0xcb   :  { %2718 = vmatprep.mubr.bf16.mxu1 %v18187_v54 }
  0xcc   :  { %2646 = vmatpush1.bf16.msra.mxu0 %v16288_v18  ;;  %v16378_v18 = vld [vmem:[#allocation5 + $0x2b0] ss:$48 sps:$4 sm:$0xff]  }
  0xcd   :  { %2689 = vmatpush1.bf16.msra.mxu1 %v16291_v19  ;;  %2647 = vmatprep.subr.bf16.mxu0 %v16296_v20  ;;  %v16381_v19 = vld [vmem:[#allocation5 + $0x8b0] ss:$48 sps:$4 sm:$0xff]   ;;  %v16386_v20 = vld [vmem:[#allocation5 + $0x254] ss:$48 sps:$4 sm:$0xff]  }
  0xce   :  { %2690 = vmatprep.subr.bf16.mxu1 %v16299_v21  ;;  %v16389_v21 = vld [vmem:[#allocation5 + $0x854] ss:$48 sps:$4 sm:$0xff]  }
  0xd0   :  { %2648 = vmatpush1.bf16.msra.mxu0 %v16294_v22  ;;  %v16384_v22 = vld [vmem:[#allocation5 + $0x250] ss:$48 sps:$4 sm:$0xff]  }
  0xd1   :  { %2691 = vmatpush1.bf16.msra.mxu1 %v16297_v23  ;;  %2649 = vmatprep.subr.bf16.mxu0 %v16302_v24  ;;  %v16387_v23 = vld [vmem:[#allocation5 + $0x850] ss:$48 sps:$4 sm:$0xff]   ;;  %v16392_v24 = vld [vmem:[#allocation5 + $0x1f4] ss:$48 sps:$4 sm:$0xff]  }
  0xd2   :  { %2692 = vmatprep.subr.bf16.mxu1 %v16305_v25  ;;  %v16395_v25 = vld [vmem:[#allocation5 + $0x7f4] ss:$48 sps:$4 sm:$0xff]  }
  0xd4   :  { %2650 = vmatpush1.bf16.msra.mxu0 %v16300_v26  ;;  %v16390_v26 = vld [vmem:[#allocation5 + $0x1f0] ss:$48 sps:$4 sm:$0xff]  }
  0xd5   :  { %2693 = vmatpush1.bf16.msra.mxu1 %v16303_v27  ;;  %2651 = vmatprep.subr.bf16.mxu0 %v16308_v28  ;;  %v16393_v27 = vld [vmem:[#allocation5 + $0x7f0] ss:$48 sps:$4 sm:$0xff]   ;;  %v16398_v28 = vld [vmem:[#allocation5 + $0x194] ss:$48 sps:$4 sm:$0xff]  }
  0xd6   :  { %2694 = vmatprep.subr.bf16.mxu1 %v16311_v29  ;;  %v16401_v29 = vld [vmem:[#allocation5 + $0x794] ss:$48 sps:$4 sm:$0xff]  }
  0xd8   :  { %2652 = vmatpush1.bf16.msra.mxu0 %v16306_v30  ;;  %v16396_v30 = vld [vmem:[#allocation5 + $0x190] ss:$48 sps:$4 sm:$0xff]  }
  0xd9   :  { %2695 = vmatpush1.bf16.msra.mxu1 %v16309_v31  ;;  %2653 = vmatprep.subr.bf16.mxu0 %v16314_v32  ;;  %v16399_v31 = vld [vmem:[#allocation5 + $0x790] ss:$48 sps:$4 sm:$0xff]   ;;  %v16404_v32 = vld [vmem:[#allocation5 + $0x134] ss:$48 sps:$4 sm:$0xff]  }
  0xda   :  { %2696 = vmatprep.subr.bf16.mxu1 %v16317_v33  ;;  %v16407_v33 = vld [vmem:[#allocation5 + $0x734] ss:$48 sps:$4 sm:$0xff]  }
  0xdc   :  { %2654 = vmatpush1.bf16.msra.mxu0 %v16312_v34  ;;  %v16402_v34 = vld [vmem:[#allocation5 + $0x130] ss:$48 sps:$4 sm:$0xff]  }
  0xdd   :  { %2697 = vmatpush1.bf16.msra.mxu1 %v16315_v35  ;;  %2655 = vmatprep.subr.bf16.mxu0 %v16320_v36  ;;  %v16405_v35 = vld [vmem:[#allocation5 + $0x730] ss:$48 sps:$4 sm:$0xff]   ;;  %v16410_v36 = vld [vmem:[#allocation5 + $0xd4] ss:$48 sps:$4 sm:$0xff]  }
  0xde   :  { %2698 = vmatprep.subr.bf16.mxu1 %v16323_v37  ;;  %v16413_v37 = vld [vmem:[#allocation5 + $0x6d4] ss:$48 sps:$4 sm:$0xff]  }
  0xe0   :  { %2656 = vmatpush1.bf16.msra.mxu0 %v16318_v38  ;;  %v16408_v38 = vld [vmem:[#allocation5 + $0xd0] ss:$48 sps:$4 sm:$0xff]  }
  0xe1   :  { %2699 = vmatpush1.bf16.msra.mxu1 %v16321_v39  ;;  %2657 = vmatprep.subr.bf16.mxu0 %v16326_v40  ;;  %v16411_v39 = vld [vmem:[#allocation5 + $0x6d0] ss:$48 sps:$4 sm:$0xff]   ;;  %v16416_v40 = vld [vmem:[#allocation5 + $0x74] ss:$48 sps:$4 sm:$0xff]  }
  0xe2   :  { %2700 = vmatprep.subr.bf16.mxu1 %v16329_v41  ;;  %v16419_v41 = vld [vmem:[#allocation5 + $0x674] ss:$48 sps:$4 sm:$0xff]  }
  0xe4   :  { %2658 = vmatpush1.bf16.msra.mxu0 %v16324_v42  ;;  %v16414_v42 = vld [vmem:[#allocation5 + $0x70] ss:$48 sps:$4 sm:$0xff]  }
  0xe5   :  { %2701 = vmatpush1.bf16.msra.mxu1 %v16327_v43  ;;  %2659 = vmatprep.subr.bf16.mxu0 %v16332_v44  ;;  %v16417_v43 = vld [vmem:[#allocation5 + $0x670] ss:$48 sps:$4 sm:$0xff]   ;;  %v16422_v44 = vld [vmem:[#allocation5 + $0x14] ss:$48 sps:$4 sm:$0xff]  }
  0xe6   :  { %2702 = vmatprep.subr.bf16.mxu1 %v16335_v45  ;;  %v16425_v45 = vld [vmem:[#allocation5 + $0x614] ss:$48 sps:$4 sm:$0xff]  }
  0xe8   :  { %2660 = vmatpush2.bf16.msra.mxu0 %v16330_v46  ;;  %v16420_v46 = vld [vmem:[#allocation5 + $0x10] ss:$48 sps:$4 sm:$0xff]  }
  0xe9   :  { %2703 = vmatpush2.bf16.msra.mxu1 %v16333_v47  ;;  %2661 = vmatprep.subr.bf16.mxu0 %v16338_v48  ;;  %v16423_v47 = vld [vmem:[#allocation5 + $0x610] ss:$48 sps:$4 sm:$0xff]   ;;  %v16428_v48 = vld [vmem:[#allocation5 + $0x5b4] ss:$48 sps:$4 sm:$0xff]  }
  0xea   :  { %2704 = vmatprep.subr.bf16.mxu1 %v16341_v49  ;;  %v16431_v49 = vld [vmem:[#allocation5 + $0xbb4] ss:$48 sps:$4 sm:$0xff]  }
  0xec   :  { %2662 = vmatpush2.bf16.msra.mxu0 %v16336_v50  ;;  %v16426_v50 = vld [vmem:[#allocation5 + $0x5b0] ss:$48 sps:$4 sm:$0xff]  }
  0xed   :  { %2705 = vmatpush2.bf16.msra.mxu1 %v16339_v51  ;;  %2663 = vmatprep.subr.bf16.mxu0 %v16344_v52  ;;  %v16429_v51 = vld [vmem:[#allocation5 + $0xbb0] ss:$48 sps:$4 sm:$0xff]   ;;  %v16434_v52 = vld [vmem:[#allocation5 + $0x554] ss:$48 sps:$4 sm:$0xff]  }
  0xee   :  { %2706 = vmatprep.subr.bf16.mxu1 %v16347_v55  ;;  %v16437_v55 = vld [vmem:[#allocation5 + $0xb54] ss:$48 sps:$4 sm:$0xff]  }
  0xf0   :  { %2664 = vmatpush2.bf16.msra.mxu0 %v16342_v56  ;;  %v16432_v56 = vld [vmem:[#allocation5 + $0x550] ss:$48 sps:$4 sm:$0xff]  }
  0xf1   :  { %2707 = vmatpush2.bf16.msra.mxu1 %v16345_v57  ;;  %2665 = vmatprep.subr.bf16.mxu0 %v16350_v58  ;;  %v16435_v57 = vld [vmem:[#allocation5 + $0xb50] ss:$48 sps:$4 sm:$0xff]   ;;  %v16440_v58 = vld [vmem:[#allocation5 + $0x4f4] ss:$48 sps:$4 sm:$0xff]  }
  0xf2   :  { %2708 = vmatprep.subr.bf16.mxu1 %v16353_v59  ;;  %v16443_v59 = vld [vmem:[#allocation5 + $0xaf4] ss:$48 sps:$4 sm:$0xff]  }
  0xf4   :  { %2666 = vmatpush2.bf16.msra.mxu0 %v16348_v60  ;;  %v16438_v60 = vld [vmem:[#allocation5 + $0x4f0] ss:$48 sps:$4 sm:$0xff]  }
  0xf5   :  { %2709 = vmatpush2.bf16.msra.mxu1 %v16351_v61  ;;  %2667 = vmatprep.subr.bf16.mxu0 %v16356_v62  ;;  %v16441_v61 = vld [vmem:[#allocation5 + $0xaf0] ss:$48 sps:$4 sm:$0xff]   ;;  %v16446_v62 = vld [vmem:[#allocation5 + $0x494] ss:$48 sps:$4 sm:$0xff]  }
  0xf6   :  { %2710 = vmatprep.subr.bf16.mxu1 %v16359_v63  ;;  %v16449_v63 = vld [vmem:[#allocation5 + $0xa94] ss:$48 sps:$4 sm:$0xff]  }
  0xf8   :  { %2668 = vmatpush2.bf16.msra.mxu0 %v16354_v0  ;;  %v16444_v0 = vld [vmem:[#allocation5 + $0x490] ss:$48 sps:$4 sm:$0xff]  }
  0xf9   :  { %2711 = vmatpush2.bf16.msra.mxu1 %v16357_v1  ;;  %2669 = vmatprep.subr.bf16.mxu0 %v16362_v2  ;;  %v16447_v1 = vld [vmem:[#allocation5 + $0xa90] ss:$48 sps:$4 sm:$0xff]   ;;  %v16452_v2 = vld [vmem:[#allocation5 + $0x434] ss:$48 sps:$4 sm:$0xff]  }
  0xfa   :  { %2712 = vmatprep.subr.bf16.mxu1 %v16365_v3  ;;  %v16455_v3 = vld [vmem:[#allocation5 + $0xa34] ss:$48 sps:$4 sm:$0xff]  }
  0xfc   :  { %2670 = vmatpush2.bf16.msra.mxu0 %v16360_v4  ;;  %v16450_v4 = vld [vmem:[#allocation5 + $0x430] ss:$48 sps:$4 sm:$0xff]  }
  0xfd   :  { %2713 = vmatpush2.bf16.msra.mxu1 %v16363_v5  ;;  %2671 = vmatprep.subr.bf16.mxu0 %v16368_v6  ;;  %v16453_v5 = vld [vmem:[#allocation5 + $0xa30] ss:$48 sps:$4 sm:$0xff]   ;;  %v16458_v6 = vld [vmem:[#allocation5 + $0x3d4] ss:$48 sps:$4 sm:$0xff]  }
  0xfe   :  { %2714 = vmatprep.subr.bf16.mxu1 %v16371_v7  ;;  %v16461_v7 = vld [vmem:[#allocation5 + $0x9d4] ss:$48 sps:$4 sm:$0xff]  }
 0x100   :  { %2672 = vmatpush2.bf16.msra.mxu0 %v16366_v8  ;;  %v16456_v8 = vld [vmem:[#allocation5 + $0x3d0] ss:$48 sps:$4 sm:$0xff]  }
 0x101   :  { %2715 = vmatpush2.bf16.msra.mxu1 %v16369_v9  ;;  %2673 = vmatprep.subr.bf16.mxu0 %v16374_v10  ;;  %v16459_v9 = vld [vmem:[#allocation5 + $0x9d0] ss:$48 sps:$4 sm:$0xff]   ;;  %v16464_v10 = vld [vmem:[#allocation5 + $0x374] ss:$48 sps:$4 sm:$0xff]  }
 0x102   :  { %2716 = vmatprep.subr.bf16.mxu1 %v16377_v11  ;;  %v16467_v11 = vld [vmem:[#allocation5 + $0x974] ss:$48 sps:$4 sm:$0xff]  }
 0x104   :  { %2674 = vmatpush2.bf16.msra.mxu0 %v16372_v14  ;;  %v16462_v14 = vld [vmem:[#allocation5 + $0x370] ss:$48 sps:$4 sm:$0xff]  }
 0x105   :  { %2717 = vmatpush2.bf16.msra.mxu1 %v16375_v15  ;;  %2729 = vmatprep.subr.bf16.mxu0 %v16380_v16  ;;  %v16465_v15 = vld [vmem:[#allocation5 + $0x970] ss:$48 sps:$4 sm:$0xff]   ;;  %v16470_v16 = vld [vmem:[#allocation5 + $0x314] ss:$48 sps:$4 sm:$0xff]  }
 0x106   :  { %2772 = vmatprep.subr.bf16.mxu1 %v16383_v17  ;;  %v16473_v17 = vld [vmem:[#allocation5 + $0x914] ss:$48 sps:$4 sm:$0xff]  }
 0x107   :  { %2676 = vmatmul.mubr.bf16.vlgmr.msra.gmra.mxu0 %v18191_v12 }
 0x108   :  { %2719 = vmatmul.mubr.bf16.vlgmr.msra.gmra.mxu1 %v18193_v13  ;;  %2730 = vmatpush1.bf16.msra.mxu0 %v16378_v18  ;;  %v16468_v18 = vld [vmem:[#allocation5 + $0x310] ss:$48 sps:$4 sm:$0xff]  }
 0x109   :  { %2773 = vmatpush1.bf16.msra.mxu1 %v16381_v19  ;;  %2731 = vmatprep.subr.bf16.mxu0 %v16386_v20  ;;  %v16471_v19 = vld [vmem:[#allocation5 + $0x910] ss:$48 sps:$4 sm:$0xff]   ;;  %v16476_v20 = vld [vmem:[#allocation5 + $0x2bc] ss:$48 sps:$4 sm:$0xff]  }
 0x10a   :  { %2774 = vmatprep.subr.bf16.mxu1 %v16389_v21  ;;  %2761 = vmatprep.mubr.bf16.mxu0 %v18185_v53  ;;  %v16479_v21 = vld [vmem:[#allocation5 + $0x8bc] ss:$48 sps:$4 sm:$0xff]  }
 0x10b   :  { %2804 = vmatprep.mubr.bf16.mxu1 %v18187_v54 }
 0x10c   :  { %2732 = vmatpush1.bf16.msra.mxu0 %v16384_v22  ;;  %v16474_v22 = vld [vmem:[#allocation5 + $0x2b8] ss:$48 sps:$4 sm:$0xff]  }
 0x10d   :  { %2775 = vmatpush1.bf16.msra.mxu1 %v16387_v23  ;;  %2733 = vmatprep.subr.bf16.mxu0 %v16392_v24  ;;  %v16477_v23 = vld [vmem:[#allocation5 + $0x8b8] ss:$48 sps:$4 sm:$0xff]   ;;  %v16482_v24 = vld [vmem:[#allocation5 + $0x25c] ss:$48 sps:$4 sm:$0xff]  }
 0x10e   :  { %2776 = vmatprep.subr.bf16.mxu1 %v16395_v25  ;;  %v16485_v25 = vld [vmem:[#allocation5 + $0x85c] ss:$48 sps:$4 sm:$0xff]  }
 0x110   :  { %2734 = vmatpush1.bf16.msra.mxu0 %v16390_v26  ;;  %v16480_v26 = vld [vmem:[#allocation5 + $0x258] ss:$48 sps:$4 sm:$0xff]  }
 0x111   :  { %2777 = vmatpush1.bf16.msra.mxu1 %v16393_v27  ;;  %2735 = vmatprep.subr.bf16.mxu0 %v16398_v28  ;;  %v16483_v27 = vld [vmem:[#allocation5 + $0x858] ss:$48 sps:$4 sm:$0xff]   ;;  %v16488_v28 = vld [vmem:[#allocation5 + $0x1fc] ss:$48 sps:$4 sm:$0xff]  }
 0x112   :  { %2778 = vmatprep.subr.bf16.mxu1 %v16401_v29  ;;  %v16491_v29 = vld [vmem:[#allocation5 + $0x7fc] ss:$48 sps:$4 sm:$0xff]  }
 0x114   :  { %2736 = vmatpush1.bf16.msra.mxu0 %v16396_v30  ;;  %v16486_v30 = vld [vmem:[#allocation5 + $0x1f8] ss:$48 sps:$4 sm:$0xff]  }
 0x115   :  { %2779 = vmatpush1.bf16.msra.mxu1 %v16399_v31  ;;  %2737 = vmatprep.subr.bf16.mxu0 %v16404_v32  ;;  %v16489_v31 = vld [vmem:[#allocation5 + $0x7f8] ss:$48 sps:$4 sm:$0xff]   ;;  %v16494_v32 = vld [vmem:[#allocation5 + $0x19c] ss:$48 sps:$4 sm:$0xff]  }
 0x116   :  { %2780 = vmatprep.subr.bf16.mxu1 %v16407_v33  ;;  %v16497_v33 = vld [vmem:[#allocation5 + $0x79c] ss:$48 sps:$4 sm:$0xff]  }
 0x118   :  { %2738 = vmatpush1.bf16.msra.mxu0 %v16402_v34  ;;  %v16492_v34 = vld [vmem:[#allocation5 + $0x198] ss:$48 sps:$4 sm:$0xff]  }
 0x119   :  { %2781 = vmatpush1.bf16.msra.mxu1 %v16405_v35  ;;  %2739 = vmatprep.subr.bf16.mxu0 %v16410_v36  ;;  %v16495_v35 = vld [vmem:[#allocation5 + $0x798] ss:$48 sps:$4 sm:$0xff]   ;;  %v16500_v36 = vld [vmem:[#allocation5 + $0x13c] ss:$48 sps:$4 sm:$0xff]  }
 0x11a   :  { %2782 = vmatprep.subr.bf16.mxu1 %v16413_v37  ;;  %v16503_v37 = vld [vmem:[#allocation5 + $0x73c] ss:$48 sps:$4 sm:$0xff]  }
 0x11c   :  { %2740 = vmatpush1.bf16.msra.mxu0 %v16408_v38  ;;  %v16498_v38 = vld [vmem:[#allocation5 + $0x138] ss:$48 sps:$4 sm:$0xff]  }
 0x11d   :  { %2783 = vmatpush1.bf16.msra.mxu1 %v16411_v39  ;;  %2741 = vmatprep.subr.bf16.mxu0 %v16416_v40  ;;  %v16501_v39 = vld [vmem:[#allocation5 + $0x738] ss:$48 sps:$4 sm:$0xff]   ;;  %v16506_v40 = vld [vmem:[#allocation5 + $0xdc] ss:$48 sps:$4 sm:$0xff]  }
 0x11e   :  { %2784 = vmatprep.subr.bf16.mxu1 %v16419_v41  ;;  %v16509_v41 = vld [vmem:[#allocation5 + $0x6dc] ss:$48 sps:$4 sm:$0xff]  }
 0x120   :  { %2742 = vmatpush1.bf16.msra.mxu0 %v16414_v42  ;;  %v16504_v42 = vld [vmem:[#allocation5 + $0xd8] ss:$48 sps:$4 sm:$0xff]  }
 0x121   :  { %2785 = vmatpush1.bf16.msra.mxu1 %v16417_v43  ;;  %2743 = vmatprep.subr.bf16.mxu0 %v16422_v44  ;;  %v16507_v43 = vld [vmem:[#allocation5 + $0x6d8] ss:$48 sps:$4 sm:$0xff]   ;;  %v16512_v44 = vld [vmem:[#allocation5 + $0x7c] ss:$48 sps:$4 sm:$0xff]  }
 0x122   :  { %2786 = vmatprep.subr.bf16.mxu1 %v16425_v45  ;;  %v16515_v45 = vld [vmem:[#allocation5 + $0x67c] ss:$48 sps:$4 sm:$0xff]  }
 0x124   :  { %2744 = vmatpush1.bf16.msra.mxu0 %v16420_v46  ;;  %v16510_v46 = vld [vmem:[#allocation5 + $0x78] ss:$48 sps:$4 sm:$0xff]  }
 0x125   :  { %2787 = vmatpush1.bf16.msra.mxu1 %v16423_v47  ;;  %2745 = vmatprep.subr.bf16.mxu0 %v16428_v48  ;;  %v16513_v47 = vld [vmem:[#allocation5 + $0x678] ss:$48 sps:$4 sm:$0xff]   ;;  %v16518_v48 = vld [vmem:[#allocation5 + $0x1c] ss:$48 sps:$4 sm:$0xff]  }
 0x126   :  { %2788 = vmatprep.subr.bf16.mxu1 %v16431_v49  ;;  %v16521_v49 = vld [vmem:[#allocation5 + $0x61c] ss:$48 sps:$4 sm:$0xff]  }
 0x128   :  { %2746 = vmatpush2.bf16.msra.mxu0 %v16426_v50  ;;  %v16516_v50 = vld [vmem:[#allocation5 + $0x18] ss:$48 sps:$4 sm:$0xff]  }
 0x129   :  { %2789 = vmatpush2.bf16.msra.mxu1 %v16429_v51  ;;  %2747 = vmatprep.subr.bf16.mxu0 %v16434_v52  ;;  %v16519_v51 = vld [vmem:[#allocation5 + $0x618] ss:$48 sps:$4 sm:$0xff]   ;;  %v16524_v52 = vld [vmem:[#allocation5 + $0x5bc] ss:$48 sps:$4 sm:$0xff]  }
 0x12a   :  { %2790 = vmatprep.subr.bf16.mxu1 %v16437_v55  ;;  %v16527_v55 = vld [vmem:[#allocation5 + $0xbbc] ss:$48 sps:$4 sm:$0xff]  }
 0x12c   :  { %2748 = vmatpush2.bf16.msra.mxu0 %v16432_v56  ;;  %v16522_v56 = vld [vmem:[#allocation5 + $0x5b8] ss:$48 sps:$4 sm:$0xff]  }
 0x12d   :  { %2791 = vmatpush2.bf16.msra.mxu1 %v16435_v57  ;;  %2749 = vmatprep.subr.bf16.mxu0 %v16440_v58  ;;  %v16525_v57 = vld [vmem:[#allocation5 + $0xbb8] ss:$48 sps:$4 sm:$0xff]   ;;  %v16530_v58 = vld [vmem:[#allocation5 + $0x55c] ss:$48 sps:$4 sm:$0xff]  }
 0x12e   :  { %2792 = vmatprep.subr.bf16.mxu1 %v16443_v59  ;;  %v16533_v59 = vld [vmem:[#allocation5 + $0xb5c] ss:$48 sps:$4 sm:$0xff]  }
 0x130   :  { %2750 = vmatpush2.bf16.msra.mxu0 %v16438_v60  ;;  %v16528_v60 = vld [vmem:[#allocation5 + $0x558] ss:$48 sps:$4 sm:$0xff]  }
 0x131   :  { %2793 = vmatpush2.bf16.msra.mxu1 %v16441_v61  ;;  %2751 = vmatprep.subr.bf16.mxu0 %v16446_v62  ;;  %v16531_v61 = vld [vmem:[#allocation5 + $0xb58] ss:$48 sps:$4 sm:$0xff]   ;;  %v16536_v62 = vld [vmem:[#allocation5 + $0x4fc] ss:$48 sps:$4 sm:$0xff]  }
 0x132   :  { %2794 = vmatprep.subr.bf16.mxu1 %v16449_v63  ;;  %v16539_v63 = vld [vmem:[#allocation5 + $0xafc] ss:$48 sps:$4 sm:$0xff]  }
 0x134   :  { %2752 = vmatpush2.bf16.msra.mxu0 %v16444_v0  ;;  %v16534_v0 = vld [vmem:[#allocation5 + $0x4f8] ss:$48 sps:$4 sm:$0xff]  }
 0x135   :  { %2795 = vmatpush2.bf16.msra.mxu1 %v16447_v1  ;;  %2753 = vmatprep.subr.bf16.mxu0 %v16452_v2  ;;  %v16537_v1 = vld [vmem:[#allocation5 + $0xaf8] ss:$48 sps:$4 sm:$0xff]   ;;  %v16542_v2 = vld [vmem:[#allocation5 + $0x49c] ss:$48 sps:$4 sm:$0xff]  }
 0x136   :  { %2796 = vmatprep.subr.bf16.mxu1 %v16455_v3  ;;  %v16545_v3 = vld [vmem:[#allocation5 + $0xa9c] ss:$48 sps:$4 sm:$0xff]  }
 0x138   :  { %2754 = vmatpush2.bf16.msra.mxu0 %v16450_v4  ;;  %v16540_v4 = vld [vmem:[#allocation5 + $0x498] ss:$48 sps:$4 sm:$0xff]  }
 0x139   :  { %2797 = vmatpush2.bf16.msra.mxu1 %v16453_v5  ;;  %2755 = vmatprep.subr.bf16.mxu0 %v16458_v6  ;;  %v16543_v5 = vld [vmem:[#allocation5 + $0xa98] ss:$48 sps:$4 sm:$0xff]   ;;  %v16548_v6 = vld [vmem:[#allocation5 + $0x43c] ss:$48 sps:$4 sm:$0xff]  }
 0x13a   :  { %2798 = vmatprep.subr.bf16.mxu1 %v16461_v7  ;;  %v16551_v7 = vld [vmem:[#allocation5 + $0xa3c] ss:$48 sps:$4 sm:$0xff]  }
 0x13c   :  { %2756 = vmatpush2.bf16.msra.mxu0 %v16456_v8  ;;  %v16546_v8 = vld [vmem:[#allocation5 + $0x438] ss:$48 sps:$4 sm:$0xff]  }
 0x13d   :  { %2799 = vmatpush2.bf16.msra.mxu1 %v16459_v9  ;;  %2757 = vmatprep.subr.bf16.mxu0 %v16464_v10  ;;  %v16549_v9 = vld [vmem:[#allocation5 + $0xa38] ss:$48 sps:$4 sm:$0xff]   ;;  %v16554_v10 = vld [vmem:[#allocation5 + $0x3dc] ss:$48 sps:$4 sm:$0xff]  }
 0x13e   :  { %2800 = vmatprep.subr.bf16.mxu1 %v16467_v11  ;;  %v16557_v11 = vld [vmem:[#allocation5 + $0x9dc] ss:$48 sps:$4 sm:$0xff]  }
 0x140   :  { %2758 = vmatpush2.bf16.msra.mxu0 %v16462_v14  ;;  %v16552_v14 = vld [vmem:[#allocation5 + $0x3d8] ss:$48 sps:$4 sm:$0xff]  }
 0x141   :  { %2801 = vmatpush2.bf16.msra.mxu1 %v16465_v15  ;;  %2759 = vmatprep.subr.bf16.mxu0 %v16470_v16  ;;  %v16555_v15 = vld [vmem:[#allocation5 + $0x9d8] ss:$48 sps:$4 sm:$0xff]   ;;  %v16560_v16 = vld [vmem:[#allocation5 + $0x37c] ss:$48 sps:$4 sm:$0xff]  }
 0x142   :  { %2802 = vmatprep.subr.bf16.mxu1 %v16473_v17  ;;  %v16563_v17 = vld [vmem:[#allocation5 + $0x97c] ss:$48 sps:$4 sm:$0xff]  }
 0x144   :  { %2760 = vmatpush2.bf16.msra.mxu0 %v16468_v18  ;;  %v577_v18 = vlaneseq }
 0x145   :  { %2803 = vmatpush2.bf16.msra.mxu1 %v16471_v19  ;;  %2815 = vmatprep.subr.bf16.mxu0 %v16476_v20  ;;  %v16558_v19 = vld [vmem:[#allocation5 + $0x378] ss:$48 sps:$4 sm:$0xff]  }
 0x146   :  { %2858 = vmatprep.subr.bf16.mxu1 %v16479_v21  ;;  %v16561_v20 = vld [vmem:[#allocation5 + $0x978] ss:$48 sps:$4 sm:$0xff]   ;;  %v16566_v21 = vld [vmem:[#allocation5 + $0x31c] ss:$48 sps:$4 sm:$0xff]  }
 0x147   :  { %2762 = vmatmul.mubr.bf16.vlgmr.msra.gmra.mxu0 %v18191_v12 }
 0x148   :  { %2805 = vmatmul.mubr.bf16.vlgmr.msra.gmra.mxu1 %v18193_v13  ;;  %2816 = vmatpush1.bf16.msra.mxu0 %v16474_v22  ;;  %v16569_v22 = vld [vmem:[#allocation5 + $0x91c] ss:$48 sps:$4 sm:$0xff]  }
 0x149   :  { %2859 = vmatpush1.bf16.msra.mxu1 %v16477_v23  ;;  %2817 = vmatprep.subr.bf16.mxu0 %v16482_v24  ;;  %v18207_v23 = vshrl.u32 %v577_v18, 7  ;;  %v16564_v24 = vld [vmem:[#allocation5 + $0x318] ss:$48 sps:$4 sm:$0xff]   ;;  %v16633_v18 = vld [vmem:[#allocation5 + $0xb00] ss:$48 sps:$4 sm:$0xff]  }
 0x14a   :  { %2860 = vmatprep.subr.bf16.mxu1 %v16485_v25  ;;  %2847 = vmatprep.mubr.bf16.mxu0 %v18185_v53  ;;  %v16567_v25 = vld [vmem:[#allocation5 + $0x918] ss:$48 sps:$4 sm:$0xff]  }
 0x14b   :  { %2890 = vmatprep.mubr.bf16.mxu1 %v18187_v54 }
 0x14c   :  { %2818 = vmatpush1.bf16.msra.mxu0 %v16480_v26  ;;  %v16572_v26 = vld [vmem:[#allocation5 + $0x2c4] ss:$48 sps:$4 sm:$0xff]  }
 0x14d   :  { %2861 = vmatpush1.bf16.msra.mxu1 %v16483_v27  ;;  %2819 = vmatprep.subr.bf16.mxu0 %v16488_v28  ;;  %v16575_v27 = vld [vmem:[#allocation5 + $0x8c4] ss:$48 sps:$4 sm:$0xff]  }
 0x14e   :  { %2862 = vmatprep.subr.bf16.mxu1 %v16491_v29  ;;  %v18209_v28 = vld [vmem:[#allocation7] sm:$0xff]  ;;  %v18212_v29 = vsub.s32 1, %v18207_v23 }
 0x150   :  { %2820 = vmatpush1.bf16.msra.mxu0 %v16486_v30  ;;  %v16570_v30 = vld [vmem:[#allocation5 + $0x2c0] ss:$48 sps:$4 sm:$0xff]  }
 0x151   :  { %2863 = vmatpush1.bf16.msra.mxu1 %v16489_v31  ;;  %2821 = vmatprep.subr.bf16.mxu0 %v16494_v32  ;;  %v16573_v31 = vld [vmem:[#allocation5 + $0x8c0] ss:$48 sps:$4 sm:$0xff]   ;;  %v16578_v32 = vld [vmem:[#allocation5 + $0x264] ss:$48 sps:$4 sm:$0xff]  }
 0x152   :  { %2864 = vmatprep.subr.bf16.mxu1 %v16497_v33  ;;  %v16581_v33 = vld [vmem:[#allocation5 + $0x864] ss:$48 sps:$4 sm:$0xff]  }
 0x154   :  { %2822 = vmatpush1.bf16.msra.mxu0 %v16492_v34  ;;  %v18216_v34 = vrot.slane %v18209_v28, %v18212_v29 }
 0x155   :  { %2865 = vmatpush1.bf16.msra.mxu1 %v16495_v35  ;;  %2823 = vmatprep.subr.bf16.mxu0 %v16500_v36  ;;  %v16576_v35 = vld [vmem:[#allocation5 + $0x260] ss:$48 sps:$4 sm:$0xff]  }
 0x156   :  { %2866 = vmatprep.subr.bf16.mxu1 %v16503_v37  ;;  %v16579_v36 = vld [vmem:[#allocation5 + $0x860] ss:$48 sps:$4 sm:$0xff]  }
 0x158   :  { %2824 = vmatpush1.bf16.msra.mxu0 %v16498_v38 }
 0x159   :  { %2867 = vmatpush1.bf16.msra.mxu1 %v16501_v39  ;;  %2825 = vmatprep.subr.bf16.mxu0 %v16506_v40  ;;  %v16584_v39 = vld [vmem:[#allocation5 + $0x204] ss:$48 sps:$4 sm:$0xff]  }
 0x15a   :  { %2868 = vmatprep.subr.bf16.mxu1 %v16509_v41  ;;  %v16587_v40 = vld [vmem:[#allocation5 + $0x804] ss:$48 sps:$4 sm:$0xff]  }
 0x15c   :  { %2826 = vmatpush1.bf16.msra.mxu0 %v16504_v42 }
 0x15d   :  { %2869 = vmatpush1.bf16.msra.mxu1 %v16507_v43  ;;  %2827 = vmatprep.subr.bf16.mxu0 %v16512_v44  ;;  %v16582_v43 = vld [vmem:[#allocation5 + $0x200] ss:$48 sps:$4 sm:$0xff]  }
 0x15e   :  { %2870 = vmatprep.subr.bf16.mxu1 %v16515_v45  ;;  %v16585_v44 = vld [vmem:[#allocation5 + $0x800] ss:$48 sps:$4 sm:$0xff]  }
 0x160   :  { %2828 = vmatpush1.bf16.msra.mxu0 %v16510_v46  ;;  %v16590_v46 = vld [vmem:[#allocation5 + $0x1a4] ss:$48 sps:$4 sm:$0xff]  }
 0x161   :  { %2871 = vmatpush1.bf16.msra.mxu1 %v16513_v47  ;;  %2829 = vmatprep.subr.bf16.mxu0 %v16518_v48  ;;  %v16593_v47 = vld [vmem:[#allocation5 + $0x7a4] ss:$48 sps:$4 sm:$0xff]  }
 0x162   :  { %2872 = vmatprep.subr.bf16.mxu1 %v16521_v49  ;;  %v16588_v49 = vld [vmem:[#allocation5 + $0x1a0] ss:$48 sps:$4 sm:$0xff]  }
 0x164   :  { %2830 = vmatpush1.bf16.msra.mxu0 %v16516_v50  ;;  %v16591_v50 = vld [vmem:[#allocation5 + $0x7a0] ss:$48 sps:$4 sm:$0xff]  }
 0x165   :  { %2873 = vmatpush1.bf16.msra.mxu1 %v16519_v51  ;;  %2831 = vmatprep.subr.bf16.mxu0 %v16524_v52  ;;  %v16596_v51 = vld [vmem:[#allocation5 + $0x144] ss:$48 sps:$4 sm:$0xff]  }
 0x166   :  { %2874 = vmatprep.subr.bf16.mxu1 %v16527_v55  ;;  %v16599_v52 = vld [vmem:[#allocation5 + $0x744] ss:$48 sps:$4 sm:$0xff]   ;;  %v16594_v55 = vld [vmem:[#allocation5 + $0x140] ss:$48 sps:$4 sm:$0xff]  }
 0x168   :  { %2832 = vmatpush2.bf16.msra.mxu0 %v16522_v56  ;;  %v16597_v56 = vld [vmem:[#allocation5 + $0x740] ss:$48 sps:$4 sm:$0xff]  }
 0x169   :  { %2875 = vmatpush2.bf16.msra.mxu1 %v16525_v57  ;;  %2833 = vmatprep.subr.bf16.mxu0 %v16530_v58  ;;  %v16602_v57 = vld [vmem:[#allocation5 + $0xe4] ss:$48 sps:$4 sm:$0xff]  }
 0x16a   :  { %2876 = vmatprep.subr.bf16.mxu1 %v16533_v59  ;;  %v16605_v58 = vld [vmem:[#allocation5 + $0x6e4] ss:$48 sps:$4 sm:$0xff]   ;;  %v16600_v59 = vld [vmem:[#allocation5 + $0xe0] ss:$48 sps:$4 sm:$0xff]  }
 0x16c   :  { %2834 = vmatpush2.bf16.msra.mxu0 %v16528_v60  ;;  %v16603_v60 = vld [vmem:[#allocation5 + $0x6e0] ss:$48 sps:$4 sm:$0xff]  }
 0x16d   :  { %2877 = vmatpush2.bf16.msra.mxu1 %v16531_v61  ;;  %2835 = vmatprep.subr.bf16.mxu0 %v16536_v62  ;;  %v16608_v61 = vld [vmem:[#allocation5 + $0x84] ss:$48 sps:$4 sm:$0xff]  }
 0x16e   :  { %2878 = vmatprep.subr.bf16.mxu1 %v16539_v63  ;;  %v16611_v62 = vld [vmem:[#allocation5 + $0x684] ss:$48 sps:$4 sm:$0xff]   ;;  %v16606_v63 = vld [vmem:[#allocation5 + $0x80] ss:$48 sps:$4 sm:$0xff]  }
 0x170   :  { %2836 = vmatpush2.bf16.msra.mxu0 %v16534_v0  ;;  %v16609_v0 = vld [vmem:[#allocation5 + $0x680] ss:$48 sps:$4 sm:$0xff]  }
 0x171   :  { %2879 = vmatpush2.bf16.msra.mxu1 %v16537_v1  ;;  %2837 = vmatprep.subr.bf16.mxu0 %v16542_v2  ;;  %v16614_v1 = vld [vmem:[#allocation5 + $0x24] ss:$48 sps:$4 sm:$0xff]  }
 0x172   :  { %2880 = vmatprep.subr.bf16.mxu1 %v16545_v3  ;;  %v16617_v2 = vld [vmem:[#allocation5 + $0x624] ss:$48 sps:$4 sm:$0xff]   ;;  %v16612_v3 = vld [vmem:[#allocation5 + $0x20] ss:$48 sps:$4 sm:$0xff]  }
 0x174   :  { %2838 = vmatpush2.bf16.msra.mxu0 %v16540_v4  ;;  %v16615_v4 = vld [vmem:[#allocation5 + $0x620] ss:$48 sps:$4 sm:$0xff]  }
 0x175   :  { %2881 = vmatpush2.bf16.msra.mxu1 %v16543_v5  ;;  %2839 = vmatprep.subr.bf16.mxu0 %v16548_v6  ;;  %v16620_v5 = vld [vmem:[#allocation5 + $0x5c4] ss:$48 sps:$4 sm:$0xff]  }
 0x176   :  { %2882 = vmatprep.subr.bf16.mxu1 %v16551_v7  ;;  %v16623_v6 = vld [vmem:[#allocation5 + $0xbc4] ss:$48 sps:$4 sm:$0xff]   ;;  %v16618_v7 = vld [vmem:[#allocation5 + $0x5c0] ss:$48 sps:$4 sm:$0xff]  }
 0x178   :  { %2840 = vmatpush2.bf16.msra.mxu0 %v16546_v8  ;;  %v16621_v8 = vld [vmem:[#allocation5 + $0xbc0] ss:$48 sps:$4 sm:$0xff]  }
 0x179   :  { %2883 = vmatpush2.bf16.msra.mxu1 %v16549_v9  ;;  %2841 = vmatprep.subr.bf16.mxu0 %v16554_v10  ;;  %v16626_v9 = vld [vmem:[#allocation5 + $0x564] ss:$48 sps:$4 sm:$0xff]  }
 0x17a   :  { %2884 = vmatprep.subr.bf16.mxu1 %v16557_v11  ;;  %v16629_v10 = vld [vmem:[#allocation5 + $0xb64] ss:$48 sps:$4 sm:$0xff]   ;;  %v16624_v11 = vld [vmem:[#allocation5 + $0x560] ss:$48 sps:$4 sm:$0xff]  }
 0x17c   :  { %2842 = vmatpush2.bf16.msra.mxu0 %v16552_v14  ;;  %v16627_v14 = vld [vmem:[#allocation5 + $0xb60] ss:$48 sps:$4 sm:$0xff]  }
 0x17d   :  { %2885 = vmatpush2.bf16.msra.mxu1 %v16555_v15  ;;  %2843 = vmatprep.subr.bf16.mxu0 %v16560_v16  ;;  %v16632_v15 = vld [vmem:[#allocation5 + $0x504] ss:$48 sps:$4 sm:$0xff]  }
 0x17e   :  { %2886 = vmatprep.subr.bf16.mxu1 %v16563_v17  ;;  %v16635_v16 = vld [vmem:[#allocation5 + $0xb04] ss:$48 sps:$4 sm:$0xff]   ;;  %v16630_v17 = vld [vmem:[#allocation5 + $0x500] ss:$48 sps:$4 sm:$0xff]  }
 0x180   :  { %2844 = vmatpush2.bf16.msra.mxu0 %v16558_v19  ;;  %v16638_v19 = vld [vmem:[#allocation5 + $0x4a4] ss:$48 sps:$4 sm:$0xff]  }
 0x181   :  { %2887 = vmatpush2.bf16.msra.mxu1 %v16561_v20  ;;  %2845 = vmatprep.subr.bf16.mxu0 %v16566_v21  ;;  %v16641_v20 = vld [vmem:[#allocation5 + $0xaa4] ss:$48 sps:$4 sm:$0xff]   ;;  %v16636_v21 = vld [vmem:[#allocation5 + $0x4a0] ss:$48 sps:$4 sm:$0xff]  }
 0x182   :  { %2888 = vmatprep.subr.bf16.mxu1 %v16569_v22  ;;  %v16639_v22 = vld [vmem:[#allocation5 + $0xaa0] ss:$48 sps:$4 sm:$0xff]  }
 0x184   :  { %2846 = vmatpush2.bf16.msra.mxu0 %v16564_v24  ;;  %v16644_v24 = vld [vmem:[#allocation5 + $0x444] ss:$48 sps:$4 sm:$0xff]  }
 0x185   :  { %2889 = vmatpush2.bf16.msra.mxu1 %v16567_v25  ;;  %2901 = vmatprep.subr.bf16.mxu0 %v16572_v26  ;;  %v16647_v25 = vld [vmem:[#allocation5 + $0xa44] ss:$48 sps:$4 sm:$0xff]   ;;  %v16642_v26 = vld [vmem:[#allocation5 + $0x440] ss:$48 sps:$4 sm:$0xff]  }
 0x186   :  { %2944 = vmatprep.subr.bf16.mxu1 %v16575_v27  ;;  %v16645_v27 = vld [vmem:[#allocation5 + $0xa40] ss:$48 sps:$4 sm:$0xff]  }
 0x187   :  { %v18218_v37 = vpop.f32.mrf.mxu0  ;;  %2848 = vmatmul.mubr.bf16.vlgmr.msra.gmra.mxu0 %v18191_v12 }
 0x188   :  { %v18220_v38 = vpop.f32.mrf.mxu1  ;;  %2891 = vmatmul.mubr.bf16.vlgmr.msra.gmra.mxu1 %v18193_v13  ;;  %2902 = vmatpush1.bf16.msra.mxu0 %v16570_v30  ;;  %v16650_v30 = vld [vmem:[#allocation5 + $0x3e4] ss:$48 sps:$4 sm:$0xff]  }
 0x189   :  { %2945 = vmatpush1.bf16.msra.mxu1 %v16573_v31  ;;  %v2593_v41 = vpop.f32.mrf.mxu0  ;;  %2903 = vmatprep.subr.bf16.mxu0 %v16578_v32  ;;  %v16653_v31 = vld [vmem:[#allocation5 + $0x9e4] ss:$48 sps:$4 sm:$0xff]   ;;  %v16648_v32 = vld [vmem:[#allocation5 + $0x3e0] ss:$48 sps:$4 sm:$0xff]  }
 0x18a   :  { %2946 = vmatprep.subr.bf16.mxu1 %v16581_v33  ;;  %v2594_v42 = vadd.f32 %v2593_v41, %v18216_v34  ;;  %2933 = vmatprep.mubr.bf16.mxu0 %v18185_v53  ;;  %v2636_v45 = vpop.f32.mrf.mxu1  ;;  %v16651_v33 = vld [vmem:[#allocation5 + $0x9e0] ss:$48 sps:$4 sm:$0xff]   ;;  %v16662_v41 = vld [vmem:[#allocation5 + $0x324] ss:$48 sps:$4 sm:$0xff]  }
 0x18b   :  { %2976 = vmatprep.mubr.bf16.mxu1 %v18187_v54 }
 0x18c   :  { %v18227_v48 = vadd.f32 %v2636_v45, %v2594_v42  ;;  %2904 = vmatpush1.bf16.msra.mxu0 %v16576_v35  ;;  %v16656_v35 = vld [vmem:[#allocation5 + $0x384] ss:$48 sps:$4 sm:$0xff]   ;;  %v16668_v45 = vld [vmem:[#allocation5 + $0x2cc] ss:$48 sps:$4 sm:$0xff]  }
 0x18d   :  { %2947 = vmatpush1.bf16.msra.mxu1 %v16579_v36  ;;  %2905 = vmatprep.subr.bf16.mxu0 %v16584_v39  ;;  %v16659_v36 = vld [vmem:[#allocation5 + $0x984] ss:$48 sps:$4 sm:$0xff]   ;;  %v16654_v39 = vld [vmem:[#allocation5 + $0x380] ss:$48 sps:$4 sm:$0xff]  }
 0x18e   :  { %2948 = vmatprep.subr.bf16.mxu1 %v16587_v40  ;;  %v16657_v40 = vld [vmem:[#allocation5 + $0x980] ss:$48 sps:$4 sm:$0xff]   ;;  %v16665_v42 = vld [vmem:[#allocation5 + $0x924] ss:$48 sps:$4 sm:$0xff]  }
 0x190   :  { %2906 = vmatpush1.bf16.msra.mxu0 %v16582_v43  ;;  %v16660_v43 = vld [vmem:[#allocation5 + $0x320] ss:$48 sps:$4 sm:$0xff]  }
 0x191   :  { %2949 = vmatpush1.bf16.msra.mxu1 %v16585_v44  ;;  %2907 = vmatprep.subr.bf16.mxu0 %v16590_v46  ;;  %v16663_v44 = vld [vmem:[#allocation5 + $0x920] ss:$48 sps:$4 sm:$0xff]   ;;  %v16671_v46 = vld [vmem:[#allocation5 + $0x8cc] ss:$48 sps:$4 sm:$0xff]  }
 0x192   :  { %2950 = vmatprep.subr.bf16.mxu1 %v16593_v47  ;;  %v18230_v47 = vsub.s32 2, %v18207_v23 }
 0x194   :  { %2908 = vmatpush1.bf16.msra.mxu0 %v16588_v49  ;;  %v18232_v49 = vpop.f32.mrf.mxu0 }
 0x195   :  { %2951 = vmatpush1.bf16.msra.mxu1 %v16591_v50  ;;  %2909 = vmatprep.subr.bf16.mxu0 %v16596_v51  ;;  %v18234_v50 = vpop.f32.mrf.mxu1  ;;  %v16666_v51 = vld [vmem:[#allocation5 + $0x2c8] ss:$48 sps:$4 sm:$0xff]  }
 0x196   :  { %2952 = vmatprep.subr.bf16.mxu1 %v16599_v52  ;;  %v18237_v52 = vsub.s32 3, %v18207_v23 }
 0x198   :  { %2910 = vmatpush1.bf16.msra.mxu0 %v16594_v55  ;;  %v16669_v55 = vld [vmem:[#allocation5 + $0x8c8] ss:$48 sps:$4 sm:$0xff]  }
 0x199   :  { %2953 = vmatpush1.bf16.msra.mxu1 %v16597_v56  ;;  %2911 = vmatprep.subr.bf16.mxu0 %v16602_v57  ;;  %v16674_v56 = vld [vmem:[#allocation5 + $0x26c] ss:$48 sps:$4 sm:$0xff]  }
 0x19a   :  { %2954 = vmatprep.subr.bf16.mxu1 %v16605_v58  ;;  %v16677_v57 = vld [vmem:[#allocation5 + $0x86c] ss:$48 sps:$4 sm:$0xff]   ;;  %v588_v58 = vrot.slane %v18209_v28, %v18230_v47 }
 0x19c   :  { %2912 = vmatpush1.bf16.msra.mxu0 %v16600_v59  ;;  %v18241_v59 = vpop.f32.mrf.mxu0 }
 0x19d   :  { %2955 = vmatpush1.bf16.msra.mxu1 %v16603_v60  ;;  %2913 = vmatprep.subr.bf16.mxu0 %v16608_v61  ;;  %v18243_v60 = vpop.f32.mrf.mxu1  ;;  %v18247_v61 = vrot.slane %v18209_v28, %v18237_v52 }
 0x19e   :  { %2956 = vmatprep.subr.bf16.mxu1 %v16611_v62  ;;  %v16672_v62 = vld [vmem:[#allocation5 + $0x268] ss:$48 sps:$4 sm:$0xff]  }
 0x1a0   :  { %2914 = vmatpush1.bf16.msra.mxu0 %v16606_v63  ;;  %v16675_v63 = vld [vmem:[#allocation5 + $0x868] ss:$48 sps:$4 sm:$0xff]  }
 0x1a1   :  { %2957 = vmatpush1.bf16.msra.mxu1 %v16609_v0  ;;  %2915 = vmatprep.subr.bf16.mxu0 %v16614_v1 }
 0x1a2   :  { %2958 = vmatprep.subr.bf16.mxu1 %v16617_v2  ;;  %v16680_v2 = vld [vmem:[#allocation5 + $0x20c] ss:$48 sps:$4 sm:$0xff]  }
 0x1a4   :  { %2916 = vmatpush1.bf16.msra.mxu0 %v16612_v3  ;;  %v16683_v3 = vld [vmem:[#allocation5 + $0x80c] ss:$48 sps:$4 sm:$0xff]  }
 0x1a5   :  { %2959 = vmatpush1.bf16.msra.mxu1 %v16615_v4  ;;  %2917 = vmatprep.subr.bf16.mxu0 %v16620_v5 }
 0x1a6   :  { %2960 = vmatprep.subr.bf16.mxu1 %v16623_v6 }
 0x1a8   :  { %2918 = vmatpush2.bf16.msra.mxu0 %v16618_v7 }
 0x1a9   :  { %2961 = vmatpush2.bf16.msra.mxu1 %v16621_v8  ;;  %2919 = vmatprep.subr.bf16.mxu0 %v16626_v9  ;;  %v16678_v8 = vld [vmem:[#allocation5 + $0x208] ss:$48 sps:$4 sm:$0xff]  }
 0x1aa   :  { %2962 = vmatprep.subr.bf16.mxu1 %v16629_v10  ;;  %v16681_v9 = vld [vmem:[#allocation5 + $0x808] ss:$48 sps:$4 sm:$0xff]  }
 0x1ac   :  { %2920 = vmatpush2.bf16.msra.mxu0 %v16624_v11  ;;  %v16686_v11 = vld [vmem:[#allocation5 + $0x1ac] ss:$48 sps:$4 sm:$0xff]  }
 0x1ad   :  { %2963 = vmatpush2.bf16.msra.mxu1 %v16627_v14  ;;  %2921 = vmatprep.subr.bf16.mxu0 %v16632_v15  ;;  %v16689_v14 = vld [vmem:[#allocation5 + $0x7ac] ss:$48 sps:$4 sm:$0xff]  }
 0x1ae   :  { %2964 = vmatprep.subr.bf16.mxu1 %v16635_v16 }
 0x1b0   :  { %2922 = vmatpush2.bf16.msra.mxu0 %v16630_v17 }
 0x1b1   :  { %2965 = vmatpush2.bf16.msra.mxu1 %v16633_v18  ;;  %2923 = vmatprep.subr.bf16.mxu0 %v16638_v19  ;;  %v16684_v19 = vld [vmem:[#allocation5 + $0x1a8] ss:$48 sps:$4 sm:$0xff]  }
 0x1b2   :  { %2966 = vmatprep.subr.bf16.mxu1 %v16641_v20  ;;  %v16687_v20 = vld [vmem:[#allocation5 + $0x7a8] ss:$48 sps:$4 sm:$0xff]  }
 0x1b4   :  { %2924 = vmatpush2.bf16.msra.mxu0 %v16636_v21  ;;  %v16692_v21 = vld [vmem:[#allocation5 + $0x14c] ss:$48 sps:$4 sm:$0xff]  }
 0x1b5   :  { %2967 = vmatpush2.bf16.msra.mxu1 %v16639_v22  ;;  %2925 = vmatprep.subr.bf16.mxu0 %v16644_v24  ;;  %v16695_v22 = vld [vmem:[#allocation5 + $0x74c] ss:$48 sps:$4 sm:$0xff]  }
 0x1b6   :  { %2968 = vmatprep.subr.bf16.mxu1 %v16647_v25  ;;  %v16698_v24 = vld [vmem:[#allocation5 + $0xec] ss:$48 sps:$4 sm:$0xff]  }
 0x1b7   :  { %v16701_v25 = vld [vmem:[#allocation5 + $0x6ec] ss:$48 sps:$4 sm:$0xff]  }
 0x1b8   :  { %2926 = vmatpush2.bf16.msra.mxu0 %v16642_v26  ;;  %v16696_v26 = vld [vmem:[#allocation5 + $0xe8] ss:$48 sps:$4 sm:$0xff]  }
 0x1b9   :  { %2969 = vmatpush2.bf16.msra.mxu1 %v16645_v27  ;;  %2927 = vmatprep.subr.bf16.mxu0 %v16650_v30  ;;  %v16699_v27 = vld [vmem:[#allocation5 + $0x6e8] ss:$48 sps:$4 sm:$0xff]   ;;  %v16704_v30 = vld [vmem:[#allocation5 + $0x8c] ss:$48 sps:$4 sm:$0xff]  }
 0x1ba   :  { %2970 = vmatprep.subr.bf16.mxu1 %v16653_v31  ;;  %v16707_v31 = vld [vmem:[#allocation5 + $0x68c] ss:$48 sps:$4 sm:$0xff]  }
 0x1bc   :  { %2928 = vmatpush2.bf16.msra.mxu0 %v16648_v32  ;;  %v16702_v32 = vld [vmem:[#allocation5 + $0x88] ss:$48 sps:$4 sm:$0xff]  }
 0x1bd   :  { %2971 = vmatpush2.bf16.msra.mxu1 %v16651_v33  ;;  %2929 = vmatprep.subr.bf16.mxu0 %v16656_v35  ;;  %v16705_v33 = vld [vmem:[#allocation5 + $0x688] ss:$48 sps:$4 sm:$0xff]   ;;  %v16710_v35 = vld [vmem:[#allocation5 + $0x2c] ss:$48 sps:$4 sm:$0xff]  }
 0x1be   :  { %2972 = vmatprep.subr.bf16.mxu1 %v16659_v36  ;;  %v16713_v36 = vld [vmem:[#allocation5 + $0x62c] ss:$48 sps:$4 sm:$0xff]  }
 0x1c0   :  { %2930 = vmatpush2.bf16.msra.mxu0 %v16654_v39  ;;  %v16708_v39 = vld [vmem:[#allocation5 + $0x28] ss:$48 sps:$4 sm:$0xff]  }
 0x1c1   :  { %2973 = vmatpush2.bf16.msra.mxu1 %v16657_v40  ;;  %2931 = vmatprep.subr.bf16.mxu0 %v16662_v41  ;;  %v16711_v40 = vld [vmem:[#allocation5 + $0x628] ss:$48 sps:$4 sm:$0xff]   ;;  %v16716_v41 = vld [vmem:[#allocation5 + $0x5cc] ss:$48 sps:$4 sm:$0xff]  }
 0x1c2   :  { %2974 = vmatprep.subr.bf16.mxu1 %v16665_v42  ;;  %v16719_v42 = vld [vmem:[#allocation5 + $0xbcc] ss:$48 sps:$4 sm:$0xff]  }
 0x1c4   :  { %2932 = vmatpush2.bf16.msra.mxu0 %v16660_v43  ;;  %v16714_v43 = vld [vmem:[#allocation5 + $0x5c8] ss:$48 sps:$4 sm:$0xff]  }
 0x1c5   :  { %2975 = vmatpush2.bf16.msra.mxu1 %v16663_v44  ;;  %2987 = vmatprep.subr.bf16.mxu0 %v16668_v45  ;;  %v16717_v44 = vld [vmem:[#allocation5 + $0xbc8] ss:$48 sps:$4 sm:$0xff]   ;;  %v16722_v45 = vld [vmem:[#allocation5 + $0x56c] ss:$48 sps:$4 sm:$0xff]  }
 0x1c6   :  { %3030 = vmatprep.subr.bf16.mxu1 %v16671_v46  ;;  %v16725_v46 = vld [vmem:[#allocation5 + $0xb6c] ss:$48 sps:$4 sm:$0xff]  }
 0x1c7   :  { %v2677_v0 = vpop.f32.mrf.mxu0  ;;  %2934 = vmatmul.mubr.bf16.vlgmr.msra.gmra.mxu0 %v18191_v12 }
 0x1c8   :  { %v2720_v1 = vpop.f32.mrf.mxu1  ;;  %2977 = vmatmul.mubr.bf16.vlgmr.msra.gmra.mxu1 %v18193_v13  ;;  %v2678_v4 = vadd.f32 %v2677_v0, %v588_v58  ;;  %2988 = vmatpush1.bf16.msra.mxu0 %v16666_v51  ;;  %v16720_v51 = vld [vmem:[#allocation5 + $0x568] ss:$48 sps:$4 sm:$0xff]   ;;  %v16737_v0 = vld [vmem:[#allocation5 + $0xaac] ss:$48 sps:$4 sm:$0xff]  }
 0x1c9   :  { %3031 = vmatpush1.bf16.msra.mxu1 %v16669_v55  ;;  %v2679_v5 = vpop.f32.mrf.mxu0  ;;  %2989 = vmatprep.subr.bf16.mxu0 %v16674_v56  ;;  %v16723_v55 = vld [vmem:[#allocation5 + $0xb68] ss:$48 sps:$4 sm:$0xff]   ;;  %v16728_v56 = vld [vmem:[#allocation5 + $0x50c] ss:$48 sps:$4 sm:$0xff]  }
 0x1ca   :  { %v2722_v6 = vpop.f32.mrf.mxu1  ;;  %3032 = vmatprep.subr.bf16.mxu1 %v16677_v57  ;;  %v18251_v7 = vadd.f32 %v2720_v1, %v2678_v4  ;;  %v2680_v28 = vadd.f32 %v2679_v5, %v18247_v61  ;;  %3019 = vmatprep.mubr.bf16.mxu0 %v18185_v53  ;;  %v16690_v53 = vld [vmem:[#allocation5 + $0x148] ss:$48 sps:$4 sm:$0xff]   ;;  %v16731_v57 = vld [vmem:[#allocation5 + $0xb0c] ss:$48 sps:$4 sm:$0xff]  }
 0x1cb   :  { %3062 = vmatprep.mubr.bf16.mxu1 %v18187_v54  ;;  %v2681_v10 = vpop.f32.mrf.mxu0  ;;  %v16693_v54 = vld [vmem:[#allocation5 + $0x748] ss:$48 sps:$4 sm:$0xff]   ;;  %v16743_v4 = vld [vmem:[#allocation5 + $0xa4c] ss:$48 sps:$4 sm:$0xff]  }
 0x1cc   :  { %v18256_v15 = vadd.f32 %v2722_v6, %v2680_v28  ;;  %v2682_v16 = vadd.f32 %v2681_v10, %v588_v58  ;;  %2990 = vmatpush1.bf16.msra.mxu0 %v16672_v62  ;;  %v2724_v17 = vpop.f32.mrf.mxu1  ;;  %v16726_v58 = vld [vmem:[#allocation5 + $0x508] ss:$48 sps:$4 sm:$0xff]   ;;  %v16746_v28 = vld [vmem:[#allocation5 + $0x3ec] ss:$48 sps:$4 sm:$0xff]  }
 0x1cd   :  { %3033 = vmatpush1.bf16.msra.mxu1 %v16675_v63  ;;  %2991 = vmatprep.subr.bf16.mxu0 %v16680_v2  ;;  %v16729_v62 = vld [vmem:[#allocation5 + $0xb08] ss:$48 sps:$4 sm:$0xff]   ;;  %v16734_v63 = vld [vmem:[#allocation5 + $0x4ac] ss:$48 sps:$4 sm:$0xff]  }
 0x1ce   :  { %3034 = vmatprep.subr.bf16.mxu1 %v16683_v3  ;;  %v18258_v18 = vadd.f32 %v2724_v17, %v2682_v16  ;;  %v16732_v1 = vld [vmem:[#allocation5 + $0x4a8] ss:$48 sps:$4 sm:$0xff]   ;;  %v16740_v3 = vld [vmem:[#allocation5 + $0x44c] ss:$48 sps:$4 sm:$0xff]  }
 0x1cf   :  { %v16735_v2 = vld [vmem:[#allocation5 + $0xaa8] ss:$48 sps:$4 sm:$0xff]  }
 0x1d0   :  { %2992 = vmatpush1.bf16.msra.mxu0 %v16678_v8  ;;  %v16738_v5 = vld [vmem:[#allocation5 + $0x448] ss:$48 sps:$4 sm:$0xff]   ;;  %v16749_v8 = vld [vmem:[#allocation5 + $0x9ec] ss:$48 sps:$4 sm:$0xff]  }
 0x1d1   :  { %3035 = vmatpush1.bf16.msra.mxu1 %v16681_v9  ;;  %2993 = vmatprep.subr.bf16.mxu0 %v16686_v11  ;;  %v16741_v6 = vld [vmem:[#allocation5 + $0xa48] ss:$48 sps:$4 sm:$0xff]   ;;  %v16752_v11 = vld [vmem:[#allocation5 + $0x38c] ss:$48 sps:$4 sm:$0xff]  }
 0x1d2   :  { %3036 = vmatprep.subr.bf16.mxu1 %v16689_v14  ;;  %v16744_v9 = vld [vmem:[#allocation5 + $0x3e8] ss:$48 sps:$4 sm:$0xff]   ;;  %v16755_v14 = vld [vmem:[#allocation5 + $0x98c] ss:$48 sps:$4 sm:$0xff]  }
 0x1d3   :  { %v16747_v10 = vld [vmem:[#allocation5 + $0x9e8] ss:$48 sps:$4 sm:$0xff]  }
 0x1d4   :  { %2994 = vmatpush1.bf16.msra.mxu0 %v16684_v19  ;;  %v16750_v16 = vld [vmem:[#allocation5 + $0x388] ss:$48 sps:$4 sm:$0xff]   ;;  %v16758_v19 = vld [vmem:[#allocation5 + $0x32c] ss:$48 sps:$4 sm:$0xff]  }
 0x1d5   :  { %3037 = vmatpush1.bf16.msra.mxu1 %v16687_v20  ;;  %2995 = vmatprep.subr.bf16.mxu0 %v16692_v21  ;;  %v16753_v17 = vld [vmem:[#allocation5 + $0x988] ss:$48 sps:$4 sm:$0xff]   ;;  %v16761_v20 = vld [vmem:[#allocation5 + $0x92c] ss:$48 sps:$4 sm:$0xff]  }
 0x1d6   :  { %3038 = vmatprep.subr.bf16.mxu1 %v16695_v22  ;;  %v16756_v21 = vld [vmem:[#allocation5 + $0x328] ss:$48 sps:$4 sm:$0xff]  }
 0x1d7   :  { %v16759_v22 = vld [vmem:[#allocation5 + $0x928] ss:$48 sps:$4 sm:$0xff]  }
 0x1d8   :  { %2996 = vmatpush1.bf16.msra.mxu0 %v16690_v53  ;;  %v18261_v53 = vsub.s32 4, %v18207_v23 }
 0x1d9   :  { %3039 = vmatpush1.bf16.msra.mxu1 %v16693_v54  ;;  %2997 = vmatprep.subr.bf16.mxu0 %v16698_v24  ;;  %v18264_v54 = vsub.s32 5, %v18207_v23  ;;  %v18267_v24 = vsub.s32 0, %v18207_v23 }
 0x1da   :  { %3040 = vmatprep.subr.bf16.mxu1 %v16701_v25  ;;  %v17794_v25 = vld [vmem:[#allocation7] sm:$0xff] }
 0x1dc   :  { %2998 = vmatpush1.bf16.msra.mxu0 %v16696_v26  ;;  %v596_v26 = vrot.slane %v17794_v25, %v18261_v53 }
 0x1dd   :  { %3041 = vmatpush1.bf16.msra.mxu1 %v16699_v27  ;;  %2999 = vmatprep.subr.bf16.mxu0 %v16704_v30  ;;  %v18270_v27 = vpop.f32.mrf.mxu0  ;;  %v18272_v30 = vpop.f32.mrf.mxu1 }
 0x1de   :  { %3042 = vmatprep.subr.bf16.mxu1 %v16707_v31  ;;  %v18078_v31 = vmov 0.0  }
 0x1e0   :  { %3000 = vmatpush1.bf16.msra.mxu0 %v16702_v32  ;;  %v18277_v32 = vrot.slane %v17794_v25, %v18264_v54 }
 0x1e1   :  { %3043 = vmatpush1.bf16.msra.mxu1 %v16705_v33  ;;  %3001 = vmatprep.subr.bf16.mxu0 %v16710_v35 }
 0x1e2   :  { %3044 = vmatprep.subr.bf16.mxu1 %v16713_v36  ;;  %v580_v36 = vrot.slane %v17794_v25, %v18267_v24 }
 0x1e4   :  { %3002 = vmatpush1.bf16.msra.mxu0 %v16708_v39 }
 0x1e5   :  { %3045 = vmatpush1.bf16.msra.mxu1 %v16711_v40  ;;  %3003 = vmatprep.subr.bf16.mxu0 %v16716_v41 }
 0x1e6   :  { %3046 = vmatprep.subr.bf16.mxu1 %v16719_v42 }
 0x1e8   :  { %3004 = vmatpush2.bf16.msra.mxu0 %v16714_v43 }
 0x1e9   :  { %3047 = vmatpush2.bf16.msra.mxu1 %v16717_v44  ;;  %3005 = vmatprep.subr.bf16.mxu0 %v16722_v45 }
 0x1ea   :  { %3048 = vmatprep.subr.bf16.mxu1 %v16725_v46 }
 0x1ec   :  { %3006 = vmatpush2.bf16.msra.mxu0 %v16720_v51 }
 0x1ed   :  { %3049 = vmatpush2.bf16.msra.mxu1 %v16723_v55  ;;  %3007 = vmatprep.subr.bf16.mxu0 %v16728_v56 }
 0x1ee   :  { %3050 = vmatprep.subr.bf16.mxu1 %v16731_v57 }
 0x1f0   :  { %3008 = vmatpush2.bf16.msra.mxu0 %v16726_v58  ;;  %v2596_v58 = vadd.f32 %v18232_v49, %v580_v36  ;;  %v18314_v49 = vsub.s32 6, %v18207_v23 }
 0x1f1   :  { %3051 = vmatpush2.bf16.msra.mxu1 %v16729_v62  ;;  %3009 = vmatprep.subr.bf16.mxu0 %v16734_v63 }
 0x1f2   :  { %3052 = vmatprep.subr.bf16.mxu1 %v16737_v0  ;;  %v2639_v0 = vadd.f32 %v18234_v50, %v2596_v58  ;;  %v18317_v50 = vsub.s32 7, %v18207_v23 }
 0x1f4   :  { %3010 = vmatpush2.bf16.msra.mxu0 %v16732_v1  ;;  %v604_v1 = vrot.slane %v17794_v25, %v18314_v49 }
 0x1f5   :  { %3053 = vmatpush2.bf16.msra.mxu1 %v16735_v2  ;;  %3011 = vmatprep.subr.bf16.mxu0 %v16740_v3 }
 0x1f6   :  { %3054 = vmatprep.subr.bf16.mxu1 %v16743_v4  ;;  %v18325_v4 = vrot.slane %v17794_v25, %v18317_v50 }
 0x1f8   :  { %3012 = vmatpush2.bf16.msra.mxu0 %v16738_v5 }
 0x1f9   :  { %3055 = vmatpush2.bf16.msra.mxu1 %v16741_v6  ;;  %3013 = vmatprep.subr.bf16.mxu0 %v16746_v28 }
 0x1fa   :  { %3056 = vmatprep.subr.bf16.mxu1 %v16749_v8 }
 0x1fc   :  { %3014 = vmatpush2.bf16.msra.mxu0 %v16744_v9 }
 0x1fd   :  { %3057 = vmatpush2.bf16.msra.mxu1 %v16747_v10  ;;  %3015 = vmatprep.subr.bf16.mxu0 %v16752_v11 }
 0x1fe   :  { %3058 = vmatprep.subr.bf16.mxu1 %v16755_v14 }
 0x200   :  { %3016 = vmatpush2.bf16.msra.mxu0 %v16750_v16 }
 0x201   :  { %3059 = vmatpush2.bf16.msra.mxu1 %v16753_v17  ;;  %3017 = vmatprep.subr.bf16.mxu0 %v16758_v19 }
 0x202   :  { %3060 = vmatprep.subr.bf16.mxu1 %v16761_v20  ;;  %v574_v20 = vld [vmem:[#allocation7 + $0x8] sm:$0xf] }
 0x204   :  { %3018 = vmatpush2.bf16.msra.mxu0 %v16756_v21  ;;  %v612_v21 = vrot.slane %v574_v20, %v18267_v24 }
 0x205   :  { %3061 = vmatpush2.bf16.msra.mxu1 %v16759_v22  ;;  %15971 = vmatprep.subr.bf16.mxu0 %v18078_v31 }
 0x206   :  { %15977 = vmatprep.subr.bf16.mxu1 %v18078_v31 }
 0x207   :  { %v2763_v33 = vpop.f32.mrf.mxu0  ;;  %3020 = vmatmul.mubr.bf16.vlgmr.msra.gmra.mxu0 %v18191_v12  ;;  %v2592_v12 = vadd.f32 %v18218_v37, %v580_v36 }
 0x208   :  { %v2806_v35 = vpop.f32.mrf.mxu1  ;;  %3063 = vmatmul.mubr.bf16.vlgmr.msra.gmra.mxu1 %v18193_v13  ;;  %v2764_v39 = vadd.f32 %v2763_v33, %v596_v26  ;;  %15973 = vmatprep.mubr.msk.bf16.mxu0 %vm18079_vm0, %v18078_v31 }
 0x209   :  { %15979 = vmatprep.mubr.msk.bf16.mxu1 %vm18079_vm0, %v18078_v31  ;;  %v2765_v40 = vpop.f32.mrf.mxu0  ;;  %v2635_v57 = vadd.f32 %v18220_v38, %v2592_v12  ;;  %v18307_v38 = vpack.c.bf16 %v2639_v0, %v2639_v0 }
 0x20a   :  { %v2808_v41 = vpop.f32.mrf.mxu1  ;;  %v2807_v42 = vadd.f32 %v2806_v35, %v2764_v39  ;;  %v2766_v43 = vadd.f32 %v2765_v40, %v18277_v32 }
 0x20b   :  { %v2767_v44 = vpop.f32.mrf.mxu0  ;;  %v18299_v63 = vpack.c.bf16 %v2635_v57, %v2635_v57 }
 0x20c   :  { %v18288_v13 = vpack.c.bf16 %v2807_v42, %v2807_v42  ;;  %v18290_v45 = vadd.f32 %v2808_v41, %v2766_v43  ;;  %v2768_v46 = vadd.f32 %v2767_v44, %v596_v26  ;;  %v2810_v51 = vpop.f32.mrf.mxu1  ;;  %v18340_v26 = vrot.slane %v574_v20, %v18212_v29 }
 0x20d   :  { %v18320_v2 = vpop.f32.mrf.mxu0 }
 0x20e   :  { %v3084_v55 = vsel %vm3079_vm1, %v18288_v13, 0  ;;  %v2811_v56 = vadd.f32 %v2810_v51, %v2768_v46  ;;  %v18322_v3 = vpop.f32.mrf.mxu1 }
 0x20f   :  { %15972 = vmatpush3.bf16.xpose.msra.mxu0 %v3084_v55 }
 0x210   :  { %v3076_v62 = vpack.c.bf16 %v2811_v56, %v2811_v56  ;;  %15983 = vmatprep.subr.bf16.mxu0 %v18078_v31 }
 0x212   :  { %v3130_v37 = vsel %vm3079_vm1, %v3076_v62, 0  ;;  %3365 = vrot.lane.b32.xlu1 %v3076_v62, %s18068_s19  ;;  %v620_v62 = vrot.slane %v574_v20, %v18230_v47 }
 0x213   :  { %15978 = vmatpush3.bf16.xpose.msra.mxu1 %v3130_v37 }
 0x214   :  { %15989 = vmatprep.subr.bf16.mxu1 %v18078_v31 }
 0x216   :  { %15974 = vmatmul.mubr.msk.bf16.vlgmr.msra.gmra.mxu0 %vm3079_vm1, %v18299_v63 }
 0x217   :  { %15985 = vmatprep.mubr.msk.bf16.mxu0 %vm18079_vm0, %v18078_v31 }
 0x21a   :  { %15980 = vmatmul.mubr.msk.bf16.vlgmr.msra.gmra.mxu1 %vm3079_vm1, %v18307_v38 }
 0x21b   :  { %15991 = vmatprep.mubr.msk.bf16.mxu1 %vm18079_vm0, %v18078_v31 }
 0x247   :  { %v2849_v5 = vpop.f32.mrf.mxu0 }
 0x248   :  { %v2892_v6 = vpop.f32.mrf.mxu1  ;;  %v2850_v28 = vadd.f32 %v2849_v5, %v604_v1 }
 0x249   :  { %v2851_v8 = vpop.f32.mrf.mxu0 }
 0x24a   :  { %v2894_v9 = vpop.f32.mrf.mxu1  ;;  %v2852_v10 = vadd.f32 %v2851_v8, %v18325_v4  ;;  %v18328_v11 = vadd.f32 %v2892_v6, %v2850_v28 }
 0x24b   :  { %v2853_v23 = vpop.f32.mrf.mxu0 }
 0x24c   :  { %v2854_v14 = vadd.f32 %v2853_v23, %v604_v1  ;;  %v18330_v16 = vadd.f32 %v2894_v9, %v2852_v10  ;;  %v2896_v17 = vpop.f32.mrf.mxu1  ;;  %v18361_v1 = vrot.slane %v574_v20, %v18237_v52 }
 0x24d   :  { %v18335_v22 = vpop.f32.mrf.mxu0 }
 0x24e   :  { %v18332_v19 = vadd.f32 %v2896_v17, %v2854_v14  ;;  %v18337_v25 = vpop.f32.mrf.mxu1 }
 0x287   :  { %v2935_v33 = vpop.f32.mrf.mxu0 }
 0x288   :  { %v2978_v35 = vpop.f32.mrf.mxu1  ;;  %v2936_v36 = vadd.f32 %v2935_v33, %v612_v21 }
 0x289   :  { %v2937_v39 = vpop.f32.mrf.mxu0 }
 0x28a   :  { %v2980_v40 = vpop.f32.mrf.mxu1  ;;  %v2938_v41 = vadd.f32 %v2937_v39, %v18340_v26  ;;  %v2979_v42 = vadd.f32 %v2978_v35, %v2936_v36 }
 0x28b   :  { %v2939_v43 = vpop.f32.mrf.mxu0 }
 0x28c   :  { %v18343_v44 = vpack.c.bf16 %v2979_v42, %v2979_v42  ;;  %v2940_v12 = vadd.f32 %v2939_v43, %v612_v21  ;;  %v18345_v46 = vadd.f32 %v2980_v40, %v2938_v41  ;;  %v2982_v51 = vpop.f32.mrf.mxu1 }
 0x28d   :  { %v18356_v37 = vpop.f32.mrf.mxu0 }
 0x28e   :  { %v3204_v55 = vsel %vm3202_vm2, %v18343_v44, 0  ;;  %v2983_v56 = vadd.f32 %v2982_v51, %v2940_v12  ;;  %v18358_v0 = vpop.f32.mrf.mxu1 }
 0x28f   :  { %15984 = vmatpush3.bf16.msra.mxu0 %v3204_v55 }
 0x290   :  { %v18349_v57 = vpack.c.bf16 %v2983_v56, %v2983_v56  ;;  %15995 = vmatprep.subr.bf16.mxu0 %v18078_v31 }
 0x292   :  { %v3250_v58 = vsel %vm3202_vm2, %v18349_v57, 0 }
 0x293   :  { %15990 = vmatpush3.bf16.msra.mxu1 %v3250_v58 }
 0x294   :  { %16001 = vmatprep.subr.bf16.mxu1 %v18078_v31 }
 0x2c7   :  { %v3021_v5 = vpop.f32.mrf.mxu0 }
 0x2c8   :  { %v3064_v6 = vpop.f32.mrf.mxu1  ;;  %v3022_v28 = vadd.f32 %v3021_v5, %v620_v62 }
 0x2c9   :  { %v3023_v8 = vpop.f32.mrf.mxu0 }
 0x2ca   :  { %v3066_v9 = vpop.f32.mrf.mxu1  ;;  %v3024_v10 = vadd.f32 %v3023_v8, %v18361_v1  ;;  %v18364_v23 = vadd.f32 %v3064_v6, %v3022_v28 }
 0x2cb   :  { %v3025_v14 = vpop.f32.mrf.mxu0 }
 0x2cc   :  { %v3026_v17 = vadd.f32 %v3025_v14, %v620_v62  ;;  %v18366_v21 = vadd.f32 %v3066_v9, %v3024_v10  ;;  %v3068_v33 = vpop.f32.mrf.mxu1 }
 0x2cd   :  { %v18370_v36 = vpop.f32.mrf.mxu0 }
 0x2ce   :  { %v18368_v35 = vadd.f32 %v3068_v33, %v3026_v17  ;;  %v18372_v40 = vpop.f32.mrf.mxu1 }
 0x2d6   :  { %v3120_v20 = vpop.f32.mrf.mxu0 }
 0x2d7   :  { %v3172_v39 = vmul.f32 0.125, %v3120_v20 }
 0x2d8   :  { %v15975_v41 = vpop.f32.mrf.mxu0 }
 0x2d9   :  { %v3175_v42 = vsel %vm3174_vm3, %v3172_v39, -inf }
 0x2da   :  { %v3166_v43 = vpop.f32.mrf.mxu1  ;;  %3176 = vmax.xlane.f32.xlu0 %v3175_v42  ;;  %v3123_v12 = vpop.f32.mrf.mxu0 }
 0x2db   :  { %v3173_v51 = vmul.f32 0.125, %v3166_v43 }
 0x2dc   :  { %v15976_v55 = vpop.f32.mrf.mxu0  ;;  %v15981_v56 = vpop.f32.mrf.mxu1 }
 0x2dd   :  { %v3178_v58 = vsel %vm3174_vm3, %v3173_v51, -inf }
 0x2de   :  { %v3169_v62 = vpop.f32.mrf.mxu1  ;;  %3179 = vmax.xlane.f32.xlu0 %v3178_v58 }
 0x2e0   :  { %v15982_v5 = vpop.f32.mrf.mxu1 }
 0x2f4   :  { %3313 = vrot.lane.b32.xlu0 %v18288_v13, %s18068_s19  ;;  %v3366_v13 = vpop.permute.xlu1 %3365 }
 0x363   :  { %v3177_v6 = vpop.xlane.xlu0 %3176 }
 0x364   :  { %v3181_v28 = vsub.f32 %v3172_v39, %v3177_v6 }
 0x366   :  { %v3183_v8 = vmul.f32 1.442695, %v3181_v28 }
 0x367   :  { %v3180_v9 = vpop.xlane.xlu0 %3179 }
 0x368   :  { %17722 = vpow2.f32 %v3183_v8  ;;  %v3182_v10 = vsub.f32 %v3173_v51, %v3180_v9 }
 0x36a   :  { %v3185_v14 = vmul.f32 1.442695, %v3182_v10 }
 0x36b   :  { %v3314_v51 = vpop.permute.xlu0 %3313 }
 0x36c   :  { %17724 = vpow2.f32 %v3185_v14  ;;  %v3319_v58 = vsel %vm3079_vm1, %v3314_v51, 0 }
 0x375   :  { %v17723_v17 = vpop.eup %17722 }
 0x376   :  { %v3187_v33 = vsel %vm3174_vm3, %v17723_v17, 0.0 }
 0x377   :  { %3188 = vadd.xlane.f32.xlu1 %v3187_v33 }
 0x379   :  { %v17725_v20 = vpop.eup %17724 }
 0x37a   :  { %v3190_v41 = vsel %vm3174_vm3, %v17725_v20, 0.0 }
 0x37b   :  { %3191 = vadd.xlane.f32.xlu1 %v3190_v41 }
 0x38c   :  { %3310 = vrot.lane.b32.xlu1 %v18299_v63, %s18068_s19 }
 0x390   :  { %3362 = vrot.lane.b32.xlu1 %v18307_v38, %s18068_s19  ;;  %v3371_v38 = vsel %vm3079_vm1, %v3366_v13, 0 }
 0x400   :  { %v3189_v39 = vpop.xlane.xlu1 %3188 }
 0x401   :  { %17726 = vrcp.f32 %v3189_v39 }
 0x404   :  { %v3192_v42 = vpop.xlane.xlu1 %3191 }
 0x405   :  { %17728 = vrcp.f32 %v3192_v42 }
 0x408   :  { %v3311_v5 = vpop.permute.xlu1 %3310 }
 0x40c   :  { %v3363_v6 = vpop.permute.xlu1 %3362 }
 0x40e   :  { %v17727_v43 = vpop.eup %17726 }
 0x40f   :  { %v3195_v12 = vmul.f32 %v17727_v43, %v17723_v17 }
 0x411   :  { %v3197_v55 = vpack.c.bf16 %v3195_v12, %v3195_v12 }
 0x412   :  { %v17729_v56 = vpop.eup %17728 }
 0x413   :  { %15986 = vmatmul.mubr.msk.bf16.vlgmr.msra.gmra.mxu0 %vm3174_vm3, %v3197_v55  ;;  %v3196_v62 = vmul.f32 %v17729_v56, %v17725_v20 }
 0x414   :  { %15996 = vmatpush3.bf16.xpose.msra.mxu0 %v3319_v58  ;;  %15997 = vmatprep.mubr.msk.bf16.mxu0 %vm18079_vm0, %v18078_v31 }
 0x415   :  { %v3198_v63 = vpack.c.bf16 %v3196_v62, %v3196_v62  ;;  %16007 = vmatprep.subr.bf16.mxu0 %v18078_v31 }
 0x417   :  { %15992 = vmatmul.mubr.msk.bf16.vlgmr.msra.gmra.mxu1 %vm3174_vm3, %v3198_v63 }
 0x418   :  { %16002 = vmatpush3.bf16.xpose.msra.mxu1 %v3371_v38  ;;  %16003 = vmatprep.mubr.msk.bf16.mxu1 %vm18079_vm0, %v18078_v31 }
 0x419   :  { %16013 = vmatprep.subr.bf16.mxu1 %v18078_v31 }
 0x41b   :  { %15998 = vmatmul.mubr.msk.bf16.vlgmr.msra.gmra.mxu0 %vm3079_vm1, %v3311_v5 }
 0x41c   :  { %16009 = vmatprep.mubr.msk.bf16.mxu0 %vm18079_vm0, %v18078_v31 }
 0x41f   :  { %16004 = vmatmul.mubr.msk.bf16.vlgmr.msra.gmra.mxu1 %vm3079_vm1, %v3363_v6 }
 0x420   :  { %16015 = vmatprep.mubr.msk.bf16.mxu1 %vm18079_vm0, %v18078_v31 }
 0x4d3   :  { %v3240_v28 = vpop.f32.mrf.mxu0 }
 0x4d5   :  { %v15987_v8 = vpop.f32.mrf.mxu0 }
 0x4d7   :  { %v3243_v9 = vpop.f32.mrf.mxu0  ;;  %v3286_v10 = vpop.f32.mrf.mxu1 }
 0x4d8   :  { %v18400_v14 = vpack.c.bf16 %v3286_v10, %v3240_v28 }
 0x4d9   :  { %v15988_v17 = vpop.f32.mrf.mxu0  ;;  %v15993_v33 = vpop.f32.mrf.mxu1 }
 0x4db   :  { %v3289_v20 = vpop.f32.mrf.mxu1  ;;  %v3355_v41 = vpop.f32.mrf.mxu0 }
 0x4dc   :  { %v3413_v13 = vmul.f32 0.125, %v3355_v41 }
 0x4dd   :  { %v15994_v39 = vpop.f32.mrf.mxu1  ;;  %v15999_v42 = vpop.f32.mrf.mxu0 }
 0x4de   :  { %v3415_v43 = vsel %vm3174_vm3, %v3413_v13, -inf }
 0x4df   :  { %v3407_v12 = vpop.f32.mrf.mxu1  ;;  %3416 = vmax.xlane.f32.xlu0 %v3415_v43  ;;  %v3358_v51 = vpop.f32.mrf.mxu0 }
 0x4e0   :  { %v3414_v55 = vmul.f32 0.125, %v3407_v12  ;;  %v16764_v12 = vld [vmem:[#allocation8 + $0xe4] ss:$16 sps:$4 sm:$0xff]  }
 0x4e1   :  { %v16000_v56 = vpop.f32.mrf.mxu0  ;;  %v16005_v58 = vpop.f32.mrf.mxu1 }
 0x4e2   :  { %v3418_v62 = vsel %vm3174_vm3, %v3414_v55, -inf }
 0x4e3   :  { %3419 = vmax.xlane.f32.xlu1 %v3418_v62  ;;  %v3410_v63 = vpop.f32.mrf.mxu1  ;;  %v16762_v62 = vld [vmem:[#allocation8 + $0xe0] ss:$16 sps:$4 sm:$0xff]  }
 0x4e5   :  { %v16006_v38 = vpop.f32.mrf.mxu1 }
 0x4e6   :  { %v16770_v38 = vld [vmem:[#allocation8 + $0xc4] ss:$16 sps:$4 sm:$0xff]  }
 0x4f4   :  { %3489 = vrot.lane.b32.xlu1 %v18349_v57, %s18068_s19  ;;  %v16767_v57 = vld [vmem:[#allocation8 + $0xec] ss:$16 sps:$4 sm:$0xff]  }
 0x568   :  { %v3417_v5 = vpop.xlane.xlu0 %3416 }
 0x569   :  { %v3421_v6 = vsub.f32 %v3413_v13, %v3417_v5 }
 0x56b   :  { %v3423_v28 = vmul.f32 1.442695, %v3421_v6  ;;  %v16765_v6 = vld [vmem:[#allocation8 + $0xe8] ss:$16 sps:$4 sm:$0xff]  }
 0x56c   :  { %v3420_v8 = vpop.xlane.xlu1 %3419 }
 0x56d   :  { %17730 = vpow2.f32 %v3423_v28  ;;  %v3422_v9 = vsub.f32 %v3414_v55, %v3420_v8  ;;  %v16768_v28 = vld [vmem:[#allocation8 + $0xc0] ss:$16 sps:$4 sm:$0xff]  }
 0x56f   :  { %v3425_v10 = vmul.f32 1.442695, %v3422_v9  ;;  %v16773_v9 = vld [vmem:[#allocation8 + $0xcc] ss:$16 sps:$4 sm:$0xff]  }
 0x570   :  { %v3490_v17 = vpop.permute.xlu1 %3489 }
 0x571   :  { %17732 = vpow2.f32 %v3425_v10  ;;  %v3495_v33 = vsel %vm3202_vm2, %v3490_v17, 0  ;;  %v16776_v10 = vld [vmem:[#allocation8 + $0xa4] ss:$16 sps:$4 sm:$0xff]   ;;  %v16771_v17 = vld [vmem:[#allocation8 + $0xc8] ss:$16 sps:$4 sm:$0xff]  }
 0x572   :  { %16014 = vmatpush3.bf16.msra.mxu1 %v3495_v33  ;;  %v16774_v33 = vld [vmem:[#allocation8 + $0xa0] ss:$16 sps:$4 sm:$0xff]  }
 0x573   :  { %3688 = vmatprep.subr.bf16.mxu1 %v16767_v57  ;;  %v16780_v57 = vld [vmem:[#allocation8 + $0x80] ss:$16 sps:$4 sm:$0xff]  }
 0x57a   :  { %v17731_v20 = vpop.eup %17730 }
 0x57b   :  { %v3427_v41 = vsel %vm3174_vm3, %v17731_v20, 0.0 }
 0x57c   :  { %3428 = vadd.xlane.f32.xlu0 %v3427_v41  ;;  %v16777_v41 = vld [vmem:[#allocation8 + $0xa8] ss:$16 sps:$4 sm:$0xff]  }
 0x57e   :  { %v17733_v39 = vpop.eup %17732 }
 0x57f   :  { %v3430_v42 = vsel %vm3174_vm3, %v17733_v39, 0.0 }
 0x580   :  { %3431 = vadd.xlane.f32.xlu0 %v3430_v42  ;;  %v16785_v42 = vld [vmem:[#allocation8 + $0x8c] ss:$16 sps:$4 sm:$0xff]  }
 0x596   :  { %3440 = vrot.lane.b32.xlu0 %v18343_v44, %s18068_s19 }
 0x605   :  { %v3429_v13 = vpop.xlane.xlu0 %3428 }
 0x606   :  { %17734 = vrcp.f32 %v3429_v13  ;;  %v16783_v13 = vld [vmem:[#allocation8 + $0x88] ss:$16 sps:$4 sm:$0xff]  }
 0x609   :  { %v3432_v43 = vpop.xlane.xlu0 %3431 }
 0x60a   :  { %17736 = vrcp.f32 %v3432_v43  ;;  %v16788_v43 = vld [vmem:[#allocation8 + $0x64] ss:$16 sps:$4 sm:$0xff]  }
 0x60d   :  { %v3441_v51 = vpop.permute.xlu0 %3440 }
 0x60e   :  { %v3446_v55 = vsel %vm3202_vm2, %v3441_v51, 0  ;;  %v18080_v51 = vmov 0  }
 0x60f   :  { %16008 = vmatpush3.bf16.msra.mxu0 %v3446_v55 }
 0x610   :  { %3645 = vmatprep.subr.bf16.mxu0 %v16764_v12  ;;  %v16791_v12 = vld [vmem:[#allocation8 + $0x6c] ss:$16 sps:$4 sm:$0xff]  }
 0x613   :  { %v17735_v56 = vpop.eup %17734 }
 0x614   :  { %v3435_v58 = vmul.f32 %v17735_v56, %v17731_v20  ;;  %v16779_v20 = vld [vmem:[#allocation8 + $0xac] ss:$16 sps:$4 sm:$0xff]  }
 0x616   :  { %v3437_v63 = vpack.c.bf16 %v3435_v58, %v3435_v58 }
 0x617   :  { %v17737_v5 = vpop.eup %17736 }
 0x618   :  { %16010 = vmatmul.mubr.msk.bf16.vlgmr.msra.gmra.mxu0 %vm3174_vm3, %v3437_v63  ;;  %v3436_v44 = vmul.f32 %v17737_v5, %v17733_v39  ;;  %v16782_v39 = vld [vmem:[#allocation8 + $0x84] ss:$16 sps:$4 sm:$0xff]   ;;  %v16786_v63 = vld [vmem:[#allocation8 + $0x60] ss:$16 sps:$4 sm:$0xff]  }
 0x619   :  { %3646 = vmatpush1.bf16.msra.mxu0 %v16762_v62  ;;  %3669 = vmatprep.mubr.bf16.mxu0 %v18080_v51 }
 0x61a   :  { %v3438_v8 = vpack.c.bf16 %v3436_v44, %v3436_v44  ;;  %3647 = vmatprep.subr.bf16.mxu0 %v16770_v38  ;;  %v16789_v38 = vld [vmem:[#allocation8 + $0x68] ss:$16 sps:$4 sm:$0xff]   ;;  %v16794_v44 = vld [vmem:[#allocation8 + $0x44] ss:$16 sps:$4 sm:$0xff]  }
 0x61c   :  { %16016 = vmatmul.mubr.msk.bf16.vlgmr.msra.gmra.mxu1 %vm3174_vm3, %v3438_v8 }
 0x61d   :  { %3689 = vmatpush1.bf16.msra.mxu1 %v16765_v6  ;;  %3648 = vmatpush1.bf16.msra.mxu0 %v16768_v28  ;;  %v16797_v6 = vld [vmem:[#allocation8 + $0x4c] ss:$16 sps:$4 sm:$0xff]  }
 0x61e   :  { %3690 = vmatprep.subr.bf16.mxu1 %v16773_v9  ;;  %3649 = vmatprep.subr.bf16.mxu0 %v16776_v10  ;;  %v16792_v10 = vld [vmem:[#allocation8 + $0x40] ss:$16 sps:$4 sm:$0xff]  }
 0x61f   :  { %3712 = vmatprep.mubr.bf16.mxu1 %v18080_v51 }
 0x621   :  { %3691 = vmatpush1.bf16.msra.mxu1 %v16771_v17  ;;  %3650 = vmatpush1.bf16.msra.mxu0 %v16774_v33  ;;  %v16795_v17 = vld [vmem:[#allocation8 + $0x48] ss:$16 sps:$4 sm:$0xff]   ;;  %v16800_v33 = vld [vmem:[#allocation8 + $0x24] ss:$16 sps:$4 sm:$0xff]  }
 0x622   :  { %3692 = vmatprep.subr.bf16.mxu1 %v16779_v20  ;;  %3651 = vmatprep.subr.bf16.mxu0 %v16782_v39  ;;  %v16803_v20 = vld [vmem:[#allocation8 + $0x2c] ss:$16 sps:$4 sm:$0xff]   ;;  %v2770_v39 = vadd.f32 %v18320_v2, %v18277_v32  ;;  %v2942_v2 = vadd.f32 %v18356_v37, %v18340_v26 }
 0x625   :  { %3693 = vmatpush1.bf16.msra.mxu1 %v16777_v41  ;;  %3652 = vmatpush1.bf16.msra.mxu0 %v16780_v57  ;;  %v16801_v57 = vld [vmem:[#allocation8 + $0x28] ss:$16 sps:$4 sm:$0xff]  }
 0x626   :  { %3694 = vmatprep.subr.bf16.mxu1 %v16785_v42  ;;  %3814 = vmatprep.subr.bf16.mxu0 %v16788_v43  ;;  %v16798_v42 = vld [vmem:[#allocation8 + $0x20] ss:$16 sps:$4 sm:$0xff]   ;;  %v16809_v43 = vld [vmem:[#allocation8 + $0xc] ss:$16 sps:$4 sm:$0xff]  }
 0x629   :  { %3695 = vmatpush1.bf16.msra.mxu1 %v16783_v13  ;;  %v16806_v13 = vld [vmem:[#allocation8 + $0x4] ss:$16 sps:$4 sm:$0xff]  }
 0x62a   :  { %3857 = vmatprep.subr.bf16.mxu1 %v16791_v12  ;;  %v2813_v12 = vadd.f32 %v18322_v3, %v2770_v39  ;;  %v2598_v3 = vadd.f32 %v18241_v59, %v18216_v34  ;;  %v18453_v59 = vpack.c.bf16 %v18345_v46, %v18345_v46 }
 0x62c   :  { %v18427_v32 = vpack.c.bf16 %v2813_v12, %v2813_v12  ;;  %v2641_v34 = vadd.f32 %v18243_v60, %v2598_v3 }
 0x62e   :  { %v3948_v26 = vsel %vm3079_vm1, %v18427_v32, 0  ;;  %v3893_v60 = vpack.c.bf16 %v2641_v34, %v2641_v34 }
 0x6d8   :  { %v3482_v55 = vpop.f32.mrf.mxu0 }
 0x6da   :  { %v16011_v56 = vpop.f32.mrf.mxu0 }
 0x6db   :  { %v16807_v56 = vld [vmem:[#allocation8 + $0x8] ss:$16 sps:$4 sm:$0xff]  }
 0x6dc   :  { %v3485_v58 = vpop.f32.mrf.mxu0  ;;  %v3531_v62 = vpop.f32.mrf.mxu1 }
 0x6dd   :  { %v3537_v5 = vpack.c.bf16 %v3531_v62, %v3482_v55  ;;  %v16804_v55 = vld [vmem:[#allocation8] ss:$16 sps:$4 sm:$0xff]   ;;  %v18425_v58 = vpack.c.bf16 %v18290_v45, %v18290_v45  ;;  %v2985_v45 = vadd.f32 %v18358_v0, %v2942_v2  ;;  %v3892_v0 = vpack.c.bf16 %v18227_v48, %v18227_v48 }
 0x6de   :  { %v16012_v28 = vpop.f32.mrf.mxu0  ;;  %v16017_v8 = vpop.f32.mrf.mxu1 }
 0x6df   :  { %14731 = vmatmul.mubr.msk.bf16.vlgmr.msra.gmra.mxu0 %vm3079_vm1, %v3537_v5  ;;  %14732 = vmatmul.mubr.msk.bf16.vlgmr.msra.gmra.mxu1 %vm3079_vm1, %v3537_v5  ;;  %v3902_v62 = vsel %vm3079_vm1, %v18425_v58, 0  ;;  %v18455_v37 = vpack.c.bf16 %v2985_v45, %v2985_v45 }
 0x6e0   :  { %3815 = vmatpush1.bf16.msra.mxu0 %v16786_v63  ;;  %3858 = vmatpush1.bf16.msra.mxu1 %v16789_v38  ;;  %v3534_v9 = vpop.f32.mrf.mxu1 }
 0x6e1   :  { %3816 = vmatprep.subr.bf16.mxu0 %v16794_v44  ;;  %3859 = vmatprep.subr.bf16.mxu1 %v16797_v6  ;;  %v4066_v63 = vsel %vm3202_vm2, %v18455_v37, 0 }
 0x6e2   :  { %v16018_v41 = vpop.f32.mrf.mxu1  ;;  %3838 = vmatprep.mubr.bf16.mxu0 %v18080_v51  ;;  %3881 = vmatprep.mubr.bf16.mxu1 %v18080_v51 }
 0x6e4   :  { %3817 = vmatpush1.bf16.msra.mxu0 %v16792_v10  ;;  %3860 = vmatpush1.bf16.msra.mxu1 %v16795_v17 }
 0x6e5   :  { %3818 = vmatprep.subr.bf16.mxu0 %v16800_v33  ;;  %3861 = vmatprep.subr.bf16.mxu1 %v16803_v20 }
 0x6e8   :  { %3819 = vmatpush1.bf16.msra.mxu0 %v16798_v42  ;;  %3862 = vmatpush1.bf16.msra.mxu1 %v16801_v57 }
 0x6e9   :  { %3820 = vmatprep.subr.bf16.mxu0 %v16806_v13  ;;  %3863 = vmatprep.subr.bf16.mxu1 %v16809_v43 }
 0x6ec   :  { %3821 = vmatpush1.bf16.msra.mxu0 %v16804_v55  ;;  %3864 = vmatpush1.bf16.msra.mxu1 %v16807_v56 }
 0x6ed   :  { %16019 = vmatprep.subr.bf16.mxu0 %v18078_v31  ;;  %16025 = vmatprep.subr.bf16.mxu1 %v18078_v31 }
 0x6ef   :  { %14749 = vmatmul.mubr.msk.bf16.vlgmr.msra.gmra.mxu0 %vm3079_vm1, %v18400_v14  ;;  %14750 = vmatmul.mubr.msk.bf16.vlgmr.msra.gmra.mxu1 %vm3079_vm1, %v18400_v14  ;;  %v4020_v14 = vsel %vm3202_vm2, %v18453_v59, 0 }
 0x6f0   :  { %16020 = vmatpush3.bf16.xpose.msra.mxu0 %v3902_v62  ;;  %16026 = vmatpush3.bf16.xpose.msra.mxu1 %v3948_v26 }
 0x6f1   :  { %16021 = vmatprep.mubr.msk.bf16.mxu0 %vm18079_vm0, %v18078_v31  ;;  %16027 = vmatprep.mubr.msk.bf16.mxu1 %vm18079_vm0, %v18078_v31 }
 0x6f2   :  { %16031 = vmatprep.subr.bf16.mxu0 %v18078_v31  ;;  %16037 = vmatprep.subr.bf16.mxu1 %v18078_v31 }
 0x6f7   :  { %16022 = vmatmul.mubr.msk.bf16.vlgmr.msra.gmra.mxu0 %vm3079_vm1, %v3892_v0  ;;  %16028 = vmatmul.mubr.msk.bf16.vlgmr.msra.gmra.mxu1 %vm3079_vm1, %v3893_v60 }
 0x6f8   :  { %16032 = vmatpush3.bf16.msra.mxu0 %v4020_v14  ;;  %16038 = vmatpush3.bf16.msra.mxu1 %v4066_v63 }
 0x6f9   :  { %16033 = vmatprep.mubr.msk.bf16.mxu0 %vm18079_vm0, %v18078_v31  ;;  %16039 = vmatprep.mubr.msk.bf16.mxu1 %vm18079_vm0, %v18078_v31 }
 0x79f   :  { %v3671_v48 = vpop.f32.mrf.mxu0  ;;  %v3714_v46 = vpop.f32.mrf.mxu1 }
 0x7a1   :  { %v3673_v38 = vpop.f32.mrf.mxu0  ;;  %v3716_v5 = vpop.f32.mrf.mxu1 }
 0x7a3   :  { %v3675_v44 = vpop.f32.mrf.mxu0  ;;  %v3718_v6 = vpop.f32.mrf.mxu1 }
 0x7a5   :  { %v18469_v28 = vpop.f32.mrf.mxu0  ;;  %v18471_v8 = vpop.f32.mrf.mxu1 }
 0x7af   :  { %v3840_v9 = vpop.f32.mrf.mxu0  ;;  %v3883_v10 = vpop.f32.mrf.mxu1 }
 0x7b0   :  { %v18473_v17 = vadd.f32 %v3840_v9, %v3671_v48  ;;  %v18475_v33 = vadd.f32 %v3883_v10, %v3714_v46 }
 0x7b1   :  { %v3842_v20 = vpop.f32.mrf.mxu0  ;;  %v3885_v41 = vpop.f32.mrf.mxu1 }
 0x7b2   :  { %v18477_v39 = vadd.f32 %v3842_v20, %v3673_v38  ;;  %v18479_v42 = vadd.f32 %v3885_v41, %v3716_v5 }
 0x7b3   :  { %v3844_v57 = vpop.f32.mrf.mxu0  ;;  %v3887_v13 = vpop.f32.mrf.mxu1 }
 0x7b4   :  { %v18481_v43 = vadd.f32 %v3844_v57, %v3675_v44  ;;  %v18483_v12 = vadd.f32 %v3887_v13, %v3718_v6 }
 0x7b5   :  { %v18485_v55 = vpop.f32.mrf.mxu0  ;;  %v18487_v56 = vpop.f32.mrf.mxu1 }
 0x7b7   :  { %v3938_v2 = vpop.f32.mrf.mxu0  ;;  %v3984_v3 = vpop.f32.mrf.mxu1 }
 0x7b8   :  { %v3990_v62 = vmul.f32 0.125, %v3938_v2  ;;  %v3991_v45 = vmul.f32 0.125, %v3984_v3 }
 0x7b9   :  { %v16023_v26 = vpop.f32.mrf.mxu0  ;;  %v16029_v34 = vpop.f32.mrf.mxu1 }
 0x7ba   :  { %v3995_v14 = vsel %vm3174_vm3, %v3991_v45, -inf  ;;  %v3992_v63 = vsel %vm3174_vm3, %v3990_v62, -inf }
 0x7bb   :  { %3996 = vmax.xlane.f32.xlu0 %v3995_v14  ;;  %v3987_v48 = vpop.f32.mrf.mxu1  ;;  %3993 = vmax.xlane.f32.xlu1 %v3992_v63  ;;  %v3941_v46 = vpop.f32.mrf.mxu0 }
 0x7bd   :  { %v16024_v38 = vpop.f32.mrf.mxu0  ;;  %v16030_v5 = vpop.f32.mrf.mxu1 }
 0x7be   :  { %v16821_v5 = vld [vmem:[#allocation8 + $0x14c] ss:$16 sps:$4 sm:$0xff]  }
 0x844   :  { %v3997_v44 = vpop.xlane.xlu0 %3996  ;;  %v3994_v6 = vpop.xlane.xlu1 %3993 }
 0x845   :  { %v3999_v9 = vsub.f32 %v3991_v45, %v3997_v44  ;;  %v3998_v10 = vsub.f32 %v3990_v62, %v3994_v6  ;;  %v16812_v62 = vld [vmem:[#allocation8 + $0x164] ss:$16 sps:$4 sm:$0xff]   ;;  %v16815_v45 = vld [vmem:[#allocation8 + $0x16c] ss:$16 sps:$4 sm:$0xff]   ;;  %v16816_v6 = vld [vmem:[#allocation8 + $0x140] ss:$16 sps:$4 sm:$0xff]  }
 0x846   :  { %4216 = vmatprep.subr.bf16.mxu0 %v16812_v62  ;;  %4259 = vmatprep.subr.bf16.mxu1 %v16815_v45 }
 0x847   :  { %v4002_v20 = vmul.f32 1.442695, %v3999_v9  ;;  %v4000_v41 = vmul.f32 1.442695, %v3998_v10  ;;  %v16827_v9 = vld [vmem:[#allocation8 + $0x12c] ss:$16 sps:$4 sm:$0xff]  }
 0x848   :  { %v16824_v10 = vld [vmem:[#allocation8 + $0x124] ss:$16 sps:$4 sm:$0xff]  }
 0x849   :  { %17738 = vpow2.f32 %v4002_v20  ;;  %v16825_v20 = vld [vmem:[#allocation8 + $0x128] ss:$16 sps:$4 sm:$0xff]  }
 0x84a   :  { %17740 = vpow2.f32 %v4000_v41  ;;  %v16822_v41 = vld [vmem:[#allocation8 + $0x120] ss:$16 sps:$4 sm:$0xff]  }
 0x856   :  { %v17739_v57 = vpop.eup %17738 }
 0x857   :  { %v17741_v13 = vpop.eup %17740  ;;  %v4007_v2 = vsel %vm3174_vm3, %v17739_v57, 0.0 }
 0x858   :  { %4008 = vadd.xlane.f32.xlu1 %v4007_v2  ;;  %v4004_v3 = vsel %vm3174_vm3, %v17741_v13, 0.0  ;;  %v16831_v2 = vld [vmem:[#allocation8 + $0x108] ss:$16 sps:$4 sm:$0xff]  }
 0x859   :  { %4005 = vadd.xlane.f32.xlu0 %v4004_v3  ;;  %v16828_v3 = vld [vmem:[#allocation8 + $0x100] ss:$16 sps:$4 sm:$0xff]  }
 0x869   :  { %4358 = vrot.lane.b32.xlu1 %v18427_v32, %s18068_s19  ;;  %v16813_v32 = vld [vmem:[#allocation8 + $0x168] ss:$16 sps:$4 sm:$0xff]  }
 0x86d   :  { %4303 = vrot.lane.b32.xlu1 %v3892_v0, %s18068_s19  ;;  %v16810_v0 = vld [vmem:[#allocation8 + $0x160] ss:$16 sps:$4 sm:$0xff]  }
 0x86f   :  { %4306 = vrot.lane.b32.xlu0 %v18425_v58, %s18068_s19  ;;  %v16818_v58 = vld [vmem:[#allocation8 + $0x144] ss:$16 sps:$4 sm:$0xff]  }
 0x871   :  { %4355 = vrot.lane.b32.xlu1 %v3893_v60, %s18068_s19  ;;  %v16819_v60 = vld [vmem:[#allocation8 + $0x148] ss:$16 sps:$4 sm:$0xff]  }
 0x8e1   :  { %v4009_v26 = vpop.xlane.xlu1 %4008 }
 0x8e2   :  { %v4006_v34 = vpop.xlane.xlu0 %4005  ;;  %17742 = vrcp.f32 %v4009_v26 }
 0x8e3   :  { %17744 = vrcp.f32 %v4006_v34 }
 0x8e5   :  { %v4359_v62 = vpop.permute.xlu1 %4358 }
 0x8e6   :  { %v4307_v26 = vpop.permute.xlu0 %4306 }
 0x8ef   :  { %v17743_v14 = vpop.eup %17742 }
 0x8f0   :  { %v17745_v63 = vpop.eup %17744  ;;  %v4013_v48 = vmul.f32 %v17743_v14, %v17739_v57  ;;  %v16833_v57 = vld [vmem:[#allocation8 + $0x10c] ss:$16 sps:$4 sm:$0xff]  }
 0x8f1   :  { %v4012_v46 = vmul.f32 %v17745_v63, %v17741_v13  ;;  %v16830_v13 = vld [vmem:[#allocation8 + $0x104] ss:$16 sps:$4 sm:$0xff]  }
 0x8f2   :  { %v4015_v38 = vpack.c.bf16 %v4013_v48, %v4013_v48 }
 0x8f3   :  { %v4014_v44 = vpack.c.bf16 %v4012_v46, %v4012_v46  ;;  %v4312_v46 = vsel %vm3079_vm1, %v4307_v26, 0 }
 0x8f4   :  { %16040 = vmatmul.mubr.msk.bf16.vlgmr.msra.gmra.mxu1 %vm3174_vm3, %v4015_v38 }
 0x8f5   :  { %16034 = vmatmul.mubr.msk.bf16.vlgmr.msra.gmra.mxu0 %vm3174_vm3, %v4014_v44  ;;  %4260 = vmatpush1.bf16.msra.mxu1 %v16813_v32  ;;  %v4364_v32 = vsel %vm3079_vm1, %v4359_v62, 0 }
 0x8f6   :  { %4217 = vmatpush1.bf16.msra.mxu0 %v16810_v0  ;;  %4261 = vmatprep.subr.bf16.mxu1 %v16821_v5  ;;  %v4304_v0 = vpop.permute.xlu1 %4303 }
 0x8f7   :  { %4218 = vmatprep.subr.bf16.mxu0 %v16818_v58  ;;  %4240 = vmatprep.mubr.bf16.mxu0 %v18080_v51 }
 0x8f8   :  { %4283 = vmatprep.mubr.bf16.mxu1 %v18080_v51 }
 0x8f9   :  { %4262 = vmatpush1.bf16.msra.mxu1 %v16819_v60 }
 0x8fa   :  { %4219 = vmatpush1.bf16.msra.mxu0 %v16816_v6  ;;  %4263 = vmatprep.subr.bf16.mxu1 %v16827_v9  ;;  %v4356_v60 = vpop.permute.xlu1 %4355 }
 0x8fb   :  { %4220 = vmatprep.subr.bf16.mxu0 %v16824_v10 }
 0x8fd   :  { %4264 = vmatpush1.bf16.msra.mxu1 %v16825_v20 }
 0x8fe   :  { %4221 = vmatpush1.bf16.msra.mxu0 %v16822_v41  ;;  %4265 = vmatprep.subr.bf16.mxu1 %v16833_v57 }
 0x8ff   :  { %4222 = vmatprep.subr.bf16.mxu0 %v16830_v13 }
 0x901   :  { %4266 = vmatpush1.bf16.msra.mxu1 %v16831_v2 }
 0x902   :  { %4223 = vmatpush1.bf16.msra.mxu0 %v16828_v3  ;;  %16049 = vmatprep.subr.bf16.mxu1 %v18078_v31 }
 0x903   :  { %16043 = vmatprep.subr.bf16.mxu0 %v18078_v31 }
 0x9b4   :  { %v4102_v45 = vpop.f32.mrf.mxu1 }
 0x9b5   :  { %v4056_v34 = vpop.f32.mrf.mxu0 }
 0x9b6   :  { %v4108_v14 = vpack.c.bf16 %v4102_v45, %v4056_v34  ;;  %v16041_v63 = vpop.f32.mrf.mxu1 }
 0x9b7   :  { %v16035_v48 = vpop.f32.mrf.mxu0 }
 0x9b8   :  { %14771 = vmatmul.mubr.msk.bf16.vlgmr.msra.gmra.mxu0 %vm3079_vm1, %v4108_v14  ;;  %14772 = vmatmul.mubr.msk.bf16.vlgmr.msra.gmra.mxu1 %vm3079_vm1, %v4108_v14  ;;  %v4105_v38 = vpop.f32.mrf.mxu1 }
 0x9b9   :  { %16044 = vmatpush3.bf16.xpose.msra.mxu0 %v4312_v46  ;;  %16050 = vmatpush3.bf16.xpose.msra.mxu1 %v4364_v32  ;;  %v4059_v5 = vpop.f32.mrf.mxu0 }
 0x9ba   :  { %v16042_v44 = vpop.f32.mrf.mxu1  ;;  %16045 = vmatprep.mubr.msk.bf16.mxu0 %vm18079_vm0, %v18078_v31  ;;  %16051 = vmatprep.mubr.msk.bf16.mxu1 %vm18079_vm0, %v18078_v31 }
 0x9bb   :  { %v16036_v58 = vpop.f32.mrf.mxu0  ;;  %16061 = vmatprep.subr.bf16.mxu1 %v18078_v31  ;;  %16055 = vmatprep.subr.bf16.mxu0 %v18078_v31 }
 0x9c0   :  { %16046 = vmatmul.mubr.msk.bf16.vlgmr.msra.gmra.mxu0 %vm3079_vm1, %v4304_v0  ;;  %16052 = vmatmul.mubr.msk.bf16.vlgmr.msra.gmra.mxu1 %vm3079_vm1, %v4356_v60 }
 0x9c1   :  { %16057 = vmatprep.mubr.msk.bf16.mxu0 %vm18079_vm0, %v18078_v31  ;;  %16063 = vmatprep.mubr.msk.bf16.mxu1 %vm18079_vm0, %v18078_v31 }
 0xa78   :  { %v4242_v6 = vpop.f32.mrf.mxu0  ;;  %v4285_v9 = vpop.f32.mrf.mxu1 }
 0xa79   :  { %v18522_v10 = vadd.f32 %v4242_v6, %v18473_v17  ;;  %v18525_v20 = vadd.f32 %v4285_v9, %v18475_v33 }
 0xa7a   :  { %v4244_v41 = vpop.f32.mrf.mxu0  ;;  %v4287_v57 = vpop.f32.mrf.mxu1 }
 0xa7b   :  { %v18528_v13 = vadd.f32 %v4244_v41, %v18477_v39  ;;  %v18531_v2 = vadd.f32 %v4287_v57, %v18479_v42 }
 0xa7c   :  { %v4246_v3 = vpop.f32.mrf.mxu0  ;;  %v4289_v62 = vpop.f32.mrf.mxu1 }
 0xa7d   :  { %v18534_v45 = vadd.f32 %v4246_v3, %v18481_v43  ;;  %v18537_v26 = vadd.f32 %v4289_v62, %v18483_v12 }
 0xa7e   :  { %v18539_v17 = vpop.f32.mrf.mxu0  ;;  %v18541_v33 = vpop.f32.mrf.mxu1 }
 0xa80   :  { %v4348_v34 = vpop.f32.mrf.mxu0  ;;  %v4400_v14 = vpop.f32.mrf.mxu1 }
 0xa81   :  { %v4406_v63 = vmul.f32 0.125, %v4348_v34  ;;  %v4407_v39 = vmul.f32 0.125, %v4400_v14 }
 0xa82   :  { %v16047_v48 = vpop.f32.mrf.mxu0  ;;  %v16053_v46 = vpop.f32.mrf.mxu1 }
 0xa83   :  { %v4411_v42 = vsel %vm3174_vm3, %v4407_v39, -inf  ;;  %v4408_v32 = vsel %vm3174_vm3, %v4406_v63, -inf  ;;  %v16836_v48 = vld [vmem:[#allocation8 + $0x1e4] ss:$16 sps:$4 sm:$0xff]  }
 0xa84   :  { %4412 = vmax.xlane.f32.xlu1 %v4411_v42  ;;  %v4403_v43 = vpop.f32.mrf.mxu1  ;;  %4409 = vmax.xlane.f32.xlu0 %v4408_v32  ;;  %v4351_v38 = vpop.f32.mrf.mxu0 }
 0xa85   :  { %v16834_v38 = vld [vmem:[#allocation8 + $0x1e0] ss:$16 sps:$4 sm:$0xff]  }
 0xa86   :  { %v16048_v12 = vpop.f32.mrf.mxu0  ;;  %v16054_v0 = vpop.f32.mrf.mxu1 }
 0xa87   :  { %v16842_v0 = vld [vmem:[#allocation8 + $0x1c4] ss:$16 sps:$4 sm:$0xff]  }
 0xa95   :  { %4482 = vrot.lane.b32.xlu1 %v18455_v37, %s18068_s19  ;;  %v16839_v37 = vld [vmem:[#allocation8 + $0x1ec] ss:$16 sps:$4 sm:$0xff]  }
 0xb0d   :  { %v4413_v5 = vpop.xlane.xlu1 %4412  ;;  %v4410_v44 = vpop.xlane.xlu0 %4409 }
 0xb0e   :  { %v4415_v58 = vsub.f32 %v4407_v39, %v4413_v5  ;;  %v4414_v60 = vsub.f32 %v4406_v63, %v4410_v44  ;;  %v16837_v44 = vld [vmem:[#allocation8 + $0x1e8] ss:$16 sps:$4 sm:$0xff]  }
 0xb10   :  { %v4416_v6 = vmul.f32 1.442695, %v4414_v60  ;;  %v4418_v9 = vmul.f32 1.442695, %v4415_v58  ;;  %v16840_v58 = vld [vmem:[#allocation8 + $0x1c0] ss:$16 sps:$4 sm:$0xff]  }
 0xb11   :  { %v4483_v41 = vpop.permute.xlu1 %4482 }
 0xb12   :  { %v4488_v57 = vsel %vm3202_vm2, %v4483_v41, 0  ;;  %17746 = vpow2.f32 %v4416_v6  ;;  %v16845_v6 = vld [vmem:[#allocation8 + $0x1cc] ss:$16 sps:$4 sm:$0xff]   ;;  %v16843_v41 = vld [vmem:[#allocation8 + $0x1c8] ss:$16 sps:$4 sm:$0xff]  }
 0xb13   :  { %16062 = vmatpush3.bf16.msra.mxu1 %v4488_v57  ;;  %17748 = vpow2.f32 %v4418_v9  ;;  %v16848_v9 = vld [vmem:[#allocation8 + $0x1a4] ss:$16 sps:$4 sm:$0xff]   ;;  %v16846_v57 = vld [vmem:[#allocation8 + $0x1a0] ss:$16 sps:$4 sm:$0xff]  }
 0xb14   :  { %4681 = vmatprep.subr.bf16.mxu1 %v16839_v37  ;;  %v16852_v37 = vld [vmem:[#allocation8 + $0x180] ss:$16 sps:$4 sm:$0xff]  }
 0xb1f   :  { %v17747_v3 = vpop.eup %17746 }
 0xb20   :  { %v4420_v62 = vsel %vm3174_vm3, %v17747_v3, 0.0  ;;  %v17749_v34 = vpop.eup %17748 }
 0xb21   :  { %4421 = vadd.xlane.f32.xlu0 %v4420_v62  ;;  %v4423_v14 = vsel %vm3174_vm3, %v17749_v34, 0.0  ;;  %v16849_v62 = vld [vmem:[#allocation8 + $0x1a8] ss:$16 sps:$4 sm:$0xff]  }
 0xb25   :  { %4424 = vadd.xlane.f32.xlu0 %v4423_v14  ;;  %v16857_v14 = vld [vmem:[#allocation8 + $0x18c] ss:$16 sps:$4 sm:$0xff]  }
 0xb3b   :  { %4433 = vrot.lane.b32.xlu0 %v18453_v59, %s18068_s19 }
 0xbaa   :  { %v4422_v63 = vpop.xlane.xlu0 %4421 }
 0xbab   :  { %17750 = vrcp.f32 %v4422_v63  ;;  %v16855_v63 = vld [vmem:[#allocation8 + $0x188] ss:$16 sps:$4 sm:$0xff]  }
 0xbae   :  { %v4425_v39 = vpop.xlane.xlu0 %4424 }
 0xbaf   :  { %17752 = vrcp.f32 %v4425_v39 }
 0xbb2   :  { %v4434_v46 = vpop.permute.xlu0 %4433 }
 0xbb3   :  { %v4439_v42 = vsel %vm3202_vm2, %v4434_v46, 0  ;;  %v18561_v46 = vpack.c.bf16 %v18328_v11, %v18328_v11 }
 0xbb4   :  { %16056 = vmatpush3.bf16.msra.mxu0 %v4439_v42  ;;  %v18565_v42 = vpack.c.bf16 %v18332_v19, %v18332_v19 }
 0xbb5   :  { %4638 = vmatprep.subr.bf16.mxu0 %v16836_v48 }
 0xbb8   :  { %v17751_v32 = vpop.eup %17750 }
 0xbb9   :  { %v4428_v43 = vmul.f32 %v17751_v32, %v17747_v3  ;;  %v16851_v3 = vld [vmem:[#allocation8 + $0x1ac] ss:$16 sps:$4 sm:$0xff]  }
 0xbbb   :  { %v4430_v12 = vpack.c.bf16 %v4428_v43, %v4428_v43 }
 0xbbc   :  { %v17753_v5 = vpop.eup %17752 }
 0xbbd   :  { %16058 = vmatmul.mubr.msk.bf16.vlgmr.msra.gmra.mxu0 %vm3174_vm3, %v4430_v12  ;;  %v4429_v59 = vmul.f32 %v17753_v5, %v17749_v34  ;;  %v16854_v34 = vld [vmem:[#allocation8 + $0x184] ss:$16 sps:$4 sm:$0xff]   ;;  %v4734_v5 = vsel %vm3079_vm1, %v18561_v46, 0 }
 0xbbe   :  { %4639 = vmatpush1.bf16.msra.mxu0 %v16834_v38  ;;  %4662 = vmatprep.mubr.bf16.mxu0 %v18080_v51 }
 0xbbf   :  { %v4431_v60 = vpack.c.bf16 %v4429_v59, %v4429_v59  ;;  %4640 = vmatprep.subr.bf16.mxu0 %v16842_v0  ;;  %v4780_v59 = vsel %vm3079_vm1, %v18565_v42, 0 }
 0xbc1   :  { %16064 = vmatmul.mubr.msk.bf16.vlgmr.msra.gmra.mxu1 %vm3174_vm3, %v4431_v60  ;;  %v4724_v60 = vpack.c.bf16 %v18251_v7, %v18251_v7 }
 0xbc2   :  { %4682 = vmatpush1.bf16.msra.mxu1 %v16837_v44  ;;  %4641 = vmatpush1.bf16.msra.mxu0 %v16840_v58  ;;  %v18581_v44 = vpack.c.bf16 %v18364_v23, %v18364_v23  ;;  %v18585_v58 = vpack.c.bf16 %v18368_v35, %v18368_v35 }
 0xbc3   :  { %4683 = vmatprep.subr.bf16.mxu1 %v16845_v6  ;;  %4642 = vmatprep.subr.bf16.mxu0 %v16848_v9  ;;  %v4725_v6 = vpack.c.bf16 %v18258_v18, %v18258_v18 }
 0xbc4   :  { %4705 = vmatprep.mubr.bf16.mxu1 %v18080_v51  ;;  %v4852_v9 = vsel %vm3202_vm2, %v18581_v44, 0 }
 0xbc6   :  { %4684 = vmatpush1.bf16.msra.mxu1 %v16843_v41  ;;  %4643 = vmatpush1.bf16.msra.mxu0 %v16846_v57  ;;  %v4898_v41 = vsel %vm3202_vm2, %v18585_v58, 0 }
 0xbc7   :  { %4685 = vmatprep.subr.bf16.mxu1 %v16851_v3  ;;  %4644 = vmatprep.subr.bf16.mxu0 %v16854_v34 }
 0xbca   :  { %4686 = vmatpush1.bf16.msra.mxu1 %v16849_v62  ;;  %4645 = vmatpush1.bf16.msra.mxu0 %v16852_v37 }
 0xbcb   :  { %4687 = vmatprep.subr.bf16.mxu1 %v16857_v14  ;;  %16067 = vmatprep.subr.bf16.mxu0 %v18078_v31 }
 0xbce   :  { %4688 = vmatpush1.bf16.msra.mxu1 %v16855_v63 }
 0xbcf   :  { %16073 = vmatprep.subr.bf16.mxu1 %v18078_v31 }
 0xc7d   :  { %v4475_v39 = vpop.f32.mrf.mxu0 }
 0xc7f   :  { %v16059_v48 = vpop.f32.mrf.mxu0 }
 0xc81   :  { %v4478_v32 = vpop.f32.mrf.mxu0  ;;  %v4524_v43 = vpop.f32.mrf.mxu1 }
 0xc82   :  { %v4530_v38 = vpack.c.bf16 %v4524_v43, %v4475_v39 }
 0xc83   :  { %v16060_v12 = vpop.f32.mrf.mxu0  ;;  %v16065_v0 = vpop.f32.mrf.mxu1 }
 0xc84   :  { %14793 = vmatmul.mubr.msk.bf16.vlgmr.msra.gmra.mxu0 %vm3079_vm1, %v4530_v38  ;;  %14794 = vmatmul.mubr.msk.bf16.vlgmr.msra.gmra.mxu1 %vm3079_vm1, %v4530_v38 }
 0xc85   :  { %16068 = vmatpush3.bf16.xpose.msra.mxu0 %v4734_v5  ;;  %16074 = vmatpush3.bf16.xpose.msra.mxu1 %v4780_v59  ;;  %v4527_v11 = vpop.f32.mrf.mxu1 }
 0xc86   :  { %16069 = vmatprep.mubr.msk.bf16.mxu0 %vm18079_vm0, %v18078_v31  ;;  %16075 = vmatprep.mubr.msk.bf16.mxu1 %vm18079_vm0, %v18078_v31 }
 0xc87   :  { %v16066_v19 = vpop.f32.mrf.mxu1  ;;  %16079 = vmatprep.subr.bf16.mxu0 %v18078_v31  ;;  %16085 = vmatprep.subr.bf16.mxu1 %v18078_v31 }
 0xc8c   :  { %16070 = vmatmul.mubr.msk.bf16.vlgmr.msra.gmra.mxu0 %vm3079_vm1, %v4724_v60  ;;  %16076 = vmatmul.mubr.msk.bf16.vlgmr.msra.gmra.mxu1 %vm3079_vm1, %v4725_v6 }
 0xc8d   :  { %16080 = vmatpush3.bf16.msra.mxu0 %v4852_v9  ;;  %16086 = vmatpush3.bf16.msra.mxu1 %v4898_v41 }
 0xc8e   :  { %16081 = vmatprep.mubr.msk.bf16.mxu0 %vm18079_vm0, %v18078_v31  ;;  %16087 = vmatprep.mubr.msk.bf16.mxu1 %vm18079_vm0, %v18078_v31 }
 0xd44   :  { %v4664_v7 = vpop.f32.mrf.mxu0  ;;  %v4707_v18 = vpop.f32.mrf.mxu1 }
 0xd45   :  { %v18602_v23 = vadd.f32 %v4664_v7, %v18522_v10  ;;  %v18605_v35 = vadd.f32 %v4707_v18, %v18525_v20 }
 0xd46   :  { %v4666_v57 = vpop.f32.mrf.mxu0  ;;  %v4709_v3 = vpop.f32.mrf.mxu1 }
 0xd47   :  { %v18608_v62 = vadd.f32 %v4666_v57, %v18528_v13  ;;  %v18611_v34 = vadd.f32 %v4709_v3, %v18531_v2 }
 0xd48   :  { %v4668_v14 = vpop.f32.mrf.mxu0  ;;  %v4711_v37 = vpop.f32.mrf.mxu1 }
 0xd49   :  { %v18614_v63 = vadd.f32 %v4668_v14, %v18534_v45  ;;  %v18617_v39 = vadd.f32 %v4711_v37, %v18537_v26 }
 0xd4a   :  { %v18619_v10 = vpop.f32.mrf.mxu0  ;;  %v18621_v20 = vpop.f32.mrf.mxu1 }
 0xd4c   :  { %v4770_v48 = vpop.f32.mrf.mxu0  ;;  %v4816_v32 = vpop.f32.mrf.mxu1 }
 0xd4d   :  { %v4822_v43 = vmul.f32 0.125, %v4770_v48  ;;  %v4823_v13 = vmul.f32 0.125, %v4816_v32  ;;  %v16860_v48 = vld [vmem:[#allocation8 + $0x264] ss:$16 sps:$4 sm:$0xff]   ;;  %v16863_v32 = vld [vmem:[#allocation8 + $0x26c] ss:$16 sps:$4 sm:$0xff]  }
 0xd4e   :  { %v16071_v38 = vpop.f32.mrf.mxu0  ;;  %v16077_v12 = vpop.f32.mrf.mxu1  ;;  %5048 = vmatprep.subr.bf16.mxu0 %v16860_v48  ;;  %5091 = vmatprep.subr.bf16.mxu1 %v16863_v32 }
 0xd4f   :  { %v4827_v2 = vsel %vm3174_vm3, %v4823_v13, -inf  ;;  %v4824_v0 = vsel %vm3174_vm3, %v4822_v43, -inf }
 0xd50   :  { %4828 = vmax.xlane.f32.xlu0 %v4827_v2  ;;  %v4819_v45 = vpop.f32.mrf.mxu1  ;;  %4825 = vmax.xlane.f32.xlu1 %v4824_v0  ;;  %v4773_v5 = vpop.f32.mrf.mxu0 }
 0xd51   :  { %v16869_v5 = vld [vmem:[#allocation8 + $0x24c] ss:$16 sps:$4 sm:$0xff]  }
 0xd52   :  { %v16072_v26 = vpop.f32.mrf.mxu0  ;;  %v16078_v59 = vpop.f32.mrf.mxu1 }
 0xd53   :  { %v16864_v59 = vld [vmem:[#allocation8 + $0x240] ss:$16 sps:$4 sm:$0xff]  }
 0xdd9   :  { %v4829_v11 = vpop.xlane.xlu0 %4828  ;;  %v4826_v19 = vpop.xlane.xlu1 %4825 }
 0xdda   :  { %v4831_v9 = vsub.f32 %v4823_v13, %v4829_v11  ;;  %v4830_v41 = vsub.f32 %v4822_v43, %v4826_v19  ;;  %v16875_v11 = vld [vmem:[#allocation8 + $0x22c] ss:$16 sps:$4 sm:$0xff]   ;;  %v16872_v19 = vld [vmem:[#allocation8 + $0x224] ss:$16 sps:$4 sm:$0xff]  }
 0xddc   :  { %v4834_v7 = vmul.f32 1.442695, %v4831_v9  ;;  %v4832_v18 = vmul.f32 1.442695, %v4830_v41  ;;  %v16873_v9 = vld [vmem:[#allocation8 + $0x228] ss:$16 sps:$4 sm:$0xff]  }
 0xddd   :  { %v16870_v41 = vld [vmem:[#allocation8 + $0x220] ss:$16 sps:$4 sm:$0xff]  }
 0xdde   :  { %17754 = vpow2.f32 %v4834_v7  ;;  %v16881_v7 = vld [vmem:[#allocation8 + $0x20c] ss:$16 sps:$4 sm:$0xff]  }
 0xddf   :  { %17756 = vpow2.f32 %v4832_v18  ;;  %v16878_v18 = vld [vmem:[#allocation8 + $0x204] ss:$16 sps:$4 sm:$0xff]  }
 0xdeb   :  { %v17755_v57 = vpop.eup %17754 }
 0xdec   :  { %v17757_v3 = vpop.eup %17756  ;;  %v4839_v14 = vsel %vm3174_vm3, %v17755_v57, 0.0 }
 0xded   :  { %4840 = vadd.xlane.f32.xlu1 %v4839_v14  ;;  %v4836_v37 = vsel %vm3174_vm3, %v17757_v3, 0.0 }
 0xdee   :  { %4837 = vadd.xlane.f32.xlu0 %v4836_v37 }
 0xdfe   :  { %5190 = vrot.lane.b32.xlu1 %v18565_v42, %s18068_s19  ;;  %v16861_v42 = vld [vmem:[#allocation8 + $0x268] ss:$16 sps:$4 sm:$0xff]  }
 0xe02   :  { %5135 = vrot.lane.b32.xlu1 %v4724_v60, %s18068_s19  ;;  %v16858_v60 = vld [vmem:[#allocation8 + $0x260] ss:$16 sps:$4 sm:$0xff]  }
 0xe04   :  { %5138 = vrot.lane.b32.xlu0 %v18561_v46, %s18068_s19  ;;  %v16866_v46 = vld [vmem:[#allocation8 + $0x244] ss:$16 sps:$4 sm:$0xff]  }
 0xe06   :  { %5187 = vrot.lane.b32.xlu1 %v4725_v6, %s18068_s19  ;;  %v16867_v6 = vld [vmem:[#allocation8 + $0x248] ss:$16 sps:$4 sm:$0xff]  }
 0xe76   :  { %v4841_v43 = vpop.xlane.xlu1 %4840 }
 0xe77   :  { %v4838_v13 = vpop.xlane.xlu0 %4837  ;;  %17758 = vrcp.f32 %v4841_v43 }
 0xe78   :  { %17760 = vrcp.f32 %v4838_v13 }
 0xe7a   :  { %v5191_v14 = vpop.permute.xlu1 %5190 }
 0xe7b   :  { %v5139_v48 = vpop.permute.xlu0 %5138 }
 0xe84   :  { %v17759_v38 = vpop.eup %17758 }
 0xe85   :  { %v17761_v12 = vpop.eup %17760  ;;  %v4845_v2 = vmul.f32 %v17759_v38, %v17755_v57  ;;  %v16879_v57 = vld [vmem:[#allocation8 + $0x208] ss:$16 sps:$4 sm:$0xff]  }
 0xe86   :  { %v4844_v0 = vmul.f32 %v17761_v12, %v17757_v3  ;;  %v16876_v3 = vld [vmem:[#allocation8 + $0x200] ss:$16 sps:$4 sm:$0xff]   ;;  %v5144_v12 = vsel %vm3079_vm1, %v5139_v48, 0 }
 0xe87   :  { %v4847_v45 = vpack.c.bf16 %v4845_v2, %v4845_v2  ;;  %v5196_v2 = vsel %vm3079_vm1, %v5191_v14, 0 }
 0xe88   :  { %v4846_v26 = vpack.c.bf16 %v4844_v0, %v4844_v0 }
 0xe89   :  { %16088 = vmatmul.mubr.msk.bf16.vlgmr.msra.gmra.mxu1 %vm3174_vm3, %v4847_v45 }
 0xe8a   :  { %16082 = vmatmul.mubr.msk.bf16.vlgmr.msra.gmra.mxu0 %vm3174_vm3, %v4846_v26  ;;  %5092 = vmatpush1.bf16.msra.mxu1 %v16861_v42  ;;  %v5136_v42 = vpop.permute.xlu1 %5135 }
 0xe8b   :  { %5049 = vmatpush1.bf16.msra.mxu0 %v16858_v60  ;;  %5093 = vmatprep.subr.bf16.mxu1 %v16869_v5 }
 0xe8c   :  { %5050 = vmatprep.subr.bf16.mxu0 %v16866_v46  ;;  %5072 = vmatprep.mubr.bf16.mxu0 %v18080_v51 }
 0xe8d   :  { %5115 = vmatprep.mubr.bf16.mxu1 %v18080_v51 }
 0xe8e   :  { %5094 = vmatpush1.bf16.msra.mxu1 %v16867_v6  ;;  %v5188_v26 = vpop.permute.xlu1 %5187 }
 0xe8f   :  { %5051 = vmatpush1.bf16.msra.mxu0 %v16864_v59  ;;  %5095 = vmatprep.subr.bf16.mxu1 %v16875_v11 }
 0xe90   :  { %5052 = vmatprep.subr.bf16.mxu0 %v16872_v19 }
 0xe92   :  { %5096 = vmatpush1.bf16.msra.mxu1 %v16873_v9 }
 0xe93   :  { %5053 = vmatpush1.bf16.msra.mxu0 %v16870_v41  ;;  %5097 = vmatprep.subr.bf16.mxu1 %v16881_v7 }
 0xe94   :  { %5054 = vmatprep.subr.bf16.mxu0 %v16878_v18 }
 0xe96   :  { %5098 = vmatpush1.bf16.msra.mxu1 %v16879_v57 }
 0xe97   :  { %5055 = vmatpush1.bf16.msra.mxu0 %v16876_v3  ;;  %16097 = vmatprep.subr.bf16.mxu1 %v18078_v31 }
 0xe98   :  { %16091 = vmatprep.subr.bf16.mxu0 %v18078_v31 }
 0xf49   :  { %v4934_v37 = vpop.f32.mrf.mxu1 }
 0xf4a   :  { %v4888_v32 = vpop.f32.mrf.mxu0 }
 0xf4b   :  { %v4940_v43 = vpack.c.bf16 %v4934_v37, %v4888_v32  ;;  %v16089_v13 = vpop.f32.mrf.mxu1 }
 0xf4c   :  { %v16083_v38 = vpop.f32.mrf.mxu0 }
 0xf4d   :  { %14815 = vmatmul.mubr.msk.bf16.vlgmr.msra.gmra.mxu0 %vm3079_vm1, %v4940_v43  ;;  %14816 = vmatmul.mubr.msk.bf16.vlgmr.msra.gmra.mxu1 %vm3079_vm1, %v4940_v43  ;;  %v4937_v0 = vpop.f32.mrf.mxu1 }
 0xf4e   :  { %16092 = vmatpush3.bf16.xpose.msra.mxu0 %v5144_v12  ;;  %16098 = vmatpush3.bf16.xpose.msra.mxu1 %v5196_v2  ;;  %v4891_v45 = vpop.f32.mrf.mxu0 }
 0xf4f   :  { %v16090_v60 = vpop.f32.mrf.mxu1  ;;  %16093 = vmatprep.mubr.msk.bf16.mxu0 %vm18079_vm0, %v18078_v31  ;;  %16099 = vmatprep.mubr.msk.bf16.mxu1 %vm18079_vm0, %v18078_v31 }
 0xf50   :  { %v16084_v5 = vpop.f32.mrf.mxu0  ;;  %16109 = vmatprep.subr.bf16.mxu1 %v18078_v31  ;;  %16103 = vmatprep.subr.bf16.mxu0 %v18078_v31 }
 0xf55   :  { %16094 = vmatmul.mubr.msk.bf16.vlgmr.msra.gmra.mxu0 %vm3079_vm1, %v5136_v42  ;;  %16100 = vmatmul.mubr.msk.bf16.vlgmr.msra.gmra.mxu1 %vm3079_vm1, %v5188_v26 }
 0xf56   :  { %16105 = vmatprep.mubr.msk.bf16.mxu0 %vm18079_vm0, %v18078_v31  ;;  %16111 = vmatprep.mubr.msk.bf16.mxu1 %vm18079_vm0, %v18078_v31 }
0x100d   :  { %v5074_v46 = vpop.f32.mrf.mxu0  ;;  %v5117_v6 = vpop.f32.mrf.mxu1 }
0x100e   :  { %v18656_v59 = vadd.f32 %v5074_v46, %v18602_v23  ;;  %v18659_v11 = vadd.f32 %v5117_v6, %v18605_v35 }
0x100f   :  { %v5076_v19 = vpop.f32.mrf.mxu0  ;;  %v5119_v9 = vpop.f32.mrf.mxu1 }
0x1010   :  { %v18662_v41 = vadd.f32 %v5076_v19, %v18608_v62  ;;  %v18665_v7 = vadd.f32 %v5119_v9, %v18611_v34 }
0x1011   :  { %v5078_v18 = vpop.f32.mrf.mxu0  ;;  %v5121_v57 = vpop.f32.mrf.mxu1 }
0x1012   :  { %v18668_v3 = vadd.f32 %v5078_v18, %v18614_v63  ;;  %v18671_v14 = vadd.f32 %v5121_v57, %v18617_v39 }
0x1013   :  { %v18673_v23 = vpop.f32.mrf.mxu0  ;;  %v18675_v35 = vpop.f32.mrf.mxu1 }
0x1015   :  { %v5180_v37 = vpop.f32.mrf.mxu0  ;;  %v5232_v48 = vpop.f32.mrf.mxu1 }
0x1016   :  { %v5238_v32 = vmul.f32 0.125, %v5180_v37  ;;  %v5239_v62 = vmul.f32 0.125, %v5232_v48 }
0x1017   :  { %v16095_v43 = vpop.f32.mrf.mxu0  ;;  %v16101_v13 = vpop.f32.mrf.mxu1 }
0x1018   :  { %v5243_v34 = vsel %vm3174_vm3, %v5239_v62, -inf  ;;  %v5240_v38 = vsel %vm3174_vm3, %v5238_v32, -inf }
0x1019   :  { %5244 = vmax.xlane.f32.xlu1 %v5243_v34  ;;  %v5235_v63 = vpop.f32.mrf.mxu1  ;;  %5241 = vmax.xlane.f32.xlu0 %v5240_v38  ;;  %v5183_v12 = vpop.f32.mrf.mxu0  ;;  %v16882_v38 = vld [vmem:[#allocation8 + $0x2e0] ss:$16 sps:$4 sm:$0xff]  }
0x101a   :  { %v16890_v12 = vld [vmem:[#allocation8 + $0x2c4] ss:$16 sps:$4 sm:$0xff]  }
0x101b   :  { %v16096_v39 = vpop.f32.mrf.mxu0  ;;  %v16102_v2 = vpop.f32.mrf.mxu1 }
0x101c   :  { %v16885_v2 = vld [vmem:[#allocation8 + $0x2e8] ss:$16 sps:$4 sm:$0xff]  }
0x102a   :  { %5314 = vrot.lane.b32.xlu1 %v18585_v58, %s18068_s19  ;;  %v16887_v58 = vld [vmem:[#allocation8 + $0x2ec] ss:$16 sps:$4 sm:$0xff]  }
0x10a2   :  { %v5245_v0 = vpop.xlane.xlu1 %5244  ;;  %v5242_v42 = vpop.xlane.xlu0 %5241 }
0x10a3   :  { %v5247_v45 = vsub.f32 %v5239_v62, %v5245_v0  ;;  %v5246_v60 = vsub.f32 %v5238_v32, %v5242_v42  ;;  %v16884_v32 = vld [vmem:[#allocation8 + $0x2e4] ss:$16 sps:$4 sm:$0xff]   ;;  %v16888_v0 = vld [vmem:[#allocation8 + $0x2c0] ss:$16 sps:$4 sm:$0xff]  }
0x10a5   :  { %v5248_v5 = vmul.f32 1.442695, %v5246_v60  ;;  %v5250_v26 = vmul.f32 1.442695, %v5247_v45  ;;  %v16893_v45 = vld [vmem:[#allocation8 + $0x2cc] ss:$16 sps:$4 sm:$0xff]  }
0x10a6   :  { %v5315_v46 = vpop.permute.xlu1 %5314  ;;  %v16896_v60 = vld [vmem:[#allocation8 + $0x2a4] ss:$16 sps:$4 sm:$0xff]  }
0x10a7   :  { %v5320_v6 = vsel %vm3202_vm2, %v5315_v46, 0  ;;  %17762 = vpow2.f32 %v5248_v5  ;;  %v16891_v5 = vld [vmem:[#allocation8 + $0x2c8] ss:$16 sps:$4 sm:$0xff]   ;;  %v16899_v46 = vld [vmem:[#allocation8 + $0x2ac] ss:$16 sps:$4 sm:$0xff]  }
0x10a8   :  { %16110 = vmatpush3.bf16.msra.mxu1 %v5320_v6  ;;  %17764 = vpow2.f32 %v5250_v26  ;;  %v16894_v26 = vld [vmem:[#allocation8 + $0x2a0] ss:$16 sps:$4 sm:$0xff]   ;;  %v16897_v6 = vld [vmem:[#allocation8 + $0x2a8] ss:$16 sps:$4 sm:$0xff]  }
0x10a9   :  { %5513 = vmatprep.subr.bf16.mxu1 %v16887_v58  ;;  %v2856_v58 = vadd.f32 %v18335_v22, %v18325_v4 }
0x10b4   :  { %v17763_v19 = vpop.eup %17762 }
0x10b5   :  { %v5252_v9 = vsel %vm3174_vm3, %v17763_v19, 0.0  ;;  %v17765_v18 = vpop.eup %17764 }
0x10b6   :  { %5253 = vadd.xlane.f32.xlu0 %v5252_v9  ;;  %v5255_v57 = vsel %vm3174_vm3, %v17765_v18, 0.0  ;;  %v16905_v9 = vld [vmem:[#allocation8 + $0x28c] ss:$16 sps:$4 sm:$0xff]  }
0x10ba   :  { %5256 = vadd.xlane.f32.xlu0 %v5255_v57  ;;  %v16903_v57 = vld [vmem:[#allocation8 + $0x288] ss:$16 sps:$4 sm:$0xff]  }
0x10d0   :  { %5265 = vrot.lane.b32.xlu0 %v18581_v44, %s18068_s19 }
0x113f   :  { %v5254_v37 = vpop.xlane.xlu0 %5253 }
0x1140   :  { %17766 = vrcp.f32 %v5254_v37  ;;  %v2899_v37 = vadd.f32 %v18337_v25, %v2856_v58 }
0x1143   :  { %v5257_v48 = vpop.xlane.xlu0 %5256 }
0x1144   :  { %17768 = vrcp.f32 %v5257_v48 }
0x1147   :  { %v5266_v62 = vpop.permute.xlu0 %5265 }
0x1148   :  { %v5271_v43 = vsel %vm3202_vm2, %v5266_v62, 0  ;;  %v18698_v62 = vpack.c.bf16 %v18330_v16, %v18330_v16 }
0x1149   :  { %16104 = vmatpush3.bf16.msra.mxu0 %v5271_v43  ;;  %v18700_v43 = vpack.c.bf16 %v2899_v37, %v2899_v37 }
0x114a   :  { %5470 = vmatprep.subr.bf16.mxu0 %v16884_v32  ;;  %v5566_v25 = vsel %vm3079_vm1, %v18698_v62, 0 }
0x114b   :  { %v5612_v16 = vsel %vm3079_vm1, %v18700_v43, 0 }
0x114d   :  { %v17767_v13 = vpop.eup %17766 }
0x114e   :  { %v5260_v34 = vmul.f32 %v17767_v13, %v17763_v19  ;;  %v16902_v19 = vld [vmem:[#allocation8 + $0x284] ss:$16 sps:$4 sm:$0xff]   ;;  %v3028_v13 = vadd.f32 %v18370_v36, %v18361_v1  ;;  %v18722_v36 = vpack.c.bf16 %v18366_v21, %v18366_v21  ;;  %v3890_v21 = vadd.f32 %v18487_v56, %v18471_v8 }
0x1150   :  { %v5262_v63 = vpack.c.bf16 %v5260_v34, %v5260_v34 }
0x1151   :  { %v17769_v39 = vpop.eup %17768 }
0x1152   :  { %16106 = vmatmul.mubr.msk.bf16.vlgmr.msra.gmra.mxu0 %vm3174_vm3, %v5262_v63  ;;  %v5261_v44 = vmul.f32 %v17769_v39, %v17765_v18  ;;  %v16900_v18 = vld [vmem:[#allocation8 + $0x280] ss:$16 sps:$4 sm:$0xff]   ;;  %v2684_v63 = vadd.f32 %v18270_v27, %v18247_v61  ;;  %v3071_v39 = vadd.f32 %v18372_v40, %v3028_v13 }
0x1153   :  { %5471 = vmatpush1.bf16.msra.mxu0 %v16882_v38  ;;  %5494 = vmatprep.mubr.bf16.mxu0 %v18080_v51 }
0x1154   :  { %v5263_v42 = vpack.c.bf16 %v5261_v44, %v5261_v44  ;;  %5472 = vmatprep.subr.bf16.mxu0 %v16890_v12  ;;  %v2727_v61 = vadd.f32 %v18272_v30, %v2684_v63  ;;  %v18724_v40 = vpack.c.bf16 %v3071_v39, %v3071_v39  ;;  %v5556_v30 = vpack.c.bf16 %v18256_v15, %v18256_v15 }
0x1155   :  { %v3847_v15 = vadd.f32 %v18485_v55, %v18469_v28 }
0x1156   :  { %16112 = vmatmul.mubr.msk.bf16.vlgmr.msra.gmra.mxu1 %vm3174_vm3, %v5263_v42  ;;  %v18728_v44 = vpack.c.bf16 %v2727_v61, %v2727_v61 }
0x1157   :  { %5514 = vmatpush1.bf16.msra.mxu1 %v16885_v2  ;;  %5473 = vmatpush1.bf16.msra.mxu0 %v16888_v0  ;;  %v5684_v2 = vsel %vm3202_vm2, %v18722_v36, 0  ;;  %v5730_v0 = vsel %vm3202_vm2, %v18724_v40, 0 }
0x1158   :  { %5515 = vmatprep.subr.bf16.mxu1 %v16893_v45  ;;  %5474 = vmatprep.subr.bf16.mxu0 %v16896_v60  ;;  %v4299_v60 = vadd.f32 %v18539_v17, %v3847_v15 }
0x1159   :  { %5537 = vmatprep.mubr.bf16.mxu1 %v18080_v51 }
0x115b   :  { %5516 = vmatpush1.bf16.msra.mxu1 %v16891_v5  ;;  %5475 = vmatpush1.bf16.msra.mxu0 %v16894_v26  ;;  %v4301_v5 = vadd.f32 %v18541_v33, %v3890_v21 }
0x115c   :  { %5517 = vmatprep.subr.bf16.mxu1 %v16899_v46  ;;  %5476 = vmatprep.subr.bf16.mxu0 %v16902_v19 }
0x115d   :  { %v4723_v28 = vadd.f32 %v18621_v20, %v4301_v5  ;;  %v16909_v5 = vld [vmem:[#allocation8 + $0x368] ss:$16 sps:$4 sm:$0xff]  }
0x115f   :  { %5518 = vmatpush1.bf16.msra.mxu1 %v16897_v6  ;;  %5477 = vmatpush1.bf16.msra.mxu0 %v16900_v18 }
0x1160   :  { %5519 = vmatprep.subr.bf16.mxu1 %v16905_v9  ;;  %16115 = vmatprep.subr.bf16.mxu0 %v18078_v31  ;;  %v4721_v9 = vadd.f32 %v18619_v10, %v4299_v60 }
0x1162   :  { %v5131_v33 = vadd.f32 %v18673_v23, %v4721_v9  ;;  %v16914_v9 = vld [vmem:[#allocation8 + $0x344] ss:$16 sps:$4 sm:$0xff]  }
0x1163   :  { %5520 = vmatpush1.bf16.msra.mxu1 %v16903_v57 }
0x1164   :  { %16121 = vmatprep.subr.bf16.mxu1 %v18078_v31 }
0x1212   :  { %v5307_v48 = vpop.f32.mrf.mxu0 }
0x1214   :  { %v16107_v32 = vpop.f32.mrf.mxu0 }
0x1216   :  { %v5310_v34 = vpop.f32.mrf.mxu0  ;;  %v5356_v38 = vpop.f32.mrf.mxu1 }
0x1217   :  { %v5362_v12 = vpack.c.bf16 %v5356_v38, %v5307_v48 }
0x1218   :  { %v16108_v4 = vpop.f32.mrf.mxu0  ;;  %v16113_v22 = vpop.f32.mrf.mxu1 }
0x1219   :  { %14837 = vmatmul.mubr.msk.bf16.vlgmr.msra.gmra.mxu0 %vm3079_vm1, %v5362_v12  ;;  %14838 = vmatmul.mubr.msk.bf16.vlgmr.msra.gmra.mxu1 %vm3079_vm1, %v5362_v12 }
0x121a   :  { %16116 = vmatpush3.bf16.xpose.msra.mxu0 %v5566_v25  ;;  %16122 = vmatpush3.bf16.xpose.msra.mxu1 %v5612_v16  ;;  %v5359_v1 = vpop.f32.mrf.mxu1 }
0x121b   :  { %16117 = vmatprep.mubr.msk.bf16.mxu0 %vm18079_vm0, %v18078_v31  ;;  %16123 = vmatprep.mubr.msk.bf16.mxu1 %vm18079_vm0, %v18078_v31 }
0x121c   :  { %v16114_v27 = vpop.f32.mrf.mxu1  ;;  %16127 = vmatprep.subr.bf16.mxu0 %v18078_v31  ;;  %16133 = vmatprep.subr.bf16.mxu1 %v18078_v31 }
0x1221   :  { %16118 = vmatmul.mubr.msk.bf16.vlgmr.msra.gmra.mxu0 %vm3079_vm1, %v5556_v30  ;;  %16124 = vmatmul.mubr.msk.bf16.vlgmr.msra.gmra.mxu1 %vm3079_vm1, %v18728_v44 }
0x1222   :  { %16128 = vmatpush3.bf16.msra.mxu0 %v5684_v2  ;;  %16134 = vmatpush3.bf16.msra.mxu1 %v5730_v0  ;;  %v16908_v2 = vld [vmem:[#allocation8 + $0x364] ss:$16 sps:$4 sm:$0xff]   ;;  %v16911_v0 = vld [vmem:[#allocation8 + $0x36c] ss:$16 sps:$4 sm:$0xff]  }
0x1223   :  { %16129 = vmatprep.mubr.msk.bf16.mxu0 %vm18079_vm0, %v18078_v31  ;;  %16135 = vmatprep.mubr.msk.bf16.mxu1 %vm18079_vm0, %v18078_v31 }
0x1224   :  { %5880 = vmatprep.subr.bf16.mxu0 %v16908_v2  ;;  %5923 = vmatprep.subr.bf16.mxu1 %v16911_v0 }
0x12d9   :  { %v5496_v42 = vpop.f32.mrf.mxu0  ;;  %v5539_v45 = vpop.f32.mrf.mxu1 }
0x12da   :  { %v18748_v26 = vadd.f32 %v5496_v42, %v18656_v59  ;;  %v18751_v46 = vadd.f32 %v5539_v45, %v18659_v11  ;;  %v5133_v59 = vadd.f32 %v18675_v35, %v4723_v28  ;;  %v16912_v28 = vld [vmem:[#allocation8 + $0x340] ss:$16 sps:$4 sm:$0xff]  }
0x12db   :  { %v5498_v6 = vpop.f32.mrf.mxu0  ;;  %v5541_v19 = vpop.f32.mrf.mxu1 }
0x12dc   :  { %v18756_v8 = vadd.f32 %v5498_v6, %v18662_v41  ;;  %v18759_v55 = vadd.f32 %v5541_v19, %v18665_v7  ;;  %v16906_v6 = vld [vmem:[#allocation8 + $0x360] ss:$16 sps:$4 sm:$0xff]   ;;  %v16917_v19 = vld [vmem:[#allocation8 + $0x34c] ss:$16 sps:$4 sm:$0xff]  }
0x12dd   :  { %v5500_v56 = vpop.f32.mrf.mxu0  ;;  %v5543_v17 = vpop.f32.mrf.mxu1 }
0x12de   :  { %v18764_v11 = vadd.f32 %v5500_v56, %v18668_v3  ;;  %v18767_v18 = vadd.f32 %v5543_v17, %v18671_v14  ;;  %v16923_v56 = vld [vmem:[#allocation8 + $0x32c] ss:$16 sps:$4 sm:$0xff]   ;;  %v16920_v17 = vld [vmem:[#allocation8 + $0x324] ss:$16 sps:$4 sm:$0xff]  }
0x12df   :  { %v5502_v10 = vpop.f32.mrf.mxu0  ;;  %v5545_v20 = vpop.f32.mrf.mxu1 }
0x12e0   :  { %v18769_v57 = vadd.f32 %v5502_v10, %v5131_v33  ;;  %v18771_v41 = vadd.f32 %v5545_v20, %v5133_v59  ;;  %v16921_v33 = vld [vmem:[#allocation8 + $0x328] ss:$16 sps:$4 sm:$0xff]   ;;  %v16918_v59 = vld [vmem:[#allocation8 + $0x320] ss:$16 sps:$4 sm:$0xff]   ;;  %v16929_v10 = vld [vmem:[#allocation8 + $0x30c] ss:$16 sps:$4 sm:$0xff]  }
0x12e1   :  { %v5602_v7 = vpop.f32.mrf.mxu0  ;;  %v5648_v58 = vpop.f32.mrf.mxu1  ;;  %v16926_v20 = vld [vmem:[#allocation8 + $0x304] ss:$16 sps:$4 sm:$0xff]  }
0x12e2   :  { %v5654_v37 = vmul.f32 0.125, %v5602_v7  ;;  %v5655_v48 = vmul.f32 0.125, %v5648_v58  ;;  %v16927_v7 = vld [vmem:[#allocation8 + $0x308] ss:$16 sps:$4 sm:$0xff]   ;;  %v16924_v58 = vld [vmem:[#allocation8 + $0x300] ss:$16 sps:$4 sm:$0xff]  }
0x12e3   :  { %v16119_v32 = vpop.f32.mrf.mxu0  ;;  %v16125_v23 = vpop.f32.mrf.mxu1 }
0x12e4   :  { %v5659_v35 = vsel %vm3174_vm3, %v5655_v48, -inf  ;;  %v5656_v3 = vsel %vm3174_vm3, %v5654_v37, -inf }
0x12e5   :  { %5660 = vmax.xlane.f32.xlu0 %v5659_v35  ;;  %v5651_v13 = vpop.f32.mrf.mxu1  ;;  %5657 = vmax.xlane.f32.xlu1 %v5656_v3  ;;  %v5605_v14 = vpop.f32.mrf.mxu0 }
0x12e7   :  { %v16120_v34 = vpop.f32.mrf.mxu0  ;;  %v16126_v38 = vpop.f32.mrf.mxu1 }
0x136e   :  { %v5661_v63 = vpop.xlane.xlu0 %5660  ;;  %v5658_v12 = vpop.xlane.xlu1 %5657 }
0x136f   :  { %v5663_v4 = vsub.f32 %v5655_v48, %v5661_v63  ;;  %v5662_v22 = vsub.f32 %v5654_v37, %v5658_v12 }
0x1371   :  { %v5666_v25 = vmul.f32 1.442695, %v5663_v4  ;;  %v5664_v39 = vmul.f32 1.442695, %v5662_v22 }
0x1373   :  { %17770 = vpow2.f32 %v5666_v25 }
0x1374   :  { %17772 = vpow2.f32 %v5664_v39 }
0x1380   :  { %v17771_v16 = vpop.eup %17770 }
0x1381   :  { %v17773_v1 = vpop.eup %17772  ;;  %v5671_v61 = vsel %vm3174_vm3, %v17771_v16, 0.0 }
0x1382   :  { %5672 = vadd.xlane.f32.xlu1 %v5671_v61  ;;  %v5668_v27 = vsel %vm3174_vm3, %v17773_v1, 0.0 }
0x1383   :  { %5669 = vadd.xlane.f32.xlu0 %v5668_v27 }
0x1393   :  { %6022 = vrot.lane.b32.xlu1 %v18700_v43, %s18068_s19 }
0x1397   :  { %5967 = vrot.lane.b32.xlu1 %v5556_v30, %s18068_s19 }
0x1399   :  { %5970 = vrot.lane.b32.xlu0 %v18698_v62, %s18068_s19 }
0x139b   :  { %6019 = vrot.lane.b32.xlu1 %v18728_v44, %s18068_s19  ;;  %v16915_v44 = vld [vmem:[#allocation8 + $0x348] ss:$16 sps:$4 sm:$0xff]  }
0x140b   :  { %v5673_v15 = vpop.xlane.xlu1 %5672 }
0x140c   :  { %v5670_v21 = vpop.xlane.xlu0 %5669  ;;  %17774 = vrcp.f32 %v5673_v15 }
0x140d   :  { %17776 = vrcp.f32 %v5670_v21 }
0x140f   :  { %v6023_v37 = vpop.permute.xlu1 %6022 }
0x1410   :  { %v5971_v32 = vpop.permute.xlu0 %5970  ;;  %v6028_v34 = vsel %vm3079_vm1, %v6023_v37, 0 }
0x1411   :  { %v5976_v14 = vsel %vm3079_vm1, %v5971_v32, 0 }
0x1413   :  { %v5968_v63 = vpop.permute.xlu1 %5967 }
0x1417   :  { %v6020_v25 = vpop.permute.xlu1 %6019 }
0x1419   :  { %v17775_v42 = vpop.eup %17774 }
0x141a   :  { %v17777_v45 = vpop.eup %17776  ;;  %v5677_v60 = vmul.f32 %v17775_v42, %v17771_v16 }
0x141b   :  { %v5676_v43 = vmul.f32 %v17777_v45, %v17773_v1 }
0x141c   :  { %v5679_v30 = vpack.c.bf16 %v5677_v60, %v5677_v60 }
0x141d   :  { %v5678_v62 = vpack.c.bf16 %v5676_v43, %v5676_v43 }
0x141e   :  { %16136 = vmatmul.mubr.msk.bf16.vlgmr.msra.gmra.mxu1 %vm3174_vm3, %v5679_v30 }
0x141f   :  { %16130 = vmatmul.mubr.msk.bf16.vlgmr.msra.gmra.mxu0 %vm3174_vm3, %v5678_v62  ;;  %5924 = vmatpush1.bf16.msra.mxu1 %v16909_v5 }
0x1420   :  { %5881 = vmatpush1.bf16.msra.mxu0 %v16906_v6  ;;  %5925 = vmatprep.subr.bf16.mxu1 %v16917_v19 }
0x1421   :  { %5882 = vmatprep.subr.bf16.mxu0 %v16914_v9  ;;  %5904 = vmatprep.mubr.bf16.mxu0 %v18080_v51 }
0x1422   :  { %5947 = vmatprep.mubr.bf16.mxu1 %v18080_v51 }
0x1423   :  { %5926 = vmatpush1.bf16.msra.mxu1 %v16915_v44 }
0x1424   :  { %5883 = vmatpush1.bf16.msra.mxu0 %v16912_v28  ;;  %5927 = vmatprep.subr.bf16.mxu1 %v16923_v56 }
0x1425   :  { %5884 = vmatprep.subr.bf16.mxu0 %v16920_v17 }
0x1427   :  { %5928 = vmatpush1.bf16.msra.mxu1 %v16921_v33 }
0x1428   :  { %5885 = vmatpush1.bf16.msra.mxu0 %v16918_v59  ;;  %5929 = vmatprep.subr.bf16.mxu1 %v16929_v10 }
0x1429   :  { %5886 = vmatprep.subr.bf16.mxu0 %v16926_v20 }
0x142b   :  { %5930 = vmatpush1.bf16.msra.mxu1 %v16927_v7 }
0x142c   :  { %5887 = vmatpush1.bf16.msra.mxu0 %v16924_v58  ;;  %16145 = vmatprep.subr.bf16.mxu1 %v18078_v31 }
0x142d   :  { %16139 = vmatprep.subr.bf16.mxu0 %v18078_v31 }
0x14de   :  { %v5766_v48 = vpop.f32.mrf.mxu1 }
0x14df   :  { %v5720_v23 = vpop.f32.mrf.mxu0 }
0x14e0   :  { %v5772_v35 = vpack.c.bf16 %v5766_v48, %v5720_v23  ;;  %v16137_v3 = vpop.f32.mrf.mxu1 }
0x14e1   :  { %v16131_v13 = vpop.f32.mrf.mxu0 }
0x14e2   :  { %14859 = vmatmul.mubr.msk.bf16.vlgmr.msra.gmra.mxu0 %vm3079_vm1, %v5772_v35  ;;  %14860 = vmatmul.mubr.msk.bf16.vlgmr.msra.gmra.mxu1 %vm3079_vm1, %v5772_v35  ;;  %v5769_v38 = vpop.f32.mrf.mxu1  ;;  %v16932_v35 = vld [vmem:[#allocation8 + $0x3e4] ss:$16 sps:$4 sm:$0xff]  }
0x14e3   :  { %16140 = vmatpush3.bf16.xpose.msra.mxu0 %v5976_v14  ;;  %16146 = vmatpush3.bf16.xpose.msra.mxu1 %v6028_v34  ;;  %v5723_v12 = vpop.f32.mrf.mxu0  ;;  %v16930_v38 = vld [vmem:[#allocation8 + $0x3e0] ss:$16 sps:$4 sm:$0xff]  }
0x14e4   :  { %v16138_v4 = vpop.f32.mrf.mxu1  ;;  %16141 = vmatprep.mubr.msk.bf16.mxu0 %vm18079_vm0, %v18078_v31  ;;  %16147 = vmatprep.mubr.msk.bf16.mxu1 %vm18079_vm0, %v18078_v31  ;;  %v16938_v12 = vld [vmem:[#allocation8 + $0x3c4] ss:$16 sps:$4 sm:$0xff]  }
0x14e5   :  { %v16132_v22 = vpop.f32.mrf.mxu0  ;;  %16157 = vmatprep.subr.bf16.mxu1 %v18078_v31  ;;  %16151 = vmatprep.subr.bf16.mxu0 %v18078_v31 }
0x14ea   :  { %16142 = vmatmul.mubr.msk.bf16.vlgmr.msra.gmra.mxu0 %vm3079_vm1, %v5968_v63  ;;  %16148 = vmatmul.mubr.msk.bf16.vlgmr.msra.gmra.mxu1 %vm3079_vm1, %v6020_v25  ;;  %v16936_v25 = vld [vmem:[#allocation8 + $0x3c0] ss:$16 sps:$4 sm:$0xff]  }
0x14eb   :  { %16153 = vmatprep.mubr.msk.bf16.mxu0 %vm18079_vm0, %v18078_v31  ;;  %16159 = vmatprep.mubr.msk.bf16.mxu1 %vm18079_vm0, %v18078_v31 }
0x15a2   :  { %v5906_v39 = vpop.f32.mrf.mxu0  ;;  %v5949_v16 = vpop.f32.mrf.mxu1 }
0x15a3   :  { %v18807_v1 = vadd.f32 %v5906_v39, %v18748_v26  ;;  %v18810_v61 = vadd.f32 %v5949_v16, %v18751_v46  ;;  %v16941_v16 = vld [vmem:[#allocation8 + $0x3cc] ss:$16 sps:$4 sm:$0xff]  }
0x15a4   :  { %v5908_v27 = vpop.f32.mrf.mxu0  ;;  %v5951_v2 = vpop.f32.mrf.mxu1 }
0x15a5   :  { %v18813_v0 = vadd.f32 %v5908_v27, %v18756_v8  ;;  %v18816_v15 = vadd.f32 %v5951_v2, %v18759_v55  ;;  %v16944_v27 = vld [vmem:[#allocation8 + $0x3a4] ss:$16 sps:$4 sm:$0xff]   ;;  %v16939_v2 = vld [vmem:[#allocation8 + $0x3c8] ss:$16 sps:$4 sm:$0xff]  }
0x15a6   :  { %v5910_v21 = vpop.f32.mrf.mxu0  ;;  %v5953_v42 = vpop.f32.mrf.mxu1 }
0x15a7   :  { %v18819_v31 = vadd.f32 %v5910_v21, %v18764_v11  ;;  %v18822_v45 = vadd.f32 %v5953_v42, %v18767_v18  ;;  %v16942_v21 = vld [vmem:[#allocation8 + $0x3a0] ss:$16 sps:$4 sm:$0xff]   ;;  %v16947_v42 = vld [vmem:[#allocation8 + $0x3ac] ss:$16 sps:$4 sm:$0xff]  }
0x15a8   :  { %v5912_v26 = vpop.f32.mrf.mxu0  ;;  %v5955_v60 = vpop.f32.mrf.mxu1 }
0x15a9   :  { %v18825_v46 = vadd.f32 %v5912_v26, %v18769_v57  ;;  %v18828_v43 = vadd.f32 %v5955_v60, %v18771_v41  ;;  %v16945_v26 = vld [vmem:[#allocation8 + $0x3a8] ss:$16 sps:$4 sm:$0xff]   ;;  %v16950_v60 = vld [vmem:[#allocation8 + $0x384] ss:$16 sps:$4 sm:$0xff]  }
0x15aa   :  { %v6012_v8 = vpop.f32.mrf.mxu0  ;;  %v6064_v5 = vpop.f32.mrf.mxu1 }
0x15ab   :  { %v6070_v55 = vmul.f32 0.125, %v6012_v8  ;;  %v6071_v30 = vmul.f32 0.125, %v6064_v5  ;;  %v16953_v8 = vld [vmem:[#allocation8 + $0x38c] ss:$16 sps:$4 sm:$0xff]   ;;  %v16948_v5 = vld [vmem:[#allocation8 + $0x380] ss:$16 sps:$4 sm:$0xff]  }
0x15ac   :  { %v16143_v6 = vpop.f32.mrf.mxu0  ;;  %v16149_v19 = vpop.f32.mrf.mxu1 }
0x15ad   :  { %v6075_v11 = vsel %vm3174_vm3, %v6071_v30, -inf  ;;  %v6072_v62 = vsel %vm3174_vm3, %v6070_v55, -inf }
0x15ae   :  { %6076 = vmax.xlane.f32.xlu1 %v6075_v11  ;;  %v6067_v18 = vpop.f32.mrf.mxu1  ;;  %6073 = vmax.xlane.f32.xlu0 %v6072_v62  ;;  %v6015_v9 = vpop.f32.mrf.mxu0 }
0x15b0   :  { %v16144_v44 = vpop.f32.mrf.mxu0  ;;  %v16150_v57 = vpop.f32.mrf.mxu1 }
0x15b1   :  { %v6388_v57 = vld [vmem:[#allocation10] sm:$0xf] }
0x15bf   :  { %6146 = vrot.lane.b32.xlu1 %v18724_v40, %s18068_s19  ;;  %v16935_v40 = vld [vmem:[#allocation8 + $0x3ec] ss:$16 sps:$4 sm:$0xff]  }
0x1637   :  { %v6077_v41 = vpop.xlane.xlu1 %6076  ;;  %v6074_v28 = vpop.xlane.xlu0 %6073 }
0x1638   :  { %v6079_v56 = vsub.f32 %v6071_v30, %v6077_v41  ;;  %v6078_v17 = vsub.f32 %v6070_v55, %v6074_v28  ;;  %v16951_v55 = vld [vmem:[#allocation8 + $0x388] ss:$16 sps:$4 sm:$0xff]   ;;  %v6393_v41 = vrot.slane %v6388_v57, %v18267_v24 }
0x163a   :  { %v6080_v33 = vmul.f32 1.442695, %v6078_v17  ;;  %v6082_v59 = vmul.f32 1.442695, %v6079_v56 }
0x163b   :  { %v6147_v10 = vpop.permute.xlu1 %6146 }
0x163c   :  { %v6152_v20 = vsel %vm3202_vm2, %v6147_v10, 0  ;;  %17778 = vpow2.f32 %v6080_v33  ;;  %v6397_v10 = vrot.slane %v6388_v57, %v18212_v29 }
0x163d   :  { %16158 = vmatpush3.bf16.msra.mxu1 %v6152_v20  ;;  %17780 = vpow2.f32 %v6082_v59  ;;  %v6401_v59 = vrot.slane %v6388_v57, %v18230_v47 }
0x163e   :  { %6345 = vmatprep.subr.bf16.mxu1 %v16935_v40 }
0x1649   :  { %v17779_v7 = vpop.eup %17778 }
0x164a   :  { %v6084_v58 = vsel %vm3174_vm3, %v17779_v7, 0.0  ;;  %v17781_v37 = vpop.eup %17780 }
0x164b   :  { %6085 = vadd.xlane.f32.xlu0 %v6084_v58  ;;  %v6087_v48 = vsel %vm3174_vm3, %v17781_v37, 0.0  ;;  %v6405_v58 = vrot.slane %v6388_v57, %v18237_v52  ;;  %v6919_v57 = vld [vmem:[#allocation14 + $0xbc0] sm:$0xff] }
0x164f   :  { %6088 = vadd.xlane.f32.xlu0 %v6087_v48 }
0x1665   :  { %6097 = vrot.lane.b32.xlu0 %v18722_v36, %s18068_s19  ;;  %v16933_v36 = vld [vmem:[#allocation8 + $0x3e8] ss:$16 sps:$4 sm:$0xff]   ;;  %s18025_s19 = scalar_lea.vmem %s14307_s10, 1024 }
0x1666   :  { %p18026_p13 = scmp.ne.s32.totalorder %s14307_s10, %s18025_s19  ;;  %p18031_p1 = scmp.lt.s32.totalorder %s18025_s19, %s18025_s19 }
0x1668   :  { %p18032_p2 = por %p18031_p1, %p18030_p0 }
0x166a   :  { %p18033_p3 = pnand %p18032_p2, %p18026_p13 }
0x16d4   :  { %v6086_v32 = vpop.xlane.xlu0 %6085 }
0x16d5   :  { %17782 = vrcp.f32 %v6086_v32 }
0x16d8   :  { %v6089_v23 = vpop.xlane.xlu0 %6088 }
0x16d9   :  { %17784 = vrcp.f32 %v6089_v23 }
0x16dc   :  { %v6098_v3 = vpop.permute.xlu0 %6097 }
0x16dd   :  { %v6103_v13 = vsel %vm3202_vm2, %v6098_v3, 0 }
0x16de   :  { %16152 = vmatpush3.bf16.msra.mxu0 %v6103_v13 }
0x16df   :  { %6302 = vmatprep.subr.bf16.mxu0 %v16932_v35 }
0x16e2   :  { %v17783_v14 = vpop.eup %17782 }
0x16e3   :  { %v6092_v34 = vmul.f32 %v17783_v14, %v17779_v7 }
0x16e5   :  { %v6094_v63 = vpack.c.bf16 %v6092_v34, %v6092_v34 }
0x16e6   :  { %v17785_v4 = vpop.eup %17784 }
0x16e7   :  { %v6093_v22 = vmul.f32 %v17785_v4, %v17781_v37  ;;  %16154 = vmatmul.mubr.msk.bf16.vlgmr.msra.gmra.mxu0 %vm3174_vm3, %v6094_v63 }
0x16e8   :  { %6303 = vmatpush1.bf16.msra.mxu0 %v16930_v38  ;;  %6326 = vmatprep.mubr.bf16.mxu0 %v18080_v51  ;;  %v17795_v38 = vld [vmem:[#allocation2] sm:$0xff] }
0x16e9   :  { %v6095_v39 = vpack.c.bf16 %v6093_v22, %v6093_v22  ;;  %6304 = vmatprep.subr.bf16.mxu0 %v16938_v12  ;;  %v17796_v12 = vld [vmem:[#allocation2 + $0x8] sm:$0xff] }
0x16eb   :  { %16160 = vmatmul.mubr.msk.bf16.vlgmr.msra.gmra.mxu1 %vm3174_vm3, %v6095_v39 }
0x16ec   :  { %6346 = vmatpush1.bf16.msra.mxu1 %v16933_v36  ;;  %6305 = vmatpush1.bf16.msra.mxu0 %v16936_v25  ;;  %v17797_v36 = vld [vmem:[#allocation2 + $0x10] sm:$0xff] }
0x16ed   :  { %6347 = vmatprep.subr.bf16.mxu1 %v16941_v16  ;;  %6306 = vmatprep.subr.bf16.mxu0 %v16944_v27  ;;  %v17798_v16 = vld [vmem:[#allocation2 + $0x18] sm:$0xff] }
0x16ee   :  { %6369 = vmatprep.mubr.bf16.mxu1 %v18080_v51 }
0x16f0   :  { %6348 = vmatpush1.bf16.msra.mxu1 %v16939_v2  ;;  %6307 = vmatpush1.bf16.msra.mxu0 %v16942_v21  ;;  %v17799_v2 = vld [vmem:[#allocation2 + $0x20] sm:$0xff] }
0x16f1   :  { %6349 = vmatprep.subr.bf16.mxu1 %v16947_v42  ;;  %6308 = vmatprep.subr.bf16.mxu0 %v16950_v60  ;;  %v17800_v42 = vld [vmem:[#allocation2 + $0x28] sm:$0xff]  ;;  %v17801_v60 = vld [vmem:[#allocation2 + $0x30] sm:$0xff] }
0x16f4   :  { %6350 = vmatpush1.bf16.msra.mxu1 %v16945_v26  ;;  %6309 = vmatpush1.bf16.msra.mxu0 %v16948_v5 }
0x16f5   :  { %6351 = vmatprep.subr.bf16.mxu1 %v16953_v8 }
0x16f8   :  { %6352 = vmatpush1.bf16.msra.mxu1 %v16951_v55 }
0x17a7   :  { %v6139_v30 = vpop.f32.mrf.mxu0 }
0x17a9   :  { %v16155_v6 = vpop.f32.mrf.mxu0 }
0x17ab   :  { %v6142_v19 = vpop.f32.mrf.mxu0  ;;  %v6188_v11 = vpop.f32.mrf.mxu1 }
0x17ac   :  { %v6194_v62 = vpack.c.bf16 %v6188_v11, %v6139_v30  ;;  %v17802_v30 = vld [vmem:[#allocation2 + $0x38] sm:$0xff] }
0x17ad   :  { %v16156_v18 = vpop.f32.mrf.mxu0  ;;  %v16161_v51 = vpop.f32.mrf.mxu1 }
0x17ae   :  { %14881 = vmatmul.mubr.msk.bf16.vlgmr.msra.gmra.mxu0 %vm3079_vm1, %v6194_v62  ;;  %14882 = vmatmul.mubr.msk.bf16.vlgmr.msra.gmra.mxu1 %vm3079_vm1, %v6194_v62  ;;  %v6655_v62 = vld [vmem:[#allocation14 + $0x380] sm:$0xff] }
0x17af   :  { %v6191_v9 = vpop.f32.mrf.mxu1  ;;  %v6663_v18 = vld [vmem:[#allocation14 + $0x3c0] sm:$0xff] }
0x17b0   :  { %v6911_v51 = vld [vmem:[#allocation14 + $0xb80] sm:$0xff]  ;;  %v14995_v9 = vcombine.low %v6655_v62, %v6663_v18 }
0x17b1   :  { %v16162_v44 = vpop.f32.mrf.mxu1 }
0x17b2   :  { %v14996_v44 = vcombine.high %v6655_v62, %v6663_v18  ;;  %v6815_v62 = vld [vmem:[#allocation14 + $0x880] sm:$0xff] }
0x17b3   :  { %v6823_v18 = vld [vmem:[#allocation14 + $0x8c0] sm:$0xff] }
0x17b4   :  { %9699 = vmatprep.subr.bf16.mxu0 %v14996_v44 }
0x17b5   :  { %9700 = vmatpush1.bf16.msra.mxu0 %v14995_v9 }
0x186e   :  { %v6328_v28 = vpop.f32.mrf.mxu0  ;;  %v6371_v56 = vpop.f32.mrf.mxu1 }
0x186f   :  { %v6380_v17 = vadd.f32 %v6328_v28, %v18807_v1  ;;  %v6382_v33 = vadd.f32 %v6371_v56, %v18810_v61  ;;  %v6647_v28 = vld [vmem:[#allocation14 + $0x340] sm:$0xff]  ;;  %v15251_v56 = vcombine.low %v6911_v51, %v6919_v57 }
0x1870   :  { %v6330_v20 = vpop.f32.mrf.mxu0  ;;  %v6373_v7 = vpop.f32.mrf.mxu1 }
0x1871   :  { %v6410_v37 = vadd.f32 %v6393_v41, %v6380_v17  ;;  %v6381_v48 = vadd.f32 %v6330_v20, %v18813_v0  ;;  %v6383_v40 = vadd.f32 %v6373_v7, %v18816_v15  ;;  %v6412_v35 = vadd.f32 %v6401_v59, %v6382_v33  ;;  %v6623_v20 = vld [vmem:[#allocation14 + $0x280] sm:$0xff] }
0x1872   :  { %v6332_v32 = vpop.f32.mrf.mxu0  ;;  %v6375_v23 = vpop.f32.mrf.mxu1  ;;  %v15252_v17 = vcombine.high %v6911_v51, %v6919_v57  ;;  %v15156_v57 = vcombine.high %v6815_v62, %v6823_v18 }
0x1873   :  { %v6411_v3 = vadd.f32 %v6397_v10, %v6381_v48  ;;  %v6413_v1 = vadd.f32 %v6405_v58, %v6383_v40  ;;  %v6384_v61 = vadd.f32 %v6332_v32, %v18819_v31  ;;  %v6386_v13 = vadd.f32 %v6375_v23, %v18822_v45  ;;  %v6887_v48 = vld [vmem:[#allocation14 + $0xac0] sm:$0xff] }
0x1874   :  { %v6334_v14 = vpop.f32.mrf.mxu0  ;;  %v6377_v34 = vpop.f32.mrf.mxu1  ;;  %v18856_v63 = vadd.f32 %v17795_v38, %v6410_v37  ;;  %v18862_v25 = vadd.f32 %v17797_v36, %v6412_v35  ;;  %v6879_v37 = vld [vmem:[#allocation14 + $0xa80] sm:$0xff]  ;;  %9742 = vmatprep.subr.bf16.mxu1 %v15252_v17 }
0x1875   :  { %v18858_v4 = vadd.f32 %v17796_v12, %v6411_v3  ;;  %v6385_v0 = vadd.f32 %v6334_v14, %v18825_v46  ;;  %v6387_v15 = vadd.f32 %v6377_v34, %v18828_v43  ;;  %v6414_v22 = vadd.f32 %v6393_v41, %v6384_v61  ;;  %v6639_v41 = vld [vmem:[#allocation14 + $0x300] sm:$0xff]  ;;  %9743 = vmatpush1.bf16.msra.mxu1 %v15251_v56 }
0x1876   :  { %v6416_v39 = vadd.f32 %v6401_v59, %v6386_v13  ;;  %v18866_v27 = vadd.f32 %v17798_v16, %v6413_v1  ;;  %v14980_v33 = vcombine.high %v6639_v41, %v6647_v28  ;;  %v6895_v59 = vld [vmem:[#allocation14 + $0xb00] sm:$0xff]  ;;  %v14979_v40 = vcombine.low %v6639_v41, %v6647_v28 }
0x1877   :  { %v6415_v31 = vadd.f32 %v6397_v10, %v6385_v0  ;;  %v6428_v45 = vadd.f32 %v18858_v4, %v18856_v63  ;;  %v18868_v21 = vadd.f32 %v17799_v2, %v6414_v22  ;;  %v6417_v46 = vadd.f32 %v6405_v58, %v6387_v15  ;;  %v6903_v10 = vld [vmem:[#allocation14 + $0xb40] sm:$0xff] }
0x1878   :  { %v18873_v8 = vadd.f32 %v17801_v60, %v6416_v39  ;;  %v15236_v7 = vcombine.high %v6895_v59, %v6903_v10  ;;  %v6631_v58 = vld [vmem:[#allocation14 + $0x2c0] sm:$0xff]  ;;  %9701 = vmatprep.subr.bf16.mxu0 %v14980_v33  ;;  %v15235_v32 = vcombine.low %v6895_v59, %v6903_v10  ;;  %v15220_v35 = vcombine.high %v6879_v37, %v6887_v48 }
0x1879   :  { %v18870_v26 = vadd.f32 %v17800_v42, %v6415_v31  ;;  %v6429_v43 = vadd.f32 %v6428_v45, %v18862_v25  ;;  %v18878_v6 = vadd.f32 %v17802_v30, %v6417_v46  ;;  %v14964_v23 = vcombine.high %v6623_v20, %v6631_v58  ;;  %v6607_v3 = vld [vmem:[#allocation14 + $0x200] sm:$0xff]  ;;  %9702 = vmatpush1.bf16.msra.mxu0 %v14979_v40 }
0x187a   :  { %9744 = vmatprep.subr.bf16.mxu1 %v15236_v7  ;;  %v6615_v1 = vld [vmem:[#allocation14 + $0x240] sm:$0xff]  ;;  %v14963_v14 = vcombine.low %v6623_v20, %v6631_v58  ;;  %v15219_v34 = vcombine.low %v6879_v37, %v6887_v48  ;;  %v15155_v59 = vcombine.low %v6815_v62, %v6823_v18 }
0x187b   :  { %v6430_v5 = vadd.f32 %v6429_v43, %v18866_v27  ;;  %v6433_v55 = vadd.f32 %v18870_v26, %v18868_v21  ;;  %v6863_v61 = vld [vmem:[#allocation14 + $0xa00] sm:$0xff]  ;;  %9745 = vmatpush1.bf16.msra.mxu1 %v15235_v32  ;;  %9703 = vmatprep.subr.bf16.mxu0 %v14964_v23  ;;  %v14948_v38 = vcombine.high %v6607_v3, %v6615_v1 }
0x187c   :  { %v6871_v13 = vld [vmem:[#allocation14 + $0xa40] sm:$0xff]  ;;  %9746 = vmatprep.subr.bf16.mxu1 %v15220_v35  ;;  %v14947_v39 = vcombine.low %v6607_v3, %v6615_v1 }
0x187d   :  { %6431 = vadd.xlane.f32.xlu1 %v6430_v5  ;;  %v6434_v19 = vadd.f32 %v6433_v55, %v18873_v8  ;;  %v15204_v12 = vcombine.high %v6863_v61, %v6871_v13  ;;  %v6591_v0 = vld [vmem:[#allocation14 + $0x180] sm:$0xff]  ;;  %9704 = vmatpush1.bf16.msra.mxu0 %v14963_v14  ;;  %v15203_v31 = vcombine.low %v6863_v61, %v6871_v13 }
0x187e   :  { %v6599_v15 = vld [vmem:[#allocation14 + $0x1c0] sm:$0xff]  ;;  %9705 = vmatprep.subr.bf16.mxu0 %v14948_v38 }
0x187f   :  { %v6435_v11 = vadd.f32 %v6434_v19, %v18878_v6  ;;  %v6847_v22 = vld [vmem:[#allocation14 + $0x980] sm:$0xff]  ;;  %9747 = vmatpush1.bf16.msra.mxu1 %v15219_v34  ;;  %v14932_v45 = vcombine.high %v6591_v0, %v6599_v15  ;;  %v14931_v60 = vcombine.low %v6591_v0, %v6599_v15 }
0x1880   :  { %v6855_v36 = vld [vmem:[#allocation14 + $0x9c0] sm:$0xff]  ;;  %9748 = vmatprep.subr.bf16.mxu1 %v15204_v12 }
0x1881   :  { %6436 = vadd.xlane.f32.xlu0 %v6435_v11  ;;  %v15188_v16 = vcombine.high %v6847_v22, %v6855_v36  ;;  %v6575_v2 = vld [vmem:[#allocation14 + $0x100] sm:$0xff]  ;;  %9706 = vmatpush1.bf16.msra.mxu0 %v14947_v39  ;;  %v15187_v5 = vcombine.low %v6847_v22, %v6855_v36 }
0x1882   :  { %v6583_v42 = vld [vmem:[#allocation14 + $0x140] sm:$0xff]  ;;  %9707 = vmatprep.subr.bf16.mxu0 %v14932_v45 }
0x1883   :  { %v6831_v46 = vld [vmem:[#allocation14 + $0x900] sm:$0xff]  ;;  %9749 = vmatpush1.bf16.msra.mxu1 %v15203_v31  ;;  %v14916_v55 = vcombine.high %v6575_v2, %v6583_v42  ;;  %v14915_v51 = vcombine.low %v6575_v2, %v6583_v42 }
0x1884   :  { %v6839_v43 = vld [vmem:[#allocation14 + $0x940] sm:$0xff]  ;;  %9750 = vmatprep.subr.bf16.mxu1 %v15188_v16 }
0x1885   :  { %v15172_v30 = vcombine.high %v6831_v46, %v6839_v43  ;;  %v6559_v19 = vld [vmem:[#allocation14 + $0x80] sm:$0xff]  ;;  %9708 = vmatpush1.bf16.msra.mxu0 %v14931_v60  ;;  %v15171_v9 = vcombine.low %v6831_v46, %v6839_v43 }
0x1886   :  { %v6567_v11 = vld [vmem:[#allocation14 + $0xc0] sm:$0xff]  ;;  %9709 = vmatprep.subr.bf16.mxu0 %v14916_v55 }
0x1887   :  { %9751 = vmatpush1.bf16.msra.mxu1 %v15187_v5  ;;  %v14900_v44 = vcombine.high %v6559_v19, %v6567_v11  ;;  %v6543_v41 = vld [vmem:[#allocation14] sm:$0xff]  ;;  %v14899_v33 = vcombine.low %v6559_v19, %v6567_v11 }
0x1888   :  { %9752 = vmatprep.subr.bf16.mxu1 %v15172_v30  ;;  %v6551_v28 = vld [vmem:[#allocation14 + $0x40] sm:$0xff] }
0x1889   :  { %v6799_v56 = vld [vmem:[#allocation14 + $0x800] sm:$0xff]  ;;  %9710 = vmatpush1.bf16.msra.mxu0 %v14915_v51  ;;  %v14884_v10 = vcombine.high %v6543_v41, %v6551_v28  ;;  %v14883_v40 = vcombine.low %v6543_v41, %v6551_v28 }
0x188a   :  { %v6807_v17 = vld [vmem:[#allocation14 + $0x840] sm:$0xff]  ;;  %9711 = vmatprep.subr.bf16.mxu0 %v14900_v44 }
0x188b   :  { %9753 = vmatpush1.bf16.msra.mxu1 %v15171_v9  ;;  %v15140_v20 = vcombine.high %v6799_v56, %v6807_v17  ;;  %v6783_v7 = vld [vmem:[#allocation14 + $0x780] sm:$0xff]  ;;  %v15139_v32 = vcombine.low %v6799_v56, %v6807_v17 }
0x188c   :  { %9754 = vmatprep.subr.bf16.mxu1 %v15156_v57  ;;  %v6791_v58 = vld [vmem:[#allocation14 + $0x7c0] sm:$0xff] }
0x188d   :  { %v7039_v37 = vld [vmem:[#allocation14 + $0xf80] sm:$0xff]  ;;  %9712 = vmatpush1.bf16.msra.mxu0 %v14899_v33  ;;  %v15124_v23 = vcombine.high %v6783_v7, %v6791_v58  ;;  %v15123_v3 = vcombine.low %v6783_v7, %v6791_v58 }
0x188e   :  { %v7047_v48 = vld [vmem:[#allocation14 + $0xfc0] sm:$0xff]  ;;  %9713 = vmatprep.subr.bf16.mxu0 %v14884_v10 }
0x188f   :  { %9755 = vmatpush1.bf16.msra.mxu1 %v15155_v59  ;;  %v15380_v35 = vcombine.high %v7039_v37, %v7047_v48  ;;  %v15379_v1 = vcombine.low %v7039_v37, %v7047_v48  ;;  %v6775_v5 = vld [vmem:[#allocation14 + $0x740] sm:$0xff] }
0x1890   :  { %9756 = vmatprep.subr.bf16.mxu1 %v15140_v20  ;;  %v7023_v55 = vld [vmem:[#allocation14 + $0xf00] sm:$0xff] }
0x1891   :  { %9714 = vmatpush1.bf16.msra.mxu0 %v14883_v40  ;;  %v7031_v19 = vld [vmem:[#allocation14 + $0xf40] sm:$0xff] }
0x1892   :  { %9715 = vmatprep.subr.bf16.mxu0 %v15124_v23  ;;  %v15363_v62 = vcombine.low %v7023_v55, %v7031_v19  ;;  %v15364_v18 = vcombine.high %v7023_v55, %v7031_v19  ;;  %v6751_v51 = vld [vmem:[#allocation14 + $0x680] sm:$0xff] }
0x1893   :  { %9757 = vmatpush1.bf16.msra.mxu1 %v15139_v32  ;;  %v6759_v9 = vld [vmem:[#allocation14 + $0x6c0] sm:$0xff] }
0x1894   :  { %9758 = vmatprep.subr.bf16.mxu1 %v15380_v35  ;;  %v7007_v44 = vld [vmem:[#allocation14 + $0xe80] sm:$0xff]  ;;  %v15092_v57 = vcombine.high %v6751_v51, %v6759_v9  ;;  %v15091_v28 = vcombine.low %v6751_v51, %v6759_v9  ;;  %v18922_v51 = vld [vmem:[#allocation14 + $0x388] sm:$0xff] }
0x1895   :  { %9716 = vmatpush2.bf16.msra.mxu0 %v15123_v3  ;;  %v7015_v41 = vld [vmem:[#allocation14 + $0xec0] sm:$0xff]  ;;  %v18924_v9 = vld [vmem:[#allocation14 + $0x3c8] sm:$0xff] }
0x1896   :  { %v15347_v56 = vcombine.low %v7007_v44, %v7015_v41  ;;  %v15348_v17 = vcombine.high %v7007_v44, %v7015_v41  ;;  %v6735_v33 = vld [vmem:[#allocation14 + $0x600] sm:$0xff]  ;;  %v18926_v44 = vld [vmem:[#allocation14 + $0xb88] sm:$0xff] }
0x1897   :  { %9759 = vmatpush2.bf16.msra.mxu1 %v15379_v1  ;;  %v6743_v59 = vld [vmem:[#allocation14 + $0x640] sm:$0xff]  ;;  %v18930_v41 = vld [vmem:[#allocation14 + $0xbc8] sm:$0xff] }
0x1898   :  { %9760 = vmatprep.subr.bf16.mxu1 %v15364_v18  ;;  %v6991_v10 = vld [vmem:[#allocation14 + $0xe00] sm:$0xff]  ;;  %v15075_v20 = vcombine.low %v6735_v33, %v6743_v59  ;;  %v15076_v7 = vcombine.high %v6735_v33, %v6743_v59 }
0x1899   :  { %v6999_v58 = vld [vmem:[#allocation14 + $0xe40] sm:$0xff] }
0x189a   :  { %v6719_v37 = vld [vmem:[#allocation14 + $0x580] sm:$0xff]  ;;  %v15331_v40 = vcombine.low %v6991_v10, %v6999_v58  ;;  %v15332_v32 = vcombine.high %v6991_v10, %v6999_v58 }
0x189b   :  { %9761 = vmatpush2.bf16.msra.mxu1 %v15363_v62  ;;  %v6727_v48 = vld [vmem:[#allocation14 + $0x5c0] sm:$0xff] }
0x189c   :  { %9762 = vmatprep.subr.bf16.mxu1 %v15348_v17  ;;  %v15060_v23 = vcombine.high %v6719_v37, %v6727_v48  ;;  %v6975_v35 = vld [vmem:[#allocation14 + $0xd80] sm:$0xff]  ;;  %v15254_v17 = vcombine.high %v18926_v44, %v18930_v41 }
0x189d   :  { %v6983_v3 = vld [vmem:[#allocation14 + $0xdc0] sm:$0xff] }
0x189e   :  { %v6703_v1 = vld [vmem:[#allocation14 + $0x500] sm:$0xff] }
0x189f   :  { %9763 = vmatpush2.bf16.msra.mxu1 %v15347_v56  ;;  %v15253_v56 = vcombine.low %v18926_v44, %v18930_v41 }
0x18a0   :  { %9764 = vmatprep.subr.bf16.mxu1 %v15332_v32 }
0x18a3   :  { %9765 = vmatpush2.bf16.msra.mxu1 %v15331_v40  ;;  %v6419_v40 = vld [vmem:[#allocation13] sm:$0xf] }
0x1906   :  { %v6432_v61 = vpop.xlane.xlu1 %6431 }
0x1907   :  { %v6439_v13 = vmul.f32 0.001953125, %v6432_v61  ;;  %v15316_v61 = vcombine.high %v6975_v35, %v6983_v3 }
0x1909   :  { %v18883_v14 = vsub.f32 %v18856_v63, %v6439_v13  ;;  %v18886_v34 = vsub.f32 %v18858_v4, %v6439_v13  ;;  %v18889_v38 = vsub.f32 %v18862_v25, %v6439_v13  ;;  %v18892_v0 = vsub.f32 %v18866_v27, %v6439_v13  ;;  %v6711_v13 = vld [vmem:[#allocation14 + $0x540] sm:$0xff]  ;;  %9766 = vmatprep.subr.bf16.mxu1 %v15316_v61 }
0x190a   :  { %v6437_v12 = vpop.xlane.xlu0 %6436 }
0x190b   :  { %v6440_v15 = vmul.f32 0.001953125, %v6437_v12  ;;  %v6449_v22 = vmul.f32 %v18883_v14, %v18883_v14  ;;  %v6450_v36 = vmul.f32 %v18886_v34, %v18886_v34  ;;  %v6451_v63 = vmul.f32 %v18889_v38, %v18889_v38  ;;  %v6959_v12 = vld [vmem:[#allocation14 + $0xd00] sm:$0xff] }
0x190c   :  { %v6452_v31 = vmul.f32 %v18892_v0, %v18892_v0 }
0x190d   :  { %v18901_v4 = vsub.f32 %v18868_v21, %v6440_v15  ;;  %v18904_v25 = vsub.f32 %v18870_v26, %v6440_v15  ;;  %v6457_v39 = vadd.f32 %v6450_v36, %v6449_v22  ;;  %v18907_v27 = vsub.f32 %v18873_v8, %v6440_v15 }
0x190e   :  { %v18912_v16 = vsub.f32 %v18878_v6, %v6440_v15  ;;  %v6767_v6 = vld [vmem:[#allocation14 + $0x700] sm:$0xff]  ;;  %v15059_v22 = vcombine.low %v6719_v37, %v6727_v48  ;;  %v15315_v36 = vcombine.low %v6975_v35, %v6983_v3  ;;  %v6418_v37 = vld [vmem:[#allocation11] sm:$0xf] }
0x190f   :  { %v6458_v45 = vadd.f32 %v6457_v39, %v6451_v63  ;;  %v6453_v2 = vmul.f32 %v18901_v4, %v18901_v4  ;;  %v6454_v21 = vmul.f32 %v18904_v25, %v18904_v25  ;;  %v6455_v26 = vmul.f32 %v18907_v27, %v18907_v27  ;;  %v6967_v15 = vld [vmem:[#allocation14 + $0xd40] sm:$0xff] }
0x1910   :  { %v6456_v8 = vmul.f32 %v18912_v16, %v18912_v16  ;;  %v15108_v30 = vcombine.high %v6767_v6, %v6775_v5  ;;  %v15107_v11 = vcombine.low %v6767_v6, %v6775_v5  ;;  %v15044_v63 = vcombine.high %v6703_v1, %v6711_v13  ;;  %9767 = vmatpush2.bf16.msra.mxu1 %v15315_v36  ;;  %v6927_v6 = vld [vmem:[#allocation14 + $0xc00] sm:$0xff] }
0x1911   :  { %v6459_v42 = vadd.f32 %v6458_v45, %v6452_v31  ;;  %v6462_v46 = vadd.f32 %v6454_v21, %v6453_v2  ;;  %v15300_v39 = vcombine.high %v6959_v12, %v6967_v15  ;;  %v6687_v31 = vld [vmem:[#allocation14 + $0x480] sm:$0xff]  ;;  %v18944_v3 = vrot.slane %v6418_v37, %v18237_v52 }
0x1912   :  { %9717 = vmatprep.subr.bf16.mxu0 %v15108_v30  ;;  %v6695_v45 = vld [vmem:[#allocation14 + $0x4c0] sm:$0xff]  ;;  %v18948_v61 = vrot.slane %v6418_v37, %v18267_v24 }
0x1913   :  { %6460 = vadd.xlane.f32.xlu0 %v6459_v42  ;;  %v6463_v43 = vadd.f32 %v6462_v46, %v6455_v26  ;;  %9718 = vmatpush2.bf16.msra.mxu0 %v15107_v11  ;;  %v6943_v2 = vld [vmem:[#allocation14 + $0xc80] sm:$0xff]  ;;  %v15043_v42 = vcombine.low %v6703_v1, %v6711_v13  ;;  %v15299_v26 = vcombine.low %v6959_v12, %v6967_v15 }
0x1914   :  { %9719 = vmatprep.subr.bf16.mxu0 %v15092_v57  ;;  %v6951_v21 = vld [vmem:[#allocation14 + $0xcc0] sm:$0xff]  ;;  %v15028_v46 = vcombine.high %v6687_v31, %v6695_v45  ;;  %9768 = vmatprep.subr.bf16.mxu1 %v15300_v39  ;;  %v15027_v55 = vcombine.low %v6687_v31, %v6695_v45  ;;  %v14998_v57 = vcombine.high %v18922_v51, %v18924_v9 }
0x1915   :  { %v6464_v60 = vadd.f32 %v6463_v43, %v6456_v8  ;;  %v15284_v8 = vcombine.high %v6943_v2, %v6951_v21  ;;  %v6671_v43 = vld [vmem:[#allocation14 + $0x400] sm:$0xff]  ;;  %9769 = vmatpush2.bf16.msra.mxu1 %v15299_v26  ;;  %v15283_v30 = vcombine.low %v6943_v2, %v6951_v21  ;;  %19348 = vst [vmem:[#allocation29_spill] sm:$0xff] %v18944_v3  ;;  %19349 = vst [vmem:[#allocation30_spill] sm:$0xff] %v18948_v61 }
0x1916   :  { %v6935_v5 = vld [vmem:[#allocation14 + $0xc40] sm:$0xff]  ;;  %v18952_v12 = vrot.slane %v6418_v37, %v18230_v47 }
0x1917   :  { %6465 = vadd.xlane.f32.xlu1 %v6464_v60  ;;  %9720 = vmatpush2.bf16.msra.mxu0 %v15091_v28  ;;  %v6679_v60 = vld [vmem:[#allocation14 + $0x440] sm:$0xff]  ;;  %v15268_v11 = vcombine.high %v6927_v6, %v6935_v5  ;;  %v15267_v18 = vcombine.low %v6927_v6, %v6935_v5  ;;  %v14997_v28 = vcombine.low %v18922_v51, %v18924_v9 }
0x1918   :  { %9721 = vmatprep.subr.bf16.mxu0 %v15076_v7  ;;  %v15012_v19 = vcombine.high %v6671_v43, %v6679_v60  ;;  %9770 = vmatprep.subr.bf16.mxu1 %v15284_v8  ;;  %v15011_v62 = vcombine.low %v6671_v43, %v6679_v60  ;;  %19350 = vst [vmem:[#allocation31_spill] sm:$0xff] %v18952_v12  ;;  %v6640_v43 = vld [vmem:[#allocation14 + $0x308] sm:$0xff] }
0x1919   :  { %9771 = vmatpush2.bf16.msra.mxu1 %v15283_v30  ;;  %v6648_v30 = vld [vmem:[#allocation14 + $0x348] sm:$0xff] }
0x191a   :  { %9772 = vmatprep.subr.bf16.mxu1 %v15268_v11  ;;  %v6904_v11 = vld [vmem:[#allocation14 + $0xb48] sm:$0xff] }
0x191b   :  { %9722 = vmatpush2.bf16.msra.mxu0 %v15075_v20 }
0x191c   :  { %9723 = vmatprep.subr.bf16.mxu0 %v15060_v23  ;;  %v18940_v23 = vrot.slane %v6418_v37, %v18212_v29  ;;  %v14981_v37 = vcombine.low %v6640_v43, %v6648_v30 }
0x191d   :  { %9773 = vmatpush2.bf16.msra.mxu1 %v15267_v18 }
0x191e   :  { %9828 = vmatprep.subr.bf16.mxu1 %v15254_v17  ;;  %19347 = vst [vmem:[#allocation28_spill] sm:$0xff] %v18940_v23 }
0x191f   :  { %9724 = vmatpush2.bf16.msra.mxu0 %v15059_v22  ;;  %v18958_v22 = vrot.slane %v6419_v40, %v18237_v52 }
0x1920   :  { %9725 = vmatprep.subr.bf16.mxu0 %v15044_v63 }
0x1921   :  { %19352 = vst [vmem:[#allocation33_spill] sm:$0xff] %v18958_v22 }
0x1923   :  { %9726 = vmatpush2.bf16.msra.mxu0 %v15043_v42 }
0x1924   :  { %9727 = vmatprep.subr.bf16.mxu0 %v15028_v46 }
0x1927   :  { %9728 = vmatpush2.bf16.msra.mxu0 %v15027_v55 }
0x1928   :  { %9729 = vmatprep.subr.bf16.mxu0 %v15012_v19  ;;  %v6896_v19 = vld [vmem:[#allocation14 + $0xb08] sm:$0xff] }
0x192b   :  { %9730 = vmatpush2.bf16.msra.mxu0 %v15011_v62 }
0x192c   :  { %9785 = vmatprep.subr.bf16.mxu0 %v14998_v57 }
0x199c   :  { %v6461_v33 = vpop.xlane.xlu0 %6460 }
0x199d   :  { %v6467_v59 = vmul.f32 0.001953125, %v6461_v33  ;;  %v6624_v33 = vld [vmem:[#allocation14 + $0x288] sm:$0xff] }
0x199f   :  { %v6469_v10 = vadd.f32 1e-05, %v6467_v59  ;;  %v14982_v59 = vcombine.high %v6640_v43, %v6648_v30 }
0x19a0   :  { %v6466_v20 = vpop.xlane.xlu1 %6465 }
0x19a1   :  { %17786 = vrsqrt.f32 %v6469_v10  ;;  %v6468_v7 = vmul.f32 0.001953125, %v6466_v20  ;;  %v15238_v10 = vcombine.high %v6896_v19, %v6904_v11  ;;  %v6632_v20 = vld [vmem:[#allocation14 + $0x2c8] sm:$0xff] }
0x19a2   :  { %v14965_v51 = vcombine.low %v6624_v33, %v6632_v20 }
0x19a3   :  { %v6470_v58 = vadd.f32 1e-05, %v6468_v7  ;;  %v6880_v7 = vld [vmem:[#allocation14 + $0xa88] sm:$0xff] }
0x19a5   :  { %17788 = vrsqrt.f32 %v6470_v58  ;;  %v6888_v58 = vld [vmem:[#allocation14 + $0xac8] sm:$0xff] }
0x19a6   :  { %v15221_v9 = vcombine.low %v6880_v7, %v6888_v58 }
0x19ae   :  { %v17787_v48 = vpop.eup %17786 }
0x19af   :  { %v6474_v32 = vmul.f32 %v17787_v48, %v18886_v34  ;;  %v6476_v35 = vmul.f32 %v17787_v48, %v18892_v0  ;;  %v6473_v1 = vmul.f32 %v17787_v48, %v18883_v14  ;;  %v6475_v13 = vmul.f32 %v17787_v48, %v18889_v38 }
0x19b0   :  { %v18955_v34 = vrot.slane %v6419_v40, %v18212_v29  ;;  %v18961_v0 = vrot.slane %v6419_v40, %v18267_v24  ;;  %v18964_v14 = vrot.slane %v6419_v40, %v18230_v47  ;;  %v15237_v48 = vcombine.low %v6896_v19, %v6904_v11  ;;  %v6560_v19 = vld [vmem:[#allocation14 + $0x88] sm:$0xff] }
0x19b1   :  { %v6503_v38 = vmul.f32 %v18940_v23, %v6474_v32  ;;  %v6505_v39 = vmul.f32 %v18944_v3, %v6476_v35  ;;  %v6502_v45 = vmul.f32 %v18948_v61, %v6473_v1  ;;  %v6504_v21 = vmul.f32 %v18952_v12, %v6475_v13  ;;  %v6608_v35 = vld [vmem:[#allocation14 + $0x208] sm:$0xff] }
0x19b2   :  { %v17789_v15 = vpop.eup %17788  ;;  %19351 = vst [vmem:[#allocation32_spill] sm:$0xff] %v18955_v34  ;;  %19353 = vst [vmem:[#allocation34_spill] sm:$0xff] %v18961_v0  ;;  %v14966_v40 = vcombine.high %v6624_v33, %v6632_v20  ;;  %v15222_v32 = vcombine.high %v6880_v7, %v6888_v58  ;;  %v6616_v1 = vld [vmem:[#allocation14 + $0x248] sm:$0xff] }
0x19b3   :  { %19354 = vst [vmem:[#allocation35_spill] sm:$0xff] %v18964_v14  ;;  %v6478_v36 = vmul.f32 %v17789_v15, %v18904_v25  ;;  %v6480_v63 = vmul.f32 %v17789_v15, %v18912_v16  ;;  %v6477_v31 = vmul.f32 %v17789_v15, %v18901_v4  ;;  %v6479_v2 = vmul.f32 %v17789_v15, %v18907_v27  ;;  %v6864_v13 = vld [vmem:[#allocation14 + $0xa08] sm:$0xff] }
0x19b4   :  { %v18979_v16 = vadd.f32 %v18955_v34, %v6503_v38  ;;  %v18985_v4 = vadd.f32 %v18958_v22, %v6505_v39  ;;  %v18991_v60 = vadd.f32 %v18961_v0, %v6502_v45  ;;  %v18997_v5 = vadd.f32 %v18964_v14, %v6504_v21  ;;  %v6872_v15 = vld [vmem:[#allocation14 + $0xa48] sm:$0xff] }
0x19b5   :  { %v6507_v42 = vmul.f32 %v18940_v23, %v6478_v36  ;;  %v6509_v26 = vmul.f32 %v18944_v3, %v6480_v63  ;;  %v6506_v25 = vmul.f32 %v18948_v61, %v6477_v31  ;;  %v6508_v46 = vmul.f32 %v18952_v12, %v6479_v2  ;;  %v6848_v36 = vld [vmem:[#allocation14 + $0x988] sm:$0xff]  ;;  %v6854_v12 = vld [vmem:[#allocation14 + $0x9b8] sm:$0xff] }
0x19b6   :  { %19355 = vst [vmem:[#allocation36_spill] sm:$0xff] %v18979_v16  ;;  %19357 = vst [vmem:[#allocation38_spill] sm:$0xff] %v18985_v4  ;;  %v14950_v44 = vcombine.high %v6608_v35, %v6616_v1  ;;  %v15206_v41 = vcombine.high %v6864_v13, %v6872_v15  ;;  %v6856_v38 = vld [vmem:[#allocation14 + $0x9c8] sm:$0xff]  ;;  %v14949_v63 = vcombine.low %v6608_v35, %v6616_v1  ;;  %v6862_v23 = vld [vmem:[#allocation14 + $0x9f8] sm:$0xff] }
0x19b7   :  { %v18982_v8 = vadd.f32 %v18955_v34, %v6507_v42  ;;  %v18988_v27 = vadd.f32 %v18958_v22, %v6509_v26  ;;  %19359 = vst [vmem:[#allocation40_spill] sm:$0xff] %v18991_v60  ;;  %v18994_v6 = vadd.f32 %v18961_v0, %v6506_v25  ;;  %19361 = vst [vmem:[#allocation42_spill] sm:$0xff] %v18997_v5  ;;  %v6576_v2 = vld [vmem:[#allocation14 + $0x108] sm:$0xff]  ;;  %v6861_v34 = vld [vmem:[#allocation14 + $0x9f0] sm:$0xff] }
0x19b8   :  { %v19000_v55 = vadd.f32 %v18964_v14, %v6508_v46  ;;  %v15205_v39 = vcombine.low %v6864_v13, %v6872_v15  ;;  %v15190_v45 = vcombine.high %v6848_v36, %v6856_v38  ;;  %v6584_v21 = vld [vmem:[#allocation14 + $0x148] sm:$0xff]  ;;  %v15189_v46 = vcombine.low %v6848_v36, %v6856_v38  ;;  %v6853_v14 = vld [vmem:[#allocation14 + $0x9b0] sm:$0xff] }
0x19b9   :  { %19356 = vst [vmem:[#allocation37_spill] sm:$0xff] %v18982_v8  ;;  %19358 = vst [vmem:[#allocation39_spill] sm:$0xff] %v18988_v27  ;;  %v19004_v62 = vpack.c.bf16 %v18982_v8, %v18979_v16  ;;  %v19008_v18 = vpack.c.bf16 %v18988_v27, %v18985_v4  ;;  %v19012_v57 = vpack.c.bf16 %v18994_v6, %v18991_v60  ;;  %v6832_v42 = vld [vmem:[#allocation14 + $0x908] sm:$0xff] }
0x19ba   :  { %19360 = vst [vmem:[#allocation41_spill] sm:$0xff] %v18994_v6  ;;  %19362 = vst [vmem:[#allocation43_spill] sm:$0xff] %v19000_v55  ;;  %v19016_v17 = vpack.c.bf16 %v19000_v55, %v18997_v5  ;;  %v6840_v26 = vld [vmem:[#allocation14 + $0x948] sm:$0xff]  ;;  %v14918_v43 = vcombine.high %v6576_v2, %v6584_v21 }
0x19bb   :  { %9731 = vmatprep.mubr.bf16.mxu0 %v19004_v62  ;;  %9774 = vmatprep.mubr.bf16.mxu1 %v19008_v18  ;;  %v15174_v30 = vcombine.high %v6832_v42, %v6840_v26  ;;  %v6568_v11 = vld [vmem:[#allocation14 + $0xc8] sm:$0xff]  ;;  %v15173_v20 = vcombine.low %v6832_v42, %v6840_v26 }
0x19bc   :  { %9732 = vmatmul.mubr.bf16.vlgmr.msra.gmra.mxu0 %v19012_v57  ;;  %9775 = vmatmul.mubr.bf16.vlgmr.msra.gmra.mxu1 %v19016_v17  ;;  %v6816_v33 = vld [vmem:[#allocation14 + $0x888] sm:$0xff]  ;;  %v14902_v7 = vcombine.high %v6560_v19, %v6568_v11  ;;  %v14901_v35 = vcombine.low %v6560_v19, %v6568_v11 }
0x19bd   :  { %9786 = vmatpush1.bf16.msra.mxu0 %v14997_v28  ;;  %9829 = vmatpush1.bf16.msra.mxu1 %v15253_v56  ;;  %v6592_v28 = vld [vmem:[#allocation14 + $0x188] sm:$0xff] }
0x19be   :  { %9817 = vmatprep.mubr.bf16.mxu0 %v19004_v62  ;;  %9860 = vmatprep.mubr.bf16.mxu1 %v19008_v18  ;;  %v6600_v56 = vld [vmem:[#allocation14 + $0x1c8] sm:$0xff] }
0x19bf   :  { %9787 = vmatprep.subr.bf16.mxu0 %v14982_v59  ;;  %9830 = vmatprep.subr.bf16.mxu1 %v15238_v10  ;;  %v14934_v31 = vcombine.high %v6592_v28, %v6600_v56  ;;  %v14933_v25 = vcombine.low %v6592_v28, %v6600_v56  ;;  %v6824_v59 = vld [vmem:[#allocation14 + $0x8c8] sm:$0xff]  ;;  %v14917_v10 = vcombine.low %v6576_v2, %v6584_v21 }
0x19c0   :  { %v15158_v58 = vcombine.high %v6816_v33, %v6824_v59  ;;  %v15157_v1 = vcombine.low %v6816_v33, %v6824_v59 }
0x19c1   :  { %9788 = vmatpush1.bf16.msra.mxu0 %v14981_v37  ;;  %9831 = vmatpush1.bf16.msra.mxu1 %v15237_v48  ;;  %v6544_v37 = vld [vmem:[#allocation14 + $0x8] sm:$0xff] }
0x19c2   :  { %9789 = vmatprep.subr.bf16.mxu0 %v14966_v40  ;;  %9832 = vmatprep.subr.bf16.mxu1 %v15222_v32  ;;  %v6552_v48 = vld [vmem:[#allocation14 + $0x48] sm:$0xff] }
0x19c3   :  { %v6800_v40 = vld [vmem:[#allocation14 + $0x808] sm:$0xff]  ;;  %v14886_v13 = vcombine.high %v6544_v37, %v6552_v48  ;;  %v14885_v28 = vcombine.low %v6544_v37, %v6552_v48 }
0x19c4   :  { %v6808_v32 = vld [vmem:[#allocation14 + $0x848] sm:$0xff] }
0x19c5   :  { %9790 = vmatpush1.bf16.msra.mxu0 %v14965_v51  ;;  %9833 = vmatpush1.bf16.msra.mxu1 %v15221_v9  ;;  %v15142_v15 = vcombine.high %v6800_v40, %v6808_v32  ;;  %v6784_v51 = vld [vmem:[#allocation14 + $0x788] sm:$0xff]  ;;  %v15141_v56 = vcombine.low %v6800_v40, %v6808_v32 }
0x19c6   :  { %9791 = vmatprep.subr.bf16.mxu0 %v14950_v44  ;;  %9834 = vmatprep.subr.bf16.mxu1 %v15206_v41  ;;  %v6792_v9 = vld [vmem:[#allocation14 + $0x7c8] sm:$0xff] }
0x19c7   :  { %v7040_v44 = vld [vmem:[#allocation14 + $0xf88] sm:$0xff]  ;;  %v15126_v36 = vcombine.high %v6784_v51, %v6792_v9  ;;  %v15125_v2 = vcombine.low %v6784_v51, %v6792_v9 }
0x19c8   :  { %v7048_v41 = vld [vmem:[#allocation14 + $0xfc8] sm:$0xff] }
0x19c9   :  { %9792 = vmatpush1.bf16.msra.mxu0 %v14949_v63  ;;  %9835 = vmatpush1.bf16.msra.mxu1 %v15205_v39  ;;  %v15382_v38 = vcombine.high %v7040_v44, %v7048_v41  ;;  %v6768_v63 = vld [vmem:[#allocation14 + $0x708] sm:$0xff]  ;;  %v15381_v21 = vcombine.low %v7040_v44, %v7048_v41 }
0x19ca   :  { %9793 = vmatprep.subr.bf16.mxu0 %v14934_v31  ;;  %9836 = vmatprep.subr.bf16.mxu1 %v15190_v45  ;;  %v6776_v39 = vld [vmem:[#allocation14 + $0x748] sm:$0xff] }
0x19cb   :  { %v7024_v31 = vld [vmem:[#allocation14 + $0xf08] sm:$0xff]  ;;  %v15110_v42 = vcombine.high %v6768_v63, %v6776_v39  ;;  %v15109_v19 = vcombine.low %v6768_v63, %v6776_v39 }
0x19cc   :  { %v7032_v45 = vld [vmem:[#allocation14 + $0xf48] sm:$0xff] }
0x19cd   :  { %9794 = vmatpush1.bf16.msra.mxu0 %v14933_v25  ;;  %9837 = vmatpush1.bf16.msra.mxu1 %v15189_v46  ;;  %v15366_v26 = vcombine.high %v7024_v31, %v7032_v45  ;;  %v6752_v25 = vld [vmem:[#allocation14 + $0x688] sm:$0xff]  ;;  %v15365_v11 = vcombine.low %v7024_v31, %v7032_v45 }
0x19ce   :  { %9795 = vmatprep.subr.bf16.mxu0 %v14918_v43  ;;  %9838 = vmatprep.subr.bf16.mxu1 %v15174_v30  ;;  %v6760_v46 = vld [vmem:[#allocation14 + $0x6c8] sm:$0xff] }
0x19cf   :  { %v7008_v43 = vld [vmem:[#allocation14 + $0xe88] sm:$0xff]  ;;  %v15094_v33 = vcombine.high %v6752_v25, %v6760_v46  ;;  %v15093_v37 = vcombine.low %v6752_v25, %v6760_v46 }
0x19d0   :  { %v7016_v30 = vld [vmem:[#allocation14 + $0xec8] sm:$0xff] }
0x19d1   :  { %9796 = vmatpush1.bf16.msra.mxu0 %v14917_v10  ;;  %9839 = vmatpush1.bf16.msra.mxu1 %v15173_v20  ;;  %v15350_v59 = vcombine.high %v7008_v43, %v7016_v30  ;;  %v6736_v10 = vld [vmem:[#allocation14 + $0x608] sm:$0xff]  ;;  %v15349_v48 = vcombine.low %v7008_v43, %v7016_v30 }
0x19d2   :  { %9797 = vmatprep.subr.bf16.mxu0 %v14902_v7  ;;  %9840 = vmatprep.subr.bf16.mxu1 %v15158_v58  ;;  %v6744_v20 = vld [vmem:[#allocation14 + $0x648] sm:$0xff] }
0x19d3   :  { %v6992_v7 = vld [vmem:[#allocation14 + $0xe08] sm:$0xff]  ;;  %v15078_v40 = vcombine.high %v6736_v10, %v6744_v20  ;;  %v15077_v51 = vcombine.low %v6736_v10, %v6744_v20 }
0x19d4   :  { %v7000_v58 = vld [vmem:[#allocation14 + $0xe48] sm:$0xff] }
0x19d5   :  { %9798 = vmatpush1.bf16.msra.mxu0 %v14901_v35  ;;  %9841 = vmatpush1.bf16.msra.mxu1 %v15157_v1  ;;  %v15334_v32 = vcombine.high %v6992_v7, %v7000_v58  ;;  %v6720_v35 = vld [vmem:[#allocation14 + $0x588] sm:$0xff]  ;;  %v15333_v9 = vcombine.low %v6992_v7, %v7000_v58 }
0x19d6   :  { %9799 = vmatprep.subr.bf16.mxu0 %v14886_v13  ;;  %9842 = vmatprep.subr.bf16.mxu1 %v15142_v15  ;;  %v6728_v1 = vld [vmem:[#allocation14 + $0x5c8] sm:$0xff] }
0x19d7   :  { %v6976_v13 = vld [vmem:[#allocation14 + $0xd88] sm:$0xff]  ;;  %v15062_v44 = vcombine.high %v6720_v35, %v6728_v1  ;;  %v15061_v63 = vcombine.low %v6720_v35, %v6728_v1 }
0x19d8   :  { %v6984_v15 = vld [vmem:[#allocation14 + $0xdc8] sm:$0xff] }
0x19d9   :  { %9800 = vmatpush1.bf16.msra.mxu0 %v14885_v28  ;;  %9843 = vmatpush1.bf16.msra.mxu1 %v15141_v56  ;;  %v15318_v41 = vcombine.high %v6976_v13, %v6984_v15  ;;  %v6704_v28 = vld [vmem:[#allocation14 + $0x508] sm:$0xff]  ;;  %v15317_v39 = vcombine.low %v6976_v13, %v6984_v15 }
0x19da   :  { %9801 = vmatprep.subr.bf16.mxu0 %v15126_v36  ;;  %9844 = vmatprep.subr.bf16.mxu1 %v15382_v38  ;;  %v6712_v56 = vld [vmem:[#allocation14 + $0x548] sm:$0xff] }
0x19db   :  { %v6960_v36 = vld [vmem:[#allocation14 + $0xd08] sm:$0xff]  ;;  %v15046_v31 = vcombine.high %v6704_v28, %v6712_v56  ;;  %v15045_v25 = vcombine.low %v6704_v28, %v6712_v56 }
0x19dc   :  { %v6968_v38 = vld [vmem:[#allocation14 + $0xd48] sm:$0xff] }
0x19dd   :  { %9802 = vmatpush2.bf16.msra.mxu0 %v15125_v2  ;;  %9845 = vmatpush2.bf16.msra.mxu1 %v15381_v21  ;;  %v15302_v45 = vcombine.high %v6960_v36, %v6968_v38  ;;  %v6688_v2 = vld [vmem:[#allocation14 + $0x488] sm:$0xff]  ;;  %v15301_v46 = vcombine.low %v6960_v36, %v6968_v38 }
0x19de   :  { %9803 = vmatprep.subr.bf16.mxu0 %v15110_v42  ;;  %9846 = vmatprep.subr.bf16.mxu1 %v15366_v26  ;;  %v6696_v21 = vld [vmem:[#allocation14 + $0x4c8] sm:$0xff] }
0x19df   :  { %v6944_v42 = vld [vmem:[#allocation14 + $0xc88] sm:$0xff]  ;;  %v15030_v43 = vcombine.high %v6688_v2, %v6696_v21  ;;  %v15029_v10 = vcombine.low %v6688_v2, %v6696_v21 }
0x19e0   :  { %v6952_v26 = vld [vmem:[#allocation14 + $0xcc8] sm:$0xff] }
0x19e1   :  { %9804 = vmatpush2.bf16.msra.mxu0 %v15109_v19  ;;  %9847 = vmatpush2.bf16.msra.mxu1 %v15365_v11  ;;  %v15286_v30 = vcombine.high %v6944_v42, %v6952_v26  ;;  %v6672_v19 = vld [vmem:[#allocation14 + $0x408] sm:$0xff]  ;;  %v15285_v20 = vcombine.low %v6944_v42, %v6952_v26 }
0x19e2   :  { %9805 = vmatprep.subr.bf16.mxu0 %v15094_v33  ;;  %9848 = vmatprep.subr.bf16.mxu1 %v15350_v59  ;;  %v6680_v11 = vld [vmem:[#allocation14 + $0x448] sm:$0xff] }
0x19e3   :  { %v6928_v33 = vld [vmem:[#allocation14 + $0xc08] sm:$0xff]  ;;  %v15014_v7 = vcombine.high %v6672_v19, %v6680_v11  ;;  %v15013_v35 = vcombine.low %v6672_v19, %v6680_v11 }
0x19e4   :  { %v6936_v59 = vld [vmem:[#allocation14 + $0xc48] sm:$0xff] }
0x19e5   :  { %9806 = vmatpush2.bf16.msra.mxu0 %v15093_v37  ;;  %9849 = vmatpush2.bf16.msra.mxu1 %v15349_v48  ;;  %v15270_v58 = vcombine.high %v6928_v33, %v6936_v59  ;;  %v6657_v37 = vld [vmem:[#allocation14 + $0x390] sm:$0xff]  ;;  %v15269_v1 = vcombine.low %v6928_v33, %v6936_v59 }
0x19e6   :  { %9807 = vmatprep.subr.bf16.mxu0 %v15078_v40  ;;  %9850 = vmatprep.subr.bf16.mxu1 %v15334_v32  ;;  %v6665_v48 = vld [vmem:[#allocation14 + $0x3d0] sm:$0xff] }
0x19e7   :  { %v6913_v40 = vld [vmem:[#allocation14 + $0xb90] sm:$0xff]  ;;  %v15000_v13 = vcombine.high %v6657_v37, %v6665_v48  ;;  %v14999_v28 = vcombine.low %v6657_v37, %v6665_v48 }
0x19e8   :  { %v6921_v32 = vld [vmem:[#allocation14 + $0xbd0] sm:$0xff] }
0x19e9   :  { %9808 = vmatpush2.bf16.msra.mxu0 %v15077_v51  ;;  %9851 = vmatpush2.bf16.msra.mxu1 %v15333_v9  ;;  %v15256_v15 = vcombine.high %v6913_v40, %v6921_v32  ;;  %v6641_v51 = vld [vmem:[#allocation14 + $0x310] sm:$0xff]  ;;  %v15255_v56 = vcombine.low %v6913_v40, %v6921_v32 }
0x19ea   :  { %9809 = vmatprep.subr.bf16.mxu0 %v15062_v44  ;;  %9852 = vmatprep.subr.bf16.mxu1 %v15318_v41  ;;  %v6649_v9 = vld [vmem:[#allocation14 + $0x350] sm:$0xff] }
0x19eb   :  { %v6897_v44 = vld [vmem:[#allocation14 + $0xb10] sm:$0xff]  ;;  %v14984_v36 = vcombine.high %v6641_v51, %v6649_v9  ;;  %v14983_v2 = vcombine.low %v6641_v51, %v6649_v9 }
0x19ec   :  { %v6905_v41 = vld [vmem:[#allocation14 + $0xb50] sm:$0xff] }
0x19ed   :  { %9810 = vmatpush2.bf16.msra.mxu0 %v15061_v63  ;;  %9853 = vmatpush2.bf16.msra.mxu1 %v15317_v39  ;;  %v15240_v38 = vcombine.high %v6897_v44, %v6905_v41  ;;  %v6625_v63 = vld [vmem:[#allocation14 + $0x290] sm:$0xff]  ;;  %v15239_v21 = vcombine.low %v6897_v44, %v6905_v41 }
0x19ee   :  { %9811 = vmatprep.subr.bf16.mxu0 %v15046_v31  ;;  %9854 = vmatprep.subr.bf16.mxu1 %v15302_v45  ;;  %v6633_v39 = vld [vmem:[#allocation14 + $0x2d0] sm:$0xff] }
0x19ef   :  { %v6881_v31 = vld [vmem:[#allocation14 + $0xa90] sm:$0xff]  ;;  %v14968_v42 = vcombine.high %v6625_v63, %v6633_v39  ;;  %v14967_v19 = vcombine.low %v6625_v63, %v6633_v39 }
0x19f0   :  { %v6889_v45 = vld [vmem:[#allocation14 + $0xad0] sm:$0xff] }
0x19f1   :  { %9812 = vmatpush2.bf16.msra.mxu0 %v15045_v25  ;;  %9855 = vmatpush2.bf16.msra.mxu1 %v15301_v46  ;;  %v15224_v26 = vcombine.high %v6881_v31, %v6889_v45  ;;  %v6609_v25 = vld [vmem:[#allocation14 + $0x210] sm:$0xff]  ;;  %v15223_v11 = vcombine.low %v6881_v31, %v6889_v45 }
0x19f2   :  { %9813 = vmatprep.subr.bf16.mxu0 %v15030_v43  ;;  %9856 = vmatprep.subr.bf16.mxu1 %v15286_v30  ;;  %v6617_v46 = vld [vmem:[#allocation14 + $0x250] sm:$0xff] }
0x19f3   :  { %v6865_v43 = vld [vmem:[#allocation14 + $0xa10] sm:$0xff]  ;;  %v14952_v33 = vcombine.high %v6609_v25, %v6617_v46  ;;  %v14951_v37 = vcombine.low %v6609_v25, %v6617_v46 }
0x19f4   :  { %v6873_v30 = vld [vmem:[#allocation14 + $0xa50] sm:$0xff] }
0x19f5   :  { %9814 = vmatpush2.bf16.msra.mxu0 %v15029_v10  ;;  %9857 = vmatpush2.bf16.msra.mxu1 %v15285_v20  ;;  %v15208_v59 = vcombine.high %v6865_v43, %v6873_v30  ;;  %v6593_v10 = vld [vmem:[#allocation14 + $0x190] sm:$0xff]  ;;  %v15207_v48 = vcombine.low %v6865_v43, %v6873_v30 }
0x19f6   :  { %9815 = vmatprep.subr.bf16.mxu0 %v15014_v7  ;;  %9858 = vmatprep.subr.bf16.mxu1 %v15270_v58  ;;  %v6601_v20 = vld [vmem:[#allocation14 + $0x1d0] sm:$0xff] }
0x19f7   :  { %v6849_v7 = vld [vmem:[#allocation14 + $0x990] sm:$0xff]  ;;  %v14936_v40 = vcombine.high %v6593_v10, %v6601_v20  ;;  %v14935_v51 = vcombine.low %v6593_v10, %v6601_v20 }
0x19f8   :  { %v6857_v58 = vld [vmem:[#allocation14 + $0x9d0] sm:$0xff] }
0x19f9   :  { %9816 = vmatpush2.bf16.msra.mxu0 %v15013_v35  ;;  %9859 = vmatpush2.bf16.msra.mxu1 %v15269_v1  ;;  %v15192_v32 = vcombine.high %v6849_v7, %v6857_v58  ;;  %v6577_v35 = vld [vmem:[#allocation14 + $0x110] sm:$0xff]  ;;  %v15191_v9 = vcombine.low %v6849_v7, %v6857_v58 }
0x19fa   :  { %9871 = vmatprep.subr.bf16.mxu0 %v15000_v13  ;;  %9914 = vmatprep.subr.bf16.mxu1 %v15256_v15  ;;  %v6585_v1 = vld [vmem:[#allocation14 + $0x150] sm:$0xff] }
0x19fb   :  { %v6833_v13 = vld [vmem:[#allocation14 + $0x910] sm:$0xff]  ;;  %v14920_v44 = vcombine.high %v6577_v35, %v6585_v1  ;;  %v14919_v63 = vcombine.low %v6577_v35, %v6585_v1 }
0x19fc   :  { %9818 = vmatmul.mubr.bf16.vlgmr.msra.gmra.mxu0 %v19012_v57  ;;  %9861 = vmatmul.mubr.bf16.vlgmr.msra.gmra.mxu1 %v19016_v17  ;;  %v6841_v15 = vld [vmem:[#allocation14 + $0x950] sm:$0xff] }
0x19fd   :  { %9872 = vmatpush1.bf16.msra.mxu0 %v14999_v28  ;;  %9903 = vmatprep.mubr.bf16.mxu0 %v19004_v62  ;;  %v15176_v41 = vcombine.high %v6833_v13, %v6841_v15  ;;  %v6561_v28 = vld [vmem:[#allocation14 + $0x90] sm:$0xff]  ;;  %v15175_v39 = vcombine.low %v6833_v13, %v6841_v15 }
0x19fe   :  { %9915 = vmatpush1.bf16.msra.mxu1 %v15255_v56  ;;  %9946 = vmatprep.mubr.bf16.mxu1 %v19008_v18  ;;  %v6569_v56 = vld [vmem:[#allocation14 + $0xd0] sm:$0xff] }
0x19ff   :  { %9873 = vmatprep.subr.bf16.mxu0 %v14984_v36  ;;  %9916 = vmatprep.subr.bf16.mxu1 %v15240_v38  ;;  %v6817_v36 = vld [vmem:[#allocation14 + $0x890] sm:$0xff]  ;;  %v14904_v31 = vcombine.high %v6561_v28, %v6569_v56  ;;  %v14903_v25 = vcombine.low %v6561_v28, %v6569_v56 }
0x1a00   :  { %v6825_v38 = vld [vmem:[#allocation14 + $0x8d0] sm:$0xff] }
0x1a01   :  { %9874 = vmatpush1.bf16.msra.mxu0 %v14983_v2  ;;  %v15160_v45 = vcombine.high %v6817_v36, %v6825_v38  ;;  %v6545_v2 = vld [vmem:[#allocation14 + $0x10] sm:$0xff]  ;;  %v15159_v46 = vcombine.low %v6817_v36, %v6825_v38 }
0x1a02   :  { %9917 = vmatpush1.bf16.msra.mxu1 %v15239_v21  ;;  %9875 = vmatprep.subr.bf16.mxu0 %v14968_v42  ;;  %v6553_v21 = vld [vmem:[#allocation14 + $0x50] sm:$0xff] }
0x1a03   :  { %9918 = vmatprep.subr.bf16.mxu1 %v15224_v26  ;;  %v6801_v42 = vld [vmem:[#allocation14 + $0x810] sm:$0xff]  ;;  %v14888_v43 = vcombine.high %v6545_v2, %v6553_v21  ;;  %v14887_v10 = vcombine.low %v6545_v2, %v6553_v21 }
0x1a04   :  { %v6809_v26 = vld [vmem:[#allocation14 + $0x850] sm:$0xff] }
0x1a05   :  { %9876 = vmatpush1.bf16.msra.mxu0 %v14967_v19  ;;  %v15144_v30 = vcombine.high %v6801_v42, %v6809_v26  ;;  %v6785_v19 = vld [vmem:[#allocation14 + $0x790] sm:$0xff]  ;;  %v15143_v20 = vcombine.low %v6801_v42, %v6809_v26 }
0x1a06   :  { %9919 = vmatpush1.bf16.msra.mxu1 %v15223_v11  ;;  %9877 = vmatprep.subr.bf16.mxu0 %v14952_v33  ;;  %v6793_v11 = vld [vmem:[#allocation14 + $0x7d0] sm:$0xff] }
0x1a07   :  { %9920 = vmatprep.subr.bf16.mxu1 %v15208_v59  ;;  %v7041_v33 = vld [vmem:[#allocation14 + $0xf90] sm:$0xff]  ;;  %v15128_v7 = vcombine.high %v6785_v19, %v6793_v11  ;;  %v15127_v35 = vcombine.low %v6785_v19, %v6793_v11 }
0x1a08   :  { %v7049_v59 = vld [vmem:[#allocation14 + $0xfd0] sm:$0xff] }
0x1a09   :  { %9878 = vmatpush1.bf16.msra.mxu0 %v14951_v37  ;;  %v15384_v58 = vcombine.high %v7041_v33, %v7049_v59  ;;  %v6769_v37 = vld [vmem:[#allocation14 + $0x710] sm:$0xff]  ;;  %v15383_v1 = vcombine.low %v7041_v33, %v7049_v59 }
0x1a0a   :  { %9921 = vmatpush1.bf16.msra.mxu1 %v15207_v48  ;;  %9879 = vmatprep.subr.bf16.mxu0 %v14936_v40  ;;  %v6777_v48 = vld [vmem:[#allocation14 + $0x750] sm:$0xff] }
0x1a0b   :  { %9922 = vmatprep.subr.bf16.mxu1 %v15192_v32  ;;  %v7025_v40 = vld [vmem:[#allocation14 + $0xf10] sm:$0xff]  ;;  %v15112_v13 = vcombine.high %v6769_v37, %v6777_v48  ;;  %v15111_v28 = vcombine.low %v6769_v37, %v6777_v48 }
0x1a0c   :  { %v7033_v32 = vld [vmem:[#allocation14 + $0xf50] sm:$0xff] }
0x1a0d   :  { %9880 = vmatpush1.bf16.msra.mxu0 %v14935_v51  ;;  %v15368_v15 = vcombine.high %v7025_v40, %v7033_v32  ;;  %v6753_v51 = vld [vmem:[#allocation14 + $0x690] sm:$0xff]  ;;  %v15367_v56 = vcombine.low %v7025_v40, %v7033_v32 }
0x1a0e   :  { %9923 = vmatpush1.bf16.msra.mxu1 %v15191_v9  ;;  %9881 = vmatprep.subr.bf16.mxu0 %v14920_v44  ;;  %v6761_v9 = vld [vmem:[#allocation14 + $0x6d0] sm:$0xff] }
0x1a0f   :  { %9924 = vmatprep.subr.bf16.mxu1 %v15176_v41  ;;  %v7009_v44 = vld [vmem:[#allocation14 + $0xe90] sm:$0xff]  ;;  %v15096_v36 = vcombine.high %v6753_v51, %v6761_v9  ;;  %v15095_v2 = vcombine.low %v6753_v51, %v6761_v9 }
0x1a10   :  { %v7017_v41 = vld [vmem:[#allocation14 + $0xed0] sm:$0xff] }
0x1a11   :  { %9882 = vmatpush1.bf16.msra.mxu0 %v14919_v63  ;;  %v15352_v38 = vcombine.high %v7009_v44, %v7017_v41  ;;  %v6737_v63 = vld [vmem:[#allocation14 + $0x610] sm:$0xff]  ;;  %v15351_v21 = vcombine.low %v7009_v44, %v7017_v41 }
0x1a12   :  { %9925 = vmatpush1.bf16.msra.mxu1 %v15175_v39  ;;  %9883 = vmatprep.subr.bf16.mxu0 %v14904_v31  ;;  %v6745_v39 = vld [vmem:[#allocation14 + $0x650] sm:$0xff] }
0x1a13   :  { %9926 = vmatprep.subr.bf16.mxu1 %v15160_v45  ;;  %v6993_v31 = vld [vmem:[#allocation14 + $0xe10] sm:$0xff]  ;;  %v15080_v42 = vcombine.high %v6737_v63, %v6745_v39  ;;  %v15079_v19 = vcombine.low %v6737_v63, %v6745_v39 }
0x1a14   :  { %v7001_v45 = vld [vmem:[#allocation14 + $0xe50] sm:$0xff] }
0x1a15   :  { %9884 = vmatpush1.bf16.msra.mxu0 %v14903_v25  ;;  %v15336_v26 = vcombine.high %v6993_v31, %v7001_v45  ;;  %v6721_v25 = vld [vmem:[#allocation14 + $0x590] sm:$0xff]  ;;  %v15335_v11 = vcombine.low %v6993_v31, %v7001_v45 }
0x1a16   :  { %9927 = vmatpush1.bf16.msra.mxu1 %v15159_v46  ;;  %9885 = vmatprep.subr.bf16.mxu0 %v14888_v43  ;;  %v6729_v46 = vld [vmem:[#allocation14 + $0x5d0] sm:$0xff] }
0x1a17   :  { %9928 = vmatprep.subr.bf16.mxu1 %v15144_v30  ;;  %v6977_v43 = vld [vmem:[#allocation14 + $0xd90] sm:$0xff]  ;;  %v15064_v33 = vcombine.high %v6721_v25, %v6729_v46  ;;  %v15063_v37 = vcombine.low %v6721_v25, %v6729_v46 }
0x1a18   :  { %v6985_v30 = vld [vmem:[#allocation14 + $0xdd0] sm:$0xff] }
0x1a19   :  { %9886 = vmatpush1.bf16.msra.mxu0 %v14887_v10  ;;  %v15320_v59 = vcombine.high %v6977_v43, %v6985_v30  ;;  %v6705_v10 = vld [vmem:[#allocation14 + $0x510] sm:$0xff]  ;;  %v15319_v48 = vcombine.low %v6977_v43, %v6985_v30 }
0x1a1a   :  { %9929 = vmatpush1.bf16.msra.mxu1 %v15143_v20  ;;  %9887 = vmatprep.subr.bf16.mxu0 %v15128_v7  ;;  %v6713_v20 = vld [vmem:[#allocation14 + $0x550] sm:$0xff] }
0x1a1b   :  { %9930 = vmatprep.subr.bf16.mxu1 %v15384_v58  ;;  %v6961_v7 = vld [vmem:[#allocation14 + $0xd10] sm:$0xff]  ;;  %v15048_v40 = vcombine.high %v6705_v10, %v6713_v20  ;;  %v15047_v51 = vcombine.low %v6705_v10, %v6713_v20  ;;  %v6906_v10 = vld [vmem:[#allocation14 + $0xb58] sm:$0xff] }
0x1a1c   :  { %v6969_v58 = vld [vmem:[#allocation14 + $0xd50] sm:$0xff] }
0x1a1d   :  { %9888 = vmatpush2.bf16.msra.mxu0 %v15127_v35  ;;  %v15304_v32 = vcombine.high %v6961_v7, %v6969_v58  ;;  %v6689_v35 = vld [vmem:[#allocation14 + $0x490] sm:$0xff]  ;;  %v15303_v9 = vcombine.low %v6961_v7, %v6969_v58  ;;  %v6626_v58 = vld [vmem:[#allocation14 + $0x298] sm:$0xff] }
0x1a1e   :  { %9931 = vmatpush2.bf16.msra.mxu1 %v15383_v1  ;;  %9889 = vmatprep.subr.bf16.mxu0 %v15112_v13  ;;  %v6697_v1 = vld [vmem:[#allocation14 + $0x4d0] sm:$0xff] }
0x1a1f   :  { %9932 = vmatprep.subr.bf16.mxu1 %v15368_v15  ;;  %v6945_v13 = vld [vmem:[#allocation14 + $0xc90] sm:$0xff]  ;;  %v15032_v44 = vcombine.high %v6689_v35, %v6697_v1  ;;  %v15031_v63 = vcombine.low %v6689_v35, %v6697_v1 }
0x1a20   :  { %v6953_v15 = vld [vmem:[#allocation14 + $0xcd0] sm:$0xff] }
0x1a21   :  { %9890 = vmatpush2.bf16.msra.mxu0 %v15111_v28  ;;  %v15288_v41 = vcombine.high %v6945_v13, %v6953_v15  ;;  %v6673_v28 = vld [vmem:[#allocation14 + $0x410] sm:$0xff]  ;;  %v15287_v39 = vcombine.low %v6945_v13, %v6953_v15 }
0x1a22   :  { %9933 = vmatpush2.bf16.msra.mxu1 %v15367_v56  ;;  %9891 = vmatprep.subr.bf16.mxu0 %v15096_v36  ;;  %v6681_v56 = vld [vmem:[#allocation14 + $0x450] sm:$0xff] }
0x1a23   :  { %9934 = vmatprep.subr.bf16.mxu1 %v15352_v38  ;;  %v6929_v36 = vld [vmem:[#allocation14 + $0xc10] sm:$0xff]  ;;  %v15016_v31 = vcombine.high %v6673_v28, %v6681_v56  ;;  %v15015_v25 = vcombine.low %v6673_v28, %v6681_v56 }
0x1a24   :  { %v6937_v38 = vld [vmem:[#allocation14 + $0xc50] sm:$0xff] }
0x1a25   :  { %9892 = vmatpush2.bf16.msra.mxu0 %v15095_v2  ;;  %v15272_v45 = vcombine.high %v6929_v36, %v6937_v38  ;;  %v6658_v2 = vld [vmem:[#allocation14 + $0x398] sm:$0xff]  ;;  %v15271_v46 = vcombine.low %v6929_v36, %v6937_v38 }
0x1a26   :  { %9935 = vmatpush2.bf16.msra.mxu1 %v15351_v21  ;;  %9893 = vmatprep.subr.bf16.mxu0 %v15080_v42  ;;  %v6666_v21 = vld [vmem:[#allocation14 + $0x3d8] sm:$0xff] }
0x1a27   :  { %9936 = vmatprep.subr.bf16.mxu1 %v15336_v26  ;;  %v6914_v42 = vld [vmem:[#allocation14 + $0xb98] sm:$0xff]  ;;  %v15002_v43 = vcombine.high %v6658_v2, %v6666_v21 }
0x1a28   :  { %v6922_v26 = vld [vmem:[#allocation14 + $0xbd8] sm:$0xff] }
0x1a29   :  { %9894 = vmatpush2.bf16.msra.mxu0 %v15079_v19  ;;  %v15258_v30 = vcombine.high %v6914_v42, %v6922_v26  ;;  %v6642_v19 = vld [vmem:[#allocation14 + $0x318] sm:$0xff]  ;;  %v15257_v20 = vcombine.low %v6914_v42, %v6922_v26 }
0x1a2a   :  { %9937 = vmatpush2.bf16.msra.mxu1 %v15335_v11  ;;  %9895 = vmatprep.subr.bf16.mxu0 %v15064_v33  ;;  %v6650_v11 = vld [vmem:[#allocation14 + $0x358] sm:$0xff]  ;;  %v15001_v33 = vcombine.low %v6658_v2, %v6666_v21 }
0x1a2b   :  { %9938 = vmatprep.subr.bf16.mxu1 %v15320_v59  ;;  %v6898_v59 = vld [vmem:[#allocation14 + $0xb18] sm:$0xff]  ;;  %v14986_v7 = vcombine.high %v6642_v19, %v6650_v11  ;;  %v14985_v35 = vcombine.low %v6642_v19, %v6650_v11 }
0x1a2c   :  { %v15241_v1 = vcombine.low %v6898_v59, %v6906_v10 }
0x1a2d   :  { %9896 = vmatpush2.bf16.msra.mxu0 %v15063_v37  ;;  %v6634_v37 = vld [vmem:[#allocation14 + $0x2d8] sm:$0xff] }
0x1a2e   :  { %9939 = vmatpush2.bf16.msra.mxu1 %v15319_v48  ;;  %9897 = vmatprep.subr.bf16.mxu0 %v15048_v40  ;;  %v15242_v48 = vcombine.high %v6898_v59, %v6906_v10  ;;  %v6882_v40 = vld [vmem:[#allocation14 + $0xa98] sm:$0xff]  ;;  %v14970_v13 = vcombine.high %v6626_v58, %v6634_v37  ;;  %v14969_v28 = vcombine.low %v6626_v58, %v6634_v37 }
0x1a2f   :  { %9940 = vmatprep.subr.bf16.mxu1 %v15304_v32  ;;  %v6890_v32 = vld [vmem:[#allocation14 + $0xad8] sm:$0xff] }
0x1a30   :  { %v15226_v15 = vcombine.high %v6882_v40, %v6890_v32  ;;  %v15225_v56 = vcombine.low %v6882_v40, %v6890_v32  ;;  %v6562_v10 = vld [vmem:[#allocation14 + $0x98] sm:$0xff] }
0x1a31   :  { %9898 = vmatpush2.bf16.msra.mxu0 %v15047_v51  ;;  %v6610_v51 = vld [vmem:[#allocation14 + $0x218] sm:$0xff] }
0x1a32   :  { %9941 = vmatpush2.bf16.msra.mxu1 %v15303_v9  ;;  %9899 = vmatprep.subr.bf16.mxu0 %v15032_v44  ;;  %v6618_v9 = vld [vmem:[#allocation14 + $0x258] sm:$0xff] }
0x1a33   :  { %9942 = vmatprep.subr.bf16.mxu1 %v15288_v41  ;;  %v6866_v44 = vld [vmem:[#allocation14 + $0xa18] sm:$0xff]  ;;  %v14954_v36 = vcombine.high %v6610_v51, %v6618_v9  ;;  %v14953_v2 = vcombine.low %v6610_v51, %v6618_v9 }
0x1a34   :  { %v6874_v41 = vld [vmem:[#allocation14 + $0xa58] sm:$0xff] }
0x1a35   :  { %9900 = vmatpush2.bf16.msra.mxu0 %v15031_v63  ;;  %v15210_v38 = vcombine.high %v6866_v44, %v6874_v41  ;;  %v6594_v63 = vld [vmem:[#allocation14 + $0x198] sm:$0xff]  ;;  %v15209_v21 = vcombine.low %v6866_v44, %v6874_v41 }
0x1a36   :  { %9943 = vmatpush2.bf16.msra.mxu1 %v15287_v39  ;;  %9901 = vmatprep.subr.bf16.mxu0 %v15016_v31  ;;  %v6602_v39 = vld [vmem:[#allocation14 + $0x1d8] sm:$0xff] }
0x1a37   :  { %9944 = vmatprep.subr.bf16.mxu1 %v15272_v45  ;;  %v6850_v31 = vld [vmem:[#allocation14 + $0x998] sm:$0xff]  ;;  %v14938_v42 = vcombine.high %v6594_v63, %v6602_v39  ;;  %v14937_v19 = vcombine.low %v6594_v63, %v6602_v39 }
0x1a38   :  { %v6858_v45 = vld [vmem:[#allocation14 + $0x9d8] sm:$0xff] }
0x1a39   :  { %9902 = vmatpush2.bf16.msra.mxu0 %v15015_v25  ;;  %v15194_v26 = vcombine.high %v6850_v31, %v6858_v45  ;;  %v6578_v25 = vld [vmem:[#allocation14 + $0x118] sm:$0xff]  ;;  %v15193_v11 = vcombine.low %v6850_v31, %v6858_v45 }
0x1a3a   :  { %9945 = vmatpush2.bf16.msra.mxu1 %v15271_v46  ;;  %9957 = vmatprep.subr.bf16.mxu0 %v15002_v43  ;;  %v6586_v46 = vld [vmem:[#allocation14 + $0x158] sm:$0xff] }
0x1a3b   :  { %10000 = vmatprep.subr.bf16.mxu1 %v15258_v30  ;;  %v6834_v43 = vld [vmem:[#allocation14 + $0x918] sm:$0xff]  ;;  %v14921_v37 = vcombine.low %v6578_v25, %v6586_v46 }
0x1a3c   :  { %9904 = vmatmul.mubr.bf16.vlgmr.msra.gmra.mxu0 %v19012_v57  ;;  %v6842_v30 = vld [vmem:[#allocation14 + $0x958] sm:$0xff] }
0x1a3d   :  { %9947 = vmatmul.mubr.bf16.vlgmr.msra.gmra.mxu1 %v19016_v17  ;;  %9958 = vmatpush1.bf16.msra.mxu0 %v15001_v33  ;;  %v14922_v33 = vcombine.high %v6578_v25, %v6586_v46  ;;  %v15178_v59 = vcombine.high %v6834_v43, %v6842_v30  ;;  %v6826_v58 = vld [vmem:[#allocation14 + $0x8d8] sm:$0xff] }
0x1a3e   :  { %9989 = vmatprep.mubr.bf16.mxu0 %v19004_v62  ;;  %10001 = vmatpush1.bf16.msra.mxu1 %v15257_v20  ;;  %v6570_v20 = vld [vmem:[#allocation14 + $0xd8] sm:$0xff] }
0x1a3f   :  { %10032 = vmatprep.mubr.bf16.mxu1 %v19008_v18  ;;  %9959 = vmatprep.subr.bf16.mxu0 %v14986_v7  ;;  %v6818_v7 = vld [vmem:[#allocation14 + $0x898] sm:$0xff]  ;;  %v14906_v40 = vcombine.high %v6562_v10, %v6570_v20  ;;  %v14905_v51 = vcombine.low %v6562_v10, %v6570_v20 }
0x1a40   :  { %10002 = vmatprep.subr.bf16.mxu1 %v15242_v48  ;;  %v15177_v48 = vcombine.low %v6834_v43, %v6842_v30  ;;  %v15162_v32 = vcombine.high %v6818_v7, %v6826_v58  ;;  %v15161_v9 = vcombine.low %v6818_v7, %v6826_v58 }
0x1a41   :  { %9960 = vmatpush1.bf16.msra.mxu0 %v14985_v35  ;;  %v6546_v35 = vld [vmem:[#allocation14 + $0x18] sm:$0xff] }
0x1a42   :  { %10003 = vmatpush1.bf16.msra.mxu1 %v15241_v1  ;;  %9961 = vmatprep.subr.bf16.mxu0 %v14970_v13  ;;  %v6554_v1 = vld [vmem:[#allocation14 + $0x58] sm:$0xff] }
0x1a43   :  { %10004 = vmatprep.subr.bf16.mxu1 %v15226_v15  ;;  %v6802_v13 = vld [vmem:[#allocation14 + $0x818] sm:$0xff]  ;;  %v14890_v44 = vcombine.high %v6546_v35, %v6554_v1  ;;  %v14889_v63 = vcombine.low %v6546_v35, %v6554_v1 }
0x1a44   :  { %v6810_v15 = vld [vmem:[#allocation14 + $0x858] sm:$0xff] }
0x1a45   :  { %9962 = vmatpush1.bf16.msra.mxu0 %v14969_v28  ;;  %v15146_v41 = vcombine.high %v6802_v13, %v6810_v15  ;;  %v6786_v28 = vld [vmem:[#allocation14 + $0x798] sm:$0xff]  ;;  %v15145_v39 = vcombine.low %v6802_v13, %v6810_v15 }
0x1a46   :  { %10005 = vmatpush1.bf16.msra.mxu1 %v15225_v56  ;;  %9963 = vmatprep.subr.bf16.mxu0 %v14954_v36  ;;  %v6794_v56 = vld [vmem:[#allocation14 + $0x7d8] sm:$0xff] }
0x1a47   :  { %10006 = vmatprep.subr.bf16.mxu1 %v15210_v38  ;;  %v7042_v36 = vld [vmem:[#allocation14 + $0xf98] sm:$0xff]  ;;  %v15130_v31 = vcombine.high %v6786_v28, %v6794_v56  ;;  %v15129_v25 = vcombine.low %v6786_v28, %v6794_v56 }
0x1a48   :  { %v7050_v38 = vld [vmem:[#allocation14 + $0xfd8] sm:$0xff] }
0x1a49   :  { %9964 = vmatpush1.bf16.msra.mxu0 %v14953_v2  ;;  %v15386_v45 = vcombine.high %v7042_v36, %v7050_v38  ;;  %v6770_v2 = vld [vmem:[#allocation14 + $0x718] sm:$0xff]  ;;  %v15385_v46 = vcombine.low %v7042_v36, %v7050_v38 }
0x1a4a   :  { %10007 = vmatpush1.bf16.msra.mxu1 %v15209_v21  ;;  %9965 = vmatprep.subr.bf16.mxu0 %v14938_v42  ;;  %v6778_v21 = vld [vmem:[#allocation14 + $0x758] sm:$0xff] }
0x1a4b   :  { %10008 = vmatprep.subr.bf16.mxu1 %v15194_v26  ;;  %v7026_v42 = vld [vmem:[#allocation14 + $0xf18] sm:$0xff]  ;;  %v15114_v43 = vcombine.high %v6770_v2, %v6778_v21  ;;  %v15113_v10 = vcombine.low %v6770_v2, %v6778_v21 }
0x1a4c   :  { %v7034_v26 = vld [vmem:[#allocation14 + $0xf58] sm:$0xff] }
0x1a4d   :  { %9966 = vmatpush1.bf16.msra.mxu0 %v14937_v19  ;;  %v15370_v30 = vcombine.high %v7026_v42, %v7034_v26  ;;  %v6754_v19 = vld [vmem:[#allocation14 + $0x698] sm:$0xff]  ;;  %v15369_v20 = vcombine.low %v7026_v42, %v7034_v26 }
0x1a4e   :  { %10009 = vmatpush1.bf16.msra.mxu1 %v15193_v11  ;;  %9967 = vmatprep.subr.bf16.mxu0 %v14922_v33  ;;  %v6762_v11 = vld [vmem:[#allocation14 + $0x6d8] sm:$0xff] }
0x1a4f   :  { %10010 = vmatprep.subr.bf16.mxu1 %v15178_v59  ;;  %v7010_v33 = vld [vmem:[#allocation14 + $0xe98] sm:$0xff]  ;;  %v15098_v7 = vcombine.high %v6754_v19, %v6762_v11  ;;  %v15097_v35 = vcombine.low %v6754_v19, %v6762_v11 }
0x1a50   :  { %v7018_v59 = vld [vmem:[#allocation14 + $0xed8] sm:$0xff] }
0x1a51   :  { %9968 = vmatpush1.bf16.msra.mxu0 %v14921_v37  ;;  %v15354_v58 = vcombine.high %v7010_v33, %v7018_v59  ;;  %v6738_v37 = vld [vmem:[#allocation14 + $0x618] sm:$0xff]  ;;  %v15353_v1 = vcombine.low %v7010_v33, %v7018_v59 }
0x1a52   :  { %10011 = vmatpush1.bf16.msra.mxu1 %v15177_v48  ;;  %9969 = vmatprep.subr.bf16.mxu0 %v14906_v40  ;;  %v6746_v48 = vld [vmem:[#allocation14 + $0x658] sm:$0xff] }
0x1a53   :  { %10012 = vmatprep.subr.bf16.mxu1 %v15162_v32  ;;  %v6994_v40 = vld [vmem:[#allocation14 + $0xe18] sm:$0xff]  ;;  %v15082_v13 = vcombine.high %v6738_v37, %v6746_v48  ;;  %v15081_v28 = vcombine.low %v6738_v37, %v6746_v48 }
0x1a54   :  { %v7002_v32 = vld [vmem:[#allocation14 + $0xe58] sm:$0xff] }
0x1a55   :  { %9970 = vmatpush1.bf16.msra.mxu0 %v14905_v51  ;;  %v15338_v15 = vcombine.high %v6994_v40, %v7002_v32  ;;  %v6722_v51 = vld [vmem:[#allocation14 + $0x598] sm:$0xff]  ;;  %v15337_v56 = vcombine.low %v6994_v40, %v7002_v32 }
0x1a56   :  { %10013 = vmatpush1.bf16.msra.mxu1 %v15161_v9  ;;  %9971 = vmatprep.subr.bf16.mxu0 %v14890_v44  ;;  %v6730_v9 = vld [vmem:[#allocation14 + $0x5d8] sm:$0xff] }
0x1a57   :  { %10014 = vmatprep.subr.bf16.mxu1 %v15146_v41  ;;  %v6978_v44 = vld [vmem:[#allocation14 + $0xd98] sm:$0xff]  ;;  %v15066_v36 = vcombine.high %v6722_v51, %v6730_v9  ;;  %v15065_v2 = vcombine.low %v6722_v51, %v6730_v9 }
0x1a58   :  { %v6986_v41 = vld [vmem:[#allocation14 + $0xdd8] sm:$0xff] }
0x1a59   :  { %9972 = vmatpush1.bf16.msra.mxu0 %v14889_v63  ;;  %v15322_v38 = vcombine.high %v6978_v44, %v6986_v41  ;;  %v6706_v63 = vld [vmem:[#allocation14 + $0x518] sm:$0xff]  ;;  %v15321_v21 = vcombine.low %v6978_v44, %v6986_v41  ;;  %v19038_v41 = vld [vmem:[#allocation16] sm:$0xff] }
0x1a5a   :  { %10015 = vmatpush1.bf16.msra.mxu1 %v15145_v39  ;;  %9973 = vmatprep.subr.bf16.mxu0 %v15130_v31  ;;  %v6714_v39 = vld [vmem:[#allocation14 + $0x558] sm:$0xff] }
0x1a5b   :  { %10016 = vmatprep.subr.bf16.mxu1 %v15386_v45  ;;  %v6962_v31 = vld [vmem:[#allocation14 + $0xd18] sm:$0xff]  ;;  %v15050_v42 = vcombine.high %v6706_v63, %v6714_v39  ;;  %v15049_v19 = vcombine.low %v6706_v63, %v6714_v39  ;;  %v7062_v63 = vrot.slane %v19038_v41, %v18267_v24  ;;  %v6899_v39 = vld [vmem:[#allocation14 + $0xb20] sm:$0xff] }
0x1a5c   :  { %v6970_v45 = vld [vmem:[#allocation14 + $0xd58] sm:$0xff] }
0x1a5d   :  { %9974 = vmatpush2.bf16.msra.mxu0 %v15129_v25  ;;  %v15306_v26 = vcombine.high %v6962_v31, %v6970_v45  ;;  %v6690_v25 = vld [vmem:[#allocation14 + $0x498] sm:$0xff]  ;;  %v15305_v11 = vcombine.low %v6962_v31, %v6970_v45  ;;  %v6907_v31 = vld [vmem:[#allocation14 + $0xb60] sm:$0xff] }
0x1a5e   :  { %10017 = vmatpush2.bf16.msra.mxu1 %v15385_v46  ;;  %9975 = vmatprep.subr.bf16.mxu0 %v15114_v43  ;;  %v6698_v46 = vld [vmem:[#allocation14 + $0x4d8] sm:$0xff] }
0x1a5f   :  { %10018 = vmatprep.subr.bf16.mxu1 %v15370_v30  ;;  %v6946_v43 = vld [vmem:[#allocation14 + $0xc98] sm:$0xff]  ;;  %v15034_v33 = vcombine.high %v6690_v25, %v6698_v46  ;;  %v15033_v37 = vcombine.low %v6690_v25, %v6698_v46  ;;  %v15244_v46 = vcombine.high %v6899_v39, %v6907_v31 }
0x1a60   :  { %v6954_v30 = vld [vmem:[#allocation14 + $0xcd8] sm:$0xff] }
0x1a61   :  { %9976 = vmatpush2.bf16.msra.mxu0 %v15113_v10  ;;  %v15290_v59 = vcombine.high %v6946_v43, %v6954_v30  ;;  %v6674_v10 = vld [vmem:[#allocation14 + $0x418] sm:$0xff]  ;;  %v15289_v48 = vcombine.low %v6946_v43, %v6954_v30  ;;  %v6883_v43 = vld [vmem:[#allocation14 + $0xaa0] sm:$0xff] }
0x1a62   :  { %10019 = vmatpush2.bf16.msra.mxu1 %v15369_v20  ;;  %9977 = vmatprep.subr.bf16.mxu0 %v15098_v7  ;;  %v6682_v20 = vld [vmem:[#allocation14 + $0x458] sm:$0xff]  ;;  %v6891_v30 = vld [vmem:[#allocation14 + $0xae0] sm:$0xff] }
0x1a63   :  { %10020 = vmatprep.subr.bf16.mxu1 %v15354_v58  ;;  %v6930_v7 = vld [vmem:[#allocation14 + $0xc18] sm:$0xff]  ;;  %v15018_v40 = vcombine.high %v6674_v10, %v6682_v20  ;;  %v15017_v51 = vcombine.low %v6674_v10, %v6682_v20  ;;  %v15243_v10 = vcombine.low %v6899_v39, %v6907_v31  ;;  %v6859_v39 = vld [vmem:[#allocation14 + $0x9e0] sm:$0xff] }
0x1a64   :  { %v6938_v58 = vld [vmem:[#allocation14 + $0xc58] sm:$0xff] }
0x1a65   :  { %9978 = vmatpush2.bf16.msra.mxu0 %v15097_v35  ;;  %v15274_v32 = vcombine.high %v6930_v7, %v6938_v58  ;;  %v6659_v35 = vld [vmem:[#allocation14 + $0x3a0] sm:$0xff]  ;;  %v15273_v9 = vcombine.low %v6930_v7, %v6938_v58  ;;  %v15228_v58 = vcombine.high %v6883_v43, %v6891_v30 }
0x1a66   :  { %10021 = vmatpush2.bf16.msra.mxu1 %v15353_v1  ;;  %9979 = vmatprep.subr.bf16.mxu0 %v15082_v13  ;;  %v6667_v1 = vld [vmem:[#allocation14 + $0x3e0] sm:$0xff] }
0x1a67   :  { %10022 = vmatprep.subr.bf16.mxu1 %v15338_v15  ;;  %v6915_v13 = vld [vmem:[#allocation14 + $0xba0] sm:$0xff]  ;;  %v15004_v44 = vcombine.high %v6659_v35, %v6667_v1 }
0x1a68   :  { %v6923_v15 = vld [vmem:[#allocation14 + $0xbe0] sm:$0xff] }
0x1a69   :  { %9980 = vmatpush2.bf16.msra.mxu0 %v15081_v28  ;;  %v15260_v28 = vcombine.high %v6915_v13, %v6923_v15  ;;  %v15259_v45 = vcombine.low %v6915_v13, %v6923_v15 }
0x1a6a   :  { %10023 = vmatpush2.bf16.msra.mxu1 %v15337_v56  ;;  %9981 = vmatprep.subr.bf16.mxu0 %v15066_v36  ;;  %v6643_v56 = vld [vmem:[#allocation14 + $0x320] sm:$0xff] }
0x1a6b   :  { %10024 = vmatprep.subr.bf16.mxu1 %v15322_v38  ;;  %v6651_v36 = vld [vmem:[#allocation14 + $0x360] sm:$0xff]  ;;  %v15003_v38 = vcombine.low %v6659_v35, %v6667_v1 }
0x1a6c   :  { %v6875_v35 = vld [vmem:[#allocation14 + $0xa60] sm:$0xff] }
0x1a6d   :  { %9982 = vmatpush2.bf16.msra.mxu0 %v15065_v2  ;;  %v14988_v2 = vcombine.high %v6643_v56, %v6651_v36 }
0x1a6e   :  { %10025 = vmatpush2.bf16.msra.mxu1 %v15321_v21  ;;  %9983 = vmatprep.subr.bf16.mxu0 %v15050_v42  ;;  %v6627_v21 = vld [vmem:[#allocation14 + $0x2a0] sm:$0xff] }
0x1a6f   :  { %10026 = vmatprep.subr.bf16.mxu1 %v15306_v26  ;;  %v6635_v42 = vld [vmem:[#allocation14 + $0x2e0] sm:$0xff] }
0x1a70   :  { %v14972_v20 = vcombine.high %v6627_v21, %v6635_v42  ;;  %v14971_v13 = vcombine.low %v6627_v21, %v6635_v42 }
0x1a71   :  { %9984 = vmatpush2.bf16.msra.mxu0 %v15049_v19 }
0x1a72   :  { %10027 = vmatpush2.bf16.msra.mxu1 %v15305_v11  ;;  %9985 = vmatprep.subr.bf16.mxu0 %v15034_v33  ;;  %v14987_v11 = vcombine.low %v6643_v56, %v6651_v36  ;;  %v6595_v56 = vld [vmem:[#allocation14 + $0x1a0] sm:$0xff] }
0x1a73   :  { %10028 = vmatprep.subr.bf16.mxu1 %v15290_v59  ;;  %v6603_v36 = vld [vmem:[#allocation14 + $0x1e0] sm:$0xff] }
0x1a74   :  { %v14940_v21 = vcombine.high %v6595_v56, %v6603_v36 }
0x1a75   :  { %9986 = vmatpush2.bf16.msra.mxu0 %v15033_v37  ;;  %v6611_v37 = vld [vmem:[#allocation14 + $0x220] sm:$0xff] }
0x1a76   :  { %10029 = vmatpush2.bf16.msra.mxu1 %v15289_v48  ;;  %9987 = vmatprep.subr.bf16.mxu0 %v15018_v40  ;;  %v6619_v48 = vld [vmem:[#allocation14 + $0x260] sm:$0xff] }
0x1a77   :  { %10030 = vmatprep.subr.bf16.mxu1 %v15274_v32  ;;  %v6867_v32 = vld [vmem:[#allocation14 + $0xa20] sm:$0xff] }
0x1a79   :  { %9988 = vmatpush2.bf16.msra.mxu0 %v15017_v51  ;;  %v15227_v51 = vcombine.low %v6883_v43, %v6891_v30  ;;  %v6835_v43 = vld [vmem:[#allocation14 + $0x920] sm:$0xff] }
0x1a7a   :  { %10031 = vmatpush2.bf16.msra.mxu1 %v15273_v9  ;;  %10043 = vmatprep.subr.bf16.mxu0 %v15004_v44  ;;  %v14956_v9 = vcombine.high %v6611_v37, %v6619_v48  ;;  %v6843_v30 = vld [vmem:[#allocation14 + $0x960] sm:$0xff] }
0x1a7b   :  { %10086 = vmatprep.subr.bf16.mxu1 %v15260_v28  ;;  %v15212_v28 = vcombine.high %v6867_v32, %v6875_v35 }
0x1a7c   :  { %9990 = vmatmul.mubr.bf16.vlgmr.msra.gmra.mxu0 %v19012_v57  ;;  %v9733_v26 = vpop.f32.mrf.mxu0  ;;  %v9776_v25 = vpop.f32.mrf.mxu1 }
0x1a7d   :  { %10033 = vmatmul.mubr.bf16.vlgmr.msra.gmra.mxu1 %v19016_v17  ;;  %v9734_v19 = vadd.f32 %v9733_v26, %v7062_v63  ;;  %10044 = vmatpush1.bf16.msra.mxu0 %v15003_v38  ;;  %v6851_v38 = vld [vmem:[#allocation14 + $0x9a0] sm:$0xff] }
0x1a7e   :  { %10075 = vmatprep.mubr.bf16.mxu0 %v19004_v62  ;;  %10087 = vmatpush1.bf16.msra.mxu1 %v15259_v45  ;;  %v19045_v33 = vpop.f32.mrf.mxu0  ;;  %v19047_v59 = vpop.f32.mrf.mxu1  ;;  %v15196_v26 = vcombine.high %v6851_v38, %v6859_v39 }
0x1a7f   :  { %v9777_v7 = vadd.f32 %v9776_v25, %v9734_v19  ;;  %10118 = vmatprep.mubr.bf16.mxu1 %v19008_v18  ;;  %10045 = vmatprep.subr.bf16.mxu0 %v14988_v2  ;;  %v14955_v2 = vcombine.low %v6611_v37, %v6619_v48  ;;  %v6579_v25 = vld [vmem:[#allocation14 + $0x120] sm:$0xff]  ;;  %v14939_v19 = vcombine.low %v6595_v56, %v6603_v36 }
0x1a80   :  { %10088 = vmatprep.subr.bf16.mxu1 %v15244_v46  ;;  %v9737_v40 = vpop.f32.mrf.mxu0  ;;  %v9780_v15 = vpop.f32.mrf.mxu1  ;;  %v6587_v46 = vld [vmem:[#allocation14 + $0x160] sm:$0xff] }
0x1a81   :  { %v9738_v1 = vadd.f32 %v9737_v40, %v7062_v63  ;;  %10046 = vmatpush1.bf16.msra.mxu0 %v14987_v11  ;;  %v10387_v31 = vmax.f32 %v9777_v7, 0.0  ;;  %v15211_v63 = vcombine.low %v6867_v32, %v6875_v35  ;;  %v15195_v11 = vcombine.low %v6851_v38, %v6859_v39  ;;  %v6563_v7 = vld [vmem:[#allocation14 + $0xa0] sm:$0xff] }
0x1a82   :  { %10089 = vmatpush1.bf16.msra.mxu1 %v15243_v10  ;;  %10047 = vmatprep.subr.bf16.mxu0 %v14972_v20  ;;  %v14924_v10 = vcombine.high %v6579_v25, %v6587_v46  ;;  %v15180_v20 = vcombine.high %v6835_v43, %v6843_v30  ;;  %v6819_v37 = vld [vmem:[#allocation14 + $0x8a0] sm:$0xff]  ;;  %v14923_v40 = vcombine.low %v6579_v25, %v6587_v46 }
0x1a83   :  { %v9781_v44 = vadd.f32 %v9780_v15, %v9738_v1  ;;  %10090 = vmatprep.subr.bf16.mxu1 %v15228_v58  ;;  %v6571_v58 = vld [vmem:[#allocation14 + $0xe0] sm:$0xff]  ;;  %v15179_v32 = vcombine.low %v6835_v43, %v6843_v30 }
0x1a84   :  { %v6827_v48 = vld [vmem:[#allocation14 + $0x8e0] sm:$0xff]  ;;  %v14908_v35 = vcombine.high %v6563_v7, %v6571_v58 }
0x1a85   :  { %v10403_v45 = vmax.f32 %v9781_v44, 0.0  ;;  %10048 = vmatpush1.bf16.msra.mxu0 %v14971_v13  ;;  %v15164_v1 = vcombine.high %v6819_v37, %v6827_v48  ;;  %v6547_v13 = vld [vmem:[#allocation14 + $0x20] sm:$0xff]  ;;  %v14907_v44 = vcombine.low %v6563_v7, %v6571_v58 }
0x1a86   :  { %10091 = vmatpush1.bf16.msra.mxu1 %v15227_v51  ;;  %10049 = vmatprep.subr.bf16.mxu0 %v14956_v9  ;;  %v6555_v15 = vld [vmem:[#allocation14 + $0x60] sm:$0xff] }
0x1a87   :  { %v19050_v42 = vpack.c.bf16 %v10403_v45, %v10387_v31  ;;  %10092 = vmatprep.subr.bf16.mxu1 %v15212_v28  ;;  %v6803_v51 = vld [vmem:[#allocation14 + $0x820] sm:$0xff]  ;;  %v15163_v28 = vcombine.low %v6819_v37, %v6827_v48  ;;  %v14892_v56 = vcombine.high %v6547_v13, %v6555_v15 }
0x1a88   :  { %v6811_v9 = vld [vmem:[#allocation14 + $0x860] sm:$0xff] }
0x1a89   :  { %10050 = vmatpush1.bf16.msra.mxu0 %v14955_v2  ;;  %v15148_v36 = vcombine.high %v6803_v51, %v6811_v9  ;;  %v6787_v38 = vld [vmem:[#allocation14 + $0x7a0] sm:$0xff]  ;;  %v14891_v2 = vcombine.low %v6547_v13, %v6555_v15 }
0x1a8a   :  { %10093 = vmatpush1.bf16.msra.mxu1 %v15211_v63  ;;  %10051 = vmatprep.subr.bf16.mxu0 %v14940_v21  ;;  %v6795_v39 = vld [vmem:[#allocation14 + $0x7e0] sm:$0xff]  ;;  %v15147_v63 = vcombine.low %v6803_v51, %v6811_v9 }
0x1a8b   :  { %10094 = vmatprep.subr.bf16.mxu1 %v15196_v26  ;;  %v7043_v31 = vld [vmem:[#allocation14 + $0xfa0] sm:$0xff]  ;;  %v15132_v21 = vcombine.high %v6787_v38, %v6795_v39 }
0x1a8c   :  { %v7051_v45 = vld [vmem:[#allocation14 + $0xfe0] sm:$0xff] }
0x1a8d   :  { %10052 = vmatpush1.bf16.msra.mxu0 %v14939_v19  ;;  %v15388_v26 = vcombine.high %v7043_v31, %v7051_v45  ;;  %v6771_v25 = vld [vmem:[#allocation14 + $0x720] sm:$0xff]  ;;  %v15131_v19 = vcombine.low %v6787_v38, %v6795_v39 }
0x1a8e   :  { %10095 = vmatpush1.bf16.msra.mxu1 %v15195_v11  ;;  %10053 = vmatprep.subr.bf16.mxu0 %v14924_v10  ;;  %v6779_v46 = vld [vmem:[#allocation14 + $0x760] sm:$0xff]  ;;  %v15387_v11 = vcombine.low %v7043_v31, %v7051_v45 }
0x1a8f   :  { %10096 = vmatprep.subr.bf16.mxu1 %v15180_v20  ;;  %v7027_v43 = vld [vmem:[#allocation14 + $0xf20] sm:$0xff]  ;;  %v15116_v10 = vcombine.high %v6771_v25, %v6779_v46 }
0x1a90   :  { %v7035_v30 = vld [vmem:[#allocation14 + $0xf60] sm:$0xff] }
0x1a91   :  { %10054 = vmatpush1.bf16.msra.mxu0 %v14923_v40  ;;  %v15372_v20 = vcombine.high %v7027_v43, %v7035_v30  ;;  %v6755_v7 = vld [vmem:[#allocation14 + $0x6a0] sm:$0xff]  ;;  %v15115_v40 = vcombine.low %v6771_v25, %v6779_v46 }
0x1a92   :  { %10097 = vmatpush1.bf16.msra.mxu1 %v15179_v32  ;;  %10055 = vmatprep.subr.bf16.mxu0 %v14908_v35  ;;  %v6763_v58 = vld [vmem:[#allocation14 + $0x6e0] sm:$0xff]  ;;  %v15371_v32 = vcombine.low %v7027_v43, %v7035_v30 }
0x1a93   :  { %10098 = vmatprep.subr.bf16.mxu1 %v15164_v1  ;;  %v7011_v37 = vld [vmem:[#allocation14 + $0xea0] sm:$0xff]  ;;  %v15100_v35 = vcombine.high %v6755_v7, %v6763_v58 }
0x1a94   :  { %v7019_v48 = vld [vmem:[#allocation14 + $0xee0] sm:$0xff] }
0x1a95   :  { %10056 = vmatpush1.bf16.msra.mxu0 %v14907_v44  ;;  %v15356_v1 = vcombine.high %v7011_v37, %v7019_v48  ;;  %v6739_v13 = vld [vmem:[#allocation14 + $0x620] sm:$0xff]  ;;  %v15099_v44 = vcombine.low %v6755_v7, %v6763_v58 }
0x1a96   :  { %10099 = vmatpush1.bf16.msra.mxu1 %v15163_v28  ;;  %10057 = vmatprep.subr.bf16.mxu0 %v14892_v56  ;;  %v6747_v15 = vld [vmem:[#allocation14 + $0x660] sm:$0xff]  ;;  %v15355_v28 = vcombine.low %v7011_v37, %v7019_v48 }
0x1a97   :  { %10100 = vmatprep.subr.bf16.mxu1 %v15148_v36  ;;  %v6995_v51 = vld [vmem:[#allocation14 + $0xe20] sm:$0xff]  ;;  %v15084_v56 = vcombine.high %v6739_v13, %v6747_v15 }
0x1a98   :  { %v7003_v9 = vld [vmem:[#allocation14 + $0xe60] sm:$0xff] }
0x1a99   :  { %10058 = vmatpush1.bf16.msra.mxu0 %v14891_v2  ;;  %v15340_v36 = vcombine.high %v6995_v51, %v7003_v9  ;;  %v6723_v38 = vld [vmem:[#allocation14 + $0x5a0] sm:$0xff]  ;;  %v15083_v2 = vcombine.low %v6739_v13, %v6747_v15 }
0x1a9a   :  { %10101 = vmatpush1.bf16.msra.mxu1 %v15147_v63  ;;  %10059 = vmatprep.subr.bf16.mxu0 %v15132_v21  ;;  %v6731_v39 = vld [vmem:[#allocation14 + $0x5e0] sm:$0xff]  ;;  %v15339_v63 = vcombine.low %v6995_v51, %v7003_v9 }
0x1a9b   :  { %10102 = vmatprep.subr.bf16.mxu1 %v15388_v26  ;;  %v6979_v31 = vld [vmem:[#allocation14 + $0xda0] sm:$0xff]  ;;  %v15068_v21 = vcombine.high %v6723_v38, %v6731_v39 }
0x1a9c   :  { %v6987_v45 = vld [vmem:[#allocation14 + $0xde0] sm:$0xff] }
0x1a9d   :  { %10060 = vmatpush2.bf16.msra.mxu0 %v15131_v19  ;;  %v15324_v26 = vcombine.high %v6979_v31, %v6987_v45  ;;  %v6707_v25 = vld [vmem:[#allocation14 + $0x520] sm:$0xff]  ;;  %v15067_v19 = vcombine.low %v6723_v38, %v6731_v39  ;;  %v6660_v38 = vld [vmem:[#allocation14 + $0x3a8] sm:$0xff] }
0x1a9e   :  { %10103 = vmatpush2.bf16.msra.mxu1 %v15387_v11  ;;  %10061 = vmatprep.subr.bf16.mxu0 %v15116_v10  ;;  %v6715_v46 = vld [vmem:[#allocation14 + $0x560] sm:$0xff]  ;;  %v15323_v11 = vcombine.low %v6979_v31, %v6987_v45  ;;  %v6668_v39 = vld [vmem:[#allocation14 + $0x3e8] sm:$0xff] }
0x1a9f   :  { %10104 = vmatprep.subr.bf16.mxu1 %v15372_v20  ;;  %v6963_v43 = vld [vmem:[#allocation14 + $0xd20] sm:$0xff]  ;;  %v15052_v10 = vcombine.high %v6707_v25, %v6715_v46  ;;  %v6916_v31 = vld [vmem:[#allocation14 + $0xba8] sm:$0xff] }
0x1aa0   :  { %v6971_v30 = vld [vmem:[#allocation14 + $0xd60] sm:$0xff]  ;;  %v6924_v45 = vld [vmem:[#allocation14 + $0xbe8] sm:$0xff] }
0x1aa1   :  { %10062 = vmatpush2.bf16.msra.mxu0 %v15115_v40  ;;  %v15308_v20 = vcombine.high %v6963_v43, %v6971_v30  ;;  %v6691_v7 = vld [vmem:[#allocation14 + $0x4a0] sm:$0xff]  ;;  %v15051_v40 = vcombine.low %v6707_v25, %v6715_v46  ;;  %v6644_v25 = vld [vmem:[#allocation14 + $0x328] sm:$0xff] }
0x1aa2   :  { %10105 = vmatpush2.bf16.msra.mxu1 %v15371_v32  ;;  %10063 = vmatprep.subr.bf16.mxu0 %v15100_v35  ;;  %v6699_v58 = vld [vmem:[#allocation14 + $0x4e0] sm:$0xff]  ;;  %v15307_v32 = vcombine.low %v6963_v43, %v6971_v30  ;;  %v6652_v46 = vld [vmem:[#allocation14 + $0x368] sm:$0xff]  ;;  %v7070_v43 = vrot.slane %v19038_v41, %v18230_v47  ;;  %v15005_v30 = vcombine.low %v6660_v38, %v6668_v39 }
0x1aa3   :  { %10106 = vmatprep.subr.bf16.mxu1 %v15356_v1  ;;  %v6947_v37 = vld [vmem:[#allocation14 + $0xca0] sm:$0xff]  ;;  %v15036_v35 = vcombine.high %v6691_v7, %v6699_v58 }
0x1aa4   :  { %v6955_v48 = vld [vmem:[#allocation14 + $0xce0] sm:$0xff] }
0x1aa5   :  { %10064 = vmatpush2.bf16.msra.mxu0 %v15099_v44  ;;  %v15292_v1 = vcombine.high %v6947_v37, %v6955_v48  ;;  %v6675_v13 = vld [vmem:[#allocation14 + $0x420] sm:$0xff]  ;;  %v15035_v44 = vcombine.low %v6691_v7, %v6699_v58  ;;  %v15261_v7 = vcombine.low %v6916_v31, %v6924_v45  ;;  %v14990_v58 = vcombine.high %v6644_v25, %v6652_v46 }
0x1aa6   :  { %10107 = vmatpush2.bf16.msra.mxu1 %v15355_v28  ;;  %10065 = vmatprep.subr.bf16.mxu0 %v15084_v56  ;;  %v6683_v15 = vld [vmem:[#allocation14 + $0x460] sm:$0xff]  ;;  %v15291_v28 = vcombine.low %v6947_v37, %v6955_v48  ;;  %v6628_v37 = vld [vmem:[#allocation14 + $0x2a8] sm:$0xff] }
0x1aa7   :  { %10108 = vmatprep.subr.bf16.mxu1 %v15340_v36  ;;  %v6931_v51 = vld [vmem:[#allocation14 + $0xc20] sm:$0xff]  ;;  %v15020_v56 = vcombine.high %v6675_v13, %v6683_v15  ;;  %v6636_v48 = vld [vmem:[#allocation14 + $0x2e8] sm:$0xff] }
0x1aa8   :  { %v6939_v9 = vld [vmem:[#allocation14 + $0xc60] sm:$0xff] }
0x1aa9   :  { %10066 = vmatpush2.bf16.msra.mxu0 %v15083_v2  ;;  %v15276_v36 = vcombine.high %v6931_v51, %v6939_v9  ;;  %v15019_v2 = vcombine.low %v6675_v13, %v6683_v15  ;;  %v6892_v13 = vld [vmem:[#allocation14 + $0xae8] sm:$0xff] }
0x1aaa   :  { %10109 = vmatpush2.bf16.msra.mxu1 %v15339_v63  ;;  %10067 = vmatprep.subr.bf16.mxu0 %v15068_v21  ;;  %v15275_v63 = vcombine.low %v6931_v51, %v6939_v9  ;;  %v15006_v21 = vcombine.high %v6660_v38, %v6668_v39  ;;  %v14989_v51 = vcombine.low %v6644_v25, %v6652_v46  ;;  %v6612_v39 = vld [vmem:[#allocation14 + $0x228] sm:$0xff] }
0x1aab   :  { %10110 = vmatprep.subr.bf16.mxu1 %v15324_v26  ;;  %v15262_v26 = vcombine.high %v6916_v31, %v6924_v45  ;;  %v6620_v31 = vld [vmem:[#allocation14 + $0x268] sm:$0xff] }
0x1aad   :  { %10068 = vmatpush2.bf16.msra.mxu0 %v15067_v19  ;;  %v6900_v19 = vld [vmem:[#allocation14 + $0xb28] sm:$0xff] }
0x1aae   :  { %10111 = vmatpush2.bf16.msra.mxu1 %v15323_v11  ;;  %10069 = vmatprep.subr.bf16.mxu0 %v15052_v10  ;;  %v6908_v11 = vld [vmem:[#allocation14 + $0xb68] sm:$0xff]  ;;  %v19054_v10 = vpop.f32.mrf.mxu0 }
0x1aaf   :  { %10112 = vmatprep.subr.bf16.mxu1 %v15308_v20  ;;  %v19056_v20 = vpop.f32.mrf.mxu1 }
0x1ab1   :  { %10070 = vmatpush2.bf16.msra.mxu0 %v15051_v40 }
0x1ab2   :  { %10113 = vmatpush2.bf16.msra.mxu1 %v15307_v32  ;;  %10071 = vmatprep.subr.bf16.mxu0 %v15036_v35  ;;  %v15246_v35 = vcombine.high %v6900_v19, %v6908_v11 }
0x1ab3   :  { %10114 = vmatprep.subr.bf16.mxu1 %v15292_v1  ;;  %v6884_v1 = vld [vmem:[#allocation14 + $0xaa8] sm:$0xff] }
0x1ab4   :  { %v15230_v38 = vcombine.high %v6884_v1, %v6892_v13  ;;  %v15229_v46 = vcombine.low %v6884_v1, %v6892_v13  ;;  %v6580_v13 = vld [vmem:[#allocation14 + $0x128] sm:$0xff] }
0x1ab5   :  { %10072 = vmatpush2.bf16.msra.mxu0 %v15035_v44 }
0x1ab6   :  { %10115 = vmatpush2.bf16.msra.mxu1 %v15291_v28  ;;  %10073 = vmatprep.subr.bf16.mxu0 %v15020_v56  ;;  %v15245_v28 = vcombine.low %v6900_v19, %v6908_v11  ;;  %v14974_v56 = vcombine.high %v6628_v37, %v6636_v48 }
0x1ab7   :  { %10116 = vmatprep.subr.bf16.mxu1 %v15276_v36 }
0x1ab9   :  { %10074 = vmatpush2.bf16.msra.mxu0 %v15019_v2  ;;  %v6868_v2 = vld [vmem:[#allocation14 + $0xa28] sm:$0xff] }
0x1aba   :  { %10117 = vmatpush2.bf16.msra.mxu1 %v15275_v63  ;;  %10129 = vmatprep.subr.bf16.mxu0 %v15006_v21  ;;  %v6876_v63 = vld [vmem:[#allocation14 + $0xa68] sm:$0xff] }
0x1abb   :  { %10172 = vmatprep.subr.bf16.mxu1 %v15262_v26  ;;  %v14973_v26 = vcombine.low %v6628_v37, %v6636_v48  ;;  %v15214_v11 = vcombine.high %v6868_v2, %v6876_v63 }
0x1abc   :  { %v9819_v40 = vpop.f32.mrf.mxu0  ;;  %v9862_v32 = vpop.f32.mrf.mxu1  ;;  %10076 = vmatmul.mubr.bf16.vlgmr.msra.gmra.mxu0 %v19012_v57 }
0x1abd   :  { %v9820_v15 = vadd.f32 %v9819_v40, %v7070_v43  ;;  %10119 = vmatmul.mubr.bf16.vlgmr.msra.gmra.mxu1 %v19016_v17  ;;  %10130 = vmatpush1.bf16.msra.mxu0 %v15005_v30  ;;  %v14958_v30 = vcombine.high %v6612_v39, %v6620_v31  ;;  %v6852_v40 = vld [vmem:[#allocation14 + $0x9a8] sm:$0xff] }
0x1abe   :  { %10161 = vmatprep.mubr.bf16.mxu0 %v19004_v62  ;;  %10173 = vmatpush1.bf16.msra.mxu1 %v15261_v7  ;;  %v19061_v9 = vpop.f32.mrf.mxu0  ;;  %v19063_v44 = vpop.f32.mrf.mxu1  ;;  %v6596_v7 = vld [vmem:[#allocation14 + $0x1a8] sm:$0xff] }
0x1abf   :  { %v9863_v36 = vadd.f32 %v9862_v32, %v9820_v15  ;;  %10204 = vmatprep.mubr.bf16.mxu1 %v19008_v18  ;;  %10131 = vmatprep.subr.bf16.mxu0 %v14990_v58  ;;  %v6604_v58 = vld [vmem:[#allocation14 + $0x1e8] sm:$0xff] }
0x1ac0   :  { %v9823_v45 = vpop.f32.mrf.mxu0  ;;  %10174 = vmatprep.subr.bf16.mxu1 %v15246_v35  ;;  %v9866_v25 = vpop.f32.mrf.mxu1  ;;  %v6860_v32 = vld [vmem:[#allocation14 + $0x9e8] sm:$0xff]  ;;  %v14957_v35 = vcombine.low %v6612_v39, %v6620_v31  ;;  %v14942_v37 = vcombine.high %v6596_v7, %v6604_v58 }
0x1ac1   :  { %v9824_v21 = vadd.f32 %v9823_v45, %v7070_v43  ;;  %10132 = vmatpush1.bf16.msra.mxu0 %v14989_v51  ;;  %v10389_v15 = vmax.f32 %v9863_v36, 0.0  ;;  %v15213_v43 = vcombine.low %v6868_v2, %v6876_v63  ;;  %v15198_v1 = vcombine.high %v6852_v40, %v6860_v32  ;;  %v6588_v51 = vld [vmem:[#allocation14 + $0x168] sm:$0xff] }
0x1ac2   :  { %10175 = vmatpush1.bf16.msra.mxu1 %v15245_v28  ;;  %10133 = vmatprep.subr.bf16.mxu0 %v14974_v56  ;;  %v6836_v28 = vld [vmem:[#allocation14 + $0x928] sm:$0xff]  ;;  %v15197_v36 = vcombine.low %v6852_v40, %v6860_v32  ;;  %v14926_v45 = vcombine.high %v6580_v13, %v6588_v51 }
0x1ac3   :  { %v9867_v19 = vadd.f32 %v9866_v25, %v9824_v21  ;;  %10176 = vmatprep.subr.bf16.mxu1 %v15230_v38  ;;  %v6844_v56 = vld [vmem:[#allocation14 + $0x968] sm:$0xff]  ;;  %v14941_v38 = vcombine.low %v6596_v7, %v6604_v58 }
0x1ac4   :  { %v15182_v39 = vcombine.high %v6836_v28, %v6844_v56  ;;  %v6564_v31 = vld [vmem:[#allocation14 + $0xa8] sm:$0xff] }
0x1ac5   :  { %v10405_v22 = vmax.f32 %v9867_v19, 0.0  ;;  %10134 = vmatpush1.bf16.msra.mxu0 %v14973_v26  ;;  %v6572_v21 = vld [vmem:[#allocation14 + $0xe8] sm:$0xff]  ;;  %v15181_v26 = vcombine.low %v6836_v28, %v6844_v56 }
0x1ac6   :  { %10177 = vmatpush1.bf16.msra.mxu1 %v15229_v46  ;;  %10135 = vmatprep.subr.bf16.mxu0 %v14958_v30  ;;  %v6820_v2 = vld [vmem:[#allocation14 + $0x8a8] sm:$0xff]  ;;  %v14910_v25 = vcombine.high %v6564_v31, %v6572_v21  ;;  %v14909_v58 = vcombine.low %v6564_v31, %v6572_v21 }
0x1ac7   :  { %v19066_v48 = vpack.c.bf16 %v10405_v22, %v10389_v15  ;;  %10178 = vmatprep.subr.bf16.mxu1 %v15214_v11  ;;  %v6828_v63 = vld [vmem:[#allocation14 + $0x8e8] sm:$0xff]  ;;  %v14925_v22 = vcombine.low %v6580_v13, %v6588_v51 }
0x1ac8   :  { %v15166_v46 = vcombine.high %v6820_v2, %v6828_v63  ;;  %v6548_v30 = vld [vmem:[#allocation14 + $0x28] sm:$0xff]  ;;  %v15165_v40 = vcombine.low %v6820_v2, %v6828_v63 }
0x1ac9   :  { %10136 = vmatpush1.bf16.msra.mxu0 %v14957_v35  ;;  %v6556_v19 = vld [vmem:[#allocation14 + $0x68] sm:$0xff] }
0x1aca   :  { %10179 = vmatpush1.bf16.msra.mxu1 %v15213_v43  ;;  %10137 = vmatprep.subr.bf16.mxu0 %v14942_v37  ;;  %v6804_v11 = vld [vmem:[#allocation14 + $0x828] sm:$0xff]  ;;  %v14894_v32 = vcombine.high %v6548_v30, %v6556_v19  ;;  %v14893_v13 = vcombine.low %v6548_v30, %v6556_v19 }
0x1acb   :  { %10180 = vmatprep.subr.bf16.mxu1 %v15198_v1  ;;  %v6812_v7 = vld [vmem:[#allocation14 + $0x868] sm:$0xff] }
0x1acc   :  { %v15150_v15 = vcombine.high %v6804_v11, %v6812_v7  ;;  %v6788_v35 = vld [vmem:[#allocation14 + $0x7a8] sm:$0xff]  ;;  %v15149_v51 = vcombine.low %v6804_v11, %v6812_v7 }
0x1acd   :  { %10138 = vmatpush1.bf16.msra.mxu0 %v14941_v38  ;;  %v6796_v43 = vld [vmem:[#allocation14 + $0x7e8] sm:$0xff] }
0x1ace   :  { %10181 = vmatpush1.bf16.msra.mxu1 %v15197_v36  ;;  %10139 = vmatprep.subr.bf16.mxu0 %v14926_v45  ;;  %v7044_v37 = vld [vmem:[#allocation14 + $0xfa8] sm:$0xff]  ;;  %v15134_v28 = vcombine.high %v6788_v35, %v6796_v43  ;;  %v15133_v31 = vcombine.low %v6788_v35, %v6796_v43 }
0x1acf   :  { %10182 = vmatprep.subr.bf16.mxu1 %v15182_v39  ;;  %v7052_v1 = vld [vmem:[#allocation14 + $0xfe8] sm:$0xff] }
0x1ad0   :  { %v15390_v56 = vcombine.high %v7044_v37, %v7052_v1  ;;  %v6772_v38 = vld [vmem:[#allocation14 + $0x728] sm:$0xff]  ;;  %v15389_v21 = vcombine.low %v7044_v37, %v7052_v1 }
0x1ad1   :  { %10140 = vmatpush1.bf16.msra.mxu0 %v14925_v22  ;;  %v6780_v36 = vld [vmem:[#allocation14 + $0x768] sm:$0xff] }
0x1ad2   :  { %10183 = vmatpush1.bf16.msra.mxu1 %v15181_v26  ;;  %10141 = vmatprep.subr.bf16.mxu0 %v14910_v25  ;;  %v7028_v45 = vld [vmem:[#allocation14 + $0xf28] sm:$0xff]  ;;  %v15118_v2 = vcombine.high %v6772_v38, %v6780_v36  ;;  %v15117_v30 = vcombine.low %v6772_v38, %v6780_v36 }
0x1ad3   :  { %10184 = vmatprep.subr.bf16.mxu1 %v15166_v46  ;;  %v7036_v39 = vld [vmem:[#allocation14 + $0xf68] sm:$0xff] }
0x1ad4   :  { %v15374_v63 = vcombine.high %v7028_v45, %v7036_v39  ;;  %v6756_v22 = vld [vmem:[#allocation14 + $0x6a8] sm:$0xff]  ;;  %v15373_v19 = vcombine.low %v7028_v45, %v7036_v39 }
0x1ad5   :  { %10142 = vmatpush1.bf16.msra.mxu0 %v14909_v58  ;;  %v6764_v26 = vld [vmem:[#allocation14 + $0x6e8] sm:$0xff] }
0x1ad6   :  { %10185 = vmatpush1.bf16.msra.mxu1 %v15165_v40  ;;  %10143 = vmatprep.subr.bf16.mxu0 %v14894_v32  ;;  %v7012_v25 = vld [vmem:[#allocation14 + $0xea8] sm:$0xff]  ;;  %v15102_v11 = vcombine.high %v6756_v22, %v6764_v26  ;;  %v15101_v35 = vcombine.low %v6756_v22, %v6764_v26 }
0x1ad7   :  { %10186 = vmatprep.subr.bf16.mxu1 %v15150_v15  ;;  %v7020_v46 = vld [vmem:[#allocation14 + $0xee8] sm:$0xff] }
0x1ad8   :  { %v15358_v7 = vcombine.high %v7012_v25, %v7020_v46  ;;  %v6740_v58 = vld [vmem:[#allocation14 + $0x628] sm:$0xff]  ;;  %v15357_v43 = vcombine.low %v7012_v25, %v7020_v46 }
0x1ad9   :  { %10144 = vmatpush1.bf16.msra.mxu0 %v14893_v13  ;;  %v6748_v40 = vld [vmem:[#allocation14 + $0x668] sm:$0xff] }
0x1ada   :  { %10187 = vmatpush1.bf16.msra.mxu1 %v15149_v51  ;;  %10145 = vmatprep.subr.bf16.mxu0 %v15134_v28  ;;  %v6996_v32 = vld [vmem:[#allocation14 + $0xe28] sm:$0xff]  ;;  %v15086_v37 = vcombine.high %v6740_v58, %v6748_v40  ;;  %v15085_v38 = vcombine.low %v6740_v58, %v6748_v40 }
0x1adb   :  { %10188 = vmatprep.subr.bf16.mxu1 %v15390_v56  ;;  %v7004_v15 = vld [vmem:[#allocation14 + $0xe68] sm:$0xff] }
0x1adc   :  { %v15342_v1 = vcombine.high %v6996_v32, %v7004_v15  ;;  %v6724_v13 = vld [vmem:[#allocation14 + $0x5a8] sm:$0xff]  ;;  %v15341_v36 = vcombine.low %v6996_v32, %v7004_v15 }
0x1add   :  { %10146 = vmatpush2.bf16.msra.mxu0 %v15133_v31  ;;  %v6732_v51 = vld [vmem:[#allocation14 + $0x5e8] sm:$0xff] }
0x1ade   :  { %10189 = vmatpush2.bf16.msra.mxu1 %v15389_v21  ;;  %10147 = vmatprep.subr.bf16.mxu0 %v15118_v2  ;;  %v6980_v28 = vld [vmem:[#allocation14 + $0xda8] sm:$0xff]  ;;  %v15070_v45 = vcombine.high %v6724_v13, %v6732_v51  ;;  %v15069_v22 = vcombine.low %v6724_v13, %v6732_v51 }
0x1adf   :  { %10190 = vmatprep.subr.bf16.mxu1 %v15374_v63  ;;  %v6988_v56 = vld [vmem:[#allocation14 + $0xde8] sm:$0xff] }
0x1ae0   :  { %v15326_v39 = vcombine.high %v6980_v28, %v6988_v56  ;;  %v6708_v31 = vld [vmem:[#allocation14 + $0x528] sm:$0xff]  ;;  %v15325_v26 = vcombine.low %v6980_v28, %v6988_v56 }
0x1ae1   :  { %10148 = vmatpush2.bf16.msra.mxu0 %v15117_v30  ;;  %v6716_v21 = vld [vmem:[#allocation14 + $0x568] sm:$0xff] }
0x1ae2   :  { %10191 = vmatpush2.bf16.msra.mxu1 %v15373_v19  ;;  %10149 = vmatprep.subr.bf16.mxu0 %v15102_v11  ;;  %v6964_v2 = vld [vmem:[#allocation14 + $0xd28] sm:$0xff]  ;;  %v15054_v25 = vcombine.high %v6708_v31, %v6716_v21  ;;  %v15053_v58 = vcombine.low %v6708_v31, %v6716_v21 }
0x1ae3   :  { %10192 = vmatprep.subr.bf16.mxu1 %v15358_v7  ;;  %v6972_v63 = vld [vmem:[#allocation14 + $0xd68] sm:$0xff] }
0x1ae4   :  { %v15310_v46 = vcombine.high %v6964_v2, %v6972_v63  ;;  %v6692_v30 = vld [vmem:[#allocation14 + $0x4a8] sm:$0xff]  ;;  %v15309_v40 = vcombine.low %v6964_v2, %v6972_v63 }
0x1ae5   :  { %10150 = vmatpush2.bf16.msra.mxu0 %v15101_v35  ;;  %v6700_v19 = vld [vmem:[#allocation14 + $0x4e8] sm:$0xff] }
0x1ae6   :  { %10193 = vmatpush2.bf16.msra.mxu1 %v15357_v43  ;;  %10151 = vmatprep.subr.bf16.mxu0 %v15086_v37  ;;  %v6948_v11 = vld [vmem:[#allocation14 + $0xca8] sm:$0xff]  ;;  %v15038_v32 = vcombine.high %v6692_v30, %v6700_v19  ;;  %v15037_v13 = vcombine.low %v6692_v30, %v6700_v19  ;;  %v6901_v30 = vld [vmem:[#allocation14 + $0xb30] sm:$0xff] }
0x1ae7   :  { %10194 = vmatprep.subr.bf16.mxu1 %v15342_v1  ;;  %v6956_v7 = vld [vmem:[#allocation14 + $0xce8] sm:$0xff]  ;;  %v6909_v19 = vld [vmem:[#allocation14 + $0xb70] sm:$0xff] }
0x1ae8   :  { %v15294_v15 = vcombine.high %v6948_v11, %v6956_v7  ;;  %v6676_v35 = vld [vmem:[#allocation14 + $0x428] sm:$0xff]  ;;  %v15293_v51 = vcombine.low %v6948_v11, %v6956_v7  ;;  %v19070_v11 = vpop.f32.mrf.mxu0 }
0x1ae9   :  { %10152 = vmatpush2.bf16.msra.mxu0 %v15085_v38  ;;  %v6684_v43 = vld [vmem:[#allocation14 + $0x468] sm:$0xff]  ;;  %v6661_v38 = vld [vmem:[#allocation14 + $0x3b0] sm:$0xff] }
0x1aea   :  { %10195 = vmatpush2.bf16.msra.mxu1 %v15341_v36  ;;  %10153 = vmatprep.subr.bf16.mxu0 %v15070_v45  ;;  %v6932_v37 = vld [vmem:[#allocation14 + $0xc28] sm:$0xff]  ;;  %v15022_v28 = vcombine.high %v6676_v35, %v6684_v43  ;;  %v6669_v36 = vld [vmem:[#allocation14 + $0x3f0] sm:$0xff]  ;;  %v15021_v31 = vcombine.low %v6676_v35, %v6684_v43  ;;  %v15248_v43 = vcombine.high %v6901_v30, %v6909_v19 }
0x1aeb   :  { %10196 = vmatprep.subr.bf16.mxu1 %v15326_v39  ;;  %v6940_v1 = vld [vmem:[#allocation14 + $0xc68] sm:$0xff]  ;;  %v6917_v45 = vld [vmem:[#allocation14 + $0xbb0] sm:$0xff]  ;;  %v15008_v2 = vcombine.high %v6661_v38, %v6669_v36 }
0x1aec   :  { %v15278_v56 = vcombine.high %v6932_v37, %v6940_v1  ;;  %v6925_v39 = vld [vmem:[#allocation14 + $0xbf0] sm:$0xff]  ;;  %v15277_v21 = vcombine.low %v6932_v37, %v6940_v1 }
0x1aed   :  { %10154 = vmatpush2.bf16.msra.mxu0 %v15069_v22  ;;  %v15264_v63 = vcombine.high %v6917_v45, %v6925_v39  ;;  %v6645_v22 = vld [vmem:[#allocation14 + $0x330] sm:$0xff]  ;;  %v15263_v7 = vcombine.low %v6917_v45, %v6925_v39 }
0x1aee   :  { %10197 = vmatpush2.bf16.msra.mxu1 %v15325_v26  ;;  %10155 = vmatprep.subr.bf16.mxu0 %v15054_v25  ;;  %v6653_v26 = vld [vmem:[#allocation14 + $0x370] sm:$0xff]  ;;  %v7078_v25 = vrot.slane %v19038_v41, %v18261_v53 }
0x1aef   :  { %10198 = vmatprep.subr.bf16.mxu1 %v15310_v46  ;;  %v15007_v46 = vcombine.low %v6661_v38, %v6669_v36  ;;  %v6885_v37 = vld [vmem:[#allocation14 + $0xab0] sm:$0xff] }
0x1af0   :  { %v6893_v41 = vld [vmem:[#allocation14 + $0xaf0] sm:$0xff] }
0x1af1   :  { %10156 = vmatpush2.bf16.msra.mxu0 %v15053_v58  ;;  %v19072_v58 = vpop.f32.mrf.mxu1  ;;  %v15232_v39 = vcombine.high %v6885_v37, %v6893_v41 }
0x1af2   :  { %10199 = vmatpush2.bf16.msra.mxu1 %v15309_v40  ;;  %10157 = vmatprep.subr.bf16.mxu0 %v15038_v32  ;;  %v14992_v40 = vcombine.high %v6645_v22, %v6653_v26  ;;  %v6629_v32 = vld [vmem:[#allocation14 + $0x2b0] sm:$0xff] }
0x1af3   :  { %10200 = vmatprep.subr.bf16.mxu1 %v15294_v15  ;;  %v6637_v15 = vld [vmem:[#allocation14 + $0x2f0] sm:$0xff] }
0x1af4   :  { %v14976_v38 = vcombine.high %v6629_v32, %v6637_v15 }
0x1af5   :  { %10158 = vmatpush2.bf16.msra.mxu0 %v15037_v13 }
0x1af6   :  { %10201 = vmatpush2.bf16.msra.mxu1 %v15293_v51  ;;  %10159 = vmatprep.subr.bf16.mxu0 %v15022_v28  ;;  %v14991_v51 = vcombine.low %v6645_v22, %v6653_v26  ;;  %v6877_v22 = vld [vmem:[#allocation14 + $0xa70] sm:$0xff] }
0x1af7   :  { %10202 = vmatprep.subr.bf16.mxu1 %v15278_v56  ;;  %v15247_v56 = vcombine.low %v6901_v30, %v6909_v19  ;;  %v15231_v30 = vcombine.low %v6885_v37, %v6893_v41  ;;  %v15200_v37 = vcombine.high %v6853_v14, %v6861_v34  ;;  %v6581_v41 = vld [vmem:[#allocation14 + $0x130] sm:$0xff] }
0x1af9   :  { %10160 = vmatpush2.bf16.msra.mxu0 %v15021_v31  ;;  %v6613_v31 = vld [vmem:[#allocation14 + $0x230] sm:$0xff] }
0x1afa   :  { %10203 = vmatpush2.bf16.msra.mxu1 %v15277_v21  ;;  %10215 = vmatprep.subr.bf16.mxu0 %v15008_v2  ;;  %v6621_v21 = vld [vmem:[#allocation14 + $0x270] sm:$0xff] }
0x1afb   :  { %10258 = vmatprep.subr.bf16.mxu1 %v15264_v63  ;;  %v6869_v63 = vld [vmem:[#allocation14 + $0xa30] sm:$0xff]  ;;  %v14960_v19 = vcombine.high %v6613_v31, %v6621_v21 }
0x1afc   :  { %v9905_v35 = vpop.f32.mrf.mxu0  ;;  %10162 = vmatmul.mubr.bf16.vlgmr.msra.gmra.mxu0 %v19012_v57 }
0x1afd   :  { %v9906_v1 = vadd.f32 %v9905_v35, %v7078_v25  ;;  %v9948_v13 = vpop.f32.mrf.mxu1  ;;  %10205 = vmatmul.mubr.bf16.vlgmr.msra.gmra.mxu1 %v19016_v17  ;;  %10216 = vmatpush1.bf16.msra.mxu0 %v15007_v46  ;;  %v14975_v46 = vcombine.low %v6629_v32, %v6637_v15 }
0x1afe   :  { %10247 = vmatprep.mubr.bf16.mxu0 %v19004_v62  ;;  %10259 = vmatpush1.bf16.msra.mxu1 %v15263_v7  ;;  %v19077_v28 = vpop.f32.mrf.mxu0 }
0x1aff   :  { %v9949_v36 = vadd.f32 %v9948_v13, %v9906_v1  ;;  %10290 = vmatprep.mubr.bf16.mxu1 %v19008_v18  ;;  %v19080_v45 = vpop.f32.mrf.mxu1  ;;  %10217 = vmatprep.subr.bf16.mxu0 %v14992_v40  ;;  %v15216_v1 = vcombine.high %v6869_v63, %v6877_v22  ;;  %v6597_v13 = vld [vmem:[#allocation14 + $0x1b0] sm:$0xff] }
0x1b00   :  { %v9909_v2 = vpop.f32.mrf.mxu0  ;;  %10260 = vmatprep.subr.bf16.mxu1 %v15248_v43  ;;  %v6605_v40 = vld [vmem:[#allocation14 + $0x1f0] sm:$0xff]  ;;  %v14959_v43 = vcombine.low %v6613_v31, %v6621_v21 }
0x1b01   :  { %v9910_v26 = vadd.f32 %v9909_v2, %v7078_v25  ;;  %10218 = vmatpush1.bf16.msra.mxu0 %v14991_v51  ;;  %v9952_v7 = vpop.f32.mrf.mxu1  ;;  %v10391_v0 = vmax.f32 %v9949_v36, 0.0  ;;  %v15215_v25 = vcombine.low %v6869_v63, %v6877_v22  ;;  %v14944_v32 = vcombine.high %v6597_v13, %v6605_v40  ;;  %v6589_v51 = vld [vmem:[#allocation14 + $0x170] sm:$0xff] }
0x1b02   :  { %10261 = vmatpush1.bf16.msra.mxu1 %v15247_v56  ;;  %10219 = vmatprep.subr.bf16.mxu0 %v14976_v38  ;;  %v6837_v56 = vld [vmem:[#allocation14 + $0x930] sm:$0xff]  ;;  %v15199_v36 = vcombine.low %v6853_v14, %v6861_v34  ;;  %v14928_v2 = vcombine.high %v6581_v41, %v6589_v51 }
0x1b03   :  { %v9953_v35 = vadd.f32 %v9952_v7, %v9910_v26  ;;  %10262 = vmatprep.subr.bf16.mxu1 %v15232_v39  ;;  %v6845_v38 = vld [vmem:[#allocation14 + $0x970] sm:$0xff]  ;;  %v14943_v39 = vcombine.low %v6597_v13, %v6605_v40 }
0x1b04   :  { %v15184_v31 = vcombine.high %v6837_v56, %v6845_v38  ;;  %v6565_v21 = vld [vmem:[#allocation14 + $0xb0] sm:$0xff] }
0x1b05   :  { %v10407_v3 = vmax.f32 %v9953_v35, 0.0  ;;  %10220 = vmatpush1.bf16.msra.mxu0 %v14975_v46  ;;  %v6573_v26 = vld [vmem:[#allocation14 + $0xf0] sm:$0xff] }
0x1b06   :  { %10263 = vmatpush1.bf16.msra.mxu1 %v15231_v30  ;;  %10221 = vmatprep.subr.bf16.mxu0 %v14960_v19  ;;  %v6821_v63 = vld [vmem:[#allocation14 + $0x8b0] sm:$0xff]  ;;  %v14912_v46 = vcombine.high %v6565_v21, %v6573_v26  ;;  %v14911_v34 = vcombine.low %v6565_v21, %v6573_v26 }
0x1b07   :  { %v19082_v15 = vpack.c.bf16 %v10407_v3, %v10391_v0  ;;  %10264 = vmatprep.subr.bf16.mxu1 %v15216_v1  ;;  %v6829_v22 = vld [vmem:[#allocation14 + $0x8f0] sm:$0xff]  ;;  %v14927_v3 = vcombine.low %v6581_v41, %v6589_v51  ;;  %v15183_v0 = vcombine.low %v6837_v56, %v6845_v38 }
0x1b08   :  { %v15168_v7 = vcombine.high %v6821_v63, %v6829_v22  ;;  %v6549_v30 = vld [vmem:[#allocation14 + $0x30] sm:$0xff]  ;;  %v15167_v14 = vcombine.low %v6821_v63, %v6829_v22 }
0x1b09   :  { %10222 = vmatpush1.bf16.msra.mxu0 %v14959_v43  ;;  %v6557_v19 = vld [vmem:[#allocation14 + $0x70] sm:$0xff] }
0x1b0a   :  { %10265 = vmatpush1.bf16.msra.mxu1 %v15215_v25  ;;  %10223 = vmatprep.subr.bf16.mxu0 %v14944_v32  ;;  %v6805_v35 = vld [vmem:[#allocation14 + $0x830] sm:$0xff]  ;;  %v14896_v13 = vcombine.high %v6549_v30, %v6557_v19  ;;  %v14895_v41 = vcombine.low %v6549_v30, %v6557_v19 }
0x1b0b   :  { %10266 = vmatprep.subr.bf16.mxu1 %v15200_v37  ;;  %v6813_v1 = vld [vmem:[#allocation14 + $0x870] sm:$0xff] }
0x1b0c   :  { %v15152_v40 = vcombine.high %v6805_v35, %v6813_v1  ;;  %v6789_v43 = vld [vmem:[#allocation14 + $0x7b0] sm:$0xff]  ;;  %v15151_v51 = vcombine.low %v6805_v35, %v6813_v1 }
0x1b0d   :  { %10224 = vmatpush1.bf16.msra.mxu0 %v14943_v39  ;;  %v6797_v25 = vld [vmem:[#allocation14 + $0x7f0] sm:$0xff] }
0x1b0e   :  { %10267 = vmatpush1.bf16.msra.mxu1 %v15199_v36  ;;  %10225 = vmatprep.subr.bf16.mxu0 %v14928_v2  ;;  %v7045_v32 = vld [vmem:[#allocation14 + $0xfb0] sm:$0xff]  ;;  %v15136_v56 = vcombine.high %v6789_v43, %v6797_v25  ;;  %v15135_v21 = vcombine.low %v6789_v43, %v6797_v25 }
0x1b0f   :  { %10268 = vmatprep.subr.bf16.mxu1 %v15184_v31  ;;  %v7053_v37 = vld [vmem:[#allocation14 + $0xff0] sm:$0xff] }
0x1b10   :  { %v15392_v38 = vcombine.high %v7045_v32, %v7053_v37  ;;  %v6773_v39 = vld [vmem:[#allocation14 + $0x730] sm:$0xff]  ;;  %v15391_v26 = vcombine.low %v7045_v32, %v7053_v37 }
0x1b11   :  { %10226 = vmatpush1.bf16.msra.mxu0 %v14927_v3  ;;  %v6781_v36 = vld [vmem:[#allocation14 + $0x770] sm:$0xff] }
0x1b12   :  { %10269 = vmatpush1.bf16.msra.mxu1 %v15183_v0  ;;  %10227 = vmatprep.subr.bf16.mxu0 %v14912_v46  ;;  %v7029_v2 = vld [vmem:[#allocation14 + $0xf30] sm:$0xff]  ;;  %v15120_v63 = vcombine.high %v6773_v39, %v6781_v36  ;;  %v15119_v30 = vcombine.low %v6773_v39, %v6781_v36 }
0x1b13   :  { %10270 = vmatprep.subr.bf16.mxu1 %v15168_v7  ;;  %v7037_v31 = vld [vmem:[#allocation14 + $0xf70] sm:$0xff] }
0x1b14   :  { %v15376_v22 = vcombine.high %v7029_v2, %v7037_v31  ;;  %v6757_v3 = vld [vmem:[#allocation14 + $0x6b0] sm:$0xff]  ;;  %v15375_v19 = vcombine.low %v7029_v2, %v7037_v31 }
0x1b15   :  { %10228 = vmatpush1.bf16.msra.mxu0 %v14911_v34  ;;  %v6765_v0 = vld [vmem:[#allocation14 + $0x6f0] sm:$0xff] }
0x1b16   :  { %10271 = vmatpush1.bf16.msra.mxu1 %v15167_v14  ;;  %10229 = vmatprep.subr.bf16.mxu0 %v14896_v13  ;;  %v7013_v46 = vld [vmem:[#allocation14 + $0xeb0] sm:$0xff]  ;;  %v15104_v35 = vcombine.high %v6757_v3, %v6765_v0  ;;  %v15103_v43 = vcombine.low %v6757_v3, %v6765_v0 }
0x1b17   :  { %10272 = vmatprep.subr.bf16.mxu1 %v15152_v40  ;;  %v7021_v7 = vld [vmem:[#allocation14 + $0xef0] sm:$0xff] }
0x1b18   :  { %v15360_v1 = vcombine.high %v7013_v46, %v7021_v7  ;;  %v6741_v34 = vld [vmem:[#allocation14 + $0x630] sm:$0xff]  ;;  %v15359_v25 = vcombine.low %v7013_v46, %v7021_v7 }
0x1b19   :  { %10230 = vmatpush1.bf16.msra.mxu0 %v14895_v41  ;;  %v6749_v14 = vld [vmem:[#allocation14 + $0x670] sm:$0xff] }
0x1b1a   :  { %10273 = vmatpush1.bf16.msra.mxu1 %v15151_v51  ;;  %10231 = vmatprep.subr.bf16.mxu0 %v15136_v56  ;;  %v6997_v13 = vld [vmem:[#allocation14 + $0xe30] sm:$0xff]  ;;  %v15088_v32 = vcombine.high %v6741_v34, %v6749_v14  ;;  %v15087_v39 = vcombine.low %v6741_v34, %v6749_v14 }
0x1b1b   :  { %10274 = vmatprep.subr.bf16.mxu1 %v15392_v38  ;;  %v7005_v40 = vld [vmem:[#allocation14 + $0xe70] sm:$0xff] }
0x1b1c   :  { %v15344_v37 = vcombine.high %v6997_v13, %v7005_v40  ;;  %v6725_v41 = vld [vmem:[#allocation14 + $0x5b0] sm:$0xff]  ;;  %v15343_v36 = vcombine.low %v6997_v13, %v7005_v40 }
0x1b1d   :  { %10232 = vmatpush2.bf16.msra.mxu0 %v15135_v21  ;;  %v6733_v51 = vld [vmem:[#allocation14 + $0x5f0] sm:$0xff] }
0x1b1e   :  { %10275 = vmatpush2.bf16.msra.mxu1 %v15391_v26  ;;  %10233 = vmatprep.subr.bf16.mxu0 %v15120_v63  ;;  %v6981_v56 = vld [vmem:[#allocation14 + $0xdb0] sm:$0xff]  ;;  %v15072_v2 = vcombine.high %v6725_v41, %v6733_v51  ;;  %v15071_v3 = vcombine.low %v6725_v41, %v6733_v51 }
0x1b1f   :  { %10276 = vmatprep.subr.bf16.mxu1 %v15376_v22  ;;  %v6989_v38 = vld [vmem:[#allocation14 + $0xdf0] sm:$0xff] }
0x1b20   :  { %v15328_v31 = vcombine.high %v6981_v56, %v6989_v38  ;;  %v6709_v21 = vld [vmem:[#allocation14 + $0x530] sm:$0xff]  ;;  %v15327_v0 = vcombine.low %v6981_v56, %v6989_v38 }
0x1b21   :  { %10234 = vmatpush2.bf16.msra.mxu0 %v15119_v30  ;;  %v6717_v26 = vld [vmem:[#allocation14 + $0x570] sm:$0xff] }
0x1b22   :  { %10277 = vmatpush2.bf16.msra.mxu1 %v15375_v19  ;;  %10235 = vmatprep.subr.bf16.mxu0 %v15104_v35  ;;  %v6965_v63 = vld [vmem:[#allocation14 + $0xd30] sm:$0xff]  ;;  %v15056_v46 = vcombine.high %v6709_v21, %v6717_v26  ;;  %v15055_v34 = vcombine.low %v6709_v21, %v6717_v26 }
0x1b23   :  { %10278 = vmatprep.subr.bf16.mxu1 %v15360_v1  ;;  %v6973_v22 = vld [vmem:[#allocation14 + $0xd70] sm:$0xff] }
0x1b24   :  { %v15312_v7 = vcombine.high %v6965_v63, %v6973_v22  ;;  %v6693_v30 = vld [vmem:[#allocation14 + $0x4b0] sm:$0xff]  ;;  %v15311_v14 = vcombine.low %v6965_v63, %v6973_v22 }
0x1b25   :  { %10236 = vmatpush2.bf16.msra.mxu0 %v15103_v43  ;;  %v6701_v19 = vld [vmem:[#allocation14 + $0x4f0] sm:$0xff] }
0x1b26   :  { %10279 = vmatpush2.bf16.msra.mxu1 %v15359_v25  ;;  %10237 = vmatprep.subr.bf16.mxu0 %v15088_v32  ;;  %v6949_v35 = vld [vmem:[#allocation14 + $0xcb0] sm:$0xff]  ;;  %v15040_v13 = vcombine.high %v6693_v30, %v6701_v19  ;;  %v15039_v41 = vcombine.low %v6693_v30, %v6701_v19  ;;  %v6902_v19 = vld [vmem:[#allocation14 + $0xb38] sm:$0xff] }
0x1b27   :  { %10280 = vmatprep.subr.bf16.mxu1 %v15344_v37  ;;  %v6957_v1 = vld [vmem:[#allocation14 + $0xcf0] sm:$0xff] }
0x1b28   :  { %v15296_v40 = vcombine.high %v6949_v35, %v6957_v1  ;;  %v6677_v43 = vld [vmem:[#allocation14 + $0x430] sm:$0xff]  ;;  %v15295_v51 = vcombine.low %v6949_v35, %v6957_v1  ;;  %v6910_v35 = vld [vmem:[#allocation14 + $0xb78] sm:$0xff]  ;;  %v19088_v1 = vpop.f32.mrf.mxu0 }
0x1b29   :  { %10238 = vmatpush2.bf16.msra.mxu0 %v15087_v39  ;;  %v6685_v25 = vld [vmem:[#allocation14 + $0x470] sm:$0xff]  ;;  %v6662_v39 = vld [vmem:[#allocation14 + $0x3b8] sm:$0xff] }
0x1b2a   :  { %10281 = vmatpush2.bf16.msra.mxu1 %v15343_v36  ;;  %10239 = vmatprep.subr.bf16.mxu0 %v15072_v2  ;;  %v6933_v32 = vld [vmem:[#allocation14 + $0xc30] sm:$0xff]  ;;  %v15024_v56 = vcombine.high %v6677_v43, %v6685_v25  ;;  %v6670_v36 = vld [vmem:[#allocation14 + $0x3f8] sm:$0xff]  ;;  %v15023_v21 = vcombine.low %v6677_v43, %v6685_v25 }
0x1b2b   :  { %10282 = vmatprep.subr.bf16.mxu1 %v15328_v31  ;;  %v6941_v37 = vld [vmem:[#allocation14 + $0xc70] sm:$0xff]  ;;  %v6918_v2 = vld [vmem:[#allocation14 + $0xbb8] sm:$0xff]  ;;  %v15010_v63 = vcombine.high %v6662_v39, %v6670_v36  ;;  %v15009_v30 = vcombine.low %v6662_v39, %v6670_v36  ;;  %v15249_v36 = vcombine.low %v6902_v19, %v6910_v35 }
0x1b2c   :  { %v15280_v38 = vcombine.high %v6933_v32, %v6941_v37  ;;  %v6926_v31 = vld [vmem:[#allocation14 + $0xbf8] sm:$0xff]  ;;  %v15279_v26 = vcombine.low %v6933_v32, %v6941_v37  ;;  %v15250_v32 = vcombine.high %v6902_v19, %v6910_v35 }
0x1b2d   :  { %10240 = vmatpush2.bf16.msra.mxu0 %v15071_v3  ;;  %v15266_v22 = vcombine.high %v6918_v2, %v6926_v31  ;;  %v6646_v3 = vld [vmem:[#allocation14 + $0x338] sm:$0xff] }
0x1b2e   :  { %10283 = vmatpush2.bf16.msra.mxu1 %v15327_v0  ;;  %10241 = vmatprep.subr.bf16.mxu0 %v15056_v46  ;;  %v6654_v0 = vld [vmem:[#allocation14 + $0x378] sm:$0xff]  ;;  %v19084_v46 = vld [vmem:[#allocation16] sm:$0xff] }
0x1b2f   :  { %10284 = vmatprep.subr.bf16.mxu1 %v15312_v7  ;;  %v7086_v7 = vrot.slane %v19084_v46, %v18314_v49  ;;  %v6638_v43 = vld [vmem:[#allocation14 + $0x2f8] sm:$0xff] }
0x1b30   :  { %v6886_v37 = vld [vmem:[#allocation14 + $0xab8] sm:$0xff] }
0x1b31   :  { %10242 = vmatpush2.bf16.msra.mxu0 %v15055_v34  ;;  %v15265_v34 = vcombine.low %v6918_v2, %v6926_v31 }
0x1b32   :  { %10285 = vmatpush2.bf16.msra.mxu1 %v15311_v14  ;;  %10243 = vmatprep.subr.bf16.mxu0 %v15040_v13  ;;  %v19090_v14 = vpop.f32.mrf.mxu1  ;;  %v14994_v13 = vcombine.high %v6646_v3, %v6654_v0 }
0x1b33   :  { %10286 = vmatprep.subr.bf16.mxu1 %v15296_v40  ;;  %v6630_v40 = vld [vmem:[#allocation14 + $0x2b8] sm:$0xff] }
0x1b34   :  { %v14978_v2 = vcombine.high %v6630_v40, %v6638_v43 }
0x1b35   :  { %10244 = vmatpush2.bf16.msra.mxu0 %v15039_v41  ;;  %v6894_v41 = vld [vmem:[#allocation14 + $0xaf8] sm:$0xff] }
0x1b36   :  { %10287 = vmatpush2.bf16.msra.mxu1 %v15295_v51  ;;  %10245 = vmatprep.subr.bf16.mxu0 %v15024_v56  ;;  %v15233_v19 = vcombine.low %v6886_v37, %v6894_v41 }
0x1b37   :  { %10288 = vmatprep.subr.bf16.mxu1 %v15280_v38  ;;  %v14993_v38 = vcombine.low %v6646_v3, %v6654_v0  ;;  %v6878_v3 = vld [vmem:[#allocation14 + $0xa78] sm:$0xff] }
0x1b39   :  { %10246 = vmatpush2.bf16.msra.mxu0 %v15023_v21 }
0x1b3a   :  { %10289 = vmatpush2.bf16.msra.mxu1 %v15279_v26  ;;  %10301 = vmatprep.subr.bf16.mxu0 %v15010_v63  ;;  %v15234_v26 = vcombine.high %v6886_v37, %v6894_v41  ;;  %v6614_v63 = vld [vmem:[#allocation14 + $0x238] sm:$0xff]  ;;  %v15202_v37 = vcombine.high %v6854_v12, %v6862_v23 }
0x1b3b   :  { %10344 = vmatprep.subr.bf16.mxu1 %v15266_v22  ;;  %v6622_v22 = vld [vmem:[#allocation14 + $0x278] sm:$0xff] }
0x1b3c   :  { %v9991_v25 = vpop.f32.mrf.mxu0  ;;  %10248 = vmatmul.mubr.bf16.vlgmr.msra.gmra.mxu0 %v19012_v57  ;;  %v14962_v35 = vcombine.high %v6614_v63, %v6622_v22  ;;  %v6582_v41 = vld [vmem:[#allocation14 + $0x138] sm:$0xff] }
0x1b3d   :  { %v9992_v51 = vadd.f32 %v9991_v25, %v7086_v7  ;;  %v10034_v56 = vpop.f32.mrf.mxu1  ;;  %10291 = vmatmul.mubr.bf16.vlgmr.msra.gmra.mxu1 %v19016_v17  ;;  %10302 = vmatpush1.bf16.msra.mxu0 %v15009_v30  ;;  %v6870_v30 = vld [vmem:[#allocation14 + $0xa38] sm:$0xff] }
0x1b3e   :  { %10333 = vmatprep.mubr.bf16.mxu0 %v19004_v62  ;;  %10345 = vmatpush1.bf16.msra.mxu1 %v15265_v34  ;;  %v19095_v39 = vpop.f32.mrf.mxu0  ;;  %v14977_v62 = vcombine.low %v6630_v40, %v6638_v43 }
0x1b3f   :  { %v10035_v31 = vadd.f32 %v10034_v56, %v9992_v51  ;;  %10376 = vmatprep.mubr.bf16.mxu1 %v19008_v18  ;;  %v19098_v21 = vpop.f32.mrf.mxu1  ;;  %10303 = vmatprep.subr.bf16.mxu0 %v14994_v13  ;;  %v15218_v18 = vcombine.high %v6870_v30, %v6878_v3  ;;  %v6598_v56 = vld [vmem:[#allocation14 + $0x1b8] sm:$0xff] }
0x1b40   :  { %v9995_v25 = vpop.f32.mrf.mxu0  ;;  %10346 = vmatprep.subr.bf16.mxu1 %v15250_v32  ;;  %v6606_v13 = vld [vmem:[#allocation14 + $0x1f8] sm:$0xff]  ;;  %v14961_v32 = vcombine.low %v6614_v63, %v6622_v22 }
0x1b41   :  { %v9996_v0 = vadd.f32 %v9995_v25, %v7086_v7  ;;  %10304 = vmatpush1.bf16.msra.mxu0 %v14993_v38  ;;  %v10038_v34 = vpop.f32.mrf.mxu1  ;;  %v10393_v61 = vmax.f32 %v10035_v31, 0.0  ;;  %v15217_v7 = vcombine.low %v6870_v30, %v6878_v3  ;;  %v14946_v40 = vcombine.high %v6598_v56, %v6606_v13  ;;  %v6590_v38 = vld [vmem:[#allocation14 + $0x178] sm:$0xff] }
0x1b42   :  { %10347 = vmatpush1.bf16.msra.mxu1 %v15249_v36  ;;  %10305 = vmatprep.subr.bf16.mxu0 %v14978_v2  ;;  %v6838_v36 = vld [vmem:[#allocation14 + $0x938] sm:$0xff]  ;;  %v15201_v31 = vcombine.low %v6854_v12, %v6862_v23  ;;  %v14930_v25 = vcombine.high %v6582_v41, %v6590_v38 }
0x1b43   :  { %v10039_v51 = vadd.f32 %v10038_v34, %v9996_v0  ;;  %10348 = vmatprep.subr.bf16.mxu1 %v15234_v26  ;;  %v6846_v2 = vld [vmem:[#allocation14 + $0x978] sm:$0xff]  ;;  %v14945_v26 = vcombine.low %v6598_v56, %v6606_v13 }
0x1b44   :  { %v15186_v63 = vcombine.high %v6838_v36, %v6846_v2  ;;  %v6566_v22 = vld [vmem:[#allocation14 + $0xb8] sm:$0xff] }
0x1b45   :  { %v10409_v27 = vmax.f32 %v10039_v51, 0.0  ;;  %10306 = vmatpush1.bf16.msra.mxu0 %v14977_v62  ;;  %v6574_v0 = vld [vmem:[#allocation14 + $0xf8] sm:$0xff] }
0x1b46   :  { %10349 = vmatpush1.bf16.msra.mxu1 %v15233_v19  ;;  %10307 = vmatprep.subr.bf16.mxu0 %v14962_v35  ;;  %v6822_v30 = vld [vmem:[#allocation14 + $0x8b8] sm:$0xff]  ;;  %v14914_v62 = vcombine.high %v6566_v22, %v6574_v0  ;;  %v14913_v23 = vcombine.low %v6566_v22, %v6574_v0 }
0x1b47   :  { %v19100_v43 = vpack.c.bf16 %v10409_v27, %v10393_v61  ;;  %10350 = vmatprep.subr.bf16.mxu1 %v15218_v18  ;;  %v6830_v3 = vld [vmem:[#allocation14 + $0x8f8] sm:$0xff]  ;;  %v14929_v61 = vcombine.low %v6582_v41, %v6590_v38  ;;  %v15185_v27 = vcombine.low %v6838_v36, %v6846_v2 }
0x1b48   :  { %v15170_v34 = vcombine.high %v6822_v30, %v6830_v3  ;;  %v6550_v19 = vld [vmem:[#allocation14 + $0x38] sm:$0xff]  ;;  %v15169_v12 = vcombine.low %v6822_v30, %v6830_v3 }
0x1b49   :  { %10308 = vmatpush1.bf16.msra.mxu0 %v14961_v32  ;;  %v6558_v35 = vld [vmem:[#allocation14 + $0x78] sm:$0xff] }
0x1b4a   :  { %10351 = vmatpush1.bf16.msra.mxu1 %v15217_v7  ;;  %10309 = vmatprep.subr.bf16.mxu0 %v14946_v40  ;;  %v6806_v51 = vld [vmem:[#allocation14 + $0x838] sm:$0xff]  ;;  %v14898_v56 = vcombine.high %v6550_v19, %v6558_v35  ;;  %v14897_v41 = vcombine.low %v6550_v19, %v6558_v35 }
0x1b4b   :  { %10352 = vmatprep.subr.bf16.mxu1 %v15202_v37  ;;  %v6814_v18 = vld [vmem:[#allocation14 + $0x878] sm:$0xff] }
0x1b4c   :  { %v15154_v13 = vcombine.high %v6806_v51, %v6814_v18  ;;  %v6790_v32 = vld [vmem:[#allocation14 + $0x7b8] sm:$0xff]  ;;  %v15153_v38 = vcombine.low %v6806_v51, %v6814_v18 }
0x1b4d   :  { %10310 = vmatpush1.bf16.msra.mxu0 %v14945_v26  ;;  %v6798_v7 = vld [vmem:[#allocation14 + $0x7f8] sm:$0xff] }
0x1b4e   :  { %10353 = vmatpush1.bf16.msra.mxu1 %v15201_v31  ;;  %10311 = vmatprep.subr.bf16.mxu0 %v14930_v25  ;;  %v7046_v40 = vld [vmem:[#allocation14 + $0xfb8] sm:$0xff]  ;;  %v15138_v36 = vcombine.high %v6790_v32, %v6798_v7  ;;  %v15137_v22 = vcombine.low %v6790_v32, %v6798_v7 }
0x1b4f   :  { %10354 = vmatprep.subr.bf16.mxu1 %v15186_v63  ;;  %v7054_v37 = vld [vmem:[#allocation14 + $0xff8] sm:$0xff] }
0x1b50   :  { %v15394_v2 = vcombine.high %v7046_v40, %v7054_v37  ;;  %v6774_v26 = vld [vmem:[#allocation14 + $0x738] sm:$0xff]  ;;  %v15393_v0 = vcombine.low %v7046_v40, %v7054_v37 }
0x1b51   :  { %10312 = vmatpush1.bf16.msra.mxu0 %v14929_v61  ;;  %v6782_v31 = vld [vmem:[#allocation14 + $0x778] sm:$0xff] }
0x1b52   :  { %10355 = vmatpush1.bf16.msra.mxu1 %v15185_v27  ;;  %10313 = vmatprep.subr.bf16.mxu0 %v14914_v62  ;;  %v7030_v25 = vld [vmem:[#allocation14 + $0xf38] sm:$0xff]  ;;  %v15122_v30 = vcombine.high %v6774_v26, %v6782_v31  ;;  %v15121_v19 = vcombine.low %v6774_v26, %v6782_v31 }
0x1b53   :  { %10356 = vmatprep.subr.bf16.mxu1 %v15170_v34  ;;  %v7038_v63 = vld [vmem:[#allocation14 + $0xf78] sm:$0xff] }
0x1b54   :  { %v15378_v3 = vcombine.high %v7030_v25, %v7038_v63  ;;  %v6758_v61 = vld [vmem:[#allocation14 + $0x6b8] sm:$0xff]  ;;  %v15377_v35 = vcombine.low %v7030_v25, %v7038_v63 }
0x1b55   :  { %10314 = vmatpush1.bf16.msra.mxu0 %v14913_v23  ;;  %v6766_v27 = vld [vmem:[#allocation14 + $0x6f8] sm:$0xff] }
0x1b56   :  { %10357 = vmatpush1.bf16.msra.mxu1 %v15169_v12  ;;  %10315 = vmatprep.subr.bf16.mxu0 %v14898_v56  ;;  %v7014_v62 = vld [vmem:[#allocation14 + $0xeb8] sm:$0xff]  ;;  %v15106_v51 = vcombine.high %v6758_v61, %v6766_v27  ;;  %v15105_v32 = vcombine.low %v6758_v61, %v6766_v27 }
0x1b57   :  { %10358 = vmatprep.subr.bf16.mxu1 %v15154_v13  ;;  %v7022_v34 = vld [vmem:[#allocation14 + $0xef8] sm:$0xff] }
0x1b58   :  { %v15362_v18 = vcombine.high %v7014_v62, %v7022_v34  ;;  %v6742_v23 = vld [vmem:[#allocation14 + $0x638] sm:$0xff]  ;;  %v15361_v7 = vcombine.low %v7014_v62, %v7022_v34 }
0x1b59   :  { %10316 = vmatpush1.bf16.msra.mxu0 %v14897_v41  ;;  %v6750_v12 = vld [vmem:[#allocation14 + $0x678] sm:$0xff] }
0x1b5a   :  { %10359 = vmatpush1.bf16.msra.mxu1 %v15153_v38  ;;  %10317 = vmatprep.subr.bf16.mxu0 %v15138_v36  ;;  %v6998_v56 = vld [vmem:[#allocation14 + $0xe38] sm:$0xff]  ;;  %v15090_v40 = vcombine.high %v6742_v23, %v6750_v12  ;;  %v15089_v26 = vcombine.low %v6742_v23, %v6750_v12  ;;  %v7066_v12 = vrot.slane %v19084_v46, %v18212_v29 }
0x1b5b   :  { %10360 = vmatprep.subr.bf16.mxu1 %v15394_v2  ;;  %v7006_v13 = vld [vmem:[#allocation14 + $0xe78] sm:$0xff] }
0x1b5c   :  { %v15346_v37 = vcombine.high %v6998_v56, %v7006_v13  ;;  %v6726_v41 = vld [vmem:[#allocation14 + $0x5b8] sm:$0xff]  ;;  %v15345_v31 = vcombine.low %v6998_v56, %v7006_v13 }
0x1b5d   :  { %10318 = vmatpush2.bf16.msra.mxu0 %v15137_v22  ;;  %v6734_v38 = vld [vmem:[#allocation14 + $0x5f8] sm:$0xff] }
0x1b5e   :  { %10361 = vmatpush2.bf16.msra.mxu1 %v15393_v0  ;;  %10319 = vmatprep.subr.bf16.mxu0 %v15122_v30  ;;  %v6982_v36 = vld [vmem:[#allocation14 + $0xdb8] sm:$0xff]  ;;  %v15074_v25 = vcombine.high %v6726_v41, %v6734_v38  ;;  %v15073_v61 = vcombine.low %v6726_v41, %v6734_v38  ;;  %v9740_v41 = vadd.f32 %v19054_v10, %v7066_v12 }
0x1b5f   :  { %10362 = vmatprep.subr.bf16.mxu1 %v15378_v3  ;;  %v6990_v2 = vld [vmem:[#allocation14 + $0xdf8] sm:$0xff] }
0x1b60   :  { %v15330_v63 = vcombine.high %v6982_v36, %v6990_v2  ;;  %v6710_v22 = vld [vmem:[#allocation14 + $0x538] sm:$0xff]  ;;  %v15329_v27 = vcombine.low %v6982_v36, %v6990_v2 }
0x1b61   :  { %10320 = vmatpush2.bf16.msra.mxu0 %v15121_v19  ;;  %v6718_v0 = vld [vmem:[#allocation14 + $0x578] sm:$0xff] }
0x1b62   :  { %10363 = vmatpush2.bf16.msra.mxu1 %v15377_v35  ;;  %10321 = vmatprep.subr.bf16.mxu0 %v15106_v51  ;;  %v6966_v30 = vld [vmem:[#allocation14 + $0xd38] sm:$0xff]  ;;  %v15058_v62 = vcombine.high %v6710_v22, %v6718_v0  ;;  %v15057_v23 = vcombine.low %v6710_v22, %v6718_v0 }
0x1b63   :  { %10364 = vmatprep.subr.bf16.mxu1 %v15362_v18  ;;  %v6974_v3 = vld [vmem:[#allocation14 + $0xd78] sm:$0xff] }
0x1b64   :  { %v15314_v34 = vcombine.high %v6966_v30, %v6974_v3  ;;  %v6694_v19 = vld [vmem:[#allocation14 + $0x4b8] sm:$0xff]  ;;  %v15313_v56 = vcombine.low %v6966_v30, %v6974_v3  ;;  %v9783_v30 = vadd.f32 %v19056_v20, %v9740_v41 }
0x1b65   :  { %10322 = vmatpush2.bf16.msra.mxu0 %v15105_v32  ;;  %v6702_v35 = vld [vmem:[#allocation14 + $0x4f8] sm:$0xff]  ;;  %v7074_v32 = vrot.slane %v19084_v46, %v18237_v52 }
0x1b66   :  { %10365 = vmatpush2.bf16.msra.mxu1 %v15361_v7  ;;  %10323 = vmatprep.subr.bf16.mxu0 %v15090_v40  ;;  %v6950_v51 = vld [vmem:[#allocation14 + $0xcb8] sm:$0xff]  ;;  %v15042_v13 = vcombine.high %v6694_v19, %v6702_v35 }
0x1b67   :  { %10366 = vmatprep.subr.bf16.mxu1 %v15346_v37  ;;  %v6958_v18 = vld [vmem:[#allocation14 + $0xcf8] sm:$0xff]  ;;  %v9826_v2 = vadd.f32 %v19070_v11, %v7074_v32  ;;  %v9822_v22 = vadd.f32 %v19061_v9, %v7074_v32  ;;  %v16959_v9 = vld [vmem:[#allocation17 + $0x2e4] ss:$16 sps:$4 sm:$0xff]  }
0x1b68   :  { %v15298_v7 = vcombine.high %v6950_v51, %v6958_v18  ;;  %v6678_v40 = vld [vmem:[#allocation14 + $0x438] sm:$0xff] }
0x1b69   :  { %10324 = vmatpush2.bf16.msra.mxu0 %v15089_v26  ;;  %v6686_v37 = vld [vmem:[#allocation14 + $0x478] sm:$0xff]  ;;  %v15041_v26 = vcombine.low %v6694_v19, %v6702_v35  ;;  %v9869_v10 = vadd.f32 %v19072_v58, %v9826_v2  ;;  %v16954_v58 = vld [vmem:[#allocation17 + $0xe0] ss:$16 sps:$4 sm:$0xff]  }
0x1b6a   :  { %10367 = vmatpush2.bf16.msra.mxu1 %v15345_v31  ;;  %10325 = vmatprep.subr.bf16.mxu0 %v15074_v25  ;;  %v6934_v38 = vld [vmem:[#allocation14 + $0xc38] sm:$0xff]  ;;  %v9736_v31 = vadd.f32 %v19045_v33, %v7066_v12  ;;  %v15297_v25 = vcombine.low %v6950_v51, %v6958_v18  ;;  %v15025_v3 = vcombine.low %v6678_v40, %v6686_v37  ;;  %v19113_v33 = vld [vmem:[#allocation16 + $0x8] sm:$0xff]  ;;  %v19118_v51 = vpop.f32.mrf.mxu0 }
0x1b6b   :  { %10368 = vmatprep.subr.bf16.mxu1 %v15330_v63  ;;  %v6942_v36 = vld [vmem:[#allocation14 + $0xc78] sm:$0xff]  ;;  %v15026_v63 = vcombine.high %v6678_v40, %v6686_v37  ;;  %v10406_v19 = vmax.f32 %v9869_v10, 0.0  ;;  %v7094_v20 = vrot.slane %v19113_v33, %v18267_v24  ;;  %v16960_v37 = vld [vmem:[#allocation17 + $0xc0] ss:$16 sps:$4 sm:$0xff]   ;;  %v16977_v10 = vld [vmem:[#allocation17 + $0x284] ss:$16 sps:$4 sm:$0xff]  }
0x1b6c   :  { %v15282_v0 = vcombine.high %v6934_v38, %v6942_v36  ;;  %v9779_v11 = vadd.f32 %v19047_v59, %v9736_v31  ;;  %v16957_v59 = vld [vmem:[#allocation17 + $0x2e0] ss:$16 sps:$4 sm:$0xff]  }
0x1b6d   :  { %10326 = vmatpush2.bf16.msra.mxu0 %v15073_v61  ;;  %v15281_v61 = vcombine.low %v6934_v38, %v6942_v36  ;;  %v16963_v38 = vld [vmem:[#allocation17 + $0x2c0] ss:$16 sps:$4 sm:$0xff]   ;;  %v16968_v36 = vld [vmem:[#allocation17 + $0xa4] ss:$16 sps:$4 sm:$0xff]  }
0x1b6e   :  { %10369 = vmatpush2.bf16.msra.mxu1 %v15329_v27  ;;  %10327 = vmatprep.subr.bf16.mxu0 %v15058_v62  ;;  %v16956_v27 = vld [vmem:[#allocation17 + $0xe4] ss:$16 sps:$4 sm:$0xff]   ;;  %v9865_v62 = vadd.f32 %v19063_v44, %v9822_v22  ;;  %v10388_v35 = vmax.f32 %v9779_v11, 0.0  ;;  %v16969_v22 = vld [vmem:[#allocation17 + $0x2a0] ss:$16 sps:$4 sm:$0xff]  }
0x1b6f   :  { %10370 = vmatprep.subr.bf16.mxu1 %v15314_v34  ;;  %v10404_v34 = vmax.f32 %v9783_v30, 0.0  ;;  %v16962_v44 = vld [vmem:[#allocation17 + $0xc4] ss:$16 sps:$4 sm:$0xff]  }
0x1b70   :  { %v10390_v18 = vmax.f32 %v9865_v62, 0.0  ;;  %v16980_v62 = vld [vmem:[#allocation17 + $0x64] ss:$16 sps:$4 sm:$0xff]  }
0x1b71   :  { %10328 = vmatpush2.bf16.msra.mxu0 %v15057_v23  ;;  %v19120_v23 = vpop.f32.mrf.mxu1  ;;  %v19122_v12 = vpack.c.bf16 %v10404_v34, %v10388_v35  ;;  %v16983_v34 = vld [vmem:[#allocation17 + $0x264] ss:$16 sps:$4 sm:$0xff]  }
0x1b72   :  { %10371 = vmatpush2.bf16.msra.mxu1 %v15313_v56  ;;  %10329 = vmatprep.subr.bf16.mxu0 %v15042_v13  ;;  %v16965_v13 = vld [vmem:[#allocation17 + $0x2c4] ss:$16 sps:$4 sm:$0xff]   ;;  %v19125_v32 = vpack.c.bf16 %v10406_v19, %v10390_v18  ;;  %v16978_v19 = vld [vmem:[#allocation17 + $0x60] ss:$16 sps:$4 sm:$0xff]  }
0x1b73   :  { %10372 = vmatprep.subr.bf16.mxu1 %v15298_v7  ;;  %v16989_v35 = vld [vmem:[#allocation17 + $0x244] ss:$16 sps:$4 sm:$0xff]   ;;  %v16987_v18 = vld [vmem:[#allocation17 + $0x240] ss:$16 sps:$4 sm:$0xff]  }
0x1b75   :  { %10330 = vmatpush2.bf16.msra.mxu0 %v15041_v26  ;;  %v16971_v26 = vld [vmem:[#allocation17 + $0x2a4] ss:$16 sps:$4 sm:$0xff]  }
0x1b76   :  { %10373 = vmatpush2.bf16.msra.mxu1 %v15297_v25  ;;  %10331 = vmatprep.subr.bf16.mxu0 %v15026_v63 }
0x1b77   :  { %10374 = vmatprep.subr.bf16.mxu1 %v15282_v0  ;;  %v16974_v0 = vld [vmem:[#allocation17 + $0x84] ss:$16 sps:$4 sm:$0xff]  }
0x1b79   :  { %10332 = vmatpush2.bf16.msra.mxu0 %v15025_v3 }
0x1b7a   :  { %10375 = vmatpush2.bf16.msra.mxu1 %v15281_v61  ;;  %13529 = vmatprep.subr.bf16.mxu0 %v16956_v27  ;;  %v16972_v61 = vld [vmem:[#allocation17 + $0x80] ss:$16 sps:$4 sm:$0xff]  }
0x1b7b   :  { %13572 = vmatprep.subr.bf16.mxu1 %v16959_v9  ;;  %v16975_v27 = vld [vmem:[#allocation17 + $0x280] ss:$16 sps:$4 sm:$0xff]  }
0x1b7c   :  { %v10077_v56 = vpop.f32.mrf.mxu0  ;;  %10334 = vmatmul.mubr.bf16.vlgmr.msra.gmra.mxu0 %v19012_v57 }
0x1b7d   :  { %v10078_v7 = vadd.f32 %v10077_v56, %v7094_v20  ;;  %v10120_v40 = vpop.f32.mrf.mxu1  ;;  %10377 = vmatmul.mubr.bf16.vlgmr.msra.gmra.mxu1 %v19016_v17  ;;  %13530 = vmatpush1.bf16.msra.mxu0 %v16954_v58  ;;  %v16966_v17 = vld [vmem:[#allocation17 + $0xa0] ss:$16 sps:$4 sm:$0xff]   ;;  %v16986_v58 = vld [vmem:[#allocation17 + $0x44] ss:$16 sps:$4 sm:$0xff]  }
0x1b7e   :  { %13561 = vmatprep.mubr.bf16.mxu0 %v19122_v12  ;;  %13573 = vmatpush1.bf16.msra.mxu1 %v16957_v59  ;;  %v19129_v41 = vpop.f32.mrf.mxu0  ;;  %v16984_v59 = vld [vmem:[#allocation17 + $0x40] ss:$16 sps:$4 sm:$0xff]   ;;  %v16995_v56 = vld [vmem:[#allocation17 + $0x224] ss:$16 sps:$4 sm:$0xff]  }
0x1b7f   :  { %v10121_v2 = vadd.f32 %v10120_v40, %v10078_v7  ;;  %13604 = vmatprep.mubr.bf16.mxu1 %v19125_v32  ;;  %v19132_v57 = vpop.f32.mrf.mxu1  ;;  %13531 = vmatprep.subr.bf16.mxu0 %v16962_v44  ;;  %v16992_v44 = vld [vmem:[#allocation17 + $0x24] ss:$16 sps:$4 sm:$0xff]   ;;  %v16993_v7 = vld [vmem:[#allocation17 + $0x220] ss:$16 sps:$4 sm:$0xff]  }
0x1b80   :  { %v10081_v31 = vpop.f32.mrf.mxu0  ;;  %13574 = vmatprep.subr.bf16.mxu1 %v16965_v13  ;;  %v16990_v13 = vld [vmem:[#allocation17 + $0x20] ss:$16 sps:$4 sm:$0xff]   ;;  %v16998_v40 = vld [vmem:[#allocation17 + $0x4] ss:$16 sps:$4 sm:$0xff]  }
0x1b81   :  { %v10082_v25 = vadd.f32 %v10081_v31, %v7094_v20  ;;  %13532 = vmatpush1.bf16.msra.mxu0 %v16960_v37  ;;  %v10124_v63 = vpop.f32.mrf.mxu1  ;;  %v10395_v3 = vmax.f32 %v10121_v2, 0.0  ;;  %v16981_v20 = vld [vmem:[#allocation17 + $0x260] ss:$16 sps:$4 sm:$0xff]   ;;  %v17001_v37 = vld [vmem:[#allocation17 + $0x204] ss:$16 sps:$4 sm:$0xff]  }
0x1b82   :  { %13575 = vmatpush1.bf16.msra.mxu1 %v16963_v38  ;;  %13533 = vmatprep.subr.bf16.mxu0 %v16968_v36  ;;  %v16996_v38 = vld [vmem:[#allocation17] ss:$16 sps:$4 sm:$0xff]   ;;  %v17004_v2 = vld [vmem:[#allocation17 + $0x1e4] ss:$16 sps:$4 sm:$0xff]  }
0x1b83   :  { %v10125_v30 = vadd.f32 %v10124_v63, %v10082_v25  ;;  %13576 = vmatprep.subr.bf16.mxu1 %v16971_v26  ;;  %v16999_v36 = vld [vmem:[#allocation17 + $0x200] ss:$16 sps:$4 sm:$0xff]   ;;  %v17007_v26 = vld [vmem:[#allocation17 + $0x3e4] ss:$16 sps:$4 sm:$0xff]  }
0x1b84   :  { %v17002_v31 = vld [vmem:[#allocation17 + $0x1e0] ss:$16 sps:$4 sm:$0xff]   ;;  %v17013_v63 = vld [vmem:[#allocation17 + $0x3c4] ss:$16 sps:$4 sm:$0xff]  }
0x1b85   :  { %v10411_v11 = vmax.f32 %v10125_v30, 0.0  ;;  %13534 = vmatpush1.bf16.msra.mxu0 %v16966_v17  ;;  %v17005_v25 = vld [vmem:[#allocation17 + $0x3e0] ss:$16 sps:$4 sm:$0xff]   ;;  %v17010_v17 = vld [vmem:[#allocation17 + $0x1c4] ss:$16 sps:$4 sm:$0xff]  }
0x1b86   :  { %13577 = vmatpush1.bf16.msra.mxu1 %v16969_v22  ;;  %13535 = vmatprep.subr.bf16.mxu0 %v16974_v0  ;;  %v17008_v22 = vld [vmem:[#allocation17 + $0x1c0] ss:$16 sps:$4 sm:$0xff]   ;;  %v17016_v30 = vld [vmem:[#allocation17 + $0x1a4] ss:$16 sps:$4 sm:$0xff]  }
0x1b87   :  { %v19134_v9 = vpack.c.bf16 %v10411_v11, %v10395_v3  ;;  %13578 = vmatprep.subr.bf16.mxu1 %v16977_v10  ;;  %v17011_v0 = vld [vmem:[#allocation17 + $0x3c0] ss:$16 sps:$4 sm:$0xff]   ;;  %v17019_v10 = vld [vmem:[#allocation17 + $0x3a4] ss:$16 sps:$4 sm:$0xff]  }
0x1b88   :  { %v17014_v3 = vld [vmem:[#allocation17 + $0x1a0] ss:$16 sps:$4 sm:$0xff]  }
0x1b89   :  { %13536 = vmatpush1.bf16.msra.mxu0 %v16972_v61  ;;  %v17017_v11 = vld [vmem:[#allocation17 + $0x3a0] ss:$16 sps:$4 sm:$0xff]   ;;  %v17022_v61 = vld [vmem:[#allocation17 + $0x184] ss:$16 sps:$4 sm:$0xff]  }
0x1b8a   :  { %13579 = vmatpush1.bf16.msra.mxu1 %v16975_v27  ;;  %13537 = vmatprep.subr.bf16.mxu0 %v16980_v62  ;;  %v17025_v27 = vld [vmem:[#allocation17 + $0x384] ss:$16 sps:$4 sm:$0xff]   ;;  %v17020_v62 = vld [vmem:[#allocation17 + $0x180] ss:$16 sps:$4 sm:$0xff]  }
0x1b8b   :  { %13580 = vmatprep.subr.bf16.mxu1 %v16983_v34  ;;  %v17023_v34 = vld [vmem:[#allocation17 + $0x380] ss:$16 sps:$4 sm:$0xff]  }
0x1b8d   :  { %13538 = vmatpush1.bf16.msra.mxu0 %v16978_v19  ;;  %v17028_v19 = vld [vmem:[#allocation17 + $0x164] ss:$16 sps:$4 sm:$0xff]  }
0x1b8e   :  { %13581 = vmatpush1.bf16.msra.mxu1 %v16981_v20  ;;  %13539 = vmatprep.subr.bf16.mxu0 %v16986_v58  ;;  %v17031_v20 = vld [vmem:[#allocation17 + $0x364] ss:$16 sps:$4 sm:$0xff]   ;;  %v17026_v58 = vld [vmem:[#allocation17 + $0x160] ss:$16 sps:$4 sm:$0xff]  }
0x1b8f   :  { %13582 = vmatprep.subr.bf16.mxu1 %v16989_v35  ;;  %v17029_v35 = vld [vmem:[#allocation17 + $0x360] ss:$16 sps:$4 sm:$0xff]  }
0x1b91   :  { %13540 = vmatpush1.bf16.msra.mxu0 %v16984_v59  ;;  %v17034_v59 = vld [vmem:[#allocation17 + $0x144] ss:$16 sps:$4 sm:$0xff]  }
0x1b92   :  { %13583 = vmatpush1.bf16.msra.mxu1 %v16987_v18  ;;  %13541 = vmatprep.subr.bf16.mxu0 %v16992_v44  ;;  %v17037_v18 = vld [vmem:[#allocation17 + $0x344] ss:$16 sps:$4 sm:$0xff]   ;;  %v17032_v44 = vld [vmem:[#allocation17 + $0x140] ss:$16 sps:$4 sm:$0xff]  }
0x1b93   :  { %13584 = vmatprep.subr.bf16.mxu1 %v16995_v56  ;;  %v7082_v56 = vrot.slane %v19084_v46, %v18264_v54 }
0x1b95   :  { %13542 = vmatpush1.bf16.msra.mxu0 %v16990_v13  ;;  %v17035_v13 = vld [vmem:[#allocation17 + $0x340] ss:$16 sps:$4 sm:$0xff]  }
0x1b96   :  { %13585 = vmatpush1.bf16.msra.mxu1 %v16993_v7  ;;  %13543 = vmatprep.subr.bf16.mxu0 %v16998_v40  ;;  %v17040_v7 = vld [vmem:[#allocation17 + $0x124] ss:$16 sps:$4 sm:$0xff]   ;;  %v7090_v40 = vrot.slane %v19084_v46, %v18317_v50 }
0x1b97   :  { %13586 = vmatprep.subr.bf16.mxu1 %v17001_v37  ;;  %v17043_v37 = vld [vmem:[#allocation17 + $0x324] ss:$16 sps:$4 sm:$0xff]  }
0x1b99   :  { %13544 = vmatpush1.bf16.msra.mxu0 %v16996_v38  ;;  %v9912_v38 = vadd.f32 %v19088_v1, %v7082_v56  ;;  %v17044_v1 = vld [vmem:[#allocation17 + $0x100] ss:$16 sps:$4 sm:$0xff]  }
0x1b9a   :  { %13587 = vmatpush1.bf16.msra.mxu1 %v16999_v36  ;;  %13545 = vmatprep.subr.bf16.mxu0 %v17004_v2  ;;  %v9998_v36 = vadd.f32 %v19118_v51, %v7090_v40  ;;  %v17038_v2 = vld [vmem:[#allocation17 + $0x120] ss:$16 sps:$4 sm:$0xff]  }
0x1b9b   :  { %13588 = vmatprep.subr.bf16.mxu1 %v17007_v26  ;;  %v9908_v26 = vadd.f32 %v19077_v28, %v7082_v56  ;;  %v9955_v46 = vadd.f32 %v19090_v14, %v9912_v38  ;;  %v17052_v28 = vld [vmem:[#allocation17 + $0x4e4] ss:$16 sps:$4 sm:$0xff]   ;;  %v7102_v14 = vrot.slane %v19113_v33, %v18230_v47  ;;  %v17059_v56 = vld [vmem:[#allocation17 + $0x6c0] ss:$16 sps:$4 sm:$0xff]  }
0x1b9d   :  { %13546 = vmatpush2.bf16.msra.mxu0 %v17002_v31  ;;  %v17041_v31 = vld [vmem:[#allocation17 + $0x320] ss:$16 sps:$4 sm:$0xff]   ;;  %v9951_v51 = vadd.f32 %v19080_v45, %v9908_v26 }
0x1b9e   :  { %13589 = vmatpush2.bf16.msra.mxu1 %v17005_v25  ;;  %13547 = vmatprep.subr.bf16.mxu0 %v17010_v17  ;;  %v17046_v25 = vld [vmem:[#allocation17 + $0x104] ss:$16 sps:$4 sm:$0xff]   ;;  %v9994_v17 = vadd.f32 %v19095_v39, %v7090_v40  ;;  %v17053_v45 = vld [vmem:[#allocation17 + $0x6e0] ss:$16 sps:$4 sm:$0xff]  }
0x1b9f   :  { %13590 = vmatprep.subr.bf16.mxu1 %v17013_v63  ;;  %v17049_v63 = vld [vmem:[#allocation17 + $0x304] ss:$16 sps:$4 sm:$0xff]  }
0x1ba1   :  { %13548 = vmatpush2.bf16.msra.mxu0 %v17008_v22  ;;  %v10041_v22 = vadd.f32 %v19120_v23, %v9998_v36  ;;  %v10392_v23 = vmax.f32 %v9951_v51, 0.0  ;;  %v17071_v51 = vld [vmem:[#allocation17 + $0x680] ss:$16 sps:$4 sm:$0xff]  }
0x1ba2   :  { %13591 = vmatpush2.bf16.msra.mxu1 %v17011_v0  ;;  %13549 = vmatprep.subr.bf16.mxu0 %v17016_v30  ;;  %v17047_v0 = vld [vmem:[#allocation17 + $0x300] ss:$16 sps:$4 sm:$0xff]   ;;  %v10037_v30 = vadd.f32 %v19098_v21, %v9994_v17  ;;  %v17058_v21 = vld [vmem:[#allocation17 + $0x4c4] ss:$16 sps:$4 sm:$0xff]  }
0x1ba3   :  { %13592 = vmatprep.subr.bf16.mxu1 %v17019_v10  ;;  %v17055_v10 = vld [vmem:[#allocation17 + $0x6e4] ss:$16 sps:$4 sm:$0xff]   ;;  %v10410_v39 = vmax.f32 %v10041_v22, 0.0 }
0x1ba5   :  { %13550 = vmatpush2.bf16.msra.mxu0 %v17014_v3  ;;  %v10408_v3 = vmax.f32 %v9955_v46, 0.0 }
0x1ba6   :  { %13593 = vmatpush2.bf16.msra.mxu1 %v17017_v11  ;;  %13551 = vmatprep.subr.bf16.mxu0 %v17022_v61  ;;  %v17050_v11 = vld [vmem:[#allocation17 + $0x4e0] ss:$16 sps:$4 sm:$0xff]   ;;  %v19150_v61 = vpop.f32.mrf.mxu0 }
0x1ba7   :  { %13594 = vmatprep.subr.bf16.mxu1 %v17025_v27  ;;  %v10394_v27 = vmax.f32 %v10037_v30, 0.0  ;;  %v17079_v30 = vld [vmem:[#allocation17 + $0x664] ss:$16 sps:$4 sm:$0xff]  }
0x1ba9   :  { %13552 = vmatpush2.bf16.msra.mxu0 %v17020_v62  ;;  %v19152_v62 = vpop.f32.mrf.mxu1 }
0x1baa   :  { %13595 = vmatpush2.bf16.msra.mxu1 %v17023_v34  ;;  %13553 = vmatprep.subr.bf16.mxu0 %v17028_v19  ;;  %v19154_v34 = vpack.c.bf16 %v10408_v3, %v10392_v23  ;;  %v17077_v3 = vld [vmem:[#allocation17 + $0x660] ss:$16 sps:$4 sm:$0xff]  }
0x1bab   :  { %13596 = vmatprep.subr.bf16.mxu1 %v17031_v20  ;;  %v17061_v20 = vld [vmem:[#allocation17 + $0x6c4] ss:$16 sps:$4 sm:$0xff]   ;;  %v17083_v23 = vld [vmem:[#allocation17 + $0x640] ss:$16 sps:$4 sm:$0xff]  }
0x1bad   :  { %13554 = vmatpush2.bf16.msra.mxu0 %v17026_v58  ;;  %v19157_v58 = vpack.c.bf16 %v10410_v39, %v10394_v27  ;;  %v17082_v39 = vld [vmem:[#allocation17 + $0x444] ss:$16 sps:$4 sm:$0xff]  }
0x1bae   :  { %13597 = vmatpush2.bf16.msra.mxu1 %v17029_v35  ;;  %13555 = vmatprep.subr.bf16.mxu0 %v17034_v59  ;;  %v17091_v27 = vld [vmem:[#allocation17 + $0x624] ss:$16 sps:$4 sm:$0xff]  }
0x1baf   :  { %13598 = vmatprep.subr.bf16.mxu1 %v17037_v18  ;;  %v17056_v18 = vld [vmem:[#allocation17 + $0x4c0] ss:$16 sps:$4 sm:$0xff]  }
0x1bb1   :  { %13556 = vmatpush2.bf16.msra.mxu0 %v17032_v44 }
0x1bb2   :  { %13599 = vmatpush2.bf16.msra.mxu1 %v17035_v13  ;;  %13557 = vmatprep.subr.bf16.mxu0 %v17040_v7  ;;  %v17064_v13 = vld [vmem:[#allocation17 + $0x4a4] ss:$16 sps:$4 sm:$0xff]  }
0x1bb3   :  { %13600 = vmatprep.subr.bf16.mxu1 %v17043_v37  ;;  %v17067_v37 = vld [vmem:[#allocation17 + $0x6a4] ss:$16 sps:$4 sm:$0xff]  }
0x1bb5   :  { %13558 = vmatpush2.bf16.msra.mxu0 %v17038_v2  ;;  %v17062_v2 = vld [vmem:[#allocation17 + $0x4a0] ss:$16 sps:$4 sm:$0xff]  }
0x1bb6   :  { %13601 = vmatpush2.bf16.msra.mxu1 %v17041_v31  ;;  %13559 = vmatprep.subr.bf16.mxu0 %v17046_v25  ;;  %v17065_v31 = vld [vmem:[#allocation17 + $0x6a0] ss:$16 sps:$4 sm:$0xff]   ;;  %v17070_v25 = vld [vmem:[#allocation17 + $0x484] ss:$16 sps:$4 sm:$0xff]  }
0x1bb7   :  { %13602 = vmatprep.subr.bf16.mxu1 %v17049_v63  ;;  %v17073_v63 = vld [vmem:[#allocation17 + $0x684] ss:$16 sps:$4 sm:$0xff]  }
0x1bb9   :  { %13560 = vmatpush2.bf16.msra.mxu0 %v17044_v1  ;;  %v17068_v1 = vld [vmem:[#allocation17 + $0x480] ss:$16 sps:$4 sm:$0xff]  }
0x1bba   :  { %13603 = vmatpush2.bf16.msra.mxu1 %v17047_v0  ;;  %13615 = vmatprep.subr.bf16.mxu0 %v17052_v28  ;;  %v17076_v0 = vld [vmem:[#allocation17 + $0x464] ss:$16 sps:$4 sm:$0xff]  }
0x1bbb   :  { %13658 = vmatprep.subr.bf16.mxu1 %v17055_v10  ;;  %v17074_v10 = vld [vmem:[#allocation17 + $0x460] ss:$16 sps:$4 sm:$0xff]  }
0x1bbc   :  { %v10163_v19 = vpop.f32.mrf.mxu0  ;;  %13562 = vmatmul.mubr.bf16.vlgmr.msra.gmra.mxu0 %v19050_v42 }
0x1bbd   :  { %v10164_v35 = vadd.f32 %v10163_v19, %v7102_v14  ;;  %v10206_v59 = vpop.f32.mrf.mxu1  ;;  %13605 = vmatmul.mubr.bf16.vlgmr.msra.gmra.mxu1 %v19066_v48  ;;  %13616 = vmatpush1.bf16.msra.mxu0 %v17050_v11  ;;  %v17080_v11 = vld [vmem:[#allocation17 + $0x440] ss:$16 sps:$4 sm:$0xff]  }
0x1bbe   :  { %13647 = vmatprep.mubr.bf16.mxu0 %v19154_v34  ;;  %13659 = vmatpush1.bf16.msra.mxu1 %v17053_v45  ;;  %v19161_v44 = vpop.f32.mrf.mxu0  ;;  %v17088_v45 = vld [vmem:[#allocation17 + $0x424] ss:$16 sps:$4 sm:$0xff]   ;;  %v17089_v19 = vld [vmem:[#allocation17 + $0x620] ss:$16 sps:$4 sm:$0xff]  }
0x1bbf   :  { %v10207_v7 = vadd.f32 %v10206_v59, %v10164_v35  ;;  %13690 = vmatprep.mubr.bf16.mxu1 %v19157_v58  ;;  %v19164_v40 = vpop.f32.mrf.mxu1  ;;  %13617 = vmatprep.subr.bf16.mxu0 %v17058_v21  ;;  %v17086_v21 = vld [vmem:[#allocation17 + $0x420] ss:$16 sps:$4 sm:$0xff]   ;;  %v17097_v35 = vld [vmem:[#allocation17 + $0x604] ss:$16 sps:$4 sm:$0xff]  }
0x1bc0   :  { %v10167_v38 = vpop.f32.mrf.mxu0  ;;  %13660 = vmatprep.subr.bf16.mxu1 %v17061_v20  ;;  %v17094_v20 = vld [vmem:[#allocation17 + $0x404] ss:$16 sps:$4 sm:$0xff]   ;;  %v17092_v59 = vld [vmem:[#allocation17 + $0x400] ss:$16 sps:$4 sm:$0xff]  }
0x1bc1   :  { %v10168_v36 = vadd.f32 %v10167_v38, %v7102_v14  ;;  %13618 = vmatpush1.bf16.msra.mxu0 %v17056_v18  ;;  %v10210_v26 = vpop.f32.mrf.mxu1  ;;  %v10397_v46 = vmax.f32 %v10207_v7, 0.0  ;;  %v17085_v14 = vld [vmem:[#allocation17 + $0x644] ss:$16 sps:$4 sm:$0xff]   ;;  %v17095_v18 = vld [vmem:[#allocation17 + $0x600] ss:$16 sps:$4 sm:$0xff]  }
0x1bc2   :  { %13661 = vmatpush1.bf16.msra.mxu1 %v17059_v56  ;;  %13619 = vmatprep.subr.bf16.mxu0 %v17064_v13  ;;  %v17100_v56 = vld [vmem:[#allocation17 + $0x5e4] ss:$16 sps:$4 sm:$0xff]   ;;  %v17098_v7 = vld [vmem:[#allocation17 + $0x5e0] ss:$16 sps:$4 sm:$0xff]  }
0x1bc3   :  { %v10211_v17 = vadd.f32 %v10210_v26, %v10168_v36  ;;  %13662 = vmatprep.subr.bf16.mxu1 %v17067_v37  ;;  %v17103_v13 = vld [vmem:[#allocation17 + $0x7e4] ss:$16 sps:$4 sm:$0xff]   ;;  %v17101_v37 = vld [vmem:[#allocation17 + $0x7e0] ss:$16 sps:$4 sm:$0xff]  }
0x1bc4   :  { %v17106_v38 = vld [vmem:[#allocation17 + $0x5c4] ss:$16 sps:$4 sm:$0xff]   ;;  %v17107_v26 = vld [vmem:[#allocation17 + $0x7c0] ss:$16 sps:$4 sm:$0xff]  }
0x1bc5   :  { %v10413_v22 = vmax.f32 %v10211_v17, 0.0  ;;  %13620 = vmatpush1.bf16.msra.mxu0 %v17062_v2  ;;  %v17109_v36 = vld [vmem:[#allocation17 + $0x7c4] ss:$16 sps:$4 sm:$0xff]   ;;  %v17104_v2 = vld [vmem:[#allocation17 + $0x5c0] ss:$16 sps:$4 sm:$0xff]  }
0x1bc6   :  { %13663 = vmatpush1.bf16.msra.mxu1 %v17065_v31  ;;  %13621 = vmatprep.subr.bf16.mxu0 %v17070_v25  ;;  %v17112_v31 = vld [vmem:[#allocation17 + $0x5a4] ss:$16 sps:$4 sm:$0xff]   ;;  %v17110_v17 = vld [vmem:[#allocation17 + $0x5a0] ss:$16 sps:$4 sm:$0xff]  }
0x1bc7   :  { %v19166_v28 = vpack.c.bf16 %v10413_v22, %v10397_v46  ;;  %13664 = vmatprep.subr.bf16.mxu1 %v17073_v63  ;;  %v17115_v25 = vld [vmem:[#allocation17 + $0x7a4] ss:$16 sps:$4 sm:$0xff]   ;;  %v17113_v63 = vld [vmem:[#allocation17 + $0x7a0] ss:$16 sps:$4 sm:$0xff]  }
0x1bc8   :  { %v17118_v46 = vld [vmem:[#allocation17 + $0x584] ss:$16 sps:$4 sm:$0xff]  }
0x1bc9   :  { %13622 = vmatpush1.bf16.msra.mxu0 %v17068_v1  ;;  %v17121_v22 = vld [vmem:[#allocation17 + $0x784] ss:$16 sps:$4 sm:$0xff]   ;;  %v17116_v1 = vld [vmem:[#allocation17 + $0x580] ss:$16 sps:$4 sm:$0xff]  }
0x1bca   :  { %13665 = vmatpush1.bf16.msra.mxu1 %v17071_v51  ;;  %13623 = vmatprep.subr.bf16.mxu0 %v17076_v0  ;;  %v17119_v51 = vld [vmem:[#allocation17 + $0x780] ss:$16 sps:$4 sm:$0xff]   ;;  %v17124_v0 = vld [vmem:[#allocation17 + $0x564] ss:$16 sps:$4 sm:$0xff]  }
0x1bcb   :  { %13666 = vmatprep.subr.bf16.mxu1 %v17079_v30  ;;  %v17127_v30 = vld [vmem:[#allocation17 + $0x764] ss:$16 sps:$4 sm:$0xff]  }
0x1bcd   :  { %13624 = vmatpush1.bf16.msra.mxu0 %v17074_v10  ;;  %v17122_v10 = vld [vmem:[#allocation17 + $0x560] ss:$16 sps:$4 sm:$0xff]  }
0x1bce   :  { %13667 = vmatpush1.bf16.msra.mxu1 %v17077_v3  ;;  %13625 = vmatprep.subr.bf16.mxu0 %v17082_v39  ;;  %v17125_v3 = vld [vmem:[#allocation17 + $0x760] ss:$16 sps:$4 sm:$0xff]   ;;  %v17130_v39 = vld [vmem:[#allocation17 + $0x544] ss:$16 sps:$4 sm:$0xff]  }
0x1bcf   :  { %13668 = vmatprep.subr.bf16.mxu1 %v17085_v14  ;;  %v17133_v14 = vld [vmem:[#allocation17 + $0x744] ss:$16 sps:$4 sm:$0xff]  }
0x1bd1   :  { %13626 = vmatpush1.bf16.msra.mxu0 %v17080_v11  ;;  %v17128_v11 = vld [vmem:[#allocation17 + $0x540] ss:$16 sps:$4 sm:$0xff]  }
0x1bd2   :  { %13669 = vmatpush1.bf16.msra.mxu1 %v17083_v23  ;;  %13627 = vmatprep.subr.bf16.mxu0 %v17088_v45  ;;  %v7098_v23 = vrot.slane %v19113_v33, %v18212_v29  ;;  %v10169_v45 = vpop.f32.mrf.mxu0 }
0x1bd3   :  { %13670 = vmatprep.subr.bf16.mxu1 %v17091_v27  ;;  %v17131_v27 = vld [vmem:[#allocation17 + $0x740] ss:$16 sps:$4 sm:$0xff]  }
0x1bd5   :  { %13628 = vmatpush1.bf16.msra.mxu0 %v17086_v21  ;;  %v17136_v21 = vld [vmem:[#allocation17 + $0x524] ss:$16 sps:$4 sm:$0xff]  }
0x1bd6   :  { %13671 = vmatpush1.bf16.msra.mxu1 %v17089_v19  ;;  %13629 = vmatprep.subr.bf16.mxu0 %v17094_v20  ;;  %v7106_v19 = vrot.slane %v19113_v33, %v18237_v52  ;;  %v17139_v20 = vld [vmem:[#allocation17 + $0x724] ss:$16 sps:$4 sm:$0xff]  }
0x1bd7   :  { %13672 = vmatprep.subr.bf16.mxu1 %v17097_v35  ;;  %v10084_v35 = vadd.f32 %v19150_v61, %v7098_v23 }
0x1bd9   :  { %13630 = vmatpush1.bf16.msra.mxu0 %v17092_v59  ;;  %v10170_v59 = vadd.f32 %v10169_v45, %v7106_v19  ;;  %v17160_v45 = vld [vmem:[#allocation17 + $0x8a4] ss:$16 sps:$4 sm:$0xff]  }
0x1bda   :  { %13673 = vmatpush1.bf16.msra.mxu1 %v17095_v18  ;;  %13631 = vmatprep.subr.bf16.mxu0 %v17100_v56  ;;  %v17134_v18 = vld [vmem:[#allocation17 + $0x520] ss:$16 sps:$4 sm:$0xff]   ;;  %v10080_v56 = vadd.f32 %v19129_v41, %v7098_v23  ;;  %v17148_v41 = vld [vmem:[#allocation17 + $0x8e4] ss:$16 sps:$4 sm:$0xff]  }
0x1bdb   :  { %13674 = vmatprep.subr.bf16.mxu1 %v17103_v13  ;;  %v17137_v13 = vld [vmem:[#allocation17 + $0x720] ss:$16 sps:$4 sm:$0xff]  }
0x1bdc   :  { %v10123_v61 = vadd.f32 %v19132_v57, %v10080_v56  ;;  %v17155_v23 = vld [vmem:[#allocation17 + $0xac0] ss:$16 sps:$4 sm:$0xff]  }
0x1bdd   :  { %13632 = vmatpush2.bf16.msra.mxu0 %v17098_v7  ;;  %v17142_v7 = vld [vmem:[#allocation17 + $0x504] ss:$16 sps:$4 sm:$0xff]   ;;  %v17161_v56 = vld [vmem:[#allocation17 + $0xaa0] ss:$16 sps:$4 sm:$0xff]  }
0x1bde   :  { %13675 = vmatpush2.bf16.msra.mxu1 %v17101_v37  ;;  %13633 = vmatprep.subr.bf16.mxu0 %v17106_v38  ;;  %v10166_v37 = vadd.f32 %v19161_v44, %v7106_v19  ;;  %v17145_v38 = vld [vmem:[#allocation17 + $0x704] ss:$16 sps:$4 sm:$0xff]  }
0x1bdf   :  { %13676 = vmatprep.subr.bf16.mxu1 %v17109_v36  ;;  %v10127_v36 = vadd.f32 %v19152_v62, %v10084_v35  ;;  %v7110_v62 = vrot.slane %v19113_v33, %v18261_v53  ;;  %v17152_v53 = vld [vmem:[#allocation17 + $0x8c0] ss:$16 sps:$4 sm:$0xff]   ;;  %v17163_v19 = vld [vmem:[#allocation17 + $0xaa4] ss:$16 sps:$4 sm:$0xff]  }
0x1be1   :  { %13634 = vmatpush2.bf16.msra.mxu0 %v17104_v2  ;;  %v10212_v2 = vpop.f32.mrf.mxu1 }
0x1be2   :  { %13677 = vmatpush2.bf16.msra.mxu1 %v17107_v26  ;;  %13635 = vmatprep.subr.bf16.mxu0 %v17112_v31  ;;  %v10213_v26 = vadd.f32 %v10212_v2, %v10170_v59  ;;  %v17140_v31 = vld [vmem:[#allocation17 + $0x500] ss:$16 sps:$4 sm:$0xff]  }
0x1be3   :  { %13678 = vmatprep.subr.bf16.mxu1 %v17115_v25  ;;  %v17143_v25 = vld [vmem:[#allocation17 + $0x700] ss:$16 sps:$4 sm:$0xff]  }
0x1be4   :  { %v10414_v44 = vmax.f32 %v10213_v26, 0.0  ;;  %v17158_v59 = vld [vmem:[#allocation17 + $0x8a0] ss:$16 sps:$4 sm:$0xff]  }
0x1be5   :  { %13636 = vmatpush2.bf16.msra.mxu0 %v17110_v17  ;;  %v10209_v17 = vadd.f32 %v19164_v40, %v10166_v37  ;;  %v17157_v40 = vld [vmem:[#allocation17 + $0xac4] ss:$16 sps:$4 sm:$0xff]   ;;  %v17164_v2 = vld [vmem:[#allocation17 + $0x880] ss:$16 sps:$4 sm:$0xff]  }
0x1be6   :  { %13679 = vmatpush2.bf16.msra.mxu1 %v17113_v63  ;;  %13637 = vmatprep.subr.bf16.mxu0 %v17118_v46  ;;  %v17151_v63 = vld [vmem:[#allocation17 + $0xae4] ss:$16 sps:$4 sm:$0xff]   ;;  %v10412_v46 = vmax.f32 %v10127_v36, 0.0  ;;  %v17167_v26 = vld [vmem:[#allocation17 + $0xa80] ss:$16 sps:$4 sm:$0xff]  }
0x1be7   :  { %13680 = vmatprep.subr.bf16.mxu1 %v17121_v22  ;;  %v17146_v22 = vld [vmem:[#allocation17 + $0x8e0] ss:$16 sps:$4 sm:$0xff]   ;;  %v10398_v57 = vmax.f32 %v10209_v17, 0.0  ;;  %v17169_v37 = vld [vmem:[#allocation17 + $0xa84] ss:$16 sps:$4 sm:$0xff]  }
0x1be8   :  { %v17173_v17 = vld [vmem:[#allocation17 + $0xa60] ss:$16 sps:$4 sm:$0xff]  }
0x1be9   :  { %13638 = vmatpush2.bf16.msra.mxu0 %v17116_v1  ;;  %v10396_v1 = vmax.f32 %v10123_v61, 0.0 }
0x1bea   :  { %13681 = vmatpush2.bf16.msra.mxu1 %v17119_v51  ;;  %13639 = vmatprep.subr.bf16.mxu0 %v17124_v0  ;;  %v17149_v51 = vld [vmem:[#allocation17 + $0xae0] ss:$16 sps:$4 sm:$0xff]   ;;  %v17154_v0 = vld [vmem:[#allocation17 + $0x8c4] ss:$16 sps:$4 sm:$0xff]  }
0x1beb   :  { %13682 = vmatprep.subr.bf16.mxu1 %v17127_v30  ;;  %v19180_v30 = vpack.c.bf16 %v10412_v46, %v10396_v1  ;;  %v17181_v46 = vld [vmem:[#allocation17 + $0xa44] ss:$16 sps:$4 sm:$0xff]  }
0x1bec   :  { %v17187_v1 = vld [vmem:[#allocation17 + $0xa24] ss:$16 sps:$4 sm:$0xff]  }
0x1bed   :  { %13640 = vmatpush2.bf16.msra.mxu0 %v17122_v10 }
0x1bee   :  { %13683 = vmatpush2.bf16.msra.mxu1 %v17125_v3  ;;  %13641 = vmatprep.subr.bf16.mxu0 %v17130_v39  ;;  %v19183_v3 = vpack.c.bf16 %v10414_v44, %v10398_v57  ;;  %v17176_v44 = vld [vmem:[#allocation17 + $0x840] ss:$16 sps:$4 sm:$0xff]  }
0x1bef   :  { %13684 = vmatprep.subr.bf16.mxu1 %v17133_v14  ;;  %v17185_v57 = vld [vmem:[#allocation17 + $0xa20] ss:$16 sps:$4 sm:$0xff]  }
0x1bf1   :  { %13642 = vmatpush2.bf16.msra.mxu0 %v17128_v11 }
0x1bf2   :  { %13685 = vmatpush2.bf16.msra.mxu1 %v17131_v27  ;;  %13643 = vmatprep.subr.bf16.mxu0 %v17136_v21 }
0x1bf3   :  { %13686 = vmatprep.subr.bf16.mxu1 %v17139_v20 }
0x1bf5   :  { %13644 = vmatpush2.bf16.msra.mxu0 %v17134_v18 }
0x1bf6   :  { %13687 = vmatpush2.bf16.msra.mxu1 %v17137_v13  ;;  %13645 = vmatprep.subr.bf16.mxu0 %v17142_v7  ;;  %v17166_v13 = vld [vmem:[#allocation17 + $0x884] ss:$16 sps:$4 sm:$0xff]  }
0x1bf7   :  { %13688 = vmatprep.subr.bf16.mxu1 %v17145_v38 }
0x1bf9   :  { %13646 = vmatpush2.bf16.msra.mxu0 %v17140_v31  ;;  %v17172_v31 = vld [vmem:[#allocation17 + $0x864] ss:$16 sps:$4 sm:$0xff]  }
0x1bfa   :  { %13689 = vmatpush2.bf16.msra.mxu1 %v17143_v25  ;;  %13701 = vmatprep.subr.bf16.mxu0 %v17148_v41  ;;  %v17175_v25 = vld [vmem:[#allocation17 + $0xa64] ss:$16 sps:$4 sm:$0xff]   ;;  %v17170_v41 = vld [vmem:[#allocation17 + $0x860] ss:$16 sps:$4 sm:$0xff]  }
0x1bfb   :  { %13744 = vmatprep.subr.bf16.mxu1 %v17151_v63  ;;  %v17178_v63 = vld [vmem:[#allocation17 + $0x844] ss:$16 sps:$4 sm:$0xff]  }
0x1bfc   :  { %v10249_v10 = vpop.f32.mrf.mxu0  ;;  %13648 = vmatmul.mubr.bf16.vlgmr.msra.gmra.mxu0 %v19082_v15 }
0x1bfd   :  { %v10250_v39 = vadd.f32 %v10249_v10, %v7110_v62  ;;  %v10292_v14 = vpop.f32.mrf.mxu1  ;;  %13691 = vmatmul.mubr.bf16.vlgmr.msra.gmra.mxu1 %v19100_v43  ;;  %13702 = vmatpush1.bf16.msra.mxu0 %v17146_v22  ;;  %v17184_v22 = vld [vmem:[#allocation17 + $0x824] ss:$16 sps:$4 sm:$0xff]  }
0x1bfe   :  { %13733 = vmatprep.mubr.bf16.mxu0 %v19180_v30  ;;  %13745 = vmatpush1.bf16.msra.mxu1 %v17149_v51  ;;  %v19187_v11 = vpop.f32.mrf.mxu0  ;;  %v17182_v51 = vld [vmem:[#allocation17 + $0x820] ss:$16 sps:$4 sm:$0xff]   ;;  %v17193_v10 = vld [vmem:[#allocation17 + $0xa04] ss:$16 sps:$4 sm:$0xff]  }
0x1bff   :  { %v10293_v27 = vadd.f32 %v10292_v14, %v10250_v39  ;;  %13776 = vmatprep.mubr.bf16.mxu1 %v19183_v3  ;;  %v19190_v21 = vpop.f32.mrf.mxu1  ;;  %13703 = vmatprep.subr.bf16.mxu0 %v17154_v0  ;;  %v17190_v0 = vld [vmem:[#allocation17 + $0x804] ss:$16 sps:$4 sm:$0xff]   ;;  %v17191_v39 = vld [vmem:[#allocation17 + $0xa00] ss:$16 sps:$4 sm:$0xff]  }
0x1c00   :  { %v10253_v20 = vpop.f32.mrf.mxu0  ;;  %13746 = vmatprep.subr.bf16.mxu1 %v17157_v40  ;;  %v17188_v40 = vld [vmem:[#allocation17 + $0x800] ss:$16 sps:$4 sm:$0xff]   ;;  %v17196_v14 = vld [vmem:[#allocation17 + $0x9e4] ss:$16 sps:$4 sm:$0xff]  }
0x1c01   :  { %v10254_v35 = vadd.f32 %v10253_v20, %v7110_v62  ;;  %13704 = vmatpush1.bf16.msra.mxu0 %v17152_v53  ;;  %v10296_v18 = vpop.f32.mrf.mxu1  ;;  %v10399_v38 = vmax.f32 %v10293_v27, 0.0  ;;  %v17179_v62 = vld [vmem:[#allocation17 + $0xa40] ss:$16 sps:$4 sm:$0xff]   ;;  %v17199_v53 = vld [vmem:[#allocation17 + $0xbe4] ss:$16 sps:$4 sm:$0xff]  }
0x1c02   :  { %13747 = vmatpush1.bf16.msra.mxu1 %v17155_v23  ;;  %13705 = vmatprep.subr.bf16.mxu0 %v17160_v45  ;;  %v17194_v23 = vld [vmem:[#allocation17 + $0x9e0] ss:$16 sps:$4 sm:$0xff]   ;;  %v17202_v27 = vld [vmem:[#allocation17 + $0x9c4] ss:$16 sps:$4 sm:$0xff]  }
0x1c03   :  { %v10297_v7 = vadd.f32 %v10296_v18, %v10254_v35  ;;  %13748 = vmatprep.subr.bf16.mxu1 %v17163_v19  ;;  %v17197_v45 = vld [vmem:[#allocation17 + $0xbe0] ss:$16 sps:$4 sm:$0xff]   ;;  %v17205_v19 = vld [vmem:[#allocation17 + $0xbc4] ss:$16 sps:$4 sm:$0xff]  }
0x1c04   :  { %v17200_v20 = vld [vmem:[#allocation17 + $0x9c0] ss:$16 sps:$4 sm:$0xff]   ;;  %v17211_v18 = vld [vmem:[#allocation17 + $0xba4] ss:$16 sps:$4 sm:$0xff]  }
0x1c05   :  { %v10415_v36 = vmax.f32 %v10297_v7, 0.0  ;;  %13706 = vmatpush1.bf16.msra.mxu0 %v17158_v59  ;;  %v17203_v35 = vld [vmem:[#allocation17 + $0xbc0] ss:$16 sps:$4 sm:$0xff]   ;;  %v17208_v59 = vld [vmem:[#allocation17 + $0x9a4] ss:$16 sps:$4 sm:$0xff]  }
0x1c06   :  { %13749 = vmatpush1.bf16.msra.mxu1 %v17161_v56  ;;  %13707 = vmatprep.subr.bf16.mxu0 %v17166_v13  ;;  %v17206_v56 = vld [vmem:[#allocation17 + $0x9a0] ss:$16 sps:$4 sm:$0xff]   ;;  %v17214_v7 = vld [vmem:[#allocation17 + $0x984] ss:$16 sps:$4 sm:$0xff]  }
0x1c07   :  { %v19192_v61 = vpack.c.bf16 %v10415_v36, %v10399_v38  ;;  %13750 = vmatprep.subr.bf16.mxu1 %v17169_v37  ;;  %v17209_v13 = vld [vmem:[#allocation17 + $0xba0] ss:$16 sps:$4 sm:$0xff]   ;;  %v17217_v37 = vld [vmem:[#allocation17 + $0xb84] ss:$16 sps:$4 sm:$0xff]  }
0x1c08   :  { %v17212_v38 = vld [vmem:[#allocation17 + $0x980] ss:$16 sps:$4 sm:$0xff]  }
0x1c09   :  { %13708 = vmatpush1.bf16.msra.mxu0 %v17164_v2  ;;  %v17215_v36 = vld [vmem:[#allocation17 + $0xb80] ss:$16 sps:$4 sm:$0xff]   ;;  %v17220_v2 = vld [vmem:[#allocation17 + $0x964] ss:$16 sps:$4 sm:$0xff]  }
0x1c0a   :  { %13751 = vmatpush1.bf16.msra.mxu1 %v17167_v26  ;;  %13709 = vmatprep.subr.bf16.mxu0 %v17172_v31  ;;  %v17223_v26 = vld [vmem:[#allocation17 + $0xb64] ss:$16 sps:$4 sm:$0xff]   ;;  %v17218_v31 = vld [vmem:[#allocation17 + $0x960] ss:$16 sps:$4 sm:$0xff]  }
0x1c0b   :  { %13752 = vmatprep.subr.bf16.mxu1 %v17175_v25  ;;  %v17221_v25 = vld [vmem:[#allocation17 + $0xb60] ss:$16 sps:$4 sm:$0xff]  }
0x1c0d   :  { %13710 = vmatpush1.bf16.msra.mxu0 %v17170_v41  ;;  %v17226_v41 = vld [vmem:[#allocation17 + $0x944] ss:$16 sps:$4 sm:$0xff]  }
0x1c0e   :  { %13753 = vmatpush1.bf16.msra.mxu1 %v17173_v17  ;;  %13711 = vmatprep.subr.bf16.mxu0 %v17178_v63  ;;  %v17229_v17 = vld [vmem:[#allocation17 + $0xb44] ss:$16 sps:$4 sm:$0xff]   ;;  %v10255_v63 = vpop.f32.mrf.mxu0 }
0x1c0f   :  { %13754 = vmatprep.subr.bf16.mxu1 %v17181_v46  ;;  %v17224_v46 = vld [vmem:[#allocation17 + $0x940] ss:$16 sps:$4 sm:$0xff]  }
0x1c11   :  { %13712 = vmatpush1.bf16.msra.mxu0 %v17176_v44  ;;  %v7114_v44 = vrot.slane %v19113_v33, %v18264_v54  ;;  %v17236_v54 = vld [vmem:[#allocation17 + $0x900] ss:$16 sps:$4 sm:$0xff]  }
0x1c12   :  { %13755 = vmatpush1.bf16.msra.mxu1 %v17179_v62  ;;  %13713 = vmatprep.subr.bf16.mxu0 %v17184_v22  ;;  %v17227_v62 = vld [vmem:[#allocation17 + $0xb40] ss:$16 sps:$4 sm:$0xff]   ;;  %v17232_v22 = vld [vmem:[#allocation17 + $0x924] ss:$16 sps:$4 sm:$0xff]  }
0x1c13   :  { %13756 = vmatprep.subr.bf16.mxu1 %v17187_v1  ;;  %v17235_v1 = vld [vmem:[#allocation17 + $0xb24] ss:$16 sps:$4 sm:$0xff]  }
0x1c15   :  { %13714 = vmatpush1.bf16.msra.mxu0 %v17182_v51  ;;  %v10256_v51 = vadd.f32 %v10255_v63, %v7114_v44 }
0x1c16   :  { %13757 = vmatpush1.bf16.msra.mxu1 %v17185_v57  ;;  %13715 = vmatprep.subr.bf16.mxu0 %v17190_v0  ;;  %v17230_v57 = vld [vmem:[#allocation17 + $0x920] ss:$16 sps:$4 sm:$0xff]   ;;  %v10252_v0 = vadd.f32 %v19187_v11, %v7114_v44  ;;  %v17262_v44 = vld [vmem:[#allocation17 + $0xc84] ss:$16 sps:$4 sm:$0xff]  }
0x1c17   :  { %13758 = vmatprep.subr.bf16.mxu1 %v17193_v10  ;;  %v17233_v10 = vld [vmem:[#allocation17 + $0xb20] ss:$16 sps:$4 sm:$0xff]  }
0x1c18   :  { %v17242_v11 = vld [vmem:[#allocation17 + $0xce0] ss:$16 sps:$4 sm:$0xff]  }
0x1c19   :  { %13716 = vmatpush1.bf16.msra.mxu0 %v17188_v40  ;;  %v17238_v40 = vld [vmem:[#allocation17 + $0x904] ss:$16 sps:$4 sm:$0xff]  }
0x1c1a   :  { %13759 = vmatpush1.bf16.msra.mxu1 %v17191_v39  ;;  %13717 = vmatprep.subr.bf16.mxu0 %v17196_v14  ;;  %v10298_v39 = vpop.f32.mrf.mxu1  ;;  %v17241_v14 = vld [vmem:[#allocation17 + $0xb04] ss:$16 sps:$4 sm:$0xff]  }
0x1c1b   :  { %13760 = vmatprep.subr.bf16.mxu1 %v17199_v53  ;;  %v10299_v53 = vadd.f32 %v10298_v39, %v10256_v51 }
0x1c1d   :  { %13718 = vmatpush2.bf16.msra.mxu0 %v17194_v23  ;;  %v10295_v23 = vadd.f32 %v19190_v21, %v10252_v0  ;;  %v17260_v0 = vld [vmem:[#allocation17 + $0xc80] ss:$16 sps:$4 sm:$0xff]  }
0x1c1e   :  { %13761 = vmatpush2.bf16.msra.mxu1 %v17197_v45  ;;  %13719 = vmatprep.subr.bf16.mxu0 %v17202_v27  ;;  %v17239_v45 = vld [vmem:[#allocation17 + $0xb00] ss:$16 sps:$4 sm:$0xff]   ;;  %v17244_v27 = vld [vmem:[#allocation17 + $0xce4] ss:$16 sps:$4 sm:$0xff]  }
0x1c1f   :  { %13762 = vmatprep.subr.bf16.mxu1 %v17205_v19  ;;  %v17247_v19 = vld [vmem:[#allocation17 + $0xee4] ss:$16 sps:$4 sm:$0xff]  }
0x1c21   :  { %13720 = vmatpush2.bf16.msra.mxu0 %v17200_v20  ;;  %v10416_v20 = vmax.f32 %v10299_v53, 0.0  ;;  %v17271_v53 = vld [vmem:[#allocation17 + $0xe64] ss:$16 sps:$4 sm:$0xff]  }
0x1c22   :  { %13763 = vmatpush2.bf16.msra.mxu1 %v17203_v35  ;;  %13721 = vmatprep.subr.bf16.mxu0 %v17208_v59  ;;  %v10400_v35 = vmax.f32 %v10295_v23, 0.0  ;;  %v17245_v59 = vld [vmem:[#allocation17 + $0xee0] ss:$16 sps:$4 sm:$0xff]  }
0x1c23   :  { %13764 = vmatprep.subr.bf16.mxu1 %v17211_v18  ;;  %v7122_v18 = vrot.slane %v19113_v33, %v18317_v50  ;;  %v17256_v50 = vld [vmem:[#allocation17 + $0xca4] ss:$16 sps:$4 sm:$0xff]   ;;  %v17266_v23 = vld [vmem:[#allocation17 + $0xc60] ss:$16 sps:$4 sm:$0xff]  }
0x1c24   :  { %v19200_v21 = vpack.c.bf16 %v10416_v20, %v10400_v35  ;;  %v17272_v20 = vld [vmem:[#allocation17 + $0xc40] ss:$16 sps:$4 sm:$0xff]   ;;  %v17280_v35 = vld [vmem:[#allocation17 + $0xc24] ss:$16 sps:$4 sm:$0xff]  }
0x1c25   :  { %13722 = vmatpush2.bf16.msra.mxu0 %v17206_v56  ;;  %v17250_v56 = vld [vmem:[#allocation17 + $0xcc4] ss:$16 sps:$4 sm:$0xff]  }
0x1c26   :  { %13765 = vmatpush2.bf16.msra.mxu1 %v17209_v13  ;;  %13723 = vmatprep.subr.bf16.mxu0 %v17214_v7  ;;  %v17253_v13 = vld [vmem:[#allocation17 + $0xec4] ss:$16 sps:$4 sm:$0xff]  }
0x1c27   :  { %13766 = vmatprep.subr.bf16.mxu1 %v17217_v37 }
0x1c29   :  { %13724 = vmatpush2.bf16.msra.mxu0 %v17212_v38  ;;  %v17248_v38 = vld [vmem:[#allocation17 + $0xcc0] ss:$16 sps:$4 sm:$0xff]  }
0x1c2a   :  { %13767 = vmatpush2.bf16.msra.mxu1 %v17215_v36  ;;  %13725 = vmatprep.subr.bf16.mxu0 %v17220_v2  ;;  %v17251_v2 = vld [vmem:[#allocation17 + $0xec0] ss:$16 sps:$4 sm:$0xff]  }
0x1c2b   :  { %13768 = vmatprep.subr.bf16.mxu1 %v17223_v26 }
0x1c2d   :  { %13726 = vmatpush2.bf16.msra.mxu0 %v17218_v31  ;;  %v17259_v31 = vld [vmem:[#allocation17 + $0xea4] ss:$16 sps:$4 sm:$0xff]  }
0x1c2e   :  { %13769 = vmatpush2.bf16.msra.mxu1 %v17221_v25  ;;  %13727 = vmatprep.subr.bf16.mxu0 %v17226_v41 }
0x1c2f   :  { %13770 = vmatprep.subr.bf16.mxu1 %v17229_v17  ;;  %v17254_v17 = vld [vmem:[#allocation17 + $0xca0] ss:$16 sps:$4 sm:$0xff]  }
0x1c31   :  { %13728 = vmatpush2.bf16.msra.mxu0 %v17224_v46  ;;  %v17257_v46 = vld [vmem:[#allocation17 + $0xea0] ss:$16 sps:$4 sm:$0xff]  }
0x1c32   :  { %13771 = vmatpush2.bf16.msra.mxu1 %v17227_v62  ;;  %13729 = vmatprep.subr.bf16.mxu0 %v17232_v22 }
0x1c33   :  { %13772 = vmatprep.subr.bf16.mxu1 %v17235_v1  ;;  %v17265_v1 = vld [vmem:[#allocation17 + $0xe84] ss:$16 sps:$4 sm:$0xff]  }
0x1c35   :  { %13730 = vmatpush2.bf16.msra.mxu0 %v17230_v57 }
0x1c36   :  { %13773 = vmatpush2.bf16.msra.mxu1 %v17233_v10  ;;  %13731 = vmatprep.subr.bf16.mxu0 %v17238_v40  ;;  %v17263_v10 = vld [vmem:[#allocation17 + $0xe80] ss:$16 sps:$4 sm:$0xff]   ;;  %v17268_v40 = vld [vmem:[#allocation17 + $0xc64] ss:$16 sps:$4 sm:$0xff]  }
0x1c37   :  { %13774 = vmatprep.subr.bf16.mxu1 %v17241_v14 }
0x1c39   :  { %13732 = vmatpush2.bf16.msra.mxu0 %v17236_v54 }
0x1c3a   :  { %13775 = vmatpush2.bf16.msra.mxu1 %v17239_v45  ;;  %13787 = vmatprep.subr.bf16.mxu0 %v17244_v27  ;;  %v17269_v45 = vld [vmem:[#allocation17 + $0xe60] ss:$16 sps:$4 sm:$0xff]   ;;  %v17274_v27 = vld [vmem:[#allocation17 + $0xc44] ss:$16 sps:$4 sm:$0xff]  }
0x1c3b   :  { %13830 = vmatprep.subr.bf16.mxu1 %v17247_v19  ;;  %v17277_v19 = vld [vmem:[#allocation17 + $0xe44] ss:$16 sps:$4 sm:$0xff]  }
0x1c3c   :  { %v19202_v7 = vpop.f32.mrf.mxu0  ;;  %13734 = vmatmul.mubr.bf16.vlgmr.msra.gmra.mxu0 %v19134_v9 }
0x1c3d   :  { %v19205_v37 = vpop.f32.mrf.mxu1  ;;  %13777 = vmatmul.mubr.bf16.vlgmr.msra.gmra.mxu1 %v19166_v28  ;;  %13788 = vmatpush1.bf16.msra.mxu0 %v17242_v11  ;;  %v17275_v11 = vld [vmem:[#allocation17 + $0xe40] ss:$16 sps:$4 sm:$0xff]  }
0x1c3e   :  { %13819 = vmatprep.mubr.bf16.mxu0 %v19200_v21  ;;  %13831 = vmatpush1.bf16.msra.mxu1 %v17245_v59  ;;  %v10337_v36 = vpop.f32.mrf.mxu0  ;;  %v17283_v59 = vld [vmem:[#allocation17 + $0xe24] ss:$16 sps:$4 sm:$0xff]  }
0x1c3f   :  { %v10338_v33 = vadd.f32 %v10337_v36, %v7122_v18  ;;  %v10380_v26 = vpop.f32.mrf.mxu1  ;;  %13789 = vmatprep.subr.bf16.mxu0 %v17250_v56  ;;  %13832 = vmatprep.subr.bf16.mxu1 %v17253_v13  ;;  %v17281_v56 = vld [vmem:[#allocation17 + $0xe20] ss:$16 sps:$4 sm:$0xff]   ;;  %v17286_v13 = vld [vmem:[#allocation17 + $0xc04] ss:$16 sps:$4 sm:$0xff]  }
0x1c40   :  { %v19209_v25 = vpop.f32.mrf.mxu0  ;;  %v17284_v36 = vld [vmem:[#allocation17 + $0xc00] ss:$16 sps:$4 sm:$0xff]  }
0x1c41   :  { %v19211_v41 = vpop.f32.mrf.mxu1  ;;  %13790 = vmatpush1.bf16.msra.mxu0 %v17248_v38  ;;  %v10381_v62 = vadd.f32 %v10380_v26, %v10338_v33  ;;  %v17289_v38 = vld [vmem:[#allocation17 + $0xe04] ss:$16 sps:$4 sm:$0xff]   ;;  %v17290_v26 = vld [vmem:[#allocation17 + $0xde0] ss:$16 sps:$4 sm:$0xff]  }
0x1c42   :  { %13833 = vmatpush1.bf16.msra.mxu1 %v17251_v2  ;;  %v10341_v63 = vpop.f32.mrf.mxu0  ;;  %13791 = vmatprep.subr.bf16.mxu0 %v17256_v50  ;;  %v17287_v2 = vld [vmem:[#allocation17 + $0xe00] ss:$16 sps:$4 sm:$0xff]   ;;  %v17292_v50 = vld [vmem:[#allocation17 + $0xde4] ss:$16 sps:$4 sm:$0xff]  }
0x1c43   :  { %v10342_v22 = vadd.f32 %v10341_v63, %v7122_v18  ;;  %13834 = vmatprep.subr.bf16.mxu1 %v17259_v31  ;;  %v10384_v51 = vpop.f32.mrf.mxu1  ;;  %v10402_v39 = vmax.f32 %v10381_v62, 0.0  ;;  %v17278_v18 = vld [vmem:[#allocation17 + $0xc20] ss:$16 sps:$4 sm:$0xff]   ;;  %v17295_v33 = vld [vmem:[#allocation17 + $0xfe4] ss:$16 sps:$4 sm:$0xff]  }
0x1c44   :  { %v17293_v31 = vld [vmem:[#allocation17 + $0xfe0] ss:$16 sps:$4 sm:$0xff]   ;;  %v17301_v63 = vld [vmem:[#allocation17 + $0xfc4] ss:$16 sps:$4 sm:$0xff]  }
0x1c45   :  { %v10385_v57 = vadd.f32 %v10384_v51, %v10342_v22  ;;  %13792 = vmatpush1.bf16.msra.mxu0 %v17254_v17  ;;  %v17298_v17 = vld [vmem:[#allocation17 + $0xdc4] ss:$16 sps:$4 sm:$0xff]   ;;  %v17305_v51 = vld [vmem:[#allocation17 + $0xfa0] ss:$16 sps:$4 sm:$0xff]  }
0x1c46   :  { %13835 = vmatpush1.bf16.msra.mxu1 %v17257_v46  ;;  %13793 = vmatprep.subr.bf16.mxu0 %v17262_v44  ;;  %v17296_v46 = vld [vmem:[#allocation17 + $0xdc0] ss:$16 sps:$4 sm:$0xff]   ;;  %v17304_v62 = vld [vmem:[#allocation17 + $0xda4] ss:$16 sps:$4 sm:$0xff]  }
0x1c47   :  { %v10418_v14 = vmax.f32 %v10385_v57, 0.0  ;;  %13836 = vmatprep.subr.bf16.mxu1 %v17265_v1  ;;  %v17299_v44 = vld [vmem:[#allocation17 + $0xfc0] ss:$16 sps:$4 sm:$0xff]   ;;  %v17307_v22 = vld [vmem:[#allocation17 + $0xfa4] ss:$16 sps:$4 sm:$0xff]  }
0x1c48   :  { %v17302_v1 = vld [vmem:[#allocation17 + $0xda0] ss:$16 sps:$4 sm:$0xff]   ;;  %v17310_v57 = vld [vmem:[#allocation17 + $0xd84] ss:$16 sps:$4 sm:$0xff]  }
0x1c49   :  { %v19213_v54 = vpack.c.bf16 %v10418_v14, %v10402_v39  ;;  %13794 = vmatpush1.bf16.msra.mxu0 %v17260_v0  ;;  %v17313_v0 = vld [vmem:[#allocation17 + $0xf84] ss:$16 sps:$4 sm:$0xff]  }
0x1c4a   :  { %13837 = vmatpush1.bf16.msra.mxu1 %v17263_v10  ;;  %13795 = vmatprep.subr.bf16.mxu0 %v17268_v40  ;;  %v17308_v10 = vld [vmem:[#allocation17 + $0xd80] ss:$16 sps:$4 sm:$0xff]   ;;  %v17316_v39 = vld [vmem:[#allocation17 + $0xd64] ss:$16 sps:$4 sm:$0xff]  }
0x1c4b   :  { %13862 = vmatprep.mubr.bf16.mxu1 %v19213_v54  ;;  %13838 = vmatprep.subr.bf16.mxu1 %v17271_v53  ;;  %v17311_v40 = vld [vmem:[#allocation17 + $0xf80] ss:$16 sps:$4 sm:$0xff]   ;;  %v17319_v14 = vld [vmem:[#allocation17 + $0xf64] ss:$16 sps:$4 sm:$0xff]  }
0x1c4c   :  { %v17314_v53 = vld [vmem:[#allocation17 + $0xd60] ss:$16 sps:$4 sm:$0xff]  }
0x1c4d   :  { %13796 = vmatpush1.bf16.msra.mxu0 %v17266_v23  ;;  %v17317_v23 = vld [vmem:[#allocation17 + $0xf60] ss:$16 sps:$4 sm:$0xff]  }
0x1c4e   :  { %13839 = vmatpush1.bf16.msra.mxu1 %v17269_v45  ;;  %13797 = vmatprep.subr.bf16.mxu0 %v17274_v27  ;;  %v17322_v45 = vld [vmem:[#allocation17 + $0xd44] ss:$16 sps:$4 sm:$0xff]  }
0x1c4f   :  { %13840 = vmatprep.subr.bf16.mxu1 %v17277_v19  ;;  %v17325_v27 = vld [vmem:[#allocation17 + $0xf44] ss:$16 sps:$4 sm:$0xff]   ;;  %v17804_v19 = vld [vmem:[#allocation16 + $0x8] sm:$0xff] }
0x1c51   :  { %13798 = vmatpush1.bf16.msra.mxu0 %v17272_v20  ;;  %v7118_v20 = vrot.slane %v17804_v19, %v18314_v49  ;;  %v17373_v19 = vld [vmem:[#allocation17 + $0x24c] ss:$16 sps:$4 sm:$0xff]  }
0x1c52   :  { %13841 = vmatpush1.bf16.msra.mxu1 %v17275_v11  ;;  %13799 = vmatprep.subr.bf16.mxu0 %v17280_v35  ;;  %v17320_v11 = vld [vmem:[#allocation17 + $0xd40] ss:$16 sps:$4 sm:$0xff]  }
0x1c53   :  { %13842 = vmatprep.subr.bf16.mxu1 %v17283_v59  ;;  %v17323_v35 = vld [vmem:[#allocation17 + $0xf40] ss:$16 sps:$4 sm:$0xff]   ;;  %v17328_v59 = vld [vmem:[#allocation17 + $0xd24] ss:$16 sps:$4 sm:$0xff]  }
0x1c55   :  { %13800 = vmatpush1.bf16.msra.mxu0 %v17278_v18  ;;  %v10340_v18 = vadd.f32 %v19209_v25, %v7118_v20  ;;  %v17335_v25 = vld [vmem:[#allocation17 + $0xf00] ss:$16 sps:$4 sm:$0xff]  }
0x1c56   :  { %13843 = vmatpush1.bf16.msra.mxu1 %v17281_v56  ;;  %13801 = vmatprep.subr.bf16.mxu0 %v17286_v13  ;;  %v17331_v56 = vld [vmem:[#allocation17 + $0xf24] ss:$16 sps:$4 sm:$0xff]   ;;  %v10336_v13 = vadd.f32 %v19202_v7, %v7118_v20  ;;  %v17343_v7 = vld [vmem:[#allocation17 + $0x2ec] ss:$16 sps:$4 sm:$0xff]   ;;  %v17368_v20 = vld [vmem:[#allocation17 + $0x48] ss:$16 sps:$4 sm:$0xff]  }
0x1c57   :  { %13844 = vmatprep.subr.bf16.mxu1 %v17289_v38  ;;  %v17326_v38 = vld [vmem:[#allocation17 + $0xd20] ss:$16 sps:$4 sm:$0xff]   ;;  %v10383_v49 = vadd.f32 %v19211_v41, %v10340_v18  ;;  %v17374_v18 = vld [vmem:[#allocation17 + $0x28] ss:$16 sps:$4 sm:$0xff]  }
0x1c59   :  { %13802 = vmatpush1.bf16.msra.mxu0 %v17284_v36  ;;  %v17329_v36 = vld [vmem:[#allocation17 + $0xf20] ss:$16 sps:$4 sm:$0xff]  }
0x1c5a   :  { %13845 = vmatpush1.bf16.msra.mxu1 %v17287_v2  ;;  %13803 = vmatprep.subr.bf16.mxu0 %v17292_v50  ;;  %v17334_v2 = vld [vmem:[#allocation17 + $0xd04] ss:$16 sps:$4 sm:$0xff]  }
0x1c5b   :  { %13846 = vmatprep.subr.bf16.mxu1 %v17295_v33  ;;  %v17337_v50 = vld [vmem:[#allocation17 + $0xf04] ss:$16 sps:$4 sm:$0xff]   ;;  %v10379_v33 = vadd.f32 %v19205_v37, %v10336_v13  ;;  %v17349_v37 = vld [vmem:[#allocation17 + $0x2cc] ss:$16 sps:$4 sm:$0xff]  }
0x1c5c   :  { %v17382_v13 = vld [vmem:[#allocation17 + $0xc] ss:$16 sps:$4 sm:$0xff]  }
0x1c5d   :  { %13804 = vmatpush2.bf16.msra.mxu0 %v17290_v26  ;;  %v17332_v26 = vld [vmem:[#allocation17 + $0xd00] ss:$16 sps:$4 sm:$0xff]  }
0x1c5e   :  { %13847 = vmatpush2.bf16.msra.mxu1 %v17293_v31  ;;  %13805 = vmatprep.subr.bf16.mxu0 %v17298_v17  ;;  %v17340_v31 = vld [vmem:[#allocation17 + $0xec] ss:$16 sps:$4 sm:$0xff]   ;;  %v10417_v17 = vmax.f32 %v10383_v49, 0.0 }
0x1c5f   :  { %13848 = vmatprep.subr.bf16.mxu1 %v17301_v63  ;;  %v10401_v63 = vmax.f32 %v10379_v33, 0.0  ;;  %v17388_v49 = vld [vmem:[#allocation17 + $0x1ec] ss:$16 sps:$4 sm:$0xff]   ;;  %v17386_v33 = vld [vmem:[#allocation17 + $0x1e8] ss:$16 sps:$4 sm:$0xff]  }
0x1c61   :  { %13806 = vmatpush2.bf16.msra.mxu0 %v17296_v46  ;;  %v17338_v46 = vld [vmem:[#allocation17 + $0xe8] ss:$16 sps:$4 sm:$0xff]   ;;  %v19221_v41 = vpack.c.bf16 %v10417_v17, %v10401_v63  ;;  %v17400_v63 = vld [vmem:[#allocation17 + $0x1ac] ss:$16 sps:$4 sm:$0xff]  }
0x1c62   :  { %13849 = vmatpush2.bf16.msra.mxu1 %v17299_v44  ;;  %13807 = vmatprep.subr.bf16.mxu0 %v17304_v62  ;;  %v17341_v44 = vld [vmem:[#allocation17 + $0x2e8] ss:$16 sps:$4 sm:$0xff]   ;;  %v17346_v62 = vld [vmem:[#allocation17 + $0xcc] ss:$16 sps:$4 sm:$0xff]  }
0x1c63   :  { %13850 = vmatprep.subr.bf16.mxu1 %v17307_v22  ;;  %v17344_v22 = vld [vmem:[#allocation17 + $0xc8] ss:$16 sps:$4 sm:$0xff]  }
0x1c64   :  { %v17392_v17 = vld [vmem:[#allocation17 + $0x1c8] ss:$16 sps:$4 sm:$0xff]  }
0x1c65   :  { %13808 = vmatpush2.bf16.msra.mxu0 %v17302_v1  ;;  %v17347_v1 = vld [vmem:[#allocation17 + $0x2c8] ss:$16 sps:$4 sm:$0xff]  }
0x1c66   :  { %13851 = vmatpush2.bf16.msra.mxu1 %v17305_v51  ;;  %13809 = vmatprep.subr.bf16.mxu0 %v17310_v57  ;;  %v17352_v51 = vld [vmem:[#allocation17 + $0xac] ss:$16 sps:$4 sm:$0xff]  }
0x1c67   :  { %13852 = vmatprep.subr.bf16.mxu1 %v17313_v0  ;;  %v17355_v57 = vld [vmem:[#allocation17 + $0x2ac] ss:$16 sps:$4 sm:$0xff]   ;;  %v17350_v0 = vld [vmem:[#allocation17 + $0xa8] ss:$16 sps:$4 sm:$0xff]  }
0x1c69   :  { %13810 = vmatpush2.bf16.msra.mxu0 %v17308_v10  ;;  %v17353_v10 = vld [vmem:[#allocation17 + $0x2a8] ss:$16 sps:$4 sm:$0xff]  }
0x1c6a   :  { %13853 = vmatpush2.bf16.msra.mxu1 %v17311_v40  ;;  %13811 = vmatprep.subr.bf16.mxu0 %v17316_v39  ;;  %v17358_v40 = vld [vmem:[#allocation17 + $0x8c] ss:$16 sps:$4 sm:$0xff]  }
0x1c6b   :  { %13854 = vmatprep.subr.bf16.mxu1 %v17319_v14  ;;  %v17361_v39 = vld [vmem:[#allocation17 + $0x28c] ss:$16 sps:$4 sm:$0xff]   ;;  %v17356_v14 = vld [vmem:[#allocation17 + $0x88] ss:$16 sps:$4 sm:$0xff]  }
0x1c6d   :  { %13812 = vmatpush2.bf16.msra.mxu0 %v17314_v53  ;;  %v17364_v53 = vld [vmem:[#allocation17 + $0x6c] ss:$16 sps:$4 sm:$0xff]  }
0x1c6e   :  { %13855 = vmatpush2.bf16.msra.mxu1 %v17317_v23  ;;  %13813 = vmatprep.subr.bf16.mxu0 %v17322_v45  ;;  %v17367_v23 = vld [vmem:[#allocation17 + $0x26c] ss:$16 sps:$4 sm:$0xff]   ;;  %v17365_v45 = vld [vmem:[#allocation17 + $0x268] ss:$16 sps:$4 sm:$0xff]  }
0x1c6f   :  { %13856 = vmatprep.subr.bf16.mxu1 %v17325_v27  ;;  %v17370_v27 = vld [vmem:[#allocation17 + $0x4c] ss:$16 sps:$4 sm:$0xff]  }
0x1c71   :  { %13814 = vmatpush2.bf16.msra.mxu0 %v17320_v11  ;;  %v17371_v11 = vld [vmem:[#allocation17 + $0x248] ss:$16 sps:$4 sm:$0xff]  }
0x1c72   :  { %13857 = vmatpush2.bf16.msra.mxu1 %v17323_v35  ;;  %13815 = vmatprep.subr.bf16.mxu0 %v17328_v59  ;;  %v17376_v35 = vld [vmem:[#allocation17 + $0x2c] ss:$16 sps:$4 sm:$0xff]  }
0x1c73   :  { %13858 = vmatprep.subr.bf16.mxu1 %v17331_v56  ;;  %v17379_v59 = vld [vmem:[#allocation17 + $0x22c] ss:$16 sps:$4 sm:$0xff]   ;;  %v17377_v56 = vld [vmem:[#allocation17 + $0x228] ss:$16 sps:$4 sm:$0xff]  }
0x1c75   :  { %13816 = vmatpush2.bf16.msra.mxu0 %v17326_v38  ;;  %v17385_v38 = vld [vmem:[#allocation17 + $0x20c] ss:$16 sps:$4 sm:$0xff]  }
0x1c76   :  { %13859 = vmatpush2.bf16.msra.mxu1 %v17329_v36  ;;  %13817 = vmatprep.subr.bf16.mxu0 %v17334_v2  ;;  %v17380_v36 = vld [vmem:[#allocation17 + $0x8] ss:$16 sps:$4 sm:$0xff]  }
0x1c77   :  { %13860 = vmatprep.subr.bf16.mxu1 %v17337_v50  ;;  %v17383_v2 = vld [vmem:[#allocation17 + $0x208] ss:$16 sps:$4 sm:$0xff]   ;;  %v17391_v50 = vld [vmem:[#allocation17 + $0x3ec] ss:$16 sps:$4 sm:$0xff]  }
0x1c79   :  { %13818 = vmatpush2.bf16.msra.mxu0 %v17332_v26  ;;  %v17389_v26 = vld [vmem:[#allocation17 + $0x3e8] ss:$16 sps:$4 sm:$0xff]  }
0x1c7a   :  { %13861 = vmatpush2.bf16.msra.mxu1 %v17335_v25  ;;  %13873 = vmatprep.subr.bf16.mxu0 %v17340_v31  ;;  %v17394_v25 = vld [vmem:[#allocation17 + $0x1cc] ss:$16 sps:$4 sm:$0xff]  }
0x1c7b   :  { %13916 = vmatprep.subr.bf16.mxu1 %v17343_v7  ;;  %v17397_v31 = vld [vmem:[#allocation17 + $0x3cc] ss:$16 sps:$4 sm:$0xff]   ;;  %v17395_v7 = vld [vmem:[#allocation17 + $0x3c8] ss:$16 sps:$4 sm:$0xff]  }
0x1c7c   :  { %13820 = vmatmul.mubr.bf16.vlgmr.msra.gmra.mxu0 %v19192_v61 }
0x1c7d   :  { %13863 = vmatmul.mubr.bf16.vlgmr.msra.gmra.mxu1 %v19221_v41  ;;  %13874 = vmatpush1.bf16.msra.mxu0 %v17338_v46  ;;  %v17403_v46 = vld [vmem:[#allocation17 + $0x3ac] ss:$16 sps:$4 sm:$0xff]  }
0x1c7e   :  { %13905 = vmatprep.mubr.bf16.mxu0 %v19122_v12  ;;  %13917 = vmatpush1.bf16.msra.mxu1 %v17341_v44  ;;  %v17359_v12 = vld [vmem:[#allocation17 + $0x288] ss:$16 sps:$4 sm:$0xff]  }
0x1c7f   :  { %13948 = vmatprep.mubr.bf16.mxu1 %v19125_v32  ;;  %13875 = vmatprep.subr.bf16.mxu0 %v17346_v62  ;;  %v17362_v32 = vld [vmem:[#allocation17 + $0x68] ss:$16 sps:$4 sm:$0xff]  }
0x1c80   :  { %13918 = vmatprep.subr.bf16.mxu1 %v17349_v37  ;;  %v17398_v44 = vld [vmem:[#allocation17 + $0x1a8] ss:$16 sps:$4 sm:$0xff]   ;;  %v17406_v37 = vld [vmem:[#allocation17 + $0x18c] ss:$16 sps:$4 sm:$0xff]  }
0x1c81   :  { %13876 = vmatpush1.bf16.msra.mxu0 %v17344_v22  ;;  %v17401_v62 = vld [vmem:[#allocation17 + $0x3a8] ss:$16 sps:$4 sm:$0xff]   ;;  %v17409_v22 = vld [vmem:[#allocation17 + $0x38c] ss:$16 sps:$4 sm:$0xff]  }
0x1c82   :  { %13919 = vmatpush1.bf16.msra.mxu1 %v17347_v1  ;;  %13877 = vmatprep.subr.bf16.mxu0 %v17352_v51  ;;  %v17404_v1 = vld [vmem:[#allocation17 + $0x188] ss:$16 sps:$4 sm:$0xff]  }
0x1c83   :  { %13920 = vmatprep.subr.bf16.mxu1 %v17355_v57  ;;  %v17407_v51 = vld [vmem:[#allocation17 + $0x388] ss:$16 sps:$4 sm:$0xff]   ;;  %v17412_v57 = vld [vmem:[#allocation17 + $0x16c] ss:$16 sps:$4 sm:$0xff]  }
0x1c85   :  { %13878 = vmatpush1.bf16.msra.mxu0 %v17350_v0  ;;  %v17415_v0 = vld [vmem:[#allocation17 + $0x36c] ss:$16 sps:$4 sm:$0xff]  }
0x1c86   :  { %13921 = vmatpush1.bf16.msra.mxu1 %v17353_v10  ;;  %13879 = vmatprep.subr.bf16.mxu0 %v17358_v40  ;;  %v17410_v10 = vld [vmem:[#allocation17 + $0x168] ss:$16 sps:$4 sm:$0xff]  }
0x1c87   :  { %13922 = vmatprep.subr.bf16.mxu1 %v17361_v39  ;;  %v17413_v40 = vld [vmem:[#allocation17 + $0x368] ss:$16 sps:$4 sm:$0xff]   ;;  %v17418_v39 = vld [vmem:[#allocation17 + $0x14c] ss:$16 sps:$4 sm:$0xff]  }
0x1c89   :  { %13880 = vmatpush1.bf16.msra.mxu0 %v17356_v14  ;;  %v17421_v14 = vld [vmem:[#allocation17 + $0x34c] ss:$16 sps:$4 sm:$0xff]  }
0x1c8a   :  { %13923 = vmatpush1.bf16.msra.mxu1 %v17359_v12  ;;  %13881 = vmatprep.subr.bf16.mxu0 %v17364_v53  ;;  %v17416_v12 = vld [vmem:[#allocation17 + $0x148] ss:$16 sps:$4 sm:$0xff]  }
0x1c8b   :  { %13924 = vmatprep.subr.bf16.mxu1 %v17367_v23  ;;  %v17419_v53 = vld [vmem:[#allocation17 + $0x348] ss:$16 sps:$4 sm:$0xff]   ;;  %v17424_v23 = vld [vmem:[#allocation17 + $0x12c] ss:$16 sps:$4 sm:$0xff]  }
0x1c8d   :  { %13882 = vmatpush1.bf16.msra.mxu0 %v17362_v32  ;;  %v17427_v32 = vld [vmem:[#allocation17 + $0x32c] ss:$16 sps:$4 sm:$0xff]  }
0x1c8e   :  { %13925 = vmatpush1.bf16.msra.mxu1 %v17365_v45  ;;  %13883 = vmatprep.subr.bf16.mxu0 %v17370_v27  ;;  %v17422_v45 = vld [vmem:[#allocation17 + $0x128] ss:$16 sps:$4 sm:$0xff]  }
0x1c8f   :  { %13926 = vmatprep.subr.bf16.mxu1 %v17373_v19  ;;  %v17425_v27 = vld [vmem:[#allocation17 + $0x328] ss:$16 sps:$4 sm:$0xff]   ;;  %v17430_v19 = vld [vmem:[#allocation17 + $0x10c] ss:$16 sps:$4 sm:$0xff]  }
0x1c91   :  { %13884 = vmatpush1.bf16.msra.mxu0 %v17368_v20  ;;  %v17433_v20 = vld [vmem:[#allocation17 + $0x30c] ss:$16 sps:$4 sm:$0xff]  }
0x1c92   :  { %13927 = vmatpush1.bf16.msra.mxu1 %v17371_v11  ;;  %13885 = vmatprep.subr.bf16.mxu0 %v17376_v35  ;;  %v17428_v11 = vld [vmem:[#allocation17 + $0x108] ss:$16 sps:$4 sm:$0xff]  }
0x1c93   :  { %13928 = vmatprep.subr.bf16.mxu1 %v17379_v59  ;;  %v17431_v35 = vld [vmem:[#allocation17 + $0x308] ss:$16 sps:$4 sm:$0xff]   ;;  %v17436_v59 = vld [vmem:[#allocation17 + $0x4ec] ss:$16 sps:$4 sm:$0xff]  }
0x1c95   :  { %13886 = vmatpush1.bf16.msra.mxu0 %v17374_v18  ;;  %v17439_v18 = vld [vmem:[#allocation17 + $0x6ec] ss:$16 sps:$4 sm:$0xff]  }
0x1c96   :  { %13929 = vmatpush1.bf16.msra.mxu1 %v17377_v56  ;;  %13887 = vmatprep.subr.bf16.mxu0 %v17382_v13  ;;  %v17434_v56 = vld [vmem:[#allocation17 + $0x4e8] ss:$16 sps:$4 sm:$0xff]  }
0x1c97   :  { %13930 = vmatprep.subr.bf16.mxu1 %v17385_v38  ;;  %v17437_v13 = vld [vmem:[#allocation17 + $0x6e8] ss:$16 sps:$4 sm:$0xff]   ;;  %v17442_v38 = vld [vmem:[#allocation17 + $0x4cc] ss:$16 sps:$4 sm:$0xff]  }
0x1c99   :  { %13888 = vmatpush1.bf16.msra.mxu0 %v17380_v36  ;;  %v17445_v36 = vld [vmem:[#allocation17 + $0x6cc] ss:$16 sps:$4 sm:$0xff]  }
0x1c9a   :  { %13931 = vmatpush1.bf16.msra.mxu1 %v17383_v2  ;;  %13889 = vmatprep.subr.bf16.mxu0 %v17388_v49  ;;  %v17440_v2 = vld [vmem:[#allocation17 + $0x4c8] ss:$16 sps:$4 sm:$0xff]  }
0x1c9b   :  { %13932 = vmatprep.subr.bf16.mxu1 %v17391_v50  ;;  %v17443_v49 = vld [vmem:[#allocation17 + $0x6c8] ss:$16 sps:$4 sm:$0xff]   ;;  %v17448_v50 = vld [vmem:[#allocation17 + $0x4ac] ss:$16 sps:$4 sm:$0xff]  }
0x1c9d   :  { %13890 = vmatpush2.bf16.msra.mxu0 %v17386_v33  ;;  %v17451_v33 = vld [vmem:[#allocation17 + $0x6ac] ss:$16 sps:$4 sm:$0xff]  }
0x1c9e   :  { %13933 = vmatpush2.bf16.msra.mxu1 %v17389_v26  ;;  %13891 = vmatprep.subr.bf16.mxu0 %v17394_v25  ;;  %v17446_v26 = vld [vmem:[#allocation17 + $0x4a8] ss:$16 sps:$4 sm:$0xff]   ;;  %v17454_v25 = vld [vmem:[#allocation17 + $0x48c] ss:$16 sps:$4 sm:$0xff]  }
0x1c9f   :  { %13934 = vmatprep.subr.bf16.mxu1 %v17397_v31  ;;  %v17452_v31 = vld [vmem:[#allocation17 + $0x488] ss:$16 sps:$4 sm:$0xff]  }
0x1ca1   :  { %13892 = vmatpush2.bf16.msra.mxu0 %v17392_v17  ;;  %v17460_v17 = vld [vmem:[#allocation17 + $0x46c] ss:$16 sps:$4 sm:$0xff]  }
0x1ca2   :  { %13935 = vmatpush2.bf16.msra.mxu1 %v17395_v7  ;;  %13893 = vmatprep.subr.bf16.mxu0 %v17400_v63  ;;  %v17463_v7 = vld [vmem:[#allocation17 + $0x66c] ss:$16 sps:$4 sm:$0xff]   ;;  %v17461_v63 = vld [vmem:[#allocation17 + $0x668] ss:$16 sps:$4 sm:$0xff]  }
0x1ca3   :  { %13936 = vmatprep.subr.bf16.mxu1 %v17403_v46  ;;  %v17466_v46 = vld [vmem:[#allocation17 + $0x44c] ss:$16 sps:$4 sm:$0xff]  }
0x1ca5   :  { %13894 = vmatpush2.bf16.msra.mxu0 %v17398_v44  ;;  %v17469_v44 = vld [vmem:[#allocation17 + $0x64c] ss:$16 sps:$4 sm:$0xff]  }
0x1ca6   :  { %13937 = vmatpush2.bf16.msra.mxu1 %v17401_v62  ;;  %13895 = vmatprep.subr.bf16.mxu0 %v17406_v37  ;;  %v17464_v62 = vld [vmem:[#allocation17 + $0x448] ss:$16 sps:$4 sm:$0xff]  }
0x1ca7   :  { %13938 = vmatprep.subr.bf16.mxu1 %v17409_v22  ;;  %v17467_v37 = vld [vmem:[#allocation17 + $0x648] ss:$16 sps:$4 sm:$0xff]   ;;  %v17472_v22 = vld [vmem:[#allocation17 + $0x42c] ss:$16 sps:$4 sm:$0xff]  }
0x1ca9   :  { %13896 = vmatpush2.bf16.msra.mxu0 %v17404_v1  ;;  %v17475_v1 = vld [vmem:[#allocation17 + $0x62c] ss:$16 sps:$4 sm:$0xff]  }
0x1caa   :  { %13939 = vmatpush2.bf16.msra.mxu1 %v17407_v51  ;;  %13897 = vmatprep.subr.bf16.mxu0 %v17412_v57  ;;  %v17470_v51 = vld [vmem:[#allocation17 + $0x428] ss:$16 sps:$4 sm:$0xff]  }
0x1cab   :  { %13940 = vmatprep.subr.bf16.mxu1 %v17415_v0  ;;  %v17473_v57 = vld [vmem:[#allocation17 + $0x628] ss:$16 sps:$4 sm:$0xff]   ;;  %v17478_v0 = vld [vmem:[#allocation17 + $0x40c] ss:$16 sps:$4 sm:$0xff]  }
0x1cad   :  { %13898 = vmatpush2.bf16.msra.mxu0 %v17410_v10  ;;  %v17481_v10 = vld [vmem:[#allocation17 + $0x60c] ss:$16 sps:$4 sm:$0xff]  }
0x1cae   :  { %13941 = vmatpush2.bf16.msra.mxu1 %v17413_v40  ;;  %13899 = vmatprep.subr.bf16.mxu0 %v17418_v39  ;;  %v17476_v40 = vld [vmem:[#allocation17 + $0x408] ss:$16 sps:$4 sm:$0xff]  }
0x1caf   :  { %13942 = vmatprep.subr.bf16.mxu1 %v17421_v14  ;;  %v17479_v39 = vld [vmem:[#allocation17 + $0x608] ss:$16 sps:$4 sm:$0xff]   ;;  %v17484_v14 = vld [vmem:[#allocation17 + $0x5ec] ss:$16 sps:$4 sm:$0xff]  }
0x1cb1   :  { %13900 = vmatpush2.bf16.msra.mxu0 %v17416_v12  ;;  %v17487_v12 = vld [vmem:[#allocation17 + $0x7ec] ss:$16 sps:$4 sm:$0xff]  }
0x1cb2   :  { %13943 = vmatpush2.bf16.msra.mxu1 %v17419_v53  ;;  %13901 = vmatprep.subr.bf16.mxu0 %v17424_v23  ;;  %v17482_v53 = vld [vmem:[#allocation17 + $0x5e8] ss:$16 sps:$4 sm:$0xff]  }
0x1cb3   :  { %13944 = vmatprep.subr.bf16.mxu1 %v17427_v32  ;;  %v17485_v23 = vld [vmem:[#allocation17 + $0x7e8] ss:$16 sps:$4 sm:$0xff]   ;;  %v17490_v32 = vld [vmem:[#allocation17 + $0x5cc] ss:$16 sps:$4 sm:$0xff]  }
0x1cb5   :  { %13902 = vmatpush2.bf16.msra.mxu0 %v17422_v45  ;;  %v17493_v45 = vld [vmem:[#allocation17 + $0x7cc] ss:$16 sps:$4 sm:$0xff]  }
0x1cb6   :  { %13945 = vmatpush2.bf16.msra.mxu1 %v17425_v27  ;;  %13903 = vmatprep.subr.bf16.mxu0 %v17430_v19  ;;  %v17488_v27 = vld [vmem:[#allocation17 + $0x5c8] ss:$16 sps:$4 sm:$0xff]  }
0x1cb7   :  { %13946 = vmatprep.subr.bf16.mxu1 %v17433_v20  ;;  %v17491_v19 = vld [vmem:[#allocation17 + $0x7c8] ss:$16 sps:$4 sm:$0xff]   ;;  %v17496_v20 = vld [vmem:[#allocation17 + $0x5ac] ss:$16 sps:$4 sm:$0xff]  }
0x1cb9   :  { %13904 = vmatpush2.bf16.msra.mxu0 %v17428_v11  ;;  %v17499_v11 = vld [vmem:[#allocation17 + $0x7ac] ss:$16 sps:$4 sm:$0xff]  }
0x1cba   :  { %13947 = vmatpush2.bf16.msra.mxu1 %v17431_v35  ;;  %13959 = vmatprep.subr.bf16.mxu0 %v17436_v59  ;;  %v17494_v35 = vld [vmem:[#allocation17 + $0x5a8] ss:$16 sps:$4 sm:$0xff]  }
0x1cbb   :  { %14002 = vmatprep.subr.bf16.mxu1 %v17439_v18  ;;  %v17497_v59 = vld [vmem:[#allocation17 + $0x7a8] ss:$16 sps:$4 sm:$0xff]   ;;  %v17502_v18 = vld [vmem:[#allocation17 + $0x58c] ss:$16 sps:$4 sm:$0xff]  }
0x1cbc   :  { %13906 = vmatmul.mubr.bf16.vlgmr.msra.gmra.mxu0 %v19050_v42  ;;  %v17449_v42 = vld [vmem:[#allocation17 + $0x6a8] ss:$16 sps:$4 sm:$0xff]  }
0x1cbd   :  { %13949 = vmatmul.mubr.bf16.vlgmr.msra.gmra.mxu1 %v19066_v48  ;;  %13960 = vmatpush1.bf16.msra.mxu0 %v17434_v56  ;;  %v17457_v48 = vld [vmem:[#allocation17 + $0x68c] ss:$16 sps:$4 sm:$0xff]  }
0x1cbe   :  { %13991 = vmatprep.mubr.bf16.mxu0 %v19154_v34  ;;  %14003 = vmatpush1.bf16.msra.mxu1 %v17437_v13  ;;  %v17455_v34 = vld [vmem:[#allocation17 + $0x688] ss:$16 sps:$4 sm:$0xff]   ;;  %v17505_v56 = vld [vmem:[#allocation17 + $0x78c] ss:$16 sps:$4 sm:$0xff]  }
0x1cbf   :  { %14034 = vmatprep.mubr.bf16.mxu1 %v19157_v58  ;;  %13961 = vmatprep.subr.bf16.mxu0 %v17442_v38  ;;  %v17458_v58 = vld [vmem:[#allocation17 + $0x468] ss:$16 sps:$4 sm:$0xff]  }
0x1cc0   :  { %14004 = vmatprep.subr.bf16.mxu1 %v17445_v36  ;;  %v17500_v13 = vld [vmem:[#allocation17 + $0x588] ss:$16 sps:$4 sm:$0xff]   ;;  %v17508_v36 = vld [vmem:[#allocation17 + $0x56c] ss:$16 sps:$4 sm:$0xff]  }
0x1cc1   :  { %13962 = vmatpush1.bf16.msra.mxu0 %v17440_v2  ;;  %v17503_v38 = vld [vmem:[#allocation17 + $0x788] ss:$16 sps:$4 sm:$0xff]   ;;  %v17511_v2 = vld [vmem:[#allocation17 + $0x76c] ss:$16 sps:$4 sm:$0xff]  }
0x1cc2   :  { %14005 = vmatpush1.bf16.msra.mxu1 %v17443_v49  ;;  %13963 = vmatprep.subr.bf16.mxu0 %v17448_v50  ;;  %v17506_v49 = vld [vmem:[#allocation17 + $0x568] ss:$16 sps:$4 sm:$0xff]  }
0x1cc3   :  { %14006 = vmatprep.subr.bf16.mxu1 %v17451_v33  ;;  %v17509_v50 = vld [vmem:[#allocation17 + $0x768] ss:$16 sps:$4 sm:$0xff]   ;;  %v17514_v33 = vld [vmem:[#allocation17 + $0x54c] ss:$16 sps:$4 sm:$0xff]  }
0x1cc5   :  { %13964 = vmatpush1.bf16.msra.mxu0 %v17446_v26  ;;  %v17517_v26 = vld [vmem:[#allocation17 + $0x74c] ss:$16 sps:$4 sm:$0xff]  }
0x1cc6   :  { %14007 = vmatpush1.bf16.msra.mxu1 %v17449_v42  ;;  %13965 = vmatprep.subr.bf16.mxu0 %v17454_v25  ;;  %v17512_v42 = vld [vmem:[#allocation17 + $0x548] ss:$16 sps:$4 sm:$0xff]  }
0x1cc7   :  { %14008 = vmatprep.subr.bf16.mxu1 %v17457_v48  ;;  %v17515_v25 = vld [vmem:[#allocation17 + $0x748] ss:$16 sps:$4 sm:$0xff]   ;;  %v17520_v48 = vld [vmem:[#allocation17 + $0x52c] ss:$16 sps:$4 sm:$0xff]  }
0x1cc9   :  { %13966 = vmatpush1.bf16.msra.mxu0 %v17452_v31  ;;  %v17523_v31 = vld [vmem:[#allocation17 + $0x72c] ss:$16 sps:$4 sm:$0xff]  }
0x1cca   :  { %14009 = vmatpush1.bf16.msra.mxu1 %v17455_v34  ;;  %13967 = vmatprep.subr.bf16.mxu0 %v17460_v17  ;;  %v17518_v34 = vld [vmem:[#allocation17 + $0x528] ss:$16 sps:$4 sm:$0xff]  }
0x1ccb   :  { %14010 = vmatprep.subr.bf16.mxu1 %v17463_v7  ;;  %v17521_v17 = vld [vmem:[#allocation17 + $0x728] ss:$16 sps:$4 sm:$0xff]   ;;  %v17526_v7 = vld [vmem:[#allocation17 + $0x50c] ss:$16 sps:$4 sm:$0xff]  }
0x1ccd   :  { %13968 = vmatpush1.bf16.msra.mxu0 %v17458_v58  ;;  %v17529_v58 = vld [vmem:[#allocation17 + $0x70c] ss:$16 sps:$4 sm:$0xff]  }
0x1cce   :  { %14011 = vmatpush1.bf16.msra.mxu1 %v17461_v63  ;;  %13969 = vmatprep.subr.bf16.mxu0 %v17466_v46  ;;  %v17524_v63 = vld [vmem:[#allocation17 + $0x508] ss:$16 sps:$4 sm:$0xff]  }
0x1ccf   :  { %14012 = vmatprep.subr.bf16.mxu1 %v17469_v44  ;;  %v17527_v46 = vld [vmem:[#allocation17 + $0x708] ss:$16 sps:$4 sm:$0xff]   ;;  %v17532_v44 = vld [vmem:[#allocation17 + $0x8ec] ss:$16 sps:$4 sm:$0xff]  }
0x1cd1   :  { %13970 = vmatpush1.bf16.msra.mxu0 %v17464_v62  ;;  %v17535_v62 = vld [vmem:[#allocation17 + $0xaec] ss:$16 sps:$4 sm:$0xff]  }
0x1cd2   :  { %14013 = vmatpush1.bf16.msra.mxu1 %v17467_v37  ;;  %13971 = vmatprep.subr.bf16.mxu0 %v17472_v22  ;;  %v17530_v37 = vld [vmem:[#allocation17 + $0x8e8] ss:$16 sps:$4 sm:$0xff]  }
0x1cd3   :  { %14014 = vmatprep.subr.bf16.mxu1 %v17475_v1  ;;  %v17533_v22 = vld [vmem:[#allocation17 + $0xae8] ss:$16 sps:$4 sm:$0xff]   ;;  %v17538_v1 = vld [vmem:[#allocation17 + $0x8cc] ss:$16 sps:$4 sm:$0xff]  }
0x1cd5   :  { %13972 = vmatpush1.bf16.msra.mxu0 %v17470_v51  ;;  %v17541_v51 = vld [vmem:[#allocation17 + $0xacc] ss:$16 sps:$4 sm:$0xff]  }
0x1cd6   :  { %14015 = vmatpush1.bf16.msra.mxu1 %v17473_v57  ;;  %13973 = vmatprep.subr.bf16.mxu0 %v17478_v0  ;;  %v17536_v57 = vld [vmem:[#allocation17 + $0x8c8] ss:$16 sps:$4 sm:$0xff]  }
0x1cd7   :  { %14016 = vmatprep.subr.bf16.mxu1 %v17481_v10  ;;  %v17539_v0 = vld [vmem:[#allocation17 + $0xac8] ss:$16 sps:$4 sm:$0xff]   ;;  %v17544_v10 = vld [vmem:[#allocation17 + $0x8ac] ss:$16 sps:$4 sm:$0xff]  }
0x1cd9   :  { %13974 = vmatpush1.bf16.msra.mxu0 %v17476_v40  ;;  %v17547_v40 = vld [vmem:[#allocation17 + $0xaac] ss:$16 sps:$4 sm:$0xff]  }
0x1cda   :  { %14017 = vmatpush1.bf16.msra.mxu1 %v17479_v39  ;;  %13975 = vmatprep.subr.bf16.mxu0 %v17484_v14  ;;  %v17542_v39 = vld [vmem:[#allocation17 + $0x8a8] ss:$16 sps:$4 sm:$0xff]   ;;  %v17550_v14 = vld [vmem:[#allocation17 + $0x88c] ss:$16 sps:$4 sm:$0xff]  }
0x1cdb   :  { %14018 = vmatprep.subr.bf16.mxu1 %v17487_v12  ;;  %v17548_v12 = vld [vmem:[#allocation17 + $0x888] ss:$16 sps:$4 sm:$0xff]  }
0x1cdd   :  { %13976 = vmatpush2.bf16.msra.mxu0 %v17482_v53  ;;  %v17556_v53 = vld [vmem:[#allocation17 + $0x86c] ss:$16 sps:$4 sm:$0xff]  }
0x1cde   :  { %14019 = vmatpush2.bf16.msra.mxu1 %v17485_v23  ;;  %13977 = vmatprep.subr.bf16.mxu0 %v17490_v32  ;;  %v17559_v23 = vld [vmem:[#allocation17 + $0xa6c] ss:$16 sps:$4 sm:$0xff]   ;;  %v17557_v32 = vld [vmem:[#allocation17 + $0xa68] ss:$16 sps:$4 sm:$0xff]  }
0x1cdf   :  { %14020 = vmatprep.subr.bf16.mxu1 %v17493_v45  ;;  %v17562_v45 = vld [vmem:[#allocation17 + $0x84c] ss:$16 sps:$4 sm:$0xff]  }
0x1ce1   :  { %13978 = vmatpush2.bf16.msra.mxu0 %v17488_v27  ;;  %v17565_v27 = vld [vmem:[#allocation17 + $0xa4c] ss:$16 sps:$4 sm:$0xff]  }
0x1ce2   :  { %14021 = vmatpush2.bf16.msra.mxu1 %v17491_v19  ;;  %13979 = vmatprep.subr.bf16.mxu0 %v17496_v20  ;;  %v17560_v19 = vld [vmem:[#allocation17 + $0x848] ss:$16 sps:$4 sm:$0xff]  }
0x1ce3   :  { %14022 = vmatprep.subr.bf16.mxu1 %v17499_v11  ;;  %v17563_v20 = vld [vmem:[#allocation17 + $0xa48] ss:$16 sps:$4 sm:$0xff]   ;;  %v17568_v11 = vld [vmem:[#allocation17 + $0x82c] ss:$16 sps:$4 sm:$0xff]  }
0x1ce5   :  { %13980 = vmatpush2.bf16.msra.mxu0 %v17494_v35  ;;  %v17571_v35 = vld [vmem:[#allocation17 + $0xa2c] ss:$16 sps:$4 sm:$0xff]  }
0x1ce6   :  { %14023 = vmatpush2.bf16.msra.mxu1 %v17497_v59  ;;  %13981 = vmatprep.subr.bf16.mxu0 %v17502_v18  ;;  %v17566_v59 = vld [vmem:[#allocation17 + $0x828] ss:$16 sps:$4 sm:$0xff]  }
0x1ce7   :  { %14024 = vmatprep.subr.bf16.mxu1 %v17505_v56  ;;  %v17569_v18 = vld [vmem:[#allocation17 + $0xa28] ss:$16 sps:$4 sm:$0xff]   ;;  %v17574_v56 = vld [vmem:[#allocation17 + $0x80c] ss:$16 sps:$4 sm:$0xff]  }
0x1ce9   :  { %13982 = vmatpush2.bf16.msra.mxu0 %v17500_v13  ;;  %v17577_v13 = vld [vmem:[#allocation17 + $0xa0c] ss:$16 sps:$4 sm:$0xff]  }
0x1cea   :  { %14025 = vmatpush2.bf16.msra.mxu1 %v17503_v38  ;;  %13983 = vmatprep.subr.bf16.mxu0 %v17508_v36  ;;  %v17572_v38 = vld [vmem:[#allocation17 + $0x808] ss:$16 sps:$4 sm:$0xff]  }
0x1ceb   :  { %14026 = vmatprep.subr.bf16.mxu1 %v17511_v2  ;;  %v17575_v36 = vld [vmem:[#allocation17 + $0xa08] ss:$16 sps:$4 sm:$0xff]   ;;  %v17580_v2 = vld [vmem:[#allocation17 + $0x9ec] ss:$16 sps:$4 sm:$0xff]  }
0x1ced   :  { %13984 = vmatpush2.bf16.msra.mxu0 %v17506_v49  ;;  %v17583_v49 = vld [vmem:[#allocation17 + $0xbec] ss:$16 sps:$4 sm:$0xff]  }
0x1cee   :  { %14027 = vmatpush2.bf16.msra.mxu1 %v17509_v50  ;;  %13985 = vmatprep.subr.bf16.mxu0 %v17514_v33  ;;  %v17578_v50 = vld [vmem:[#allocation17 + $0x9e8] ss:$16 sps:$4 sm:$0xff]  }
0x1cef   :  { %14028 = vmatprep.subr.bf16.mxu1 %v17517_v26  ;;  %v17581_v33 = vld [vmem:[#allocation17 + $0xbe8] ss:$16 sps:$4 sm:$0xff]   ;;  %v17586_v26 = vld [vmem:[#allocation17 + $0x9cc] ss:$16 sps:$4 sm:$0xff]  }
0x1cf1   :  { %13986 = vmatpush2.bf16.msra.mxu0 %v17512_v42  ;;  %v17589_v42 = vld [vmem:[#allocation17 + $0xbcc] ss:$16 sps:$4 sm:$0xff]  }
0x1cf2   :  { %14029 = vmatpush2.bf16.msra.mxu1 %v17515_v25  ;;  %13987 = vmatprep.subr.bf16.mxu0 %v17520_v48  ;;  %v17584_v25 = vld [vmem:[#allocation17 + $0x9c8] ss:$16 sps:$4 sm:$0xff]  }
0x1cf3   :  { %14030 = vmatprep.subr.bf16.mxu1 %v17523_v31  ;;  %v17587_v48 = vld [vmem:[#allocation17 + $0xbc8] ss:$16 sps:$4 sm:$0xff]   ;;  %v17592_v31 = vld [vmem:[#allocation17 + $0x9ac] ss:$16 sps:$4 sm:$0xff]  }
0x1cf5   :  { %13988 = vmatpush2.bf16.msra.mxu0 %v17518_v34  ;;  %v17595_v34 = vld [vmem:[#allocation17 + $0xbac] ss:$16 sps:$4 sm:$0xff]  }
0x1cf6   :  { %14031 = vmatpush2.bf16.msra.mxu1 %v17521_v17  ;;  %13989 = vmatprep.subr.bf16.mxu0 %v17526_v7  ;;  %v17590_v17 = vld [vmem:[#allocation17 + $0x9a8] ss:$16 sps:$4 sm:$0xff]  }
0x1cf7   :  { %14032 = vmatprep.subr.bf16.mxu1 %v17529_v58  ;;  %v17593_v7 = vld [vmem:[#allocation17 + $0xba8] ss:$16 sps:$4 sm:$0xff]   ;;  %v17598_v58 = vld [vmem:[#allocation17 + $0x98c] ss:$16 sps:$4 sm:$0xff]  }
0x1cf9   :  { %13990 = vmatpush2.bf16.msra.mxu0 %v17524_v63  ;;  %v17601_v63 = vld [vmem:[#allocation17 + $0xb8c] ss:$16 sps:$4 sm:$0xff]  }
0x1cfa   :  { %14033 = vmatpush2.bf16.msra.mxu1 %v17527_v46  ;;  %14045 = vmatprep.subr.bf16.mxu0 %v17532_v44  ;;  %v17596_v46 = vld [vmem:[#allocation17 + $0x988] ss:$16 sps:$4 sm:$0xff]  }
0x1cfb   :  { %14088 = vmatprep.subr.bf16.mxu1 %v17535_v62  ;;  %v17599_v44 = vld [vmem:[#allocation17 + $0xb88] ss:$16 sps:$4 sm:$0xff]   ;;  %v17604_v62 = vld [vmem:[#allocation17 + $0x96c] ss:$16 sps:$4 sm:$0xff]  }
0x1cfc   :  { %13992 = vmatmul.mubr.bf16.vlgmr.msra.gmra.mxu0 %v19082_v15  ;;  %v17545_v15 = vld [vmem:[#allocation17 + $0xaa8] ss:$16 sps:$4 sm:$0xff]  }
0x1cfd   :  { %14035 = vmatmul.mubr.bf16.vlgmr.msra.gmra.mxu1 %v19100_v43  ;;  %14046 = vmatpush1.bf16.msra.mxu0 %v17530_v37  ;;  %v17553_v43 = vld [vmem:[#allocation17 + $0xa8c] ss:$16 sps:$4 sm:$0xff]  }
0x1cfe   :  { %14077 = vmatprep.mubr.bf16.mxu0 %v19180_v30  ;;  %14089 = vmatpush1.bf16.msra.mxu1 %v17533_v22  ;;  %v17551_v30 = vld [vmem:[#allocation17 + $0xa88] ss:$16 sps:$4 sm:$0xff]   ;;  %v17607_v37 = vld [vmem:[#allocation17 + $0xb6c] ss:$16 sps:$4 sm:$0xff]  }
0x1cff   :  { %14120 = vmatprep.mubr.bf16.mxu1 %v19183_v3  ;;  %14047 = vmatprep.subr.bf16.mxu0 %v17538_v1  ;;  %v17554_v3 = vld [vmem:[#allocation17 + $0x868] ss:$16 sps:$4 sm:$0xff]  }
0x1d00   :  { %14090 = vmatprep.subr.bf16.mxu1 %v17541_v51  ;;  %v17602_v22 = vld [vmem:[#allocation17 + $0x968] ss:$16 sps:$4 sm:$0xff]   ;;  %v17610_v51 = vld [vmem:[#allocation17 + $0x94c] ss:$16 sps:$4 sm:$0xff]  }
0x1d01   :  { %14048 = vmatpush1.bf16.msra.mxu0 %v17536_v57  ;;  %v17605_v1 = vld [vmem:[#allocation17 + $0xb68] ss:$16 sps:$4 sm:$0xff]   ;;  %v17613_v57 = vld [vmem:[#allocation17 + $0xb4c] ss:$16 sps:$4 sm:$0xff]  }
0x1d02   :  { %14091 = vmatpush1.bf16.msra.mxu1 %v17539_v0  ;;  %14049 = vmatprep.subr.bf16.mxu0 %v17544_v10  ;;  %v17608_v0 = vld [vmem:[#allocation17 + $0x948] ss:$16 sps:$4 sm:$0xff]  }
0x1d03   :  { %14092 = vmatprep.subr.bf16.mxu1 %v17547_v40  ;;  %v17611_v10 = vld [vmem:[#allocation17 + $0xb48] ss:$16 sps:$4 sm:$0xff]   ;;  %v17616_v40 = vld [vmem:[#allocation17 + $0x92c] ss:$16 sps:$4 sm:$0xff]  }
0x1d05   :  { %14050 = vmatpush1.bf16.msra.mxu0 %v17542_v39  ;;  %v17619_v39 = vld [vmem:[#allocation17 + $0xb2c] ss:$16 sps:$4 sm:$0xff]  }
0x1d06   :  { %14093 = vmatpush1.bf16.msra.mxu1 %v17545_v15  ;;  %14051 = vmatprep.subr.bf16.mxu0 %v17550_v14  ;;  %v17614_v15 = vld [vmem:[#allocation17 + $0x928] ss:$16 sps:$4 sm:$0xff]  }
0x1d07   :  { %14094 = vmatprep.subr.bf16.mxu1 %v17553_v43  ;;  %v17617_v14 = vld [vmem:[#allocation17 + $0xb28] ss:$16 sps:$4 sm:$0xff]   ;;  %v17622_v43 = vld [vmem:[#allocation17 + $0x90c] ss:$16 sps:$4 sm:$0xff]  }
0x1d09   :  { %14052 = vmatpush1.bf16.msra.mxu0 %v17548_v12  ;;  %v17625_v12 = vld [vmem:[#allocation17 + $0xb0c] ss:$16 sps:$4 sm:$0xff]  }
0x1d0a   :  { %14095 = vmatpush1.bf16.msra.mxu1 %v17551_v30  ;;  %14053 = vmatprep.subr.bf16.mxu0 %v17556_v53  ;;  %v17620_v30 = vld [vmem:[#allocation17 + $0x908] ss:$16 sps:$4 sm:$0xff]  }
0x1d0b   :  { %14096 = vmatprep.subr.bf16.mxu1 %v17559_v23  ;;  %v17623_v53 = vld [vmem:[#allocation17 + $0xb08] ss:$16 sps:$4 sm:$0xff]   ;;  %v17628_v23 = vld [vmem:[#allocation17 + $0xcec] ss:$16 sps:$4 sm:$0xff]  }
0x1d0d   :  { %14054 = vmatpush1.bf16.msra.mxu0 %v17554_v3  ;;  %v17631_v3 = vld [vmem:[#allocation17 + $0xeec] ss:$16 sps:$4 sm:$0xff]  }
0x1d0e   :  { %14097 = vmatpush1.bf16.msra.mxu1 %v17557_v32  ;;  %14055 = vmatprep.subr.bf16.mxu0 %v17562_v45  ;;  %v17626_v32 = vld [vmem:[#allocation17 + $0xce8] ss:$16 sps:$4 sm:$0xff]  }
0x1d0f   :  { %14098 = vmatprep.subr.bf16.mxu1 %v17565_v27  ;;  %v17629_v45 = vld [vmem:[#allocation17 + $0xee8] ss:$16 sps:$4 sm:$0xff]   ;;  %v17634_v27 = vld [vmem:[#allocation17 + $0xccc] ss:$16 sps:$4 sm:$0xff]  }
0x1d11   :  { %14056 = vmatpush1.bf16.msra.mxu0 %v17560_v19  ;;  %v17637_v19 = vld [vmem:[#allocation17 + $0xecc] ss:$16 sps:$4 sm:$0xff]  }
0x1d12   :  { %14099 = vmatpush1.bf16.msra.mxu1 %v17563_v20  ;;  %14057 = vmatprep.subr.bf16.mxu0 %v17568_v11  ;;  %v17632_v20 = vld [vmem:[#allocation17 + $0xcc8] ss:$16 sps:$4 sm:$0xff]  }
0x1d13   :  { %14100 = vmatprep.subr.bf16.mxu1 %v17571_v35  ;;  %v17635_v11 = vld [vmem:[#allocation17 + $0xec8] ss:$16 sps:$4 sm:$0xff]   ;;  %v17640_v35 = vld [vmem:[#allocation17 + $0xcac] ss:$16 sps:$4 sm:$0xff]  }
0x1d15   :  { %14058 = vmatpush1.bf16.msra.mxu0 %v17566_v59  ;;  %v17643_v59 = vld [vmem:[#allocation17 + $0xeac] ss:$16 sps:$4 sm:$0xff]  }
0x1d16   :  { %14101 = vmatpush1.bf16.msra.mxu1 %v17569_v18  ;;  %14059 = vmatprep.subr.bf16.mxu0 %v17574_v56  ;;  %v17638_v18 = vld [vmem:[#allocation17 + $0xca8] ss:$16 sps:$4 sm:$0xff]   ;;  %v17646_v56 = vld [vmem:[#allocation17 + $0xc8c] ss:$16 sps:$4 sm:$0xff]  }
0x1d17   :  { %14102 = vmatprep.subr.bf16.mxu1 %v17577_v13  ;;  %v17644_v13 = vld [vmem:[#allocation17 + $0xc88] ss:$16 sps:$4 sm:$0xff]  }
0x1d19   :  { %14060 = vmatpush1.bf16.msra.mxu0 %v17572_v38  ;;  %v17652_v38 = vld [vmem:[#allocation17 + $0xc6c] ss:$16 sps:$4 sm:$0xff]  }
0x1d1a   :  { %14103 = vmatpush1.bf16.msra.mxu1 %v17575_v36  ;;  %14061 = vmatprep.subr.bf16.mxu0 %v17580_v2  ;;  %v17655_v36 = vld [vmem:[#allocation17 + $0xe6c] ss:$16 sps:$4 sm:$0xff]   ;;  %v17653_v2 = vld [vmem:[#allocation17 + $0xe68] ss:$16 sps:$4 sm:$0xff]  }
0x1d1b   :  { %14104 = vmatprep.subr.bf16.mxu1 %v17583_v49  ;;  %v17658_v49 = vld [vmem:[#allocation17 + $0xc4c] ss:$16 sps:$4 sm:$0xff]  }
0x1d1d   :  { %14062 = vmatpush2.bf16.msra.mxu0 %v17578_v50  ;;  %v17661_v50 = vld [vmem:[#allocation17 + $0xe4c] ss:$16 sps:$4 sm:$0xff]  }
0x1d1e   :  { %14105 = vmatpush2.bf16.msra.mxu1 %v17581_v33  ;;  %14063 = vmatprep.subr.bf16.mxu0 %v17586_v26  ;;  %v17656_v33 = vld [vmem:[#allocation17 + $0xc48] ss:$16 sps:$4 sm:$0xff]  }
0x1d1f   :  { %14106 = vmatprep.subr.bf16.mxu1 %v17589_v42  ;;  %v17659_v26 = vld [vmem:[#allocation17 + $0xe48] ss:$16 sps:$4 sm:$0xff]   ;;  %v17664_v42 = vld [vmem:[#allocation17 + $0xc2c] ss:$16 sps:$4 sm:$0xff]  }
0x1d21   :  { %14064 = vmatpush2.bf16.msra.mxu0 %v17584_v25  ;;  %v17667_v25 = vld [vmem:[#allocation17 + $0xe2c] ss:$16 sps:$4 sm:$0xff]  }
0x1d22   :  { %14107 = vmatpush2.bf16.msra.mxu1 %v17587_v48  ;;  %14065 = vmatprep.subr.bf16.mxu0 %v17592_v31  ;;  %v17662_v48 = vld [vmem:[#allocation17 + $0xc28] ss:$16 sps:$4 sm:$0xff]  }
0x1d23   :  { %14108 = vmatprep.subr.bf16.mxu1 %v17595_v34  ;;  %v17665_v31 = vld [vmem:[#allocation17 + $0xe28] ss:$16 sps:$4 sm:$0xff]   ;;  %v17670_v34 = vld [vmem:[#allocation17 + $0xc0c] ss:$16 sps:$4 sm:$0xff]  }
0x1d25   :  { %14066 = vmatpush2.bf16.msra.mxu0 %v17590_v17  ;;  %v17673_v17 = vld [vmem:[#allocation17 + $0xe0c] ss:$16 sps:$4 sm:$0xff]  }
0x1d26   :  { %14109 = vmatpush2.bf16.msra.mxu1 %v17593_v7  ;;  %14067 = vmatprep.subr.bf16.mxu0 %v17598_v58  ;;  %v17668_v7 = vld [vmem:[#allocation17 + $0xc08] ss:$16 sps:$4 sm:$0xff]  }
0x1d27   :  { %14110 = vmatprep.subr.bf16.mxu1 %v17601_v63  ;;  %v17671_v58 = vld [vmem:[#allocation17 + $0xe08] ss:$16 sps:$4 sm:$0xff]   ;;  %v17676_v63 = vld [vmem:[#allocation17 + $0xdec] ss:$16 sps:$4 sm:$0xff]  }
0x1d29   :  { %14068 = vmatpush2.bf16.msra.mxu0 %v17596_v46  ;;  %v17679_v46 = vld [vmem:[#allocation17 + $0xfec] ss:$16 sps:$4 sm:$0xff]  }
0x1d2a   :  { %14111 = vmatpush2.bf16.msra.mxu1 %v17599_v44  ;;  %14069 = vmatprep.subr.bf16.mxu0 %v17604_v62  ;;  %v17674_v44 = vld [vmem:[#allocation17 + $0xde8] ss:$16 sps:$4 sm:$0xff]  }
0x1d2b   :  { %14112 = vmatprep.subr.bf16.mxu1 %v17607_v37  ;;  %v17677_v62 = vld [vmem:[#allocation17 + $0xfe8] ss:$16 sps:$4 sm:$0xff]   ;;  %v17682_v37 = vld [vmem:[#allocation17 + $0xdcc] ss:$16 sps:$4 sm:$0xff]  }
0x1d2d   :  { %14070 = vmatpush2.bf16.msra.mxu0 %v17602_v22  ;;  %v17685_v22 = vld [vmem:[#allocation17 + $0xfcc] ss:$16 sps:$4 sm:$0xff]  }
0x1d2e   :  { %14113 = vmatpush2.bf16.msra.mxu1 %v17605_v1  ;;  %14071 = vmatprep.subr.bf16.mxu0 %v17610_v51  ;;  %v17680_v1 = vld [vmem:[#allocation17 + $0xdc8] ss:$16 sps:$4 sm:$0xff]  }
0x1d2f   :  { %14114 = vmatprep.subr.bf16.mxu1 %v17613_v57  ;;  %v17683_v51 = vld [vmem:[#allocation17 + $0xfc8] ss:$16 sps:$4 sm:$0xff]   ;;  %v17688_v57 = vld [vmem:[#allocation17 + $0xdac] ss:$16 sps:$4 sm:$0xff]  }
0x1d31   :  { %14072 = vmatpush2.bf16.msra.mxu0 %v17608_v0  ;;  %v17691_v0 = vld [vmem:[#allocation17 + $0xfac] ss:$16 sps:$4 sm:$0xff]  }
0x1d32   :  { %14115 = vmatpush2.bf16.msra.mxu1 %v17611_v10  ;;  %14073 = vmatprep.subr.bf16.mxu0 %v17616_v40  ;;  %v17686_v10 = vld [vmem:[#allocation17 + $0xda8] ss:$16 sps:$4 sm:$0xff]  }
0x1d33   :  { %14116 = vmatprep.subr.bf16.mxu1 %v17619_v39  ;;  %v17689_v40 = vld [vmem:[#allocation17 + $0xfa8] ss:$16 sps:$4 sm:$0xff]   ;;  %v17694_v39 = vld [vmem:[#allocation17 + $0xd8c] ss:$16 sps:$4 sm:$0xff]  }
0x1d35   :  { %14074 = vmatpush2.bf16.msra.mxu0 %v17614_v15  ;;  %v17697_v15 = vld [vmem:[#allocation17 + $0xf8c] ss:$16 sps:$4 sm:$0xff]  }
0x1d36   :  { %14117 = vmatpush2.bf16.msra.mxu1 %v17617_v14  ;;  %14075 = vmatprep.subr.bf16.mxu0 %v17622_v43  ;;  %v17692_v14 = vld [vmem:[#allocation17 + $0xd88] ss:$16 sps:$4 sm:$0xff]  }
0x1d37   :  { %14118 = vmatprep.subr.bf16.mxu1 %v17625_v12  ;;  %v17695_v43 = vld [vmem:[#allocation17 + $0xf88] ss:$16 sps:$4 sm:$0xff]   ;;  %v17700_v12 = vld [vmem:[#allocation17 + $0xd6c] ss:$16 sps:$4 sm:$0xff]  }
0x1d39   :  { %14076 = vmatpush2.bf16.msra.mxu0 %v17620_v30  ;;  %v17703_v30 = vld [vmem:[#allocation17 + $0xf6c] ss:$16 sps:$4 sm:$0xff]  }
0x1d3a   :  { %14119 = vmatpush2.bf16.msra.mxu1 %v17623_v53  ;;  %14131 = vmatprep.subr.bf16.mxu0 %v17628_v23  ;;  %v17698_v53 = vld [vmem:[#allocation17 + $0xd68] ss:$16 sps:$4 sm:$0xff]  }
0x1d3b   :  { %14174 = vmatprep.subr.bf16.mxu1 %v17631_v3  ;;  %v17701_v23 = vld [vmem:[#allocation17 + $0xf68] ss:$16 sps:$4 sm:$0xff]   ;;  %v17706_v3 = vld [vmem:[#allocation17 + $0xd4c] ss:$16 sps:$4 sm:$0xff]  }
0x1d3c   :  { %14078 = vmatmul.mubr.bf16.vlgmr.msra.gmra.mxu0 %v19134_v9  ;;  %v17641_v9 = vld [vmem:[#allocation17 + $0xea8] ss:$16 sps:$4 sm:$0xff]  }
0x1d3d   :  { %14121 = vmatmul.mubr.bf16.vlgmr.msra.gmra.mxu1 %v19166_v28  ;;  %14132 = vmatpush1.bf16.msra.mxu0 %v17626_v32  ;;  %v17649_v28 = vld [vmem:[#allocation17 + $0xe8c] ss:$16 sps:$4 sm:$0xff]  }
0x1d3e   :  { %14163 = vmatprep.mubr.bf16.mxu0 %v19200_v21  ;;  %14175 = vmatpush1.bf16.msra.mxu1 %v17629_v45  ;;  %v17647_v21 = vld [vmem:[#allocation17 + $0xe88] ss:$16 sps:$4 sm:$0xff]   ;;  %v17709_v32 = vld [vmem:[#allocation17 + $0xf4c] ss:$16 sps:$4 sm:$0xff]  }
0x1d3f   :  { %14206 = vmatprep.mubr.bf16.mxu1 %v19213_v54  ;;  %14133 = vmatprep.subr.bf16.mxu0 %v17634_v27  ;;  %v17650_v54 = vld [vmem:[#allocation17 + $0xc68] ss:$16 sps:$4 sm:$0xff]  }
0x1d40   :  { %14176 = vmatprep.subr.bf16.mxu1 %v17637_v19  ;;  %v17704_v45 = vld [vmem:[#allocation17 + $0xd48] ss:$16 sps:$4 sm:$0xff]   ;;  %v17712_v19 = vld [vmem:[#allocation17 + $0xd2c] ss:$16 sps:$4 sm:$0xff]  }
0x1d41   :  { %14134 = vmatpush1.bf16.msra.mxu0 %v17632_v20  ;;  %v17707_v27 = vld [vmem:[#allocation17 + $0xf48] ss:$16 sps:$4 sm:$0xff]   ;;  %v17715_v20 = vld [vmem:[#allocation17 + $0xf2c] ss:$16 sps:$4 sm:$0xff]  }
0x1d42   :  { %14177 = vmatpush1.bf16.msra.mxu1 %v17635_v11  ;;  %14135 = vmatprep.subr.bf16.mxu0 %v17640_v35  ;;  %v17710_v11 = vld [vmem:[#allocation17 + $0xd28] ss:$16 sps:$4 sm:$0xff]  }
0x1d43   :  { %14178 = vmatprep.subr.bf16.mxu1 %v17643_v59  ;;  %v17713_v35 = vld [vmem:[#allocation17 + $0xf28] ss:$16 sps:$4 sm:$0xff]   ;;  %v17718_v59 = vld [vmem:[#allocation17 + $0xd0c] ss:$16 sps:$4 sm:$0xff]  }
0x1d45   :  { %14136 = vmatpush1.bf16.msra.mxu0 %v17638_v18  ;;  %v17721_v18 = vld [vmem:[#allocation17 + $0xf0c] ss:$16 sps:$4 sm:$0xff]  }
0x1d46   :  { %14179 = vmatpush1.bf16.msra.mxu1 %v17641_v9  ;;  %14137 = vmatprep.subr.bf16.mxu0 %v17646_v56  ;;  %v17716_v9 = vld [vmem:[#allocation17 + $0xd08] ss:$16 sps:$4 sm:$0xff]  }
0x1d47   :  { %14180 = vmatprep.subr.bf16.mxu1 %v17649_v28  ;;  %v17719_v56 = vld [vmem:[#allocation17 + $0xf08] ss:$16 sps:$4 sm:$0xff]   ;;  %v13563_v28 = vpop.f32.mrf.mxu0 }
0x1d49   :  { %14138 = vmatpush1.bf16.msra.mxu0 %v17644_v13  ;;  %v13606_v13 = vpop.f32.mrf.mxu1 }
0x1d4a   :  { %14181 = vmatpush1.bf16.msra.mxu1 %v17647_v21  ;;  %14139 = vmatprep.subr.bf16.mxu0 %v17652_v38  ;;  %v13565_v21 = vpop.f32.mrf.mxu0 }
0x1d4b   :  { %14182 = vmatprep.subr.bf16.mxu1 %v17655_v36  ;;  %v13608_v38 = vpop.f32.mrf.mxu1 }
0x1d4c   :  { %v13567_v36 = vpop.f32.mrf.mxu0 }
0x1d4d   :  { %14140 = vmatpush1.bf16.msra.mxu0 %v17650_v54  ;;  %v13610_v54 = vpop.f32.mrf.mxu1 }
0x1d4e   :  { %14183 = vmatpush1.bf16.msra.mxu1 %v17653_v2  ;;  %14141 = vmatprep.subr.bf16.mxu0 %v17658_v49  ;;  %v13569_v2 = vpop.f32.mrf.mxu0 }
0x1d4f   :  { %14184 = vmatprep.subr.bf16.mxu1 %v17661_v50  ;;  %v13612_v49 = vpop.f32.mrf.mxu1 }
0x1d50   :  { %v13649_v50 = vpop.f32.mrf.mxu0 }
0x1d51   :  { %14142 = vmatpush1.bf16.msra.mxu0 %v17656_v33  ;;  %v13692_v33 = vpop.f32.mrf.mxu1 }
0x1d52   :  { %14185 = vmatpush1.bf16.msra.mxu1 %v17659_v26  ;;  %14143 = vmatprep.subr.bf16.mxu0 %v17664_v42  ;;  %v13651_v26 = vpop.f32.mrf.mxu0 }
0x1d53   :  { %14186 = vmatprep.subr.bf16.mxu1 %v17667_v25  ;;  %v13694_v42 = vpop.f32.mrf.mxu1 }
0x1d54   :  { %v13653_v25 = vpop.f32.mrf.mxu0 }
0x1d55   :  { %14144 = vmatpush1.bf16.msra.mxu0 %v17662_v48  ;;  %v19241_v48 = vpop.f32.mrf.mxu1 }
0x1d56   :  { %14187 = vmatpush1.bf16.msra.mxu1 %v17665_v31  ;;  %14145 = vmatprep.subr.bf16.mxu0 %v17670_v34  ;;  %v13655_v31 = vpop.f32.mrf.mxu0 }
0x1d57   :  { %14188 = vmatprep.subr.bf16.mxu1 %v17673_v17  ;;  %v13698_v34 = vpop.f32.mrf.mxu1 }
0x1d59   :  { %14146 = vmatpush1.bf16.msra.mxu0 %v17668_v7  ;;  %v19243_v17 = vpop.f32.mrf.mxu1 }
0x1d5a   :  { %14189 = vmatpush1.bf16.msra.mxu1 %v17671_v58  ;;  %14147 = vmatprep.subr.bf16.mxu0 %v17676_v63 }
0x1d5b   :  { %14190 = vmatprep.subr.bf16.mxu1 %v17679_v46  ;;  %v13780_v7 = vpop.f32.mrf.mxu1 }
0x1d5d   :  { %14148 = vmatpush2.bf16.msra.mxu0 %v17674_v44  ;;  %v19247_v63 = vpop.f32.mrf.mxu1 }
0x1d5e   :  { %14191 = vmatpush2.bf16.msra.mxu1 %v17677_v62  ;;  %14149 = vmatprep.subr.bf16.mxu0 %v17682_v37 }
0x1d5f   :  { %14192 = vmatprep.subr.bf16.mxu1 %v17685_v22  ;;  %v19249_v44 = vpop.f32.mrf.mxu1 }
0x1d61   :  { %14150 = vmatpush2.bf16.msra.mxu0 %v17680_v1  ;;  %v19253_v37 = vpop.f32.mrf.mxu1 }
0x1d62   :  { %14193 = vmatpush2.bf16.msra.mxu1 %v17683_v51  ;;  %14151 = vmatprep.subr.bf16.mxu0 %v17688_v57 }
0x1d63   :  { %14194 = vmatprep.subr.bf16.mxu1 %v17691_v0  ;;  %v19255_v1 = vpop.f32.mrf.mxu1 }
0x1d65   :  { %14152 = vmatpush2.bf16.msra.mxu0 %v17686_v10  ;;  %v19259_v57 = vpop.f32.mrf.mxu1 }
0x1d66   :  { %14195 = vmatpush2.bf16.msra.mxu1 %v17689_v40  ;;  %14153 = vmatprep.subr.bf16.mxu0 %v17694_v39  ;;  %19364 = vst [vmem:[#allocation45_spill] sm:$0xff] %v19259_v57 }
0x1d67   :  { %14196 = vmatprep.subr.bf16.mxu1 %v17697_v15  ;;  %v19263_v10 = vpop.f32.mrf.mxu1 }
0x1d68   :  { %19365 = vst [vmem:[#allocation46_spill] sm:$0xff] %v19263_v10 }
0x1d69   :  { %14154 = vmatpush2.bf16.msra.mxu0 %v17692_v14 }
0x1d6a   :  { %14197 = vmatpush2.bf16.msra.mxu1 %v17695_v43  ;;  %14155 = vmatprep.subr.bf16.mxu0 %v17700_v12 }
0x1d6b   :  { %14198 = vmatprep.subr.bf16.mxu1 %v17703_v30  ;;  %v10947_v30 = vld [vmem:[#allocation19] sm:$0xf] }
0x1d6d   :  { %14156 = vmatpush2.bf16.msra.mxu0 %v17698_v53  ;;  %v10956_v53 = vrot.slane %v10947_v30, %v18212_v29  ;;  %v10964_v29 = vrot.slane %v10947_v30, %v18237_v52 }
0x1d6e   :  { %14199 = vmatpush2.bf16.msra.mxu1 %v17701_v23  ;;  %14157 = vmatprep.subr.bf16.mxu0 %v17706_v3 }
0x1d6f   :  { %14200 = vmatprep.subr.bf16.mxu1 %v17709_v32  ;;  %v10952_v32 = vrot.slane %v10947_v30, %v18267_v24 }
0x1d71   :  { %14158 = vmatpush2.bf16.msra.mxu0 %v17704_v45  ;;  %v13568_v55 = vadd.f32 %v13567_v36, %v10952_v32 }
0x1d72   :  { %14201 = vmatpush2.bf16.msra.mxu1 %v17707_v27  ;;  %14159 = vmatprep.subr.bf16.mxu0 %v17712_v19  ;;  %v13566_v19 = vadd.f32 %v13565_v21, %v10956_v53 }
0x1d73   :  { %14202 = vmatprep.subr.bf16.mxu1 %v17715_v20  ;;  %v13564_v20 = vadd.f32 %v13563_v28, %v10952_v32  ;;  %v13611_v60 = vadd.f32 %v13610_v54, %v13568_v55 }
0x1d75   :  { %14160 = vmatpush2.bf16.msra.mxu0 %v17710_v11 }
0x1d76   :  { %14203 = vmatpush2.bf16.msra.mxu1 %v17713_v35  ;;  %14161 = vmatprep.subr.bf16.mxu0 %v17718_v59  ;;  %v13609_v59 = vadd.f32 %v13608_v38, %v13566_v19 }
0x1d77   :  { %14204 = vmatprep.subr.bf16.mxu1 %v17721_v18  ;;  %v13570_v18 = vadd.f32 %v13569_v2, %v10956_v53  ;;  %v13654_v2 = vadd.f32 %v13653_v25, %v13611_v60 }
0x1d78   :  { %v13652_v4 = vadd.f32 %v13651_v26, %v13609_v59 }
0x1d79   :  { %14162 = vmatpush2.bf16.msra.mxu0 %v17716_v9  ;;  %v10960_v9 = vrot.slane %v10947_v30, %v18230_v47  ;;  %v13613_v8 = vadd.f32 %v13612_v49, %v13570_v18 }
0x1d7a   :  { %14205 = vmatpush2.bf16.msra.mxu1 %v17719_v56  ;;  %v13607_v56 = vadd.f32 %v13606_v13, %v13564_v20  ;;  %v13695_v10 = vadd.f32 %v13694_v42, %v13652_v4  ;;  %v19368_v20 = vld [vmem:[#allocation46_spill] sm:$0xff] }
0x1d7b   :  { %v13656_v21 = vadd.f32 %v13655_v31, %v13613_v8 }
0x1d7c   :  { %14164 = vmatmul.mubr.bf16.vlgmr.msra.gmra.mxu0 %v19192_v61  ;;  %v13735_v61 = vpop.f32.mrf.mxu0  ;;  %v13650_v57 = vadd.f32 %v13649_v50, %v13607_v56  ;;  %v13697_v50 = vadd.f32 %v19241_v48, %v13654_v2 }
0x1d7d   :  { %14207 = vmatmul.mubr.bf16.vlgmr.msra.gmra.mxu1 %v19221_v41  ;;  %v13950_v39 = vpop.f32.mrf.mxu1  ;;  %v13699_v32 = vadd.f32 %v13698_v34, %v13656_v21 }
0x1d7e   :  { %v13737_v41 = vpop.f32.mrf.mxu0  ;;  %v13693_v38 = vadd.f32 %v13692_v33, %v13650_v57 }
0x1d7f   :  { %v13952_v14 = vpop.f32.mrf.mxu1  ;;  %v13738_v53 = vadd.f32 %v13737_v41, %v13695_v10 }
0x1d80   :  { %v19245_v58 = vpop.f32.mrf.mxu0  ;;  %v13736_v19 = vadd.f32 %v13735_v61, %v13693_v38  ;;  %v19371_v38 = vld [vmem:[#allocation37_spill] sm:$0xff] }
0x1d81   :  { %v13954_v12 = vpop.f32.mrf.mxu1  ;;  %v13781_v55 = vadd.f32 %v13780_v7, %v13738_v53  ;;  %v13740_v33 = vadd.f32 %v19245_v58, %v13697_v50  ;;  %v19374_v50 = vld [vmem:[#allocation38_spill] sm:$0xff] }
0x1d82   :  { %v13741_v46 = vpop.f32.mrf.mxu0  ;;  %v13779_v60 = vadd.f32 %v19243_v17, %v13736_v19 }
0x1d83   :  { %v13956_v3 = vpop.f32.mrf.mxu1  ;;  %v13742_v4 = vadd.f32 %v13741_v46, %v13699_v32 }
0x1d84   :  { %v19251_v62 = vpop.f32.mrf.mxu0 }
0x1d85   :  { %v13822_v61 = vadd.f32 %v19251_v62, %v13779_v60  ;;  %v19375_v60 = vld [vmem:[#allocation43_spill] sm:$0xff] }
0x1d86   :  { %v13823_v22 = vpop.f32.mrf.mxu0 }
0x1d87   :  { %v13824_v25 = vadd.f32 %v13823_v22, %v13781_v55 }
0x1d88   :  { %v19257_v51 = vpop.f32.mrf.mxu0 }
0x1d89   :  { %19363 = vst [vmem:[#allocation44_spill] sm:$0xff] %v19257_v51 }
0x1d8a   :  { %v19261_v0 = vpop.f32.mrf.mxu0 }
0x1d8c   :  { %v13907_v40 = vpop.f32.mrf.mxu0 }
0x1d8d   :  { %v13908_v24 = vadd.f32 %v13907_v40, %v10960_v9 }
0x1d8e   :  { %v13909_v15 = vpop.f32.mrf.mxu0 }
0x1d8f   :  { %v13910_v16 = vadd.f32 %v13909_v15, %v10964_v29  ;;  %v13951_v13 = vadd.f32 %v13950_v39, %v13908_v24  ;;  %v13783_v39 = vadd.f32 %v19247_v63, %v13740_v33  ;;  %v13867_v15 = vadd.f32 %v19255_v1, %v13824_v25 }
0x1d90   :  { %v13911_v43 = vpop.f32.mrf.mxu0 }
0x1d91   :  { %v13912_v36 = vadd.f32 %v13911_v43, %v10960_v9  ;;  %v13953_v52 = vadd.f32 %v13952_v14, %v13910_v16  ;;  %v13785_v16 = vadd.f32 %v19249_v44, %v13742_v4  ;;  %v13865_v14 = vadd.f32 %v19253_v37, %v13822_v61  ;;  %v19370_v9 = vld [vmem:[#allocation45_spill] sm:$0xff] }
0x1d92   :  { %v13913_v23 = vpop.f32.mrf.mxu0 }
0x1d93   :  { %v13914_v30 = vadd.f32 %v13913_v23, %v10964_v29  ;;  %v13955_v54 = vadd.f32 %v13954_v12, %v13912_v36  ;;  %v13828_v17 = vadd.f32 %v19261_v0, %v13785_v16 }
0x1d95   :  { %v13957_v41 = vadd.f32 %v13956_v3, %v13914_v30 }
0x1dbc   :  { %v13993_v45 = vpop.f32.mrf.mxu0 }
0x1dbd   :  { %v14036_v27 = vpop.f32.mrf.mxu1  ;;  %v13994_v49 = vadd.f32 %v13993_v45, %v13951_v13  ;;  %v19367_v45 = vld [vmem:[#allocation36_spill] sm:$0xff]  ;;  %v19372_v13 = vld [vmem:[#allocation42_spill] sm:$0xff] }
0x1dbe   :  { %v13995_v11 = vpop.f32.mrf.mxu0 }
0x1dbf   :  { %v14038_v35 = vpop.f32.mrf.mxu1  ;;  %v13996_v42 = vadd.f32 %v13995_v11, %v13953_v52  ;;  %v14037_v57 = vadd.f32 %v14036_v27, %v13994_v49  ;;  %v14218_v27 = vadd.f32 %v13867_v15, %v19367_v45  ;;  %v13871_v11 = vadd.f32 %v19368_v20, %v13828_v17  ;;  %v19373_v52 = vld [vmem:[#allocation41_spill] sm:$0xff] }
0x1dc0   :  { %v13997_v6 = vpop.f32.mrf.mxu0 }
0x1dc1   :  { %v14040_v5 = vpop.f32.mrf.mxu1  ;;  %v13998_v34 = vadd.f32 %v13997_v6, %v13955_v54  ;;  %v14039_v48 = vadd.f32 %v14038_v35, %v13996_v42  ;;  %v19366_v6 = vld [vmem:[#allocation44_spill] sm:$0xff]  ;;  %v14222_v2 = vadd.f32 %v13871_v11, %v19371_v38  ;;  %v19377_v38 = vld [vmem:[#allocation30_spill] sm:$0xff] }
0x1dc2   :  { %v13999_v28 = vpop.f32.mrf.mxu0  ;;  %v13826_v43 = vadd.f32 %v19366_v6, %v13783_v39 }
0x1dc3   :  { %v14042_v51 = vpop.f32.mrf.mxu1  ;;  %v14000_v7 = vadd.f32 %v13999_v28, %v13957_v41  ;;  %v14041_v58 = vadd.f32 %v14040_v5, %v13998_v34  ;;  %v19369_v5 = vld [vmem:[#allocation40_spill] sm:$0xff] }
0x1dc4   :  { %v14217_v18 = vadd.f32 %v13865_v14, %v19369_v5  ;;  %v13869_v37 = vadd.f32 %v19370_v9, %v13826_v43 }
0x1dc5   :  { %v14043_v12 = vadd.f32 %v14042_v51, %v14000_v7 }
0x1dc6   :  { %v14225_v28 = vadd.f32 %v14218_v27, %v14217_v18  ;;  %v14221_v30 = vadd.f32 %v13869_v37, %v19373_v52 }
0x1dfc   :  { %v14079_v47 = vpop.f32.mrf.mxu0 }
0x1dfd   :  { %v14122_v26 = vpop.f32.mrf.mxu1  ;;  %v14080_v46 = vadd.f32 %v14079_v47, %v14037_v57  ;;  %v19376_v57 = vld [vmem:[#allocation39_spill] sm:$0xff] }
0x1dfe   :  { %v14081_v8 = vpop.f32.mrf.mxu0 }
0x1dff   :  { %v14124_v31 = vpop.f32.mrf.mxu1  ;;  %v14082_v22 = vadd.f32 %v14081_v8, %v14039_v48  ;;  %v14123_v62 = vadd.f32 %v14122_v26, %v14080_v46 }
0x1e00   :  { %v14083_v10 = vpop.f32.mrf.mxu0 }
0x1e01   :  { %v14126_v40 = vpop.f32.mrf.mxu1  ;;  %v14084_v23 = vadd.f32 %v14083_v10, %v14041_v58  ;;  %v14125_v35 = vadd.f32 %v14124_v31, %v14082_v22  ;;  %v14230_v31 = vadd.f32 %v14222_v2, %v14221_v30 }
0x1e02   :  { %v14085_v44 = vpop.f32.mrf.mxu0 }
0x1e03   :  { %v14128_v3 = vpop.f32.mrf.mxu1  ;;  %v14086_v1 = vadd.f32 %v14085_v44, %v14043_v12  ;;  %v14127_v29 = vadd.f32 %v14126_v40, %v14084_v23 }
0x1e05   :  { %v14129_v47 = vadd.f32 %v14128_v3, %v14086_v1 }
0x1e3c   :  { %v14165_v63 = vpop.f32.mrf.mxu0 }
0x1e3d   :  { %v14166_v59 = vadd.f32 %v14165_v63, %v14123_v62  ;;  %v14208_v0 = vpop.f32.mrf.mxu1 }
0x1e3e   :  { %v14167_v56 = vpop.f32.mrf.mxu0 }
0x1e3f   :  { %v14209_v24 = vadd.f32 %v14208_v0, %v14166_v59  ;;  %v14168_v51 = vadd.f32 %v14167_v56, %v14125_v35  ;;  %v14210_v21 = vpop.f32.mrf.mxu1 }
0x1e40   :  { %v14169_v53 = vpop.f32.mrf.mxu0 }
0x1e41   :  { %v14219_v36 = vadd.f32 %v14209_v24, %v19372_v13  ;;  %v14211_v26 = vadd.f32 %v14210_v21, %v14168_v51  ;;  %v14170_v32 = vadd.f32 %v14169_v53, %v14127_v29  ;;  %v14212_v19 = vpop.f32.mrf.mxu1  ;;  %v19378_v53 = vld [vmem:[#allocation28_spill] sm:$0xff]  ;;  %v19379_v13 = vld [vmem:[#allocation31_spill] sm:$0xff] }
0x1e42   :  { %v14171_v49 = vpop.f32.mrf.mxu0 }
0x1e43   :  { %v14220_v55 = vadd.f32 %v14211_v26, %v19374_v50  ;;  %v14213_v4 = vadd.f32 %v14212_v19, %v14170_v32  ;;  %v14172_v8 = vadd.f32 %v14171_v49, %v14129_v47  ;;  %v14226_v54 = vadd.f32 %v14225_v28, %v14219_v36  ;;  %v14214_v42 = vpop.f32.mrf.mxu1  ;;  %v19380_v26 = vld [vmem:[#allocation29_spill] sm:$0xff] }
0x1e45   :  { %v14223_v33 = vadd.f32 %v14213_v4, %v19375_v60  ;;  %v14215_v25 = vadd.f32 %v14214_v42, %v14172_v8  ;;  %v14227_v41 = vadd.f32 %v14226_v54, %v14220_v55  ;;  %v19382_v8 = vld [vmem:[#allocation32_spill] sm:$0xff]  ;;  %v19383_v42 = vld [vmem:[#allocation35_spill] sm:$0xff]  ;;  %v19384_v60 = vld [vmem:[#allocation33_spill] sm:$0xff] }
0x1e47   :  { %v14224_v34 = vadd.f32 %v14215_v25, %v19376_v57  ;;  %14228 = vadd.xlane.f32.xlu0 %v14227_v41  ;;  %v14231_v16 = vadd.f32 %v14230_v31, %v14223_v33 }
0x1e49   :  { %v14232_v61 = vadd.f32 %v14231_v16, %v14224_v34 }
0x1e4b   :  { %14233 = vadd.xlane.f32.xlu1 %v14232_v61 }
0x1ed0   :  { %v14229_v10 = vpop.xlane.xlu0 %14228 }
0x1ed1   :  { %v14235_v48 = vmul.f32 0.001953125, %v14229_v10 }
0x1ed3   :  { %v14237_v7 = vsub.f32 %v14217_v18, %v14235_v48  ;;  %v14238_v46 = vsub.f32 %v14218_v27, %v14235_v48  ;;  %v14239_v40 = vsub.f32 %v14219_v36, %v14235_v48  ;;  %v14240_v15 = vsub.f32 %v14220_v55, %v14235_v48  ;;  %v19381_v55 = vld [vmem:[#allocation34_spill] sm:$0xff] }
0x1ed4   :  { %v14234_v39 = vpop.xlane.xlu1 %14233 }
0x1ed5   :  { %v14236_v17 = vmul.f32 0.001953125, %v14234_v39  ;;  %v14245_v58 = vmul.f32 %v14237_v7, %v14237_v7  ;;  %v14246_v22 = vmul.f32 %v14238_v46, %v14238_v46  ;;  %v14247_v14 = vmul.f32 %v14239_v40, %v14239_v40 }
0x1ed6   :  { %v14248_v62 = vmul.f32 %v14240_v15, %v14240_v15 }
0x1ed7   :  { %v14241_v6 = vsub.f32 %v14221_v30, %v14236_v17  ;;  %v14242_v43 = vsub.f32 %v14222_v2, %v14236_v17  ;;  %v14253_v44 = vadd.f32 %v14246_v22, %v14245_v58  ;;  %v14243_v12 = vsub.f32 %v14223_v33, %v14236_v17 }
0x1ed8   :  { %v14244_v3 = vsub.f32 %v14224_v34, %v14236_v17 }
0x1ed9   :  { %v14254_v23 = vadd.f32 %v14253_v44, %v14247_v14  ;;  %v14249_v45 = vmul.f32 %v14241_v6, %v14241_v6  ;;  %v14250_v20 = vmul.f32 %v14242_v43, %v14242_v43  ;;  %v14251_v63 = vmul.f32 %v14243_v12, %v14243_v12 }
0x1eda   :  { %v14252_v27 = vmul.f32 %v14244_v3, %v14244_v3 }
0x1edb   :  { %v14255_v11 = vadd.f32 %v14254_v23, %v14248_v62  ;;  %v14258_v35 = vadd.f32 %v14250_v20, %v14249_v45 }
0x1edd   :  { %14256 = vadd.xlane.f32.xlu0 %v14255_v11  ;;  %v14259_v1 = vadd.f32 %v14258_v35, %v14251_v63 }
0x1edf   :  { %v14260_v59 = vadd.f32 %v14259_v1, %v14252_v27 }
0x1ee1   :  { %14261 = vadd.xlane.f32.xlu1 %v14260_v59 }
0x1f66   :  { %v14257_v0 = vpop.xlane.xlu0 %14256 }
0x1f67   :  { %v14263_v5 = vmul.f32 0.001953125, %v14257_v0 }
0x1f69   :  { %v14265_v18 = vadd.f32 1e-05, %v14263_v5 }
0x1f6a   :  { %v14262_v9 = vpop.xlane.xlu1 %14261 }
0x1f6b   :  { %17790 = vrsqrt.f32 %v14265_v18  ;;  %v14264_v37 = vmul.f32 0.001953125, %v14262_v9 }
0x1f6d   :  { %v14266_v56 = vadd.f32 1e-05, %v14264_v37 }
0x1f6f   :  { %17792 = vrsqrt.f32 %v14266_v56 }
0x1f78   :  { %v17791_v29 = vpop.eup %17790 }
0x1f79   :  { %v14269_v24 = vmul.f32 %v17791_v29, %v14237_v7  ;;  %v14270_v51 = vmul.f32 %v17791_v29, %v14238_v46  ;;  %v14271_v21 = vmul.f32 %v17791_v29, %v14239_v40  ;;  %v14272_v28 = vmul.f32 %v17791_v29, %v14240_v15 }
0x1f7b   :  { %v14277_v2 = vmul.f32 %v14269_v24, %v19377_v38  ;;  %v14278_v47 = vmul.f32 %v14270_v51, %v19378_v53  ;;  %v14279_v36 = vmul.f32 %v14271_v21, %v19379_v13  ;;  %v14280_v32 = vmul.f32 %v14272_v28, %v19380_v26 }
0x1f7c   :  { %v17793_v19 = vpop.eup %17792 }
0x1f7d   :  { %v14273_v52 = vmul.f32 %v17793_v19, %v14241_v6  ;;  %v14274_v30 = vmul.f32 %v17793_v19, %v14242_v43  ;;  %v14275_v49 = vmul.f32 %v17793_v19, %v14243_v12  ;;  %v14276_v50 = vmul.f32 %v17793_v19, %v14244_v3 }
0x1f7e   :  { %v14285_v4 = vadd.f32 %v14277_v2, %v19381_v55  ;;  %v14286_v54 = vadd.f32 %v14278_v47, %v19382_v8  ;;  %v14287_v31 = vadd.f32 %v14279_v36, %v19383_v42  ;;  %v14288_v33 = vadd.f32 %v14280_v32, %v19384_v60 }
0x1f7f   :  { %v14281_v25 = vmul.f32 %v14273_v52, %v19377_v38  ;;  %v14282_v41 = vmul.f32 %v14274_v30, %v19378_v53  ;;  %v14283_v57 = vmul.f32 %v14275_v49, %v19379_v13  ;;  %v14284_v34 = vmul.f32 %v14276_v50, %v19380_v26 }
0x1f80   :  { %14293 = vst [vmem:[#allocation20] sm:$0xff] %v14285_v4  ;;  %14294 = vst [vmem:[#allocation20 + $0x8] sm:$0xff] %v14286_v54 }
0x1f81   :  { %14295 = vst [vmem:[#allocation20 + $0x10] sm:$0xff] %v14287_v31  ;;  %14296 = vst [vmem:[#allocation20 + $0x18] sm:$0xff] %v14288_v33  ;;  %v14289_v16 = vadd.f32 %v14281_v25, %v19381_v55  ;;  %v14290_v61 = vadd.f32 %v14282_v41, %v19382_v8  ;;  %v14291_v10 = vadd.f32 %v14283_v57, %v19383_v42 }
0x1f82   :  { %v14292_v48 = vadd.f32 %v14284_v34, %v19384_v60 }
0x1f83   :  { %14297 = vst [vmem:[#allocation20 + $0x20] sm:$0xff] %v14289_v16  ;;  %14298 = vst [vmem:[#allocation20 + $0x28] sm:$0xff] %v14290_v61 }
0x1f84   :  { %14299 = vst [vmem:[#allocation20 + $0x30] sm:$0xff] %v14291_v10  ;;  %14300 = vst [vmem:[#allocation20 + $0x38] sm:$0xff] %v14292_v48 }
0x1f85   :  { %18036 = shalt.err (!%p18033_p3)
}
0x1f86   :  { %14312 = dma.vmem_to_hbm [thread:$0]  %s14307_s10, 1024, %s19322_s11, [#allocation4], %s18071_s30, %s18071_s30, %s18072_s1  }
0x1f87   :  { %18057 = dma.done.wait [#allocation4], 1024  }
0x1f88   :  { %18058 = vsyncadd [#allocation4], 4294966272 }
0x1f89   :  { %14316 = vsyncpa [#allocation3], 1 }
0x1f8a   :  { %14317 = vsyncpa [#allocation6], 1 }
0x1f8b   :  { %14318 = vsyncpa [#allocation9], 1 }
0x1f8c   :  { %14319 = vsyncpa [#allocation12], 1 }
0x1f8d   :  { %14320 = vsyncpa [#allocation15], 1 }
0x1f8e   :  { %14321 = vsyncpa [#allocation18], 1 }
0x1f8f   :  { %14322 = vsyncpa [#allocation4], 1 }

</bundles_post_ra>
